<compile_context>
chip_gen: v7x
topology: tpu7x:2x2x1
jax: 0.10.0
libtpu: 0.0.40
codegen_flags: <defaults>
</compile_context>

<pallas_src>
import numpy as np

import jax
import jax.numpy as jnp
from jax.experimental import pallas as pl
from jax.experimental.pallas import tpu as pltpu


# ----------------------------------------------------------------------------
# Static geometry (module-level Python ints; never traced under jit)
# ----------------------------------------------------------------------------
H = W = 16
N_CLASSES = 7
CIN_PAD = 8            # conv1 input channels zero-padded 1 -> 8 (MXU-friendly K)
FC2_PAD = 128          # fc2 logits zero-padded 7 -> 128 (lane-dense output store)

# "padded-grid flat-row" layout per image: (Hp*Wp, C) rows where Hp/Wp include
# the zero-padding ring, plus a zero margin of M rows on each side so shifted
# 3x3 / pool taps never read out of bounds.  Margins chosen so total rows are
# multiples of 8 (sublane-friendly) and >= Wp+1 (max shift).
HPA, WPA, MA = H + 2, W + 2, 22     # grid A: 16x16 spatial, padded 18x18
HPB, WPB, MB = 10, 10, 14           # grid B:  8x8 spatial, padded 10x10
HPC, WPC, MC = 6, 6, 10             # grid C:  4x4 spatial, padded  6x6
RA, RB, RC = HPA * WPA, HPB * WPB, HPC * WPC          # 324, 100, 36
SA, SB, SC = RA + 2 * MA, RB + 2 * MB, RC + 2 * MC    # 368, 128, 56


# ----------------------------------------------------------------------------
# In-kernel building blocks (static slices, 2D values, MXU matmuls)
# ----------------------------------------------------------------------------
def _conv_bn_relu(in_ref, w_ref, sc_ref, sh_ref, mask_ref, out_ref, *, wp):
    """3x3 / pad-1 conv as ONE fused-K matmul + folded-BN + ReLU + pad-ring mask.

    in_ref : (rows + 2*m_in, Cin)   bf16 padded-grid slab (margins zero)
    w_ref  : (9*Cin, Cout)          bf16 weight (tap-major rows)
    sc/sh  : (1, Cout)              f32 folded BatchNorm scale/shift
    mask   : (rows, 1)              f32 1 at interior rows, 0 at pad-ring rows
    out_ref: (rows + 2*m_out, Cout) bf16 destination scratch
    """
    rows = mask_ref.shape[0]
    cout = w_ref.shape[1]
    m_in = (in_ref.shape[0] - rows) // 2
    m_out = (out_ref.shape[0] - rows) // 2

    # In-VMEM im2col: 9 contiguous row-shifted slices concatenated along lanes.
    taps = []
    for dy in range(3):
        for dx in range(3):
            off = m_in + (dy - 1) * wp + (dx - 1)          # static Python int
            taps.append(in_ref[off:off + rows, :])
    slab = jnp.concatenate(taps, axis=1)                    # (rows, 9*Cin) bf16

    acc = jnp.dot(slab, w_ref[...], preferred_element_type=jnp.float32)
    y = jnp.maximum(acc * sc_ref[...] + sh_ref[...], 0.0)   # BN(eval)+ReLU in f32
    y = y * mask_ref[...]                                   # re-zero the pad ring

    # Zero only the margin rows, then store the interior once (bf16 residency).
    out_ref[0:m_out, :] = jnp.zeros((m_out, cout), out_ref.dtype)
    out_ref[m_out:m_out + rows, :] = y.astype(out_ref.dtype)
    out_ref[m_out + rows:, :] = jnp.zeros(
        (out_ref.shape[0] - m_out - rows, cout), out_ref.dtype)


def _maxpool2x2(in_ref, p_ref, out_ref, *, wp_in):
    """2x2 max pool: fold 4 taps with VPU maxima, then one 0/1 gather matmul.

    in_ref : (rows_in + 2*m_in, C)    bf16
    p_ref  : (rows_out, rows_in)      bf16 per-image gather matrix
                                      (zero rows at pad-ring output positions)
    out_ref: (rows_out + 2*m_out, C)  bf16
    """
    rows_out, rows_in = p_ref.shape
    c = in_ref.shape[1]
    m_in = (in_ref.shape[0] - rows_in) // 2
    m_out = (out_ref.shape[0] - rows_out) // 2

    t00 = in_ref[m_in:m_in + rows_in, :]
    t01 = in_ref[m_in + 1:m_in + 1 + rows_in, :]
    t10 = in_ref[m_in + wp_in:m_in + wp_in + rows_in, :]
    t11 = in_ref[m_in + wp_in + 1:m_in + wp_in + 1 + rows_in, :]
    folded = jnp.maximum(jnp.maximum(t00, t01), jnp.maximum(t10, t11))

    pooled = jnp.dot(p_ref[...], folded, preferred_element_type=jnp.float32)

    out_ref[0:m_out, :] = jnp.zeros((m_out, c), out_ref.dtype)
    out_ref[m_out:m_out + rows_out, :] = pooled.astype(out_ref.dtype)
    out_ref[m_out + rows_out:, :] = jnp.zeros(
        (out_ref.shape[0] - m_out - rows_out, c), out_ref.dtype)


# ----------------------------------------------------------------------------
# The fused whole-network kernel (one image per grid step)
# ----------------------------------------------------------------------------
def _xsnet5_kernel(
    # --- inputs --------------------------------------------------------------
    x_ref,                                   # (SA, 8)  bf16 padded-flat image
    w1_ref, sc1_ref, sh1_ref,                # conv1: (72,16) bf16, (1,16) f32 x2
    ma_ref,                                  # (RA, 1) f32 interior mask, grid A
    p1_ref,                                  # (RB, RA) bf16 pool1 gather
    w2_ref, sc2_ref, sh2_ref,                # conv2: (144,32)
    w3_ref, sc3_ref, sh3_ref,                # conv3: (288,64)
    mb_ref,                                  # (RB, 1) f32
    p2_ref,                                  # (RC, RB) bf16 pool2 gather
    w4_ref, sc4_ref, sh4_ref,                # conv4: (576,64)
    w5_ref, sc5_ref, sh5_ref,                # conv5: (576,128)
    mc_ref,                                  # (RC, 1) f32
    wf1_ref, scf1_ref, shf1_ref,             # fc1: (128,256) bf16, (1,256) f32 x2
    wf2_ref, bf2_ref,                        # fc2: (256,128) bf16, (1,128) f32
    # --- output --------------------------------------------------------------
    out_ref,                                 # (8, 128) f32 (8 identical rows)
    # --- VMEM scratch (bf16-resident activations) ----------------------------
    a_a_ref, a_b1_ref, a_b2_ref, a_b3_ref, a_c1_ref, a_c2_ref, a_c3_ref,
):
    # features
    _conv_bn_relu(x_ref, w1_ref, sc1_ref, sh1_ref, ma_ref, a_a_ref, wp=WPA)      # 1->16
    _maxpool2x2(a_a_ref, p1_ref, a_b1_ref, wp_in=WPA)                            # 16x16 -> 8x8
    _conv_bn_relu(a_b1_ref, w2_ref, sc2_ref, sh2_ref, mb_ref, a_b2_ref, wp=WPB)  # 16->32
    _conv_bn_relu(a_b2_ref, w3_ref, sc3_ref, sh3_ref, mb_ref, a_b3_ref, wp=WPB)  # 32->64
    _maxpool2x2(a_b3_ref, p2_ref, a_c1_ref, wp_in=WPB)                           # 8x8 -> 4x4
    _conv_bn_relu(a_c1_ref, w4_ref, sc4_ref, sh4_ref, mc_ref, a_c2_ref, wp=WPC)  # 64->64
    _conv_bn_relu(a_c2_ref, w5_ref, sc5_ref, sh5_ref, mc_ref, a_c3_ref, wp=WPC)  # 64->128

    # AdaptiveAvgPool2d(1): every non-interior row of the grid-C slab is zero,
    # so GAP is a plain row reduction / 16 (4x4 interior) on the XLU.
    feat = jnp.sum(a_c3_ref[...].astype(jnp.float32), axis=0, keepdims=True) * (1.0 / 16.0)
    feat8 = jnp.broadcast_to(feat, (8, 128))               # fill the 8-sublane M tile

    # classifier: Linear(128,256,no bias) -> BN1d -> ReLU -> Dropout(eval) -> Linear(256,7)
    h = jnp.dot(feat8.astype(jnp.bfloat16), wf1_ref[...],
                preferred_element_type=jnp.float32)          # (8, 256)
    h = jnp.maximum(h * scf1_ref[...] + shf1_ref[...], 0.0)
    # TODO(synk): nn.Dropout(0.3) is stochastic in training mode; eval-mode identity used here.
    logits = jnp.dot(h.astype(jnp.bfloat16), wf2_ref[...],
                     preferred_element_type=jnp.float32) + bf2_ref[...]   # (8, 128)
    out_ref[...] = logits


# ----------------------------------------------------------------------------
# Host-side per-image constants: interior masks, pooling gather matrices
# ----------------------------------------------------------------------------
def _grid_mask(hp, wp):
    m = np.zeros((hp, wp), np.float32)
    m[1:hp - 1, 1:wp - 1] = 1.0
    return jnp.asarray(m.reshape(hp * wp, 1))


def _pool_mat(hp_in, wp_in, hp_out, wp_out):
    """Per-image 0/1 gather: output interior row -> top-left tap of its 2x2 window."""
    m = np.zeros((hp_out * wp_out, hp_in * wp_in), np.float32)
    for y2 in range(1, hp_out - 1):
        for x2 in range(1, wp_out - 1):
            y1, x1 = 2 * y2 - 1, 2 * x2 - 1
            m[y2 * wp_out + x2, y1 * wp_in + x1] = 1.0
    return jnp.asarray(m, dtype=jnp.bfloat16)


# ----------------------------------------------------------------------------
# Parameters (deterministic, synthetic) + eval-mode BatchNorm folding
# ----------------------------------------------------------------------------
def fold_bn(gamma, beta, mean, var, eps=1e-5):
    scale = gamma / jnp.sqrt(var + eps)
    shift = beta - mean * scale
    return scale, shift


def init_params(key):
    keys = jax.random.split(key, 8)

    def conv_params(k, cin, cout, cin_pad=None):
        k1, k2, k3, k4, k5 = jax.random.split(k, 5)
        w = jax.random.normal(k1, (3, 3, cin, cout), jnp.float32) * (2.0 / (9 * cin)) ** 0.5
        if cin_pad is not None and cin_pad > cin:
            w = jnp.pad(w, ((0, 0), (0, 0), (0, cin_pad - cin), (0, 0)))
            cin = cin_pad
        gamma = 1.0 + 0.1 * jax.random.normal(k2, (cout,), jnp.float32)
        beta = 0.1 * jax.random.normal(k3, (cout,), jnp.float32)
        mean = 0.1 * jax.random.normal(k4, (cout,), jnp.float32)
        var = jnp.abs(jax.random.normal(k5, (cout,), jnp.float32)) + 0.5
        scale, shift = fold_bn(gamma, beta, mean, var)
        # tap-major weight rows: row index = tap*cin + c  (matches im2col slab)
        return (w.reshape(9 * cin, cout).astype(jnp.bfloat16),
                scale.reshape(1, cout).astype(jnp.float32),
                shift.reshape(1, cout).astype(jnp.float32))

    p = {
        "conv1": conv_params(keys[0], 1, 16, cin_pad=CIN_PAD),
        "conv2": conv_params(keys[1], 16, 32),
        "conv3": conv_params(keys[2], 32, 64),
        "conv4": conv_params(keys[3], 64, 64),
        "conv5": conv_params(keys[4], 64, 128),
    }

    # fc1: Linear(128, 256, bias=False) + BatchNorm1d(256), folded to scale/shift.
    k1, k2, k3, k4, k5 = jax.random.split(keys[5], 5)
    wf1 = jax.random.normal(k1, (128, 256), jnp.float32) * (2.0 / 128) ** 0.5
    g1 = 1.0 + 0.1 * jax.random.normal(k2, (256,), jnp.float32)
    b1 = 0.1 * jax.random.normal(k3, (256,), jnp.float32)
    m1 = 0.1 * jax.random.normal(k4, (256,), jnp.float32)
    v1 = jnp.abs(jax.random.normal(k5, (256,), jnp.float32)) + 0.5
    s1, sh1 = fold_bn(g1, b1, m1, v1)
    p["fc1"] = (wf1.astype(jnp.bfloat16),
                s1.reshape(1, 256).astype(jnp.float32),
                sh1.reshape(1, 256).astype(jnp.float32))

    # fc2: Linear(256, 7) with bias; zero-padded to 128 output lanes.
    k1, k2 = jax.random.split(keys[6], 2)
    wf2 = jax.random.normal(k1, (256, N_CLASSES), jnp.float32) * (1.0 / 256) ** 0.5
    bf2 = 0.01 * jax.random.normal(k2, (N_CLASSES,), jnp.float32)
    wf2 = jnp.pad(wf2, ((0, 0), (0, FC2_PAD - N_CLASSES)))
    bf2 = jnp.pad(bf2, (0, FC2_PAD - N_CLASSES)).reshape(1, FC2_PAD)
    p["fc2"] = (wf2.astype(jnp.bfloat16), bf2.astype(jnp.float32))

    # Per-image gather/mask constants (geometry only; batch-independent arrays).
    p["mask_a"] = _grid_mask(HPA, WPA)
    p["mask_b"] = _grid_mask(HPB, WPB)
    p["mask_c"] = _grid_mask(HPC, WPC)
    p["pool1"] = _pool_mat(HPA, WPA, HPB, WPB)
    p["pool2"] = _pool_mat(HPB, WPB, HPC, WPC)
    return p


# ----------------------------------------------------------------------------
# Forward pass
# ----------------------------------------------------------------------------
def _prep_input(x_nchw):
    """NCHW (N,1,16,16) -> per-image padded-grid flat rows (N, SA, 8) bf16."""
    n = x_nchw.shape[0]
    x = jnp.transpose(x_nchw, (0, 2, 3, 1))                        # NHWC
    x = jnp.pad(x, ((0, 0), (1, 1), (1, 1), (0, CIN_PAD - 1)))     # pad ring + channel pad
    x = x.reshape(n, HPA * WPA, CIN_PAD)
    x = jnp.pad(x, ((0, 0), (MA, MA), (0, 0)))                     # zero margins
    return x.astype(jnp.bfloat16)


@jax.jit
def xsnet5_forward(x_nchw, params):
    batch = x_nchw.shape[0]
    x_flat = _prep_input(x_nchw)                                   # (batch, SA, 8) bf16

    args = (
        x_flat,
        *params["conv1"], params["mask_a"], params["pool1"],
        *params["conv2"], *params["conv3"], params["mask_b"], params["pool2"],
        *params["conv4"], *params["conv5"], params["mask_c"],
        *params["fc1"], *params["fc2"],
    )

    # Per-image block for x; all weights/masks/pool matrices are whole-array
    # blocks with constant index maps (fetched once, resident across the grid).
    in_specs = [pl.BlockSpec((None, SA, CIN_PAD), lambda b: (b, 0, 0))]
    in_specs += [pl.BlockSpec(a.shape, lambda b: (0, 0)) for a in args[1:]]

    out = pl.pallas_call(
        _xsnet5_kernel,
        out_shape=jax.ShapeDtypeStruct((batch, 8, FC2_PAD), jnp.float32),
        grid=(batch,),
        in_specs=in_specs,
        out_specs=pl.BlockSpec((None, 8, FC2_PAD), lambda b: (b, 0, 0)),
        scratch_shapes=[
            pltpu.VMEM((SA, 16), jnp.bfloat16),    # conv1 out (grid A)
            pltpu.VMEM((SB, 16), jnp.bfloat16),    # pool1 out (grid B)
            pltpu.VMEM((SB, 32), jnp.bfloat16),    # conv2 out (grid B)
            pltpu.VMEM((SB, 64), jnp.bfloat16),    # conv3 out (grid B)
            pltpu.VMEM((SC, 64), jnp.bfloat16),    # pool2 out (grid C)
            pltpu.VMEM((SC, 64), jnp.bfloat16),    # conv4 out (grid C)
            pltpu.VMEM((SC, 128), jnp.bfloat16),   # conv5 out (grid C)
        ],
        compiler_params=pltpu.CompilerParams(
            dimension_semantics=("parallel",),
            vmem_limit_bytes=32 * 1024 * 1024),    # actual use ~2-3 MiB; safe on v7x 64 MiB
    )(*args)

    # 8 identical sublane rows per image; slice the 7 real logits.
    return out[:, 0, :N_CLASSES]


if __name__ == "__main__":
    key = jax.random.PRNGKey(0)
    k_x, k_p = jax.random.split(key)
    batch = 2
    x = jax.random.normal(k_x, (batch, 1, 16, 16), jnp.float32)    # NCHW, 1-channel 16x16
    params = init_params(k_p)

    logits = xsnet5_forward(x, params)
    jax.block_until_ready(logits)
    assert logits.shape == (batch, N_CLASSES) and logits.dtype == jnp.float32
    assert bool(jnp.all(jnp.isfinite(logits)))
    print("KERNEL_OK")
</pallas_src>

<mosaic_0001>
module attributes {stable_mosaic.version = 11 : i64} {
  func.func @_xsnet5_kernel(%arg0: i32, %arg1: memref<1x368x8xbf16, #tpu.memory_space<vmem>>, %arg2: memref<72x16xbf16, #tpu.memory_space<vmem>>, %arg3: memref<1x16xf32, #tpu.memory_space<vmem>>, %arg4: memref<1x16xf32, #tpu.memory_space<vmem>>, %arg5: memref<324x1xf32, #tpu.memory_space<vmem>>, %arg6: memref<100x324xbf16, #tpu.memory_space<vmem>>, %arg7: memref<144x32xbf16, #tpu.memory_space<vmem>>, %arg8: memref<1x32xf32, #tpu.memory_space<vmem>>, %arg9: memref<1x32xf32, #tpu.memory_space<vmem>>, %arg10: memref<288x64xbf16, #tpu.memory_space<vmem>>, %arg11: memref<1x64xf32, #tpu.memory_space<vmem>>, %arg12: memref<1x64xf32, #tpu.memory_space<vmem>>, %arg13: memref<100x1xf32, #tpu.memory_space<vmem>>, %arg14: memref<36x100xbf16, #tpu.memory_space<vmem>>, %arg15: memref<576x64xbf16, #tpu.memory_space<vmem>>, %arg16: memref<1x64xf32, #tpu.memory_space<vmem>>, %arg17: memref<1x64xf32, #tpu.memory_space<vmem>>, %arg18: memref<576x128xbf16, #tpu.memory_space<vmem>>, %arg19: memref<1x128xf32, #tpu.memory_space<vmem>>, %arg20: memref<1x128xf32, #tpu.memory_space<vmem>>, %arg21: memref<36x1xf32, #tpu.memory_space<vmem>>, %arg22: memref<128x256xbf16, #tpu.memory_space<vmem>>, %arg23: memref<1x256xf32, #tpu.memory_space<vmem>>, %arg24: memref<1x256xf32, #tpu.memory_space<vmem>>, %arg25: memref<256x128xbf16, #tpu.memory_space<vmem>>, %arg26: memref<1x128xf32, #tpu.memory_space<vmem>>, %arg27: memref<1x8x128xf32, #tpu.memory_space<vmem>>, %arg28: memref<368x16xbf16, #tpu.memory_space<vmem>>, %arg29: memref<128x16xbf16, #tpu.memory_space<vmem>>, %arg30: memref<128x32xbf16, #tpu.memory_space<vmem>>, %arg31: memref<128x64xbf16, #tpu.memory_space<vmem>>, %arg32: memref<56x64xbf16, #tpu.memory_space<vmem>>, %arg33: memref<56x64xbf16, #tpu.memory_space<vmem>>, %arg34: memref<56x128xbf16, #tpu.memory_space<vmem>>) attributes {dimension_semantics = [#tpu.dimension_semantics<parallel>], iteration_bounds = array<i64: 2>, scalar_prefetch = 0 : i64, scratch_operands = 7 : i64, tpu.core_type = #tpu.core_type<tc>, window_params = [{transform_indices = @transform_0, window_bounds = array<i64: 1, 368, 8>}, {pipeline_mode = #tpu.pipeline_mode<synchronous>, transform_indices = @transform_1, window_bounds = array<i64: 72, 16>}, {pipeline_mode = #tpu.pipeline_mode<synchronous>, transform_indices = @transform_2, window_bounds = array<i64: 1, 16>}, {pipeline_mode = #tpu.pipeline_mode<synchronous>, transform_indices = @transform_3, window_bounds = array<i64: 1, 16>}, {pipeline_mode = #tpu.pipeline_mode<synchronous>, transform_indices = @transform_4, window_bounds = array<i64: 324, 1>}, {pipeline_mode = #tpu.pipeline_mode<synchronous>, transform_indices = @transform_5, window_bounds = array<i64: 100, 324>}, {pipeline_mode = #tpu.pipeline_mode<synchronous>, transform_indices = @transform_6, window_bounds = array<i64: 144, 32>}, {pipeline_mode = #tpu.pipeline_mode<synchronous>, transform_indices = @transform_7, window_bounds = array<i64: 1, 32>}, {pipeline_mode = #tpu.pipeline_mode<synchronous>, transform_indices = @transform_8, window_bounds = array<i64: 1, 32>}, {pipeline_mode = #tpu.pipeline_mode<synchronous>, transform_indices = @transform_9, window_bounds = array<i64: 288, 64>}, {pipeline_mode = #tpu.pipeline_mode<synchronous>, transform_indices = @transform_10, window_bounds = array<i64: 1, 64>}, {pipeline_mode = #tpu.pipeline_mode<synchronous>, transform_indices = @transform_11, window_bounds = array<i64: 1, 64>}, {pipeline_mode = #tpu.pipeline_mode<synchronous>, transform_indices = @transform_12, window_bounds = array<i64: 100, 1>}, {pipeline_mode = #tpu.pipeline_mode<synchronous>, transform_indices = @transform_13, window_bounds = array<i64: 36, 100>}, {pipeline_mode = #tpu.pipeline_mode<synchronous>, transform_indices = @transform_14, window_bounds = array<i64: 576, 64>}, {pipeline_mode = #tpu.pipeline_mode<synchronous>, transform_indices = @transform_15, window_bounds = array<i64: 1, 64>}, {pipeline_mode = #tpu.pipeline_mode<synchronous>, transform_indices = @transform_16, window_bounds = array<i64: 1, 64>}, {pipeline_mode = #tpu.pipeline_mode<synchronous>, transform_indices = @transform_17, window_bounds = array<i64: 576, 128>}, {pipeline_mode = #tpu.pipeline_mode<synchronous>, transform_indices = @transform_18, window_bounds = array<i64: 1, 128>}, {pipeline_mode = #tpu.pipeline_mode<synchronous>, transform_indices = @transform_19, window_bounds = array<i64: 1, 128>}, {pipeline_mode = #tpu.pipeline_mode<synchronous>, transform_indices = @transform_20, window_bounds = array<i64: 36, 1>}, {pipeline_mode = #tpu.pipeline_mode<synchronous>, transform_indices = @transform_21, window_bounds = array<i64: 128, 256>}, {pipeline_mode = #tpu.pipeline_mode<synchronous>, transform_indices = @transform_22, window_bounds = array<i64: 1, 256>}, {pipeline_mode = #tpu.pipeline_mode<synchronous>, transform_indices = @transform_23, window_bounds = array<i64: 1, 256>}, {pipeline_mode = #tpu.pipeline_mode<synchronous>, transform_indices = @transform_24, window_bounds = array<i64: 256, 128>}, {pipeline_mode = #tpu.pipeline_mode<synchronous>, transform_indices = @transform_25, window_bounds = array<i64: 1, 128>}, {transform_indices = @transform_26, window_bounds = array<i64: 1, 8, 128>}]} {
    %c0 = arith.constant 0 : index
    %c3 = arith.constant 3 : index
    %c0_0 = arith.constant 0 : index
    %0 = vector.load %arg1[%c0, %c3, %c0_0] : memref<1x368x8xbf16, #tpu.memory_space<vmem>>, vector<1x324x8xbf16>
    %1 = vector.shape_cast %0 : vector<1x324x8xbf16> to vector<324x8xbf16>
    %c0_1 = arith.constant 0 : index
    %c4 = arith.constant 4 : index
    %c0_2 = arith.constant 0 : index
    %2 = vector.load %arg1[%c0_1, %c4, %c0_2] : memref<1x368x8xbf16, #tpu.memory_space<vmem>>, vector<1x324x8xbf16>
    %3 = vector.shape_cast %2 : vector<1x324x8xbf16> to vector<324x8xbf16>
    %c0_3 = arith.constant 0 : index
    %c5 = arith.constant 5 : index
    %c0_4 = arith.constant 0 : index
    %4 = vector.load %arg1[%c0_3, %c5, %c0_4] : memref<1x368x8xbf16, #tpu.memory_space<vmem>>, vector<1x324x8xbf16>
    %5 = vector.shape_cast %4 : vector<1x324x8xbf16> to vector<324x8xbf16>
    %c0_5 = arith.constant 0 : index
    %c21 = arith.constant 21 : index
    %c0_6 = arith.constant 0 : index
    %6 = vector.load %arg1[%c0_5, %c21, %c0_6] : memref<1x368x8xbf16, #tpu.memory_space<vmem>>, vector<1x324x8xbf16>
    %7 = vector.shape_cast %6 : vector<1x324x8xbf16> to vector<324x8xbf16>
    %c0_7 = arith.constant 0 : index
    %c22 = arith.constant 22 : index
    %c0_8 = arith.constant 0 : index
    %8 = vector.load %arg1[%c0_7, %c22, %c0_8] : memref<1x368x8xbf16, #tpu.memory_space<vmem>>, vector<1x324x8xbf16>
    %9 = vector.shape_cast %8 : vector<1x324x8xbf16> to vector<324x8xbf16>
    %c0_9 = arith.constant 0 : index
    %c23 = arith.constant 23 : index
    %c0_10 = arith.constant 0 : index
    %10 = vector.load %arg1[%c0_9, %c23, %c0_10] : memref<1x368x8xbf16, #tpu.memory_space<vmem>>, vector<1x324x8xbf16>
    %11 = vector.shape_cast %10 : vector<1x324x8xbf16> to vector<324x8xbf16>
    %c0_11 = arith.constant 0 : index
    %c39 = arith.constant 39 : index
    %c0_12 = arith.constant 0 : index
    %12 = vector.load %arg1[%c0_11, %c39, %c0_12] : memref<1x368x8xbf16, #tpu.memory_space<vmem>>, vector<1x324x8xbf16>
    %13 = vector.shape_cast %12 : vector<1x324x8xbf16> to vector<324x8xbf16>
    %c0_13 = arith.constant 0 : index
    %c40 = arith.constant 40 : index
    %c0_14 = arith.constant 0 : index
    %14 = vector.load %arg1[%c0_13, %c40, %c0_14] : memref<1x368x8xbf16, #tpu.memory_space<vmem>>, vector<1x324x8xbf16>
    %15 = vector.shape_cast %14 : vector<1x324x8xbf16> to vector<324x8xbf16>
    %c0_15 = arith.constant 0 : index
    %c41 = arith.constant 41 : index
    %c0_16 = arith.constant 0 : index
    %16 = vector.load %arg1[%c0_15, %c41, %c0_16] : memref<1x368x8xbf16, #tpu.memory_space<vmem>>, vector<1x324x8xbf16>
    %17 = vector.shape_cast %16 : vector<1x324x8xbf16> to vector<324x8xbf16>
    %18 = tpu.concatenate %1, %3, %5, %7, %9, %11, %13, %15, %17 in 1 : vector<324x8xbf16>, vector<324x8xbf16>, vector<324x8xbf16>, vector<324x8xbf16>, vector<324x8xbf16>, vector<324x8xbf16>, vector<324x8xbf16>, vector<324x8xbf16>, vector<324x8xbf16> -> vector<324x72xbf16>
    %c0_17 = arith.constant 0 : index
    %c0_18 = arith.constant 0 : index
    %19 = vector.load %arg2[%c0_17, %c0_18] : memref<72x16xbf16, #tpu.memory_space<vmem>>, vector<72x16xbf16>
    %cst = arith.constant dense<0.000000e+00> : vector<324x16xf32>
    %20 = tpu.matmul %18, %19, %cst {dimension_numbers = #tpu.dot_dimension_numbers<[1], [0], [0], [1], [0, 0, 1, 1], [], []>} : vector<324x72xbf16>, vector<72x16xbf16>, vector<324x16xf32> -> vector<324x16xf32>
    %c0_19 = arith.constant 0 : index
    %c0_20 = arith.constant 0 : index
    %21 = vector.load %arg3[%c0_19, %c0_20] : memref<1x16xf32, #tpu.memory_space<vmem>>, vector<1x16xf32>
    %22 = vector.broadcast %21 : vector<1x16xf32> to vector<324x16xf32>
    %23 = arith.mulf %20, %22 : vector<324x16xf32>
    %c0_21 = arith.constant 0 : index
    %c0_22 = arith.constant 0 : index
    %24 = vector.load %arg4[%c0_21, %c0_22] : memref<1x16xf32, #tpu.memory_space<vmem>>, vector<1x16xf32>
    %25 = vector.broadcast %24 : vector<1x16xf32> to vector<324x16xf32>
    %26 = arith.addf %23, %25 : vector<324x16xf32>
    %cst_23 = arith.constant 0.000000e+00 : f32
    %27 = vector.broadcast %cst_23 : f32 to vector<324x16xf32>
    %28 = arith.maximumf %26, %27 : vector<324x16xf32>
    %c0_24 = arith.constant 0 : index
    %c0_25 = arith.constant 0 : index
    %29 = vector.load %arg5[%c0_24, %c0_25] : memref<324x1xf32, #tpu.memory_space<vmem>>, vector<324x1xf32>
    %30 = vector.broadcast %29 : vector<324x1xf32> to vector<324x16xf32>
    %31 = arith.mulf %28, %30 : vector<324x16xf32>
    %cst_26 = arith.constant 0.000000e+00 : bf16
    %32 = vector.broadcast %cst_26 : bf16 to vector<22x16xbf16>
    %c0_27 = arith.constant 0 : index
    %c0_28 = arith.constant 0 : index
    %33 = vector.load %arg28[%c0_27, %c0_28] : memref<368x16xbf16, #tpu.memory_space<vmem>>, vector<22x16xbf16>
    tpu.vector_store %arg28[%c0_27, %c0_28], %32 {strides = array<i32>} : memref<368x16xbf16, #tpu.memory_space<vmem>>, vector<22x16xbf16>,
    %34 = arith.truncf %31 : vector<324x16xf32> to vector<324x16xbf16>
    %c22_29 = arith.constant 22 : index
    %c0_30 = arith.constant 0 : index
    %35 = vector.load %arg28[%c22_29, %c0_30] : memref<368x16xbf16, #tpu.memory_space<vmem>>, vector<324x16xbf16>
    tpu.vector_store %arg28[%c22_29, %c0_30], %34 {strides = array<i32>} : memref<368x16xbf16, #tpu.memory_space<vmem>>, vector<324x16xbf16>,
    %cst_31 = arith.constant 0.000000e+00 : bf16
    %36 = vector.broadcast %cst_31 : bf16 to vector<22x16xbf16>
    %c346 = arith.constant 346 : index
    %c0_32 = arith.constant 0 : index
    %37 = vector.load %arg28[%c346, %c0_32] : memref<368x16xbf16, #tpu.memory_space<vmem>>, vector<22x16xbf16>
    tpu.vector_store %arg28[%c346, %c0_32], %36 {strides = array<i32>} : memref<368x16xbf16, #tpu.memory_space<vmem>>, vector<22x16xbf16>,
    %c22_33 = arith.constant 22 : index
    %c0_34 = arith.constant 0 : index
    %38 = vector.load %arg28[%c22_33, %c0_34] : memref<368x16xbf16, #tpu.memory_space<vmem>>, vector<324x16xbf16>
    %c23_35 = arith.constant 23 : index
    %c0_36 = arith.constant 0 : index
    %39 = vector.load %arg28[%c23_35, %c0_36] : memref<368x16xbf16, #tpu.memory_space<vmem>>, vector<324x16xbf16>
    %c40_37 = arith.constant 40 : index
    %c0_38 = arith.constant 0 : index
    %40 = vector.load %arg28[%c40_37, %c0_38] : memref<368x16xbf16, #tpu.memory_space<vmem>>, vector<324x16xbf16>
    %c41_39 = arith.constant 41 : index
    %c0_40 = arith.constant 0 : index
    %41 = vector.load %arg28[%c41_39, %c0_40] : memref<368x16xbf16, #tpu.memory_space<vmem>>, vector<324x16xbf16>
    %42 = arith.maximumf %38, %39 : vector<324x16xbf16>
    %43 = arith.maximumf %40, %41 : vector<324x16xbf16>
    %44 = arith.maximumf %42, %43 : vector<324x16xbf16>
    %c0_41 = arith.constant 0 : index
    %c0_42 = arith.constant 0 : index
    %45 = vector.load %arg6[%c0_41, %c0_42] : memref<100x324xbf16, #tpu.memory_space<vmem>>, vector<100x324xbf16>
    %cst_43 = arith.constant dense<0.000000e+00> : vector<100x16xf32>
    %46 = tpu.matmul %45, %44, %cst_43 {dimension_numbers = #tpu.dot_dimension_numbers<[1], [0], [0], [1], [0, 0, 1, 1], [], []>} : vector<100x324xbf16>, vector<324x16xbf16>, vector<100x16xf32> -> vector<100x16xf32>
    %cst_44 = arith.constant 0.000000e+00 : bf16
    %47 = vector.broadcast %cst_44 : bf16 to vector<14x16xbf16>
    %c0_45 = arith.constant 0 : index
    %c0_46 = arith.constant 0 : index
    %48 = vector.load %arg29[%c0_45, %c0_46] : memref<128x16xbf16, #tpu.memory_space<vmem>>, vector<14x16xbf16>
    tpu.vector_store %arg29[%c0_45, %c0_46], %47 {strides = array<i32>} : memref<128x16xbf16, #tpu.memory_space<vmem>>, vector<14x16xbf16>,
    %49 = arith.truncf %46 : vector<100x16xf32> to vector<100x16xbf16>
    %c14 = arith.constant 14 : index
    %c0_47 = arith.constant 0 : index
    %50 = vector.load %arg29[%c14, %c0_47] : memref<128x16xbf16, #tpu.memory_space<vmem>>, vector<100x16xbf16>
    tpu.vector_store %arg29[%c14, %c0_47], %49 {strides = array<i32>} : memref<128x16xbf16, #tpu.memory_space<vmem>>, vector<100x16xbf16>,
    %cst_48 = arith.constant 0.000000e+00 : bf16
    %51 = vector.broadcast %cst_48 : bf16 to vector<14x16xbf16>
    %c114 = arith.constant 114 : index
    %c0_49 = arith.constant 0 : index
    %52 = vector.load %arg29[%c114, %c0_49] : memref<128x16xbf16, #tpu.memory_space<vmem>>, vector<14x16xbf16>
    tpu.vector_store %arg29[%c114, %c0_49], %51 {strides = array<i32>} : memref<128x16xbf16, #tpu.memory_space<vmem>>, vector<14x16xbf16>,
    %c3_50 = arith.constant 3 : index
    %c0_51 = arith.constant 0 : index
    %53 = vector.load %arg29[%c3_50, %c0_51] : memref<128x16xbf16, #tpu.memory_space<vmem>>, vector<100x16xbf16>
    %c4_52 = arith.constant 4 : index
    %c0_53 = arith.constant 0 : index
    %54 = vector.load %arg29[%c4_52, %c0_53] : memref<128x16xbf16, #tpu.memory_space<vmem>>, vector<100x16xbf16>
    %c5_54 = arith.constant 5 : index
    %c0_55 = arith.constant 0 : index
    %55 = vector.load %arg29[%c5_54, %c0_55] : memref<128x16xbf16, #tpu.memory_space<vmem>>, vector<100x16xbf16>
    %c13 = arith.constant 13 : index
    %c0_56 = arith.constant 0 : index
    %56 = vector.load %arg29[%c13, %c0_56] : memref<128x16xbf16, #tpu.memory_space<vmem>>, vector<100x16xbf16>
    %c14_57 = arith.constant 14 : index
    %c0_58 = arith.constant 0 : index
    %57 = vector.load %arg29[%c14_57, %c0_58] : memref<128x16xbf16, #tpu.memory_space<vmem>>, vector<100x16xbf16>
    %c15 = arith.constant 15 : index
    %c0_59 = arith.constant 0 : index
    %58 = vector.load %arg29[%c15, %c0_59] : memref<128x16xbf16, #tpu.memory_space<vmem>>, vector<100x16xbf16>
    %c23_60 = arith.constant 23 : index
    %c0_61 = arith.constant 0 : index
    %59 = vector.load %arg29[%c23_60, %c0_61] : memref<128x16xbf16, #tpu.memory_space<vmem>>, vector<100x16xbf16>
    %c24 = arith.constant 24 : index
    %c0_62 = arith.constant 0 : index
    %60 = vector.load %arg29[%c24, %c0_62] : memref<128x16xbf16, #tpu.memory_space<vmem>>, vector<100x16xbf16>
    %c25 = arith.constant 25 : index
    %c0_63 = arith.constant 0 : index
    %61 = vector.load %arg29[%c25, %c0_63] : memref<128x16xbf16, #tpu.memory_space<vmem>>, vector<100x16xbf16>
    %62 = tpu.concatenate %53, %54, %55, %56, %57, %58, %59, %60, %61 in 1 : vector<100x16xbf16>, vector<100x16xbf16>, vector<100x16xbf16>, vector<100x16xbf16>, vector<100x16xbf16>, vector<100x16xbf16>, vector<100x16xbf16>, vector<100x16xbf16>, vector<100x16xbf16> -> vector<100x144xbf16>
    %c0_64 = arith.constant 0 : index
    %c0_65 = arith.constant 0 : index
    %63 = vector.load %arg7[%c0_64, %c0_65] : memref<144x32xbf16, #tpu.memory_space<vmem>>, vector<144x32xbf16>
    %cst_66 = arith.constant dense<0.000000e+00> : vector<100x32xf32>
    %64 = tpu.matmul %62, %63, %cst_66 {dimension_numbers = #tpu.dot_dimension_numbers<[1], [0], [0], [1], [0, 0, 1, 1], [], []>} : vector<100x144xbf16>, vector<144x32xbf16>, vector<100x32xf32> -> vector<100x32xf32>
    %c0_67 = arith.constant 0 : index
    %c0_68 = arith.constant 0 : index
    %65 = vector.load %arg8[%c0_67, %c0_68] : memref<1x32xf32, #tpu.memory_space<vmem>>, vector<1x32xf32>
    %66 = vector.broadcast %65 : vector<1x32xf32> to vector<100x32xf32>
    %67 = arith.mulf %64, %66 : vector<100x32xf32>
    %c0_69 = arith.constant 0 : index
    %c0_70 = arith.constant 0 : index
    %68 = vector.load %arg9[%c0_69, %c0_70] : memref<1x32xf32, #tpu.memory_space<vmem>>, vector<1x32xf32>
    %69 = vector.broadcast %68 : vector<1x32xf32> to vector<100x32xf32>
    %70 = arith.addf %67, %69 : vector<100x32xf32>
    %cst_71 = arith.constant 0.000000e+00 : f32
    %71 = vector.broadcast %cst_71 : f32 to vector<100x32xf32>
    %72 = arith.maximumf %70, %71 : vector<100x32xf32>
    %c0_72 = arith.constant 0 : index
    %c0_73 = arith.constant 0 : index
    %73 = vector.load %arg13[%c0_72, %c0_73] : memref<100x1xf32, #tpu.memory_space<vmem>>, vector<100x1xf32>
    %74 = vector.broadcast %73 : vector<100x1xf32> to vector<100x32xf32>
    %75 = arith.mulf %72, %74 : vector<100x32xf32>
    %cst_74 = arith.constant 0.000000e+00 : bf16
    %76 = vector.broadcast %cst_74 : bf16 to vector<14x32xbf16>
    %c0_75 = arith.constant 0 : index
    %c0_76 = arith.constant 0 : index
    %77 = vector.load %arg30[%c0_75, %c0_76] : memref<128x32xbf16, #tpu.memory_space<vmem>>, vector<14x32xbf16>
    tpu.vector_store %arg30[%c0_75, %c0_76], %76 {strides = array<i32>} : memref<128x32xbf16, #tpu.memory_space<vmem>>, vector<14x32xbf16>,
    %78 = arith.truncf %75 : vector<100x32xf32> to vector<100x32xbf16>
    %c14_77 = arith.constant 14 : index
    %c0_78 = arith.constant 0 : index
    %79 = vector.load %arg30[%c14_77, %c0_78] : memref<128x32xbf16, #tpu.memory_space<vmem>>, vector<100x32xbf16>
    tpu.vector_store %arg30[%c14_77, %c0_78], %78 {strides = array<i32>} : memref<128x32xbf16, #tpu.memory_space<vmem>>, vector<100x32xbf16>,
    %cst_79 = arith.constant 0.000000e+00 : bf16
    %80 = vector.broadcast %cst_79 : bf16 to vector<14x32xbf16>
    %c114_80 = arith.constant 114 : index
    %c0_81 = arith.constant 0 : index
    %81 = vector.load %arg30[%c114_80, %c0_81] : memref<128x32xbf16, #tpu.memory_space<vmem>>, vector<14x32xbf16>
    tpu.vector_store %arg30[%c114_80, %c0_81], %80 {strides = array<i32>} : memref<128x32xbf16, #tpu.memory_space<vmem>>, vector<14x32xbf16>,
    %c3_82 = arith.constant 3 : index
    %c0_83 = arith.constant 0 : index
    %82 = vector.load %arg30[%c3_82, %c0_83] : memref<128x32xbf16, #tpu.memory_space<vmem>>, vector<100x32xbf16>
    %c4_84 = arith.constant 4 : index
    %c0_85 = arith.constant 0 : index
    %83 = vector.load %arg30[%c4_84, %c0_85] : memref<128x32xbf16, #tpu.memory_space<vmem>>, vector<100x32xbf16>
    %c5_86 = arith.constant 5 : index
    %c0_87 = arith.constant 0 : index
    %84 = vector.load %arg30[%c5_86, %c0_87] : memref<128x32xbf16, #tpu.memory_space<vmem>>, vector<100x32xbf16>
    %c13_88 = arith.constant 13 : index
    %c0_89 = arith.constant 0 : index
    %85 = vector.load %arg30[%c13_88, %c0_89] : memref<128x32xbf16, #tpu.memory_space<vmem>>, vector<100x32xbf16>
    %c14_90 = arith.constant 14 : index
    %c0_91 = arith.constant 0 : index
    %86 = vector.load %arg30[%c14_90, %c0_91] : memref<128x32xbf16, #tpu.memory_space<vmem>>, vector<100x32xbf16>
    %c15_92 = arith.constant 15 : index
    %c0_93 = arith.constant 0 : index
    %87 = vector.load %arg30[%c15_92, %c0_93] : memref<128x32xbf16, #tpu.memory_space<vmem>>, vector<100x32xbf16>
    %c23_94 = arith.constant 23 : index
    %c0_95 = arith.constant 0 : index
    %88 = vector.load %arg30[%c23_94, %c0_95] : memref<128x32xbf16, #tpu.memory_space<vmem>>, vector<100x32xbf16>
    %c24_96 = arith.constant 24 : index
    %c0_97 = arith.constant 0 : index
    %89 = vector.load %arg30[%c24_96, %c0_97] : memref<128x32xbf16, #tpu.memory_space<vmem>>, vector<100x32xbf16>
    %c25_98 = arith.constant 25 : index
    %c0_99 = arith.constant 0 : index
    %90 = vector.load %arg30[%c25_98, %c0_99] : memref<128x32xbf16, #tpu.memory_space<vmem>>, vector<100x32xbf16>
    %91 = tpu.concatenate %82, %83, %84, %85, %86, %87, %88, %89, %90 in 1 : vector<100x32xbf16>, vector<100x32xbf16>, vector<100x32xbf16>, vector<100x32xbf16>, vector<100x32xbf16>, vector<100x32xbf16>, vector<100x32xbf16>, vector<100x32xbf16>, vector<100x32xbf16> -> vector<100x288xbf16>
    %c0_100 = arith.constant 0 : index
    %c0_101 = arith.constant 0 : index
    %92 = vector.load %arg10[%c0_100, %c0_101] : memref<288x64xbf16, #tpu.memory_space<vmem>>, vector<288x64xbf16>
    %cst_102 = arith.constant dense<0.000000e+00> : vector<100x64xf32>
    %93 = tpu.matmul %91, %92, %cst_102 {dimension_numbers = #tpu.dot_dimension_numbers<[1], [0], [0], [1], [0, 0, 1, 1], [], []>} : vector<100x288xbf16>, vector<288x64xbf16>, vector<100x64xf32> -> vector<100x64xf32>
    %c0_103 = arith.constant 0 : index
    %c0_104 = arith.constant 0 : index
    %94 = vector.load %arg11[%c0_103, %c0_104] : memref<1x64xf32, #tpu.memory_space<vmem>>, vector<1x64xf32>
    %95 = vector.broadcast %94 : vector<1x64xf32> to vector<100x64xf32>
    %96 = arith.mulf %93, %95 : vector<100x64xf32>
    %c0_105 = arith.constant 0 : index
    %c0_106 = arith.constant 0 : index
    %97 = vector.load %arg12[%c0_105, %c0_106] : memref<1x64xf32, #tpu.memory_space<vmem>>, vector<1x64xf32>
    %98 = vector.broadcast %97 : vector<1x64xf32> to vector<100x64xf32>
    %99 = arith.addf %96, %98 : vector<100x64xf32>
    %cst_107 = arith.constant 0.000000e+00 : f32
    %100 = vector.broadcast %cst_107 : f32 to vector<100x64xf32>
    %101 = arith.maximumf %99, %100 : vector<100x64xf32>
    %c0_108 = arith.constant 0 : index
    %c0_109 = arith.constant 0 : index
    %102 = vector.load %arg13[%c0_108, %c0_109] : memref<100x1xf32, #tpu.memory_space<vmem>>, vector<100x1xf32>
    %103 = vector.broadcast %102 : vector<100x1xf32> to vector<100x64xf32>
    %104 = arith.mulf %101, %103 : vector<100x64xf32>
    %cst_110 = arith.constant 0.000000e+00 : bf16
    %105 = vector.broadcast %cst_110 : bf16 to vector<14x64xbf16>
    %c0_111 = arith.constant 0 : index
    %c0_112 = arith.constant 0 : index
    %106 = vector.load %arg31[%c0_111, %c0_112] : memref<128x64xbf16, #tpu.memory_space<vmem>>, vector<14x64xbf16>
    tpu.vector_store %arg31[%c0_111, %c0_112], %105 {strides = array<i32>} : memref<128x64xbf16, #tpu.memory_space<vmem>>, vector<14x64xbf16>,
    %107 = arith.truncf %104 : vector<100x64xf32> to vector<100x64xbf16>
    %c14_113 = arith.constant 14 : index
    %c0_114 = arith.constant 0 : index
    %108 = vector.load %arg31[%c14_113, %c0_114] : memref<128x64xbf16, #tpu.memory_space<vmem>>, vector<100x64xbf16>
    tpu.vector_store %arg31[%c14_113, %c0_114], %107 {strides = array<i32>} : memref<128x64xbf16, #tpu.memory_space<vmem>>, vector<100x64xbf16>,
    %cst_115 = arith.constant 0.000000e+00 : bf16
    %109 = vector.broadcast %cst_115 : bf16 to vector<14x64xbf16>
    %c114_116 = arith.constant 114 : index
    %c0_117 = arith.constant 0 : index
    %110 = vector.load %arg31[%c114_116, %c0_117] : memref<128x64xbf16, #tpu.memory_space<vmem>>, vector<14x64xbf16>
    tpu.vector_store %arg31[%c114_116, %c0_117], %109 {strides = array<i32>} : memref<128x64xbf16, #tpu.memory_space<vmem>>, vector<14x64xbf16>,
    %c14_118 = arith.constant 14 : index
    %c0_119 = arith.constant 0 : index
    %111 = vector.load %arg31[%c14_118, %c0_119] : memref<128x64xbf16, #tpu.memory_space<vmem>>, vector<100x64xbf16>
    %c15_120 = arith.constant 15 : index
    %c0_121 = arith.constant 0 : index
    %112 = vector.load %arg31[%c15_120, %c0_121] : memref<128x64xbf16, #tpu.memory_space<vmem>>, vector<100x64xbf16>
    %c24_122 = arith.constant 24 : index
    %c0_123 = arith.constant 0 : index
    %113 = vector.load %arg31[%c24_122, %c0_123] : memref<128x64xbf16, #tpu.memory_space<vmem>>, vector<100x64xbf16>
    %c25_124 = arith.constant 25 : index
    %c0_125 = arith.constant 0 : index
    %114 = vector.load %arg31[%c25_124, %c0_125] : memref<128x64xbf16, #tpu.memory_space<vmem>>, vector<100x64xbf16>
    %115 = arith.maximumf %111, %112 : vector<100x64xbf16>
    %116 = arith.maximumf %113, %114 : vector<100x64xbf16>
    %117 = arith.maximumf %115, %116 : vector<100x64xbf16>
    %c0_126 = arith.constant 0 : index
    %c0_127 = arith.constant 0 : index
    %118 = vector.load %arg14[%c0_126, %c0_127] : memref<36x100xbf16, #tpu.memory_space<vmem>>, vector<36x100xbf16>
    %cst_128 = arith.constant dense<0.000000e+00> : vector<36x64xf32>
    %119 = tpu.matmul %118, %117, %cst_128 {dimension_numbers = #tpu.dot_dimension_numbers<[1], [0], [0], [1], [0, 0, 1, 1], [], []>} : vector<36x100xbf16>, vector<100x64xbf16>, vector<36x64xf32> -> vector<36x64xf32>
    %cst_129 = arith.constant 0.000000e+00 : bf16
    %120 = vector.broadcast %cst_129 : bf16 to vector<10x64xbf16>
    %c0_130 = arith.constant 0 : index
    %c0_131 = arith.constant 0 : index
    %121 = vector.load %arg32[%c0_130, %c0_131] : memref<56x64xbf16, #tpu.memory_space<vmem>>, vector<10x64xbf16>
    tpu.vector_store %arg32[%c0_130, %c0_131], %120 {strides = array<i32>} : memref<56x64xbf16, #tpu.memory_space<vmem>>, vector<10x64xbf16>,
    %122 = arith.truncf %119 : vector<36x64xf32> to vector<36x64xbf16>
    %c10 = arith.constant 10 : index
    %c0_132 = arith.constant 0 : index
    %123 = vector.load %arg32[%c10, %c0_132] : memref<56x64xbf16, #tpu.memory_space<vmem>>, vector<36x64xbf16>
    tpu.vector_store %arg32[%c10, %c0_132], %122 {strides = array<i32>} : memref<56x64xbf16, #tpu.memory_space<vmem>>, vector<36x64xbf16>,
    %cst_133 = arith.constant 0.000000e+00 : bf16
    %124 = vector.broadcast %cst_133 : bf16 to vector<10x64xbf16>
    %c46 = arith.constant 46 : index
    %c0_134 = arith.constant 0 : index
    %125 = vector.load %arg32[%c46, %c0_134] : memref<56x64xbf16, #tpu.memory_space<vmem>>, vector<10x64xbf16>
    tpu.vector_store %arg32[%c46, %c0_134], %124 {strides = array<i32>} : memref<56x64xbf16, #tpu.memory_space<vmem>>, vector<10x64xbf16>,
    %c3_135 = arith.constant 3 : index
    %c0_136 = arith.constant 0 : index
    %126 = vector.load %arg32[%c3_135, %c0_136] : memref<56x64xbf16, #tpu.memory_space<vmem>>, vector<36x64xbf16>
    %c4_137 = arith.constant 4 : index
    %c0_138 = arith.constant 0 : index
    %127 = vector.load %arg32[%c4_137, %c0_138] : memref<56x64xbf16, #tpu.memory_space<vmem>>, vector<36x64xbf16>
    %c5_139 = arith.constant 5 : index
    %c0_140 = arith.constant 0 : index
    %128 = vector.load %arg32[%c5_139, %c0_140] : memref<56x64xbf16, #tpu.memory_space<vmem>>, vector<36x64xbf16>
    %c9 = arith.constant 9 : index
    %c0_141 = arith.constant 0 : index
    %129 = vector.load %arg32[%c9, %c0_141] : memref<56x64xbf16, #tpu.memory_space<vmem>>, vector<36x64xbf16>
    %c10_142 = arith.constant 10 : index
    %c0_143 = arith.constant 0 : index
    %130 = vector.load %arg32[%c10_142, %c0_143] : memref<56x64xbf16, #tpu.memory_space<vmem>>, vector<36x64xbf16>
    %c11 = arith.constant 11 : index
    %c0_144 = arith.constant 0 : index
    %131 = vector.load %arg32[%c11, %c0_144] : memref<56x64xbf16, #tpu.memory_space<vmem>>, vector<36x64xbf16>
    %c15_145 = arith.constant 15 : index
    %c0_146 = arith.constant 0 : index
    %132 = vector.load %arg32[%c15_145, %c0_146] : memref<56x64xbf16, #tpu.memory_space<vmem>>, vector<36x64xbf16>
    %c16 = arith.constant 16 : index
    %c0_147 = arith.constant 0 : index
    %133 = vector.load %arg32[%c16, %c0_147] : memref<56x64xbf16, #tpu.memory_space<vmem>>, vector<36x64xbf16>
    %c17 = arith.constant 17 : index
    %c0_148 = arith.constant 0 : index
    %134 = vector.load %arg32[%c17, %c0_148] : memref<56x64xbf16, #tpu.memory_space<vmem>>, vector<36x64xbf16>
    %135 = tpu.concatenate %126, %127, %128, %129, %130, %131, %132, %133, %134 in 1 : vector<36x64xbf16>, vector<36x64xbf16>, vector<36x64xbf16>, vector<36x64xbf16>, vector<36x64xbf16>, vector<36x64xbf16>, vector<36x64xbf16>, vector<36x64xbf16>, vector<36x64xbf16> -> vector<36x576xbf16>
    %c0_149 = arith.constant 0 : index
    %c0_150 = arith.constant 0 : index
    %136 = vector.load %arg15[%c0_149, %c0_150] : memref<576x64xbf16, #tpu.memory_space<vmem>>, vector<576x64xbf16>
    %cst_151 = arith.constant dense<0.000000e+00> : vector<36x64xf32>
    %137 = tpu.matmul %135, %136, %cst_151 {dimension_numbers = #tpu.dot_dimension_numbers<[1], [0], [0], [1], [0, 0, 1, 1], [], []>} : vector<36x576xbf16>, vector<576x64xbf16>, vector<36x64xf32> -> vector<36x64xf32>
    %c0_152 = arith.constant 0 : index
    %c0_153 = arith.constant 0 : index
    %138 = vector.load %arg16[%c0_152, %c0_153] : memref<1x64xf32, #tpu.memory_space<vmem>>, vector<1x64xf32>
    %139 = vector.broadcast %138 : vector<1x64xf32> to vector<36x64xf32>
    %140 = arith.mulf %137, %139 : vector<36x64xf32>
    %c0_154 = arith.constant 0 : index
    %c0_155 = arith.constant 0 : index
    %141 = vector.load %arg17[%c0_154, %c0_155] : memref<1x64xf32, #tpu.memory_space<vmem>>, vector<1x64xf32>
    %142 = vector.broadcast %141 : vector<1x64xf32> to vector<36x64xf32>
    %143 = arith.addf %140, %142 : vector<36x64xf32>
    %cst_156 = arith.constant 0.000000e+00 : f32
    %144 = vector.broadcast %cst_156 : f32 to vector<36x64xf32>
    %145 = arith.maximumf %143, %144 : vector<36x64xf32>
    %c0_157 = arith.constant 0 : index
    %c0_158 = arith.constant 0 : index
    %146 = vector.load %arg21[%c0_157, %c0_158] : memref<36x1xf32, #tpu.memory_space<vmem>>, vector<36x1xf32>
    %147 = vector.broadcast %146 : vector<36x1xf32> to vector<36x64xf32>
    %148 = arith.mulf %145, %147 : vector<36x64xf32>
    %cst_159 = arith.constant 0.000000e+00 : bf16
    %149 = vector.broadcast %cst_159 : bf16 to vector<10x64xbf16>
    %c0_160 = arith.constant 0 : index
    %c0_161 = arith.constant 0 : index
    %150 = vector.load %arg33[%c0_160, %c0_161] : memref<56x64xbf16, #tpu.memory_space<vmem>>, vector<10x64xbf16>
    tpu.vector_store %arg33[%c0_160, %c0_161], %149 {strides = array<i32>} : memref<56x64xbf16, #tpu.memory_space<vmem>>, vector<10x64xbf16>,
    %151 = arith.truncf %148 : vector<36x64xf32> to vector<36x64xbf16>
    %c10_162 = arith.constant 10 : index
    %c0_163 = arith.constant 0 : index
    %152 = vector.load %arg33[%c10_162, %c0_163] : memref<56x64xbf16, #tpu.memory_space<vmem>>, vector<36x64xbf16>
    tpu.vector_store %arg33[%c10_162, %c0_163], %151 {strides = array<i32>} : memref<56x64xbf16, #tpu.memory_space<vmem>>, vector<36x64xbf16>,
    %cst_164 = arith.constant 0.000000e+00 : bf16
    %153 = vector.broadcast %cst_164 : bf16 to vector<10x64xbf16>
    %c46_165 = arith.constant 46 : index
    %c0_166 = arith.constant 0 : index
    %154 = vector.load %arg33[%c46_165, %c0_166] : memref<56x64xbf16, #tpu.memory_space<vmem>>, vector<10x64xbf16>
    tpu.vector_store %arg33[%c46_165, %c0_166], %153 {strides = array<i32>} : memref<56x64xbf16, #tpu.memory_space<vmem>>, vector<10x64xbf16>,
    %c3_167 = arith.constant 3 : index
    %c0_168 = arith.constant 0 : index
    %155 = vector.load %arg33[%c3_167, %c0_168] : memref<56x64xbf16, #tpu.memory_space<vmem>>, vector<36x64xbf16>
    %c4_169 = arith.constant 4 : index
    %c0_170 = arith.constant 0 : index
    %156 = vector.load %arg33[%c4_169, %c0_170] : memref<56x64xbf16, #tpu.memory_space<vmem>>, vector<36x64xbf16>
    %c5_171 = arith.constant 5 : index
    %c0_172 = arith.constant 0 : index
    %157 = vector.load %arg33[%c5_171, %c0_172] : memref<56x64xbf16, #tpu.memory_space<vmem>>, vector<36x64xbf16>
    %c9_173 = arith.constant 9 : index
    %c0_174 = arith.constant 0 : index
    %158 = vector.load %arg33[%c9_173, %c0_174] : memref<56x64xbf16, #tpu.memory_space<vmem>>, vector<36x64xbf16>
    %c10_175 = arith.constant 10 : index
    %c0_176 = arith.constant 0 : index
    %159 = vector.load %arg33[%c10_175, %c0_176] : memref<56x64xbf16, #tpu.memory_space<vmem>>, vector<36x64xbf16>
    %c11_177 = arith.constant 11 : index
    %c0_178 = arith.constant 0 : index
    %160 = vector.load %arg33[%c11_177, %c0_178] : memref<56x64xbf16, #tpu.memory_space<vmem>>, vector<36x64xbf16>
    %c15_179 = arith.constant 15 : index
    %c0_180 = arith.constant 0 : index
    %161 = vector.load %arg33[%c15_179, %c0_180] : memref<56x64xbf16, #tpu.memory_space<vmem>>, vector<36x64xbf16>
    %c16_181 = arith.constant 16 : index
    %c0_182 = arith.constant 0 : index
    %162 = vector.load %arg33[%c16_181, %c0_182] : memref<56x64xbf16, #tpu.memory_space<vmem>>, vector<36x64xbf16>
    %c17_183 = arith.constant 17 : index
    %c0_184 = arith.constant 0 : index
    %163 = vector.load %arg33[%c17_183, %c0_184] : memref<56x64xbf16, #tpu.memory_space<vmem>>, vector<36x64xbf16>
    %164 = tpu.concatenate %155, %156, %157, %158, %159, %160, %161, %162, %163 in 1 : vector<36x64xbf16>, vector<36x64xbf16>, vector<36x64xbf16>, vector<36x64xbf16>, vector<36x64xbf16>, vector<36x64xbf16>, vector<36x64xbf16>, vector<36x64xbf16>, vector<36x64xbf16> -> vector<36x576xbf16>
    %c0_185 = arith.constant 0 : index
    %c0_186 = arith.constant 0 : index
    %165 = vector.load %arg18[%c0_185, %c0_186] : memref<576x128xbf16, #tpu.memory_space<vmem>>, vector<576x128xbf16>
    %cst_187 = arith.constant dense<0.000000e+00> : vector<36x128xf32>
    %166 = tpu.matmul %164, %165, %cst_187 {dimension_numbers = #tpu.dot_dimension_numbers<[1], [0], [0], [1], [0, 0, 1, 1], [], []>} : vector<36x576xbf16>, vector<576x128xbf16>, vector<36x128xf32> -> vector<36x128xf32>
    %c0_188 = arith.constant 0 : index
    %c0_189 = arith.constant 0 : index
    %167 = vector.load %arg19[%c0_188, %c0_189] : memref<1x128xf32, #tpu.memory_space<vmem>>, vector<1x128xf32>
    %168 = vector.broadcast %167 : vector<1x128xf32> to vector<36x128xf32>
    %169 = arith.mulf %166, %168 : vector<36x128xf32>
    %c0_190 = arith.constant 0 : index
    %c0_191 = arith.constant 0 : index
    %170 = vector.load %arg20[%c0_190, %c0_191] : memref<1x128xf32, #tpu.memory_space<vmem>>, vector<1x128xf32>
    %171 = vector.broadcast %170 : vector<1x128xf32> to vector<36x128xf32>
    %172 = arith.addf %169, %171 : vector<36x128xf32>
    %cst_192 = arith.constant 0.000000e+00 : f32
    %173 = vector.broadcast %cst_192 : f32 to vector<36x128xf32>
    %174 = arith.maximumf %172, %173 : vector<36x128xf32>
    %c0_193 = arith.constant 0 : index
    %c0_194 = arith.constant 0 : index
    %175 = vector.load %arg21[%c0_193, %c0_194] : memref<36x1xf32, #tpu.memory_space<vmem>>, vector<36x1xf32>
    %176 = vector.broadcast %175 : vector<36x1xf32> to vector<36x128xf32>
    %177 = arith.mulf %174, %176 : vector<36x128xf32>
    %cst_195 = arith.constant 0.000000e+00 : bf16
    %178 = vector.broadcast %cst_195 : bf16 to vector<10x128xbf16>
    %c0_196 = arith.constant 0 : index
    %c0_197 = arith.constant 0 : index
    %179 = vector.load %arg34[%c0_196, %c0_197] : memref<56x128xbf16, #tpu.memory_space<vmem>>, vector<10x128xbf16>
    tpu.vector_store %arg34[%c0_196, %c0_197], %178 {strides = array<i32>} : memref<56x128xbf16, #tpu.memory_space<vmem>>, vector<10x128xbf16>,
    %180 = arith.truncf %177 : vector<36x128xf32> to vector<36x128xbf16>
    %c10_198 = arith.constant 10 : index
    %c0_199 = arith.constant 0 : index
    %181 = vector.load %arg34[%c10_198, %c0_199] : memref<56x128xbf16, #tpu.memory_space<vmem>>, vector<36x128xbf16>
    tpu.vector_store %arg34[%c10_198, %c0_199], %180 {strides = array<i32>} : memref<56x128xbf16, #tpu.memory_space<vmem>>, vector<36x128xbf16>,
    %cst_200 = arith.constant 0.000000e+00 : bf16
    %182 = vector.broadcast %cst_200 : bf16 to vector<10x128xbf16>
    %c46_201 = arith.constant 46 : index
    %c0_202 = arith.constant 0 : index
    %183 = vector.load %arg34[%c46_201, %c0_202] : memref<56x128xbf16, #tpu.memory_space<vmem>>, vector<10x128xbf16>
    tpu.vector_store %arg34[%c46_201, %c0_202], %182 {strides = array<i32>} : memref<56x128xbf16, #tpu.memory_space<vmem>>, vector<10x128xbf16>,
    %c0_203 = arith.constant 0 : index
    %c0_204 = arith.constant 0 : index
    %184 = vector.load %arg34[%c0_203, %c0_204] : memref<56x128xbf16, #tpu.memory_space<vmem>>, vector<56x128xbf16>
    %185 = arith.extf %184 : vector<56x128xbf16> to vector<56x128xf32>
    %cst_205 = arith.constant dense<0.000000e+00> : vector<128xf32>
    %186 = vector.multi_reduction <add>, %185, %cst_205 [0] : vector<56x128xf32> to vector<128xf32>
    %187 = vector.shape_cast %186 : vector<128xf32> to vector<1x128xf32>
    %cst_206 = arith.constant 6.250000e-02 : f32
    %188 = vector.broadcast %cst_206 : f32 to vector<1x128xf32>
    %189 = arith.mulf %187, %188 : vector<1x128xf32>
    %190 = vector.shape_cast %189 : vector<1x128xf32> to vector<1x128xf32>
    %191 = vector.broadcast %190 : vector<1x128xf32> to vector<8x128xf32>
    %192 = arith.truncf %191 : vector<8x128xf32> to vector<8x128xbf16>
    %c0_207 = arith.constant 0 : index
    %c0_208 = arith.constant 0 : index
    %193 = vector.load %arg22[%c0_207, %c0_208] : memref<128x256xbf16, #tpu.memory_space<vmem>>, vector<128x256xbf16>
    %cst_209 = arith.constant dense<0.000000e+00> : vector<8x256xf32>
    %194 = tpu.matmul %192, %193, %cst_209 {dimension_numbers = #tpu.dot_dimension_numbers<[1], [0], [0], [1], [0, 0, 1, 1], [], []>} : vector<8x128xbf16>, vector<128x256xbf16>, vector<8x256xf32> -> vector<8x256xf32>
    %c0_210 = arith.constant 0 : index
    %c0_211 = arith.constant 0 : index
    %195 = vector.load %arg23[%c0_210, %c0_211] : memref<1x256xf32, #tpu.memory_space<vmem>>, vector<1x256xf32>
    %196 = vector.broadcast %195 : vector<1x256xf32> to vector<8x256xf32>
    %197 = arith.mulf %194, %196 : vector<8x256xf32>
    %c0_212 = arith.constant 0 : index
    %c0_213 = arith.constant 0 : index
    %198 = vector.load %arg24[%c0_212, %c0_213] : memref<1x256xf32, #tpu.memory_space<vmem>>, vector<1x256xf32>
    %199 = vector.broadcast %198 : vector<1x256xf32> to vector<8x256xf32>
    %200 = arith.addf %197, %199 : vector<8x256xf32>
    %cst_214 = arith.constant 0.000000e+00 : f32
    %201 = vector.broadcast %cst_214 : f32 to vector<8x256xf32>
    %202 = arith.maximumf %200, %201 : vector<8x256xf32>
    %203 = arith.truncf %202 : vector<8x256xf32> to vector<8x256xbf16>
    %c0_215 = arith.constant 0 : index
    %c0_216 = arith.constant 0 : index
    %204 = vector.load %arg25[%c0_215, %c0_216] : memref<256x128xbf16, #tpu.memory_space<vmem>>, vector<256x128xbf16>
    %cst_217 = arith.constant dense<0.000000e+00> : vector<8x128xf32>
    %205 = tpu.matmul %203, %204, %cst_217 {dimension_numbers = #tpu.dot_dimension_numbers<[1], [0], [0], [1], [0, 0, 1, 1], [], []>} : vector<8x256xbf16>, vector<256x128xbf16>, vector<8x128xf32> -> vector<8x128xf32>
    %c0_218 = arith.constant 0 : index
    %c0_219 = arith.constant 0 : index
    %206 = vector.load %arg26[%c0_218, %c0_219] : memref<1x128xf32, #tpu.memory_space<vmem>>, vector<1x128xf32>
    %207 = vector.broadcast %206 : vector<1x128xf32> to vector<8x128xf32>
    %208 = arith.addf %205, %207 : vector<8x128xf32>
    %c0_220 = arith.constant 0 : index
    %c0_221 = arith.constant 0 : index
    %c0_222 = arith.constant 0 : index
    %209 = vector.load %arg27[%c0_220, %c0_221, %c0_222] : memref<1x8x128xf32, #tpu.memory_space<vmem>>, vector<1x8x128xf32>
    %210 = vector.shape_cast %209 : vector<1x8x128xf32> to vector<8x128xf32>
    %211 = vector.shape_cast %208 : vector<8x128xf32> to vector<1x8x128xf32>
    tpu.vector_store %arg27[%c0_220, %c0_221, %c0_222], %211 {strides = array<i32>} : memref<1x8x128xf32, #tpu.memory_space<vmem>>, vector<1x8x128xf32>,
    return
  }
  func.func @transform_0(%arg0: i32) -> (i32, i32, i32) {
    %c0_i32 = arith.constant 0 : i32
    %c0_i32_0 = arith.constant 0 : i32
    %c0_i32_1 = arith.constant 0 : i32
    return %arg0, %c0_i32, %c0_i32_0 : i32, i32, i32
  }
  func.func @transform_1(%arg0: i32) -> (i32, i32) {
    %c0_i32 = arith.constant 0 : i32
    %c0_i32_0 = arith.constant 0 : i32
    %c0_i32_1 = arith.constant 0 : i32
    return %c0_i32, %c0_i32_0 : i32, i32
  }
  func.func @transform_2(%arg0: i32) -> (i32, i32) {
    %c0_i32 = arith.constant 0 : i32
    %c0_i32_0 = arith.constant 0 : i32
    %c0_i32_1 = arith.constant 0 : i32
    return %c0_i32, %c0_i32_0 : i32, i32
  }
  func.func @transform_3(%arg0: i32) -> (i32, i32) {
    %c0_i32 = arith.constant 0 : i32
    %c0_i32_0 = arith.constant 0 : i32
    %c0_i32_1 = arith.constant 0 : i32
    return %c0_i32, %c0_i32_0 : i32, i32
  }
  func.func @transform_4(%arg0: i32) -> (i32, i32) {
    %c0_i32 = arith.constant 0 : i32
    %c0_i32_0 = arith.constant 0 : i32
    %c0_i32_1 = arith.constant 0 : i32
    return %c0_i32, %c0_i32_0 : i32, i32
  }
  func.func @transform_5(%arg0: i32) -> (i32, i32) {
    %c0_i32 = arith.constant 0 : i32
    %c0_i32_0 = arith.constant 0 : i32
    %c0_i32_1 = arith.constant 0 : i32
    return %c0_i32, %c0_i32_0 : i32, i32
  }
  func.func @transform_6(%arg0: i32) -> (i32, i32) {
    %c0_i32 = arith.constant 0 : i32
    %c0_i32_0 = arith.constant 0 : i32
    %c0_i32_1 = arith.constant 0 : i32
    return %c0_i32, %c0_i32_0 : i32, i32
  }
  func.func @transform_7(%arg0: i32) -> (i32, i32) {
    %c0_i32 = arith.constant 0 : i32
    %c0_i32_0 = arith.constant 0 : i32
    %c0_i32_1 = arith.constant 0 : i32
    return %c0_i32, %c0_i32_0 : i32, i32
  }
  func.func @transform_8(%arg0: i32) -> (i32, i32) {
    %c0_i32 = arith.constant 0 : i32
    %c0_i32_0 = arith.constant 0 : i32
    %c0_i32_1 = arith.constant 0 : i32
    return %c0_i32, %c0_i32_0 : i32, i32
  }
  func.func @transform_9(%arg0: i32) -> (i32, i32) {
    %c0_i32 = arith.constant 0 : i32
    %c0_i32_0 = arith.constant 0 : i32
    %c0_i32_1 = arith.constant 0 : i32
    return %c0_i32, %c0_i32_0 : i32, i32
  }
  func.func @transform_10(%arg0: i32) -> (i32, i32) {
    %c0_i32 = arith.constant 0 : i32
    %c0_i32_0 = arith.constant 0 : i32
    %c0_i32_1 = arith.constant 0 : i32
    return %c0_i32, %c0_i32_0 : i32, i32
  }
  func.func @transform_11(%arg0: i32) -> (i32, i32) {
    %c0_i32 = arith.constant 0 : i32
    %c0_i32_0 = arith.constant 0 : i32
    %c0_i32_1 = arith.constant 0 : i32
    return %c0_i32, %c0_i32_0 : i32, i32
  }
  func.func @transform_12(%arg0: i32) -> (i32, i32) {
    %c0_i32 = arith.constant 0 : i32
    %c0_i32_0 = arith.constant 0 : i32
    %c0_i32_1 = arith.constant 0 : i32
    return %c0_i32, %c0_i32_0 : i32, i32
  }
  func.func @transform_13(%arg0: i32) -> (i32, i32) {
    %c0_i32 = arith.constant 0 : i32
    %c0_i32_0 = arith.constant 0 : i32
    %c0_i32_1 = arith.constant 0 : i32
    return %c0_i32, %c0_i32_0 : i32, i32
  }
  func.func @transform_14(%arg0: i32) -> (i32, i32) {
    %c0_i32 = arith.constant 0 : i32
    %c0_i32_0 = arith.constant 0 : i32
    %c0_i32_1 = arith.constant 0 : i32
    return %c0_i32, %c0_i32_0 : i32, i32
  }
  func.func @transform_15(%arg0: i32) -> (i32, i32) {
    %c0_i32 = arith.constant 0 : i32
    %c0_i32_0 = arith.constant 0 : i32
    %c0_i32_1 = arith.constant 0 : i32
    return %c0_i32, %c0_i32_0 : i32, i32
  }
  func.func @transform_16(%arg0: i32) -> (i32, i32) {
    %c0_i32 = arith.constant 0 : i32
    %c0_i32_0 = arith.constant 0 : i32
    %c0_i32_1 = arith.constant 0 : i32
    return %c0_i32, %c0_i32_0 : i32, i32
  }
  func.func @transform_17(%arg0: i32) -> (i32, i32) {
    %c0_i32 = arith.constant 0 : i32
    %c0_i32_0 = arith.constant 0 : i32
    %c0_i32_1 = arith.constant 0 : i32
    return %c0_i32, %c0_i32_0 : i32, i32
  }
  func.func @transform_18(%arg0: i32) -> (i32, i32) {
    %c0_i32 = arith.constant 0 : i32
    %c0_i32_0 = arith.constant 0 : i32
    %c0_i32_1 = arith.constant 0 : i32
    return %c0_i32, %c0_i32_0 : i32, i32
  }
  func.func @transform_19(%arg0: i32) -> (i32, i32) {
    %c0_i32 = arith.constant 0 : i32
    %c0_i32_0 = arith.constant 0 : i32
    %c0_i32_1 = arith.constant 0 : i32
    return %c0_i32, %c0_i32_0 : i32, i32
  }
  func.func @transform_20(%arg0: i32) -> (i32, i32) {
    %c0_i32 = arith.constant 0 : i32
    %c0_i32_0 = arith.constant 0 : i32
    %c0_i32_1 = arith.constant 0 : i32
    return %c0_i32, %c0_i32_0 : i32, i32
  }
  func.func @transform_21(%arg0: i32) -> (i32, i32) {
    %c0_i32 = arith.constant 0 : i32
    %c0_i32_0 = arith.constant 0 : i32
    %c0_i32_1 = arith.constant 0 : i32
    return %c0_i32, %c0_i32_0 : i32, i32
  }
  func.func @transform_22(%arg0: i32) -> (i32, i32) {
    %c0_i32 = arith.constant 0 : i32
    %c0_i32_0 = arith.constant 0 : i32
    %c0_i32_1 = arith.constant 0 : i32
    return %c0_i32, %c0_i32_0 : i32, i32
  }
  func.func @transform_23(%arg0: i32) -> (i32, i32) {
    %c0_i32 = arith.constant 0 : i32
    %c0_i32_0 = arith.constant 0 : i32
    %c0_i32_1 = arith.constant 0 : i32
    return %c0_i32, %c0_i32_0 : i32, i32
  }
  func.func @transform_24(%arg0: i32) -> (i32, i32) {
    %c0_i32 = arith.constant 0 : i32
    %c0_i32_0 = arith.constant 0 : i32
    %c0_i32_1 = arith.constant 0 : i32
    return %c0_i32, %c0_i32_0 : i32, i32
  }
  func.func @transform_25(%arg0: i32) -> (i32, i32) {
    %c0_i32 = arith.constant 0 : i32
    %c0_i32_0 = arith.constant 0 : i32
    %c0_i32_1 = arith.constant 0 : i32
    return %c0_i32, %c0_i32_0 : i32, i32
  }
  func.func @transform_26(%arg0: i32) -> (i32, i32, i32) {
    %c0_i32 = arith.constant 0 : i32
    %c0_i32_0 = arith.constant 0 : i32
    %c0_i32_1 = arith.constant 0 : i32
    return %arg0, %c0_i32, %c0_i32_0 : i32, i32, i32
  }
}

</mosaic_0001>

<bundles_post_ra>
// kernel: xsnet5_forward.1
= control target key start
LH: loop header
LB: loop body
LE: loop exit
PB: predicated region body
PF: predicated region fallthrough
CT: control target
= control target key end

     0   :  { %s10143_s27 = smov 0   ;;  %s14044_s0 = inlined_call_operand.vmem [shape: bf16[2,368,8], index: 0, kind: input, shape index: {}]   ;;  %s14045_s1 = inlined_call_operand.vmem [shape: bf16[72,16], index: 1, kind: input, shape index: {}]   ;;  %s14046_s2 = inlined_call_operand.vmem [shape: f32[1,16], index: 2, kind: input, shape index: {}]   ;;  %s14047_s3 = inlined_call_operand.vmem [shape: f32[1,16], index: 3, kind: input, shape index: {}]   ;;  %s14048_s4 = inlined_call_operand.vmem [shape: f32[324,1], index: 4, kind: input, shape index: {}]   ;;  %s14049_s5 = inlined_call_operand.vmem [shape: bf16[100,324], index: 5, kind: input, shape index: {}]   ;;  %s14050_s6 = inlined_call_operand.vmem [shape: bf16[144,32], index: 6, kind: input, shape index: {}]   ;;  %s14051_s7 = inlined_call_operand.vmem [shape: f32[1,32], index: 7, kind: input, shape index: {}]   ;;  %s14052_s8 = inlined_call_operand.vmem [shape: f32[1,32], index: 8, kind: input, shape index: {}]   ;;  %s14053_s9 = inlined_call_operand.vmem [shape: bf16[288,64], index: 9, kind: input, shape index: {}]   ;;  %s14054_s10 = inlined_call_operand.vmem [shape: f32[1,64], index: 10, kind: input, shape index: {}]   ;;  %s14055_s11 = inlined_call_operand.vmem [shape: f32[1,64], index: 11, kind: input, shape index: {}]   ;;  %s14056_s12 = inlined_call_operand.vmem [shape: f32[100,1], index: 12, kind: input, shape index: {}]   ;;  %s14057_s13 = inlined_call_operand.vmem [shape: bf16[36,100], index: 13, kind: input, shape index: {}]   ;;  %s14058_s14 = inlined_call_operand.vmem [shape: bf16[576,64], index: 14, kind: input, shape index: {}]   ;;  %s14059_s15 = inlined_call_operand.vmem [shape: f32[1,64], index: 15, kind: input, shape index: {}]   ;;  %s14060_s16 = inlined_call_operand.vmem [shape: f32[1,64], index: 16, kind: input, shape index: {}]   ;;  %s14061_s17 = inlined_call_operand.vmem [shape: bf16[576,128], index: 17, kind: input, shape index: {}]   ;;  %s14062_s18 = inlined_call_operand.vmem [shape: f32[1,128], index: 18, kind: input, shape index: {}]   ;;  %s14063_s19 = inlined_call_operand.vmem [shape: f32[1,128], index: 19, kind: input, shape index: {}]   ;;  %s14064_s20 = inlined_call_operand.vmem [shape: f32[36,1], index: 20, kind: input, shape index: {}]   ;;  %s14065_s21 = inlined_call_operand.vmem [shape: bf16[128,256], index: 21, kind: input, shape index: {}]   ;;  %s14066_s22 = inlined_call_operand.vmem [shape: f32[1,256], index: 22, kind: input, shape index: {}]   ;;  %s14067_s23 = inlined_call_operand.vmem [shape: f32[1,256], index: 23, kind: input, shape index: {}]   ;;  %s14068_s24 = inlined_call_operand.vmem [shape: bf16[256,128], index: 24, kind: input, shape index: {}]   ;;  %s14069_s25 = inlined_call_operand.vmem [shape: f32[1,128], index: 25, kind: input, shape index: {}]   ;;  %s14070_s26 = inlined_call_operand.vmem [shape: f32[2,8,128], index: 26, kind: output, shape index: {}]  }
   0x1   :  { %14098 = sst [smem:[#allocation9_spill]] %s14044_s0 }
   0x2   :  { %14099 = sst [smem:[#allocation10_spill]] %s14045_s1 }
   0x3   :  { %14100 = sst [smem:[#allocation11_spill]] %s14046_s2 }
   0x4   :  { %14101 = sst [smem:[#allocation12_spill]] %s14047_s3 }
   0x5   :  { %14102 = sst [smem:[#allocation13_spill]] %s14048_s4 }
   0x6   :  { %14103 = sst [smem:[#allocation14_spill]] %s14049_s5 }
   0x7   :  { %14104 = sst [smem:[#allocation15_spill]] %s14050_s6 }
   0x8   :  { %14105 = sst [smem:[#allocation16_spill]] %s14051_s7 }
   0x9   :  { %14106 = sst [smem:[#allocation17_spill]] %s14052_s8 }
   0xa   :  { %14107 = sst [smem:[#allocation18_spill]] %s14053_s9 }
   0xb   :  { %14108 = sst [smem:[#allocation19_spill]] %s14054_s10 }
   0xc LB: > { %s8759_s3 = sadd.s32 4294967295, %s9992_s27   ;;  %p8763_p0 = scmp.ge.s32.totalorder %s9992_s27, 1  ;;  %s9992_s27 = sphi %s10143_s27, %s36_s27  }
   0xd   : > { %p712_p1 = scmp.lt.s32.totalorder %s9992_s27, 3 }
   0xf   : > { %p713_p2 = pnand %p8763_p0, %p712_p1 }
  0x10   : > { %p781_p3 = scmp.lt.s32.totalorder (!%p713_p2), %s8759_s3, 1  ;;  %s14109_s4 = sld [smem:[#allocation9_spill]] (!%p713_p2)  ;;  %vm1164_vm0 = vcmask (!%p713_p2), 1046528   ;;  %vm1454_vm1 = vcmask (!%p713_p2), 1045504   ;;  %vm951_vm2 = vsmask.f32 (!%p713_p2), 7424 }
  0x11   : > { %716 = sbr.rel (%p713_p2) target bundleno = 3469 (0xd8d), region = 124  ;;  %s9994_s0 = smov (!%p713_p2), 24   ;;  %vm1310_vm3 = vsmask.f32 (!%p713_p2), 6400  ;;  %vm14089_vm4 = vsmask.f32 (!%p713_p2), 1280 }
  0x12   : > { %s14078_s9 = smov (!%p713_p2), 16   ;;  %s9996_s30 = smov (!%p713_p2), 40   ;;  %vm14095_vm5 = vcmask (!%p713_p2), 1040384   ;;  %vm14096_vm6 = vmmov (!%p713_p2), 0   ;;  %vm2548_vm7 = vcmask (!%p713_p2), 1043456   ;;  %vm1936_vm8 = vcmask (!%p713_p2), 64512  }
  0x13   : > { %s9997_s2 = smov (!%p713_p2), 8   ;;  %s14084_s5 = smov (!%p713_p2), 32   ;;  %vm1980_vm9 = vcmask (!%p713_p2), 130048   ;;  %vm2023_vm10 = vcmask (!%p713_p2), 195584   ;;  %vm2066_vm11 = vcmask (!%p713_p2), 261120   ;;  %vm2109_vm12 = vcmask (!%p713_p2), 326656  }
  0x14   : > { %s14082_s10 = smov (!%p713_p2), 48   ;;  %s10000_s6 = smov (!%p713_p2), 56   ;;  %vm2152_vm13 = vcmask (!%p713_p2), 392192   ;;  %vm2195_vm14 = vcmask (!%p713_p2), 457728   ;;  %vm2238_vm15 = vcmask (!%p713_p2), 523264  }
  0x15   : > { %s14080_s1 = smov (!%p713_p2), 64   ;;  %s14110_s8 = sld [smem:[#allocation10_spill]] (!%p713_p2) }
  0x16   : > { %s14115_s28 = sld [smem:[#allocation14_spill]] (!%p713_p2) }
  0x18   : > { %s14147_s3 = smov (!%p781_p3, %s8759_s3), 1 }
  0x19   : > { %s9708_s7 = smul.u32 184, %s14147_s3 }
  0x1b   : > { %s10157_s29 = scalar_lea.vmem %s14109_s4, %s9708_s7  ;;  %s14111_s4 = smov 16  }
  0x1c   : > { %v794_v0 = vld [vmem:[%s10157_s29 + $0xc] sm:$0xf]  ;;  %v795_v1 = vld [vmem:[%s10157_s29 + $0x10] sm:$0xf]  ;;  %v10162_v2 = vld [vmem:[%s10157_s29 + $0x14] sm:$0xf] }
  0x1d   : > { %v834_v3 = vld [vmem:[%s10157_s29 + $0x8] sm:$0xc]  ;;  %v10167_v5 = vcombine.low %v795_v1, %v10162_v2  ;;  %v792_v10 = vld [vmem:[%s10157_s29 + $0x4] sm:$0xf]  ;;  %v832_v11 = vld [vmem:[%s10157_s29] sm:$0xc] }
  0x1e   : > { %v838_v4 = vld [vmem:[%s10157_s29 + $0x8] sm:$0x8]  ;;  %v8789_v7 = vcombine.low %v834_v3, %v794_v0  ;;  %v797_v12 = vld [vmem:[%s10157_s29 + $0x18] sm:$0xf]  ;;  %v8787_v14 = vcombine.low %v832_v11, %v792_v10  ;;  %v798_v16 = vld [vmem:[%s10157_s29 + $0x1c] sm:$0xf] }
  0x1f   : > { %v793_v6 = vld [vmem:[%s10157_s29 + $0x8] sm:$0xf]  ;;  %v8792_v8 = vcombine.low %v838_v4, %v794_v0  ;;  %v1168_v13 = vrot.slane %v10167_v5, 1  ;;  %v1456_v15 = vrot.slane %v10167_v5, 2  ;;  %v10179_v20 = vcombine.low %v797_v12, %v798_v16  ;;  %v799_v40 = vld [vmem:[%s10157_s29 + $0x20] sm:$0xf] }
  0x20   : > { %v10170_v9 = vcombine.low %v793_v6, %v794_v0  ;;  %v1259_v17 = vrot.slane %v8789_v7, 1  ;;  %v1165_v21 = vrot.slane %v8787_v14, 1  ;;  %v953_v22 = vshrl.u32 %v8787_v14, 16  ;;  %v800_v45 = vld [vmem:[%s10157_s29 + $0x24] sm:$0xf]  ;;  %s14114_s7 = sld [smem:[#allocation12_spill]] }
  0x21   : > { %v1455_v19 = vrot.slane %v8792_v8, 2  ;;  %v955_v23 = vshll.u32 %v8787_v14, 16  ;;  %v1170_v27 = vrot.slane %v10179_v20, 1  ;;  %v968_v29 = vshll.u32 %v10167_v5, 16  ;;  %v840_v50 = vld [vmem:[%s10157_s29 + $0x10] sm:$0x8] }
  0x22   : > { %v1166_v18 = vrot.slane %v10170_v9, 1  ;;  %v960_v24 = vshll.u32 %v10170_v9, 16  ;;  %v1260_v25 = vsel %vm1164_vm0, %v1259_v17, %v1168_v13  ;;  %v964_v32 = vshrl.u32 %v10170_v9, 16  ;;  %v801_v17 = vld [vmem:[%s10157_s29 + $0x28] sm:$0xf] }
  0x23   : > { %1265 = vrot.lane.b32.xlu0 %v1260_v25, %s9994_s0  ;;  %v957_v28 = vrot.slane %v955_v23, 1  ;;  %v1457_v30 = vsel %vm1454_vm1, %v1455_v19, %v1456_v15  ;;  %v972_v33 = vshrl.u32 %v10167_v5, 16  ;;  %v976_v36 = vshll.u32 %v10179_v20, 16 }
  0x24   : > { %v1167_v26 = vsel %vm1164_vm0, %v1165_v21, %v1166_v18  ;;  %v962_v31 = vrot.slane %v960_v24, 1  ;;  %v1169_v34 = vsel %vm1164_vm0, %v1166_v18, %v1168_v13  ;;  %v980_v37 = vshrl.u32 %v10179_v20, 16 }
  0x25   : > { %1206 = vrot.lane.b32.xlu1 %v1167_v26, %s14078_s9  ;;  %v958_v35 = vor.u32 %v957_v28, %v953_v22  ;;  %v1458_v38 = vrot.slane %v10179_v20, 2  ;;  %v1312_v39 = vshrl.u32 %v8792_v8, 16  ;;  %v10200_v41 = vsel %vm1164_vm0, %v1168_v13, %v1170_v27 }
  0x26   : > { %v966_v42 = vor.u32 %v964_v32, %v962_v31  ;;  %v970_v43 = vrot.slane %v968_v29, 1  ;;  %v1315_v44 = vshll.u32 %v8792_v8, 16  ;;  %v1319_v47 = vrot.slane %v972_v33, 1 }
  0x27   : > { %1496 = vrot.lane.b32.xlu0 %v1457_v30, %s9996_s30  ;;  %v963_v46 = vsel %vm951_vm2, %v958_v35, %v962_v31  ;;  %v1320_v48 = vrot.slane %v968_v29, 2  ;;  %v1314_v49 = vrot.slane %v1312_v39, 1  ;;  %v1323_v51 = vrot.slane %v980_v37, 1  ;;  %v802_v31 = vld [vmem:[%s10157_s29 + $0x2c] sm:$0xf] }
  0x28   : > { %v1324_v52 = vrot.slane %v976_v36, 2  ;;  %v1317_v53 = vrot.slane %v1315_v44, 2  ;;  %v8797_v54 = vcombine.low %v10162_v2, %v797_v12  ;;  %v10213_v55 = vcombine.low %v799_v40, %v800_v45 }
  0x29   : > { %1208 = vrot.lane.b32.xlu1 %v1169_v34, %s14078_s9  ;;  %v10215_v56 = vcombine.low %v798_v16, %v799_v40  ;;  %v8794_v57 = vcombine.low %v840_v50, %v10162_v2  ;;  %v971_v59 = vsel %vm951_vm2, %v966_v42, %v970_v43  ;;  %v1321_v60 = vor.u32 %v1320_v48, %v1319_v47 }
  0x2a   : > { %v1620_v58 = vshrl.u32 %v8797_v54, 16  ;;  %v1318_v61 = vor.u32 %v1317_v53, %v1314_v49  ;;  %v1623_v62 = vshll.u32 %v8797_v54, 16  ;;  %v1459_v63 = vsel %vm1454_vm1, %v1456_v15, %v1458_v38 }
  0x2b   : > { %1119 = vrot.lane.b32.xlu0 %v963_v46, %s9997_s2  ;;  %v1325_v0 = vor.u32 %v1324_v52, %v1323_v51  ;;  %v1628_v1 = vshrl.u32 %v10215_v56, 16  ;;  %v1631_v3 = vshll.u32 %v10215_v56, 16  ;;  %v1460_v4 = vrot.slane %v10213_v55, 2 }
  0x2c   : > { %v1549_v2 = vrot.slane %v8794_v57, 2  ;;  %v1622_v6 = vrot.slane %v1620_v58, 6  ;;  %v1625_v7 = vrot.slane %v1623_v62, 7  ;;  %v1322_v8 = vsel %vm1310_vm3, %v1318_v61, %v1321_v60  ;;  %v804_v57 = vld [vmem:[%s10157_s29 + $0x34] sm:$0xf] }
  0x2d   : > { %1267 = vrot.lane.b32.xlu1 %v10200_v41, %s9994_s0  ;;  %v1326_v10 = vsel %vm1310_vm3, %v1321_v60, %v1325_v0  ;;  %v1630_v11 = vrot.slane %v1628_v1, 6  ;;  %v1633_v12 = vrot.slane %v1631_v3, 7  ;;  %v1461_v14 = vsel %vm1454_vm1, %v1458_v38, %v1460_v4 }
  0x2e   : > { %v1550_v13 = vsel %vm1454_vm1, %v1549_v2, %v1458_v38  ;;  %v1626_v15 = vor.u32 %v1625_v7, %v1622_v6  ;;  %v988_v18 = vshrl.u32 %v10213_v55, 16  ;;  %v1853_v21 = vrot.slane %v8797_v54, 7  ;;  %v9757_v7 = vld [vmem:[%s14110_s8 + $0x8] sm:$0xff]  }
  0x2f   : > { %1121 = vrot.lane.b32.xlu0 %v971_v59, %s9997_s2  ;;  %v1634_v16 = vor.u32 %v1633_v12, %v1630_v11  ;;  %v1854_v22 = vrot.slane %v10215_v56, 7  ;;  %v984_v23 = vshll.u32 %v10213_v55, 16  ;;  %v10242_v24 = vcombine.low %v800_v45, %v801_v17  ;;  %v803_v45 = vld [vmem:[%s10157_s29 + $0x30] sm:$0xf]  ;;  %v805_v11 = vld [vmem:[%s10157_s29 + $0x38] sm:$0xf] }
  0x30   : > { %v974_v25 = vor.u32 %v972_v33, %v970_v43  ;;  %v978_v26 = vrot.slane %v976_v36, 1  ;;  %v1327_v28 = vrot.slane %v988_v18, 1  ;;  %v1172_v32 = vrot.slane %v10213_v55, 1  ;;  %v9759_v12 = vld [vmem:[%s14110_s8 + $0x10] sm:$0xff]  }
  0x31   : > { %1498 = vrot.lane.b32.xlu1 %v1459_v63, %s9996_s30  ;;  %v1635_v19 = vsel %vm14089_vm4, %v1626_v15, %v1634_v16  ;;  %v1855_v29 = vsel %vm14095_vm5, %v1853_v21, %v1854_v22  ;;  %v1328_v30 = vrot.slane %v984_v23, 2  ;;  %v1637_v34 = vshrl.u32 %v10242_v24, 16  ;;  %v9756_v63 = vld [vmem:[%s14110_s8] sm:$0xff]  }
  0x32   : > { %v979_v33 = vsel %vm951_vm2, %v974_v25, %v978_v26  ;;  %v1640_v35 = vshll.u32 %v10242_v24, 16  ;;  %v10259_v38 = vcombine.low %v801_v17, %v802_v31  ;;  %v1173_v39 = vsel %vm1164_vm0, %v1170_v27, %v1172_v32  ;;  %v9761_v17 = vld [vmem:[%s14110_s8 + $0x18] sm:$0xff]  }
  0x33   : > { %1409 = vrot.lane.b32.xlu0 %v1322_v8, %s14084_s5  ;;  %v1329_v36 = vor.u32 %v1328_v30, %v1327_v28  ;;  %v1639_v40 = vrot.slane %v1637_v34, 6  ;;  %v982_v50 = vor.u32 %v980_v37, %v978_v26  ;;  %v986_v51 = vrot.slane %v984_v23, 1  ;;  %v9762_v26 = vld [vmem:[%s14110_s8 + $0x20] ss:$0 sps:$4 sm:$0xff]   ;;  %s14118_s8 = smov 48  }
  0x34   : > { %v1642_v42 = vrot.slane %v1640_v35, 7  ;;  %v1462_v44 = vrot.slane %v10259_v38, 2  ;;  %v992_v48 = vshll.u32 %v10259_v38, 16  ;;  %v996_v27 = vshrl.u32 %v10259_v38, 16 }
  0x35   : > { %1411 = vrot.lane.b32.xlu1 %v1326_v10, %s14084_s5  ;;  %v1330_v43 = vsel %vm1310_vm3, %v1325_v0, %v1329_v36  ;;  %v10281_v52 = vcombine.low %v802_v31, %v803_v45  ;;  %v987_v58 = vsel %vm951_vm2, %v982_v50, %v986_v51  ;;  %v1174_v59 = vrot.slane %v10259_v38, 1 }
  0x36   : > { %v1643_v46 = vor.u32 %v1642_v42, %v1639_v40  ;;  %v1463_v47 = vsel %vm1454_vm1, %v1460_v4, %v1462_v44  ;;  %v1331_v54 = vrot.slane %v996_v27, 1  ;;  %v1332_v56 = vrot.slane %v992_v48, 2 }
  0x37   : > { %1555 = vrot.lane.b32.xlu0 %v1550_v13, %s14082_s10  ;;  %v1646_v37 = vshrl.u32 %v10281_v52, 16  ;;  %v1649_v60 = vshll.u32 %v10281_v52, 16  ;;  %v10293_v62 = vcombine.low %v803_v45, %v804_v57  ;;  %v1175_v0 = vsel %vm1164_vm0, %v1172_v32, %v1174_v59 }
  0x38   : > { %v1644_v49 = vsel %vm14089_vm4, %v1634_v16, %v1643_v46  ;;  %v1333_v61 = vor.u32 %v1332_v56, %v1331_v54  ;;  %v10002_v4 = vmov 0.0   ;;  %v990_v16 = vor.u32 %v988_v18, %v986_v51  ;;  %v806_v18 = vld [vmem:[%s10157_s29 + $0x3c] sm:$0xf]  ;;  %v808_v56 = vld [vmem:[%s10157_s29 + $0x44] sm:$0xf] }
  0x39   : > { %1557 = vrot.lane.b32.xlu1 %v1461_v14, %s14082_s10  ;;  %v1648_v1 = vrot.slane %v1646_v37, 6  ;;  %v1651_v3 = vrot.slane %v1649_v60, 7  ;;  %9462 = vmatprep.subr.bf16.mxu0 %v10002_v4  ;;  %v1464_v6 = vrot.slane %v10293_v62, 2  ;;  %v1000_v10 = vshll.u32 %v10293_v62, 16 }
  0x3a   : > { %v1334_v2 = vsel %vm1310_vm3, %v1329_v36, %v1333_v61  ;;  %9463 = vmatpush3.bf16.msra.mxu0 %v9756_v63  ;;  %9472 = vmatprep.mubr.msk.bf16.mxu0 %vm14096_vm6, %v10002_v4  ;;  %v1176_v28 = vrot.slane %v10293_v62, 1  ;;  %v10345_v34 = vcombine.low %v805_v11, %v806_v18 }
  0x3b   : > { %1807 = vrot.lane.b32.xlu0 %v1626_v15, %s10000_s6  ;;  %9464 = vmatprep.subr.bf16.mxu0 %v10002_v4  ;;  %v1652_v8 = vor.u32 %v1651_v3, %v1648_v1  ;;  %v1465_v13 = vsel %vm1454_vm1, %v1462_v44, %v1464_v6  ;;  %v1004_v15 = vshrl.u32 %v10293_v62, 16  ;;  %v1336_v25 = vrot.slane %v1000_v10, 2 }
  0x3c   : > { %v1177_v35 = vsel %vm1164_vm0, %v1174_v59, %v1176_v28  ;;  %v1466_v42 = vrot.slane %v10345_v34, 2  ;;  %v1002_v50 = vrot.slane %v1000_v10, 1 }
  0x3d   : > { %1809 = vrot.lane.b32.xlu1 %v1635_v19, %s10000_s6  ;;  %v1653_v19 = vsel %vm14089_vm4, %v1643_v46, %v1652_v8 }
  0x3e   : > { %9465 = vmatpush3.bf16.msra.mxu0 %v9757_v7  ;;  %v1467_v46 = vsel %vm1454_vm1, %v1464_v6, %v1466_v42  ;;  %v809_v7 = vld [vmem:[%s10157_s29 + $0x48] sm:$0xf] }
  0x3f   : > { %1894 = vrot.lane.b32.xlu0 %v1853_v21, %s14080_s1  ;;  %9466 = vmatprep.subr.bf16.mxu0 %v10002_v4  ;;  %v994_v21 = vrot.slane %v992_v48, 1 }
  0x41   : > { %1896 = vrot.lane.b32.xlu1 %v1855_v29, %s14080_s1  ;;  %v995_v29 = vsel %vm951_vm2, %v990_v16, %v994_v21 }
  0x42   : > { %9467 = vmatpush3.bf16.msra.mxu0 %v9759_v12  ;;  %v10391_v12 = vcombine.low %v808_v56, %v809_v7 }
  0x43   : > { %1123 = vrot.lane.b32.xlu0 %v979_v33, %s9997_s2  ;;  %9468 = vmatprep.subr.bf16.mxu0 %v10002_v4  ;;  %v2550_v33 = vsel %vm2548_vm7, %v9762_v26, 0  ;;  %vm2484_vm7 = vcmask 588800  }
  0x45   : > { %1210 = vrot.lane.b32.xlu1 %v10200_v41, %s14078_s9  ;;  %v1856_v41 = vrot.slane %v10242_v24, 7  ;;  %v1335_v24 = vrot.slane %v1004_v15, 1 }
  0x46   : > { %9469 = vmatpush3.bf16.msra.mxu0 %v9761_v17  ;;  %v1006_v17 = vor.u32 %v1004_v15, %v1002_v50 }
  0x47   : > { %1269 = vrot.lane.b32.xlu0 %v1173_v39, %s9994_s0  ;;  %v1857_v53 = vsel %vm14095_vm5, %v1854_v22, %v1856_v41  ;;  %v10327_v22 = vcombine.low %v804_v57, %v805_v11  ;;  %v1337_v32 = vor.u32 %v1336_v25, %v1335_v24  ;;  %9470 = vmatprep.subr.bf16.mxu0 %v10002_v4  ;;  %v1178_v57 = vrot.slane %v10345_v34, 1 }
  0x48   : > { %v1673_v24 = vshrl.u32 %v10391_v12, 16  ;;  %v1676_v25 = vshll.u32 %v10391_v12, 16 }
  0x49   : > { %1413 = vrot.lane.b32.xlu1 %v1330_v43, %s14084_s5  ;;  %v1655_v30 = vshrl.u32 %v10327_v22, 16  ;;  %v1658_v31 = vshll.u32 %v10327_v22, 16  ;;  %v1338_v40 = vsel %vm1310_vm3, %v1333_v61, %v1337_v32  ;;  %v807_v43 = vld [vmem:[%s10157_s29 + $0x40] sm:$0xf]  ;;  %v1860_v44 = vrot.slane %v10327_v22, 7 }
  0x4a   : > { %9471 = vmatpush3.bf16.msra.mxu0 %v2550_v33  ;;  %v10365_v51 = vcombine.low %v806_v18, %v807_v43  ;;  %v10377_v60 = vcombine.low %v807_v43, %v808_v56  ;;  %v1179_v61 = vsel %vm1164_vm0, %v1176_v28, %v1178_v57  ;;  %v810_v22 = vld [vmem:[%s10157_s29 + $0x4c] sm:$0xf]  ;;  %v1675_v28 = vrot.slane %v1673_v24, 6 }
  0x4b   : > { %1500 = vrot.lane.b32.xlu0 %v1461_v14, %s9996_s30  ;;  %v1858_v14 = vrot.slane %v10281_v52, 7  ;;  %v1657_v36 = vrot.slane %v1655_v30, 6  ;;  %v10408_v26 = vcombine.low %v809_v7, %v810_v22  ;;  %v1864_v43 = vrot.slane %v10391_v12, 7 }
  0x4c   : > { %v1667_v59 = vshll.u32 %v10365_v51, 16  ;;  %v1468_v3 = vrot.slane %v10377_v60, 2  ;;  %v1020_v6 = vshrl.u32 %v10377_v60, 16  ;;  %v1862_v11 = vrot.slane %v10365_v51, 7 }
  0x4d   : > { %1559 = vrot.lane.b32.xlu1 %v1463_v47, %s14082_s10  ;;  %v1859_v23 = vsel %vm14095_vm5, %v1856_v41, %v1858_v14  ;;  %v1012_v41 = vshrl.u32 %v10345_v34, 16  ;;  %v1861_v52 = vsel %vm14095_vm5, %v1858_v14, %v1860_v44  ;;  %v1024_v33 = vshll.u32 %v10408_v26, 16 }
  0x4e   : > { %v1469_v10 = vsel %vm1454_vm1, %v1466_v42, %v1468_v3 }
  0x4f   : > { %1811 = vrot.lane.b32.xlu0 %v1644_v49, %s10000_s6  ;;  %v998_v49 = vor.u32 %v996_v27, %v994_v21  ;;  %v1664_v27 = vshrl.u32 %v10365_v51, 16  ;;  %v1180_v21 = vrot.slane %v10377_v60, 1  ;;  %v1865_v51 = vsel %vm14095_vm5, %v1862_v11, %v1864_v43 }
  0x51   : > { %1898 = vrot.lane.b32.xlu1 %v1857_v53, %s14080_s1  ;;  %v1339_v53 = vrot.slane %v1012_v41, 1  ;;  %v1666_v63 = vrot.slane %v1664_v27, 6  ;;  %v1181_v30 = vsel %vm1164_vm0, %v1178_v57, %v1180_v21 }
  0x53   : > { %1125 = vrot.lane.b32.xlu0 %v987_v58, %s9997_s2  ;;  %v1003_v58 = vsel %vm951_vm2, %v998_v49, %v1002_v50  ;;  %v812_v50 = vld [vmem:[%s10157_s29 + $0x54] sm:$0xf] }
  0x55   : > { %1212 = vrot.lane.b32.xlu1 %v1173_v39, %s14078_s9  ;;  %v1660_v39 = vrot.slane %v1658_v31, 7  ;;  %s14117_s9 = smov 32  }
  0x57   : > { %1271 = vrot.lane.b32.xlu0 %v1175_v0, %s9994_s0  ;;  %v1661_v45 = vor.u32 %v1660_v39, %v1657_v36  ;;  %v1028_v36 = vshrl.u32 %v10408_v26, 16  ;;  %v811_v39 = vld [vmem:[%s10157_s29 + $0x50] sm:$0xf] }
  0x58   : > { %v10439_v57 = vcombine.low %v811_v39, %v812_v50 }
  0x59   : > { %1415 = vrot.lane.b32.xlu1 %v1334_v2, %s14084_s5  ;;  %v1662_v48 = vsel %vm14089_vm4, %v1652_v8, %v1661_v45  ;;  %v1016_v2 = vshll.u32 %v10377_v60, 16 }
  0x5a   : > { %v1184_v12 = vrot.slane %v10439_v57, 1 }
  0x5b   : > { %1502 = vrot.lane.b32.xlu0 %v1463_v47, %s9996_s30  ;;  %v1008_v47 = vshll.u32 %v10345_v34, 16  ;;  %v1344_v14 = vrot.slane %v1016_v2, 2 }
  0x5d   : > { %1561 = vrot.lane.b32.xlu1 %v1465_v13, %s14082_s10  ;;  %v1340_v54 = vrot.slane %v1008_v47, 2 }
  0x5f   : > { %1813 = vrot.lane.b32.xlu0 %v1653_v19, %s10000_s6  ;;  %v1341_v37 = vor.u32 %v1340_v54, %v1339_v53  ;;  %v1343_v19 = vrot.slane %v1020_v6, 1 }
  0x61   : > { %1900 = vrot.lane.b32.xlu1 %v1859_v23, %s14080_s1  ;;  %v1342_v1 = vsel %vm1310_vm3, %v1337_v32, %v1341_v37  ;;  %v1863_v23 = vsel %vm14095_vm5, %v1860_v44, %v1862_v11  ;;  %v1345_v15 = vor.u32 %v1344_v14, %v1343_v19  ;;  %v1470_v32 = vrot.slane %v10408_v26, 2  ;;  %v791_v19 = vld [vmem:[%s10157_s29] sm:$0xe] }
  0x62   : > { %v1348_v44 = vrot.slane %v1024_v33, 2  ;;  %v1026_v11 = vrot.slane %v1024_v33, 1 }
  0x63   : > { %1127 = vrot.lane.b32.xlu0 %v995_v29, %s9997_s2  ;;  %v1678_v29 = vrot.slane %v1676_v25, 7  ;;  %v1346_v31 = vsel %vm1310_vm3, %v1341_v37, %v1345_v15  ;;  %v1471_v42 = vsel %vm1454_vm1, %v1468_v3, %v1470_v32  ;;  %v1032_v3 = vshll.u32 %v10439_v57, 16 }
  0x65   : > { %1214 = vrot.lane.b32.xlu1 %v1175_v0, %s14111_s4  ;;  %v1669_v0 = vrot.slane %v1667_v59, 7  ;;  %v813_v59 = vld [vmem:[%s10157_s29 + $0x58] sm:$0xf] }
  0x67   : > { %1273 = vrot.lane.b32.xlu0 %v1177_v35, %s9994_s0  ;;  %v1670_v8 = vor.u32 %v1669_v0, %v1666_v63  ;;  %v1472_v63 = vrot.slane %v10439_v57, 2 }
  0x69   : > { %1417 = vrot.lane.b32.xlu1 %v1338_v40, %s14084_s5  ;;  %v1671_v16 = vsel %vm14089_vm4, %v1661_v45, %v1670_v8  ;;  %v1679_v40 = vor.u32 %v1678_v29, %v1675_v28  ;;  %v10422_v45 = vcombine.low %v810_v22, %v811_v39 }
  0x6b   : > { %1504 = vrot.lane.b32.xlu0 %v1465_v13, %s9996_s30  ;;  %v1010_v13 = vrot.slane %v1008_v47, 1  ;;  %v1182_v47 = vrot.slane %v10408_v26, 1  ;;  %v1685_v53 = vshll.u32 %v10422_v45, 16 }
  0x6d   : > { %1563 = vrot.lane.b32.xlu1 %v1467_v46, %s14082_s10  ;;  %v1011_v18 = vsel %vm951_vm2, %v1006_v17, %v1010_v13  ;;  %v1014_v49 = vor.u32 %v1012_v41, %v1010_v13  ;;  %v1687_v41 = vrot.slane %v1685_v53, 7  ;;  %v1183_v27 = vsel %vm1164_vm0, %v1180_v21, %v1182_v47  ;;  %v815_v53 = vld [vmem:[%s10157_s29 + $0x60] sm:$0xf] }
  0x6e   : > { %v10462_v13 = vcombine.low %v812_v50, %v813_v59  ;;  %v1352_v17 = vrot.slane %v1032_v3, 2 }
  0x6f   : > { %1815 = vrot.lane.b32.xlu0 %v1662_v48, %s10000_s6  ;;  %v1680_v48 = vsel %vm14089_vm4, %v1670_v8, %v1679_v40 }
  0x70   : > { %v1868_v50 = vrot.slane %v10462_v13, 7 }
  0x71   : > { %1902 = vrot.lane.b32.xlu1 %v1861_v52, %s14080_s1  ;;  %v1682_v52 = vshrl.u32 %v10422_v45, 16 }
  0x73   : > { %1129 = vrot.lane.b32.xlu0 %v1003_v58, %s9997_s2  ;;  %v1684_v58 = vrot.slane %v1682_v52, 6 }
  0x75   : > { %1216 = vrot.lane.b32.xlu1 %v1177_v35, %s14111_s4  ;;  %v1018_v35 = vrot.slane %v1016_v2, 1  ;;  %v1036_v2 = vshrl.u32 %v10439_v57, 16  ;;  %v10456_v7 = vor.u32 %v1687_v41, %v1684_v58 }
  0x77   : > { %1275 = vrot.lane.b32.xlu0 %v1179_v61, %s9994_s0  ;;  %v1019_v54 = vsel %vm951_vm2, %v1014_v49, %v1018_v35  ;;  %v1689_v21 = vsel %vm14089_vm4, %v1679_v40, %v10456_v7  ;;  %v1022_v22 = vor.u32 %v1020_v6, %v1018_v35 }
  0x79   : > { %1419 = vrot.lane.b32.xlu1 %v1342_v1, %s14084_s5  ;;  %v1866_v1 = vrot.slane %v10422_v45, 7  ;;  %v1027_v29 = vsel %vm951_vm2, %v1022_v22, %v1026_v11 }
  0x7b   : > { %1506 = vrot.lane.b32.xlu0 %v1467_v46, %s9996_s30  ;;  %v1347_v46 = vrot.slane %v1028_v36, 1  ;;  %v1867_v25 = vsel %vm14095_vm5, %v1864_v43, %v1866_v1  ;;  %v10496_v43 = vsel %vm1164_vm0, %v1182_v47, %v1184_v12 }
  0x7d   : > { %1565 = vrot.lane.b32.xlu1 %v1469_v10, %s14082_s10  ;;  %v1349_v56 = vor.u32 %v1348_v44, %v1347_v46 }
  0x7f   : > { %1817 = vrot.lane.b32.xlu0 %v1671_v16, %s10000_s6  ;;  %v1351_v16 = vrot.slane %v1036_v2, 1 }
  0x81   : > { %1904 = vrot.lane.b32.xlu1 %v1863_v23, %s14080_s1  ;;  %v814_v23 = vld [vmem:[%s10157_s29 + $0x5c] sm:$0xf] }
  0x82   : > { %v10485_v33 = vcombine.low %v813_v59, %v814_v23 }
  0x83   : > { %1131 = vrot.lane.b32.xlu0 %v1011_v18, %s9997_s2  ;;  %v1691_v18 = vshrl.u32 %v10462_v13, 16 }
  0x84   : > { %v1474_v49 = vrot.slane %v10485_v33, 2  ;;  %v1044_v52 = vshrl.u32 %v10485_v33, 16  ;;  %v1186_v45 = vrot.slane %v10485_v33, 1 }
  0x85   : > { %1218 = vrot.lane.b32.xlu1 %v1179_v61, %s14111_s4  ;;  %v1350_v61 = vsel %vm1310_vm3, %v1345_v15, %v1349_v56  ;;  %v1694_v15 = vshll.u32 %v10462_v13, 16  ;;  %v1693_v39 = vrot.slane %v1691_v18, 6 }
  0x86   : > { %v10516_v41 = vsel %vm1454_vm1, %v1472_v63, %v1474_v49 }
  0x87   : > { %1277 = vrot.lane.b32.xlu0 %v1181_v30, %s9994_s0  ;;  %v1696_v40 = vrot.slane %v1694_v15, 7 }
  0x89   : > { %1421 = vrot.lane.b32.xlu1 %v1346_v31, %s14084_s5 }
  0x8b   : > { %1508 = vrot.lane.b32.xlu0 %v1469_v10, %s9996_s30  ;;  %v1473_v10 = vsel %vm1454_vm1, %v1470_v32, %v1472_v63  ;;  %v10483_v32 = vor.u32 %v1352_v17, %v1351_v16  ;;  %v10535_v17 = vcombine.low %v814_v23, %v815_v53 }
  0x8d   : > { %1567 = vrot.lane.b32.xlu1 %v1471_v42, %s14082_s10 }
  0x8f   : > { %1819 = vrot.lane.b32.xlu0 %v1680_v48, %s10000_s6  ;;  %v1354_v48 = vsel %vm1310_vm3, %v1349_v56, %v10483_v32  ;;  %v10511_v56 = vor.u32 %v1696_v40, %v1693_v39 }
  0x91   : > { %1906 = vrot.lane.b32.xlu1 %v1865_v51, %s14080_s1  ;;  %v1040_v51 = vshll.u32 %v10485_v33, 16  ;;  %v1698_v63 = vsel %vm14089_vm4, %v10456_v7, %v10511_v56 }
  0x93   : > { %1133 = vrot.lane.b32.xlu0 %v1019_v54, %s9997_s2 }
  0x95   : > { %1220 = vrot.lane.b32.xlu1 %v1181_v30, %s14111_s4  ;;  %v10447_v37 = vpop.permute.xlu0 %1265  ;;  %v9983_v30 = vld [vmem:[%s10157_s29 + $0x4] sm:$0xf] }
  0x96   : > { %v8766_v6 = vcombine.low %v791_v19, %v9983_v30  ;;  %v1356_v19 = vrot.slane %v1040_v51, 2 }
  0x97   : > { %v1207_v0 = vpop.permute.xlu1 %1206  ;;  %1279 = vrot.lane.b32.xlu0 %v1183_v27, %s9994_s0 }
  0x99   : > { %1423 = vrot.lane.b32.xlu1 %v1350_v61, %s14084_s5  ;;  %v10458_v8 = vpop.permute.xlu0 %1496  ;;  %v10519_v61 = vrot.slane %v1032_v3, 1  ;;  %v10533_v3 = vld [vmem:[%s10157_s29 + $0x64] sm:$0xf] }
  0x9b   : > { %v1209_v14 = vpop.permute.xlu1 %1208  ;;  %1510 = vrot.lane.b32.xlu0 %v1471_v42, %s9996_s30 }
  0x9d   : > { %1569 = vrot.lane.b32.xlu1 %v1473_v10, %s14082_s10  ;;  %v1120_v24 = vpop.permute.xlu0 %1119 }
  0x9e   : > { %v1939_v44 = vsel %vm1936_vm8, %v8766_v6, %v1120_v24  ;;  %v1700_v24 = vshrl.u32 %v10535_v17, 16 }
  0x9f   : > { %v1268_v28 = vpop.permute.xlu1 %1267  ;;  %1821 = vrot.lane.b32.xlu0 %v1689_v21, %s10000_s6  ;;  %v1982_v54 = vsel %vm1980_vm9, %v1939_v44, %v1207_v0 }
  0xa0   : > { %v2025_v0 = vsel %vm2023_vm10, %v1982_v54, %v10447_v37 }
  0xa1   : > { %1908 = vrot.lane.b32.xlu1 %v1867_v25, %s14080_s1  ;;  %v1122_v31 = vpop.permute.xlu0 %1121  ;;  %v1703_v25 = vshll.u32 %v10535_v17, 16 }
  0xa2   : > { %v1941_v42 = vsel %vm1936_vm8, %v10170_v9, %v1122_v31 }
  0xa3   : > { %v1499_v35 = vpop.permute.xlu1 %1498  ;;  %1135 = vrot.lane.b32.xlu0 %v1027_v29, %s9997_s2  ;;  %v1984_v47 = vsel %vm1980_vm9, %v1941_v42, %v1209_v14  ;;  %v1030_v14 = vor.u32 %v1028_v36, %v1026_v11  ;;  %v1869_v36 = vsel %vm14095_vm5, %v1866_v1, %v1868_v50  ;;  %v1355_v11 = vrot.slane %v1044_v52, 1 }
  0xa4   : > { %v10563_v29 = vcombine.low %v815_v53, %v10533_v3  ;;  %v10574_v42 = vsel %vm1164_vm0, %v1184_v12, %v1186_v45 }
  0xa5   : > { %1222 = vrot.lane.b32.xlu1 %v1183_v27, %s14111_s4  ;;  %v1410_v46 = vpop.permute.xlu0 %1409  ;;  %v2027_v27 = vsel %vm2023_vm10, %v1984_v47, %v1268_v28  ;;  %v1035_v22 = vsel %vm951_vm2, %v1030_v14, %v10519_v61  ;;  %v10560_v28 = vor.u32 %v1356_v19, %v1355_v11  ;;  %v817_v19 = vld [vmem:[%s10157_s29 + $0x68] sm:$0xf] }
  0xa6   : > { %v2068_v16 = vsel %vm2066_vm11, %v2025_v0, %v1410_v46  ;;  %v1052_v11 = vshrl.u32 %v10563_v29, 16 }
  0xa7   : > { %v1412_v9 = vpop.permute.xlu1 %1411  ;;  %1281 = vrot.lane.b32.xlu0 %v10496_v43, %s9994_s0  ;;  %v2111_v21 = vsel %vm2109_vm12, %v2068_v16, %v10458_v8 }
  0xa8   : > { %v2070_v37 = vsel %vm2066_vm11, %v2027_v27, %v1412_v9  ;;  %v1705_v9 = vrot.slane %v1703_v25, 7  ;;  %v1476_v27 = vrot.slane %v10563_v29, 2 }
  0xa9   : > { %1425 = vrot.lane.b32.xlu1 %v1354_v48, %s14084_s5  ;;  %v1556_v58 = vpop.permute.xlu0 %1555  ;;  %v2113_v1 = vsel %vm2109_vm12, %v2070_v37, %v1499_v35  ;;  %v1702_v48 = vrot.slane %v1700_v24, 6  ;;  %v10622_v24 = vcombine.low %v10533_v3, %v817_v19  ;;  %v818_v3 = vld [vmem:[%s10157_s29 + $0x6c] sm:$0xf] }
  0xaa   : > { %v2154_v23 = vsel %vm2152_vm13, %v2111_v21, %v1556_v58  ;;  %v1358_v58 = vsel %vm1310_vm3, %v10483_v32, %v10560_v28  ;;  %v1048_v32 = vshll.u32 %v10563_v29, 16 }
  0xab   : > { %v1558_v59 = vpop.permute.xlu1 %1557  ;;  %1512 = vrot.lane.b32.xlu0 %v1473_v10, %s9996_s30 }
  0xac   : > { %v2156_v8 = vsel %vm2152_vm13, %v2113_v1, %v1558_v59  ;;  %v1038_v1 = vor.u32 %v1036_v2, %v10519_v61  ;;  %v1359_v2 = vrot.slane %v1052_v11, 1 }
  0xad   : > { %1571 = vrot.lane.b32.xlu1 %v10516_v41, %s14082_s10  ;;  %v1808_v10 = vpop.permute.xlu0 %1807 }
  0xae   : > { %v2197_v18 = vsel %vm2195_vm14, %v2154_v23, %v1808_v10  ;;  %v1042_v23 = vrot.slane %v1040_v51, 1  ;;  %v1360_v51 = vrot.slane %v1048_v32, 2 }
  0xaf   : > { %v1810_v7 = vpop.permute.xlu1 %1809  ;;  %1823 = vrot.lane.b32.xlu0 %v1698_v63, %s10000_s6  ;;  %v10589_v63 = vor.u32 %v1705_v9, %v1702_v48 }
  0xb0   : > { %v2199_v30 = vsel %vm2195_vm14, %v2156_v8, %v1810_v7  ;;  %v1043_v13 = vsel %vm951_vm2, %v1038_v1, %v1042_v23 }
  0xb1   : > { %1910 = vrot.lane.b32.xlu1 %v1869_v36, %s14080_s1  ;;  %v1895_v15 = vpop.permute.xlu0 %1894  ;;  %v1870_v36 = vrot.slane %v10535_v17, 7 }
  0xb2   : > { %v2240_v31 = vsel %vm2238_vm15, %v2197_v18, %v1895_v15  ;;  %v1188_v18 = vrot.slane %v10563_v29, 1  ;;  %v1712_v15 = vshll.u32 %v10622_v24, 16 }
  0xb3   : > { %v1897_v6 = vpop.permute.xlu1 %1896  ;;  %v2290_v39 = vshrl.u32 %v2240_v31, 16  ;;  %v2293_v40 = vshll.u32 %v2240_v31, 16  ;;  %1137 = vrot.lane.b32.xlu0 %v1035_v22, %s9997_s2  ;;  %v10643_v31 = vor.u32 %v1360_v51, %v1359_v2 }
  0xb4   : > { %v2242_v35 = vsel %vm2238_vm15, %v2199_v30, %v1897_v6 }
  0xb5   : > { %v2297_v44 = vshrl.u32 %v2242_v35, 16  ;;  %v2300_v46 = vshll.u32 %v2242_v35, 16  ;;  %1224 = vrot.lane.b32.xlu1 %v10496_v43, %s14111_s4  ;;  %v2292_v47 = vrot.slane %v2290_v39, 1  ;;  %v2295_v53 = vrot.slane %v2293_v40, 2  ;;  %v1124_v54 = vpop.permute.xlu0 %1123 }
  0xb6   : > { %v1943_v0 = vsel %vm1936_vm8, %v10167_v5, %v1124_v54  ;;  %v10598_v5 = vsel %vm1454_vm1, %v1474_v49, %v1476_v27  ;;  %v1707_v49 = vsel %vm14089_vm4, %v10511_v56, %v10589_v63  ;;  %v1871_v56 = vsel %vm14095_vm5, %v1868_v50, %v1870_v36 }
  0xb7   : > { %v2299_v59 = vrot.slane %v2297_v44, 1  ;;  %v2302_v12 = vrot.slane %v2300_v46, 2  ;;  %v1211_v14 = vpop.permute.xlu1 %1210  ;;  %v2296_v16 = vor.u32 %v2295_v53, %v2292_v47  ;;  %1283 = vrot.lane.b32.xlu0 %v10574_v42, %s9994_s0  ;;  %v1709_v50 = vshrl.u32 %v10622_v24, 16 }
  0xb8   : > { %v1986_v37 = vsel %vm1980_vm9, %v1943_v0, %v1211_v14  ;;  %v10645_v35 = vcombine.low %v817_v19, %v818_v3  ;;  %v1189_v46 = vsel %vm1164_vm0, %v1186_v45, %v1188_v18  ;;  %v1714_v53 = vrot.slane %v1712_v15, 7 }
  0xb9   : > { %v10586_v43 = vor.u32 %v2302_v12, %v2299_v59  ;;  %1427 = vrot.lane.b32.xlu1 %v1358_v58, %s14084_s5  ;;  %v1270_v10 = vpop.permute.xlu0 %1269  ;;  %v1711_v47 = vrot.slane %v1709_v50, 6  ;;  %v1362_v58 = vsel %vm1310_vm3, %v10560_v28, %v10643_v31 }
  0xba   : > { %v2029_v7 = vsel %vm2023_vm10, %v1986_v37, %v1270_v10  ;;  %v1478_v59 = vrot.slane %v10645_v35, 2  ;;  %v1056_v19 = vshll.u32 %v10645_v35, 16 }
  0xbb   : > { %v1414_v21 = vpop.permute.xlu1 %1413  ;;  %v2304_v22 = vsel %vm1310_vm3, %v2296_v16, %v10586_v43  ;;  %1514 = vrot.lane.b32.xlu0 %v10516_v41, %s9996_s30  ;;  %v10668_v37 = vor.u32 %v1714_v53, %v1711_v47 }
  0xbc   : > { %9473 = vmatmul.mubr.msk.bf16.vlgmr.msra.gmra.mrb[0].mxu0 %vm2484_vm7, %v2304_v22  ;;  %v2072_v41 = vsel %vm2066_vm11, %v2029_v7, %v1414_v21  ;;  %v1060_v7 = vshrl.u32 %v10645_v35, 16  ;;  %v819_v21 = vld [vmem:[%s10157_s29 + $0x70] sm:$0xf] }
  0xbd   : > { %1573 = vrot.lane.b32.xlu1 %v10598_v5, %s14082_s10  ;;  %9476 = vmatprep.mubr.msk.bf16.mxu0 %vm14096_vm6, %v10002_v4  ;;  %v1501_v25 = vpop.permute.xlu0 %1500 }
  0xbe   : > { %v2115_v61 = vsel %vm2109_vm12, %v2072_v41, %v1501_v25  ;;  %v1046_v41 = vor.u32 %v1044_v52, %v1042_v23  ;;  %v1050_v25 = vrot.slane %v1048_v32, 1  ;;  %v1363_v52 = vrot.slane %v1060_v7, 1 }
  0xbf   : > { %v1560_v8 = vpop.permute.xlu1 %1559  ;;  %1825 = vrot.lane.b32.xlu0 %v1707_v49, %s10000_s6  ;;  %v1364_v32 = vrot.slane %v1056_v19, 2 }
  0xc0   : > { %v2158_v30 = vsel %vm2152_vm13, %v2115_v61, %v1560_v8  ;;  %v1190_v61 = vrot.slane %v10645_v35, 1  ;;  %v1051_v17 = vsel %vm951_vm2, %v1046_v41, %v1050_v25 }
  0xc1   : > { %1912 = vrot.lane.b32.xlu1 %v1871_v56, %s14080_s1  ;;  %v1812_v6 = vpop.permute.xlu0 %1811  ;;  %v10722_v15 = vor.u32 %v1364_v32, %v1363_v52 }
  0xc2   : > { %v2201_v39 = vsel %vm2195_vm14, %v2158_v30, %v1812_v6 }
  0xc3   : > { %v1899_v40 = vpop.permute.xlu1 %1898  ;;  %1139 = vrot.lane.b32.xlu0 %v1043_v13, %s9997_s2 }
  0xc4   : > { %v2244_v44 = vsel %vm2238_vm15, %v2201_v39, %v1899_v40  ;;  %v1191_v40 = vsel %vm1164_vm0, %v1188_v18, %v1190_v61 }
  0xc5   : > { %v2305_v48 = vshrl.u32 %v2244_v44, 16  ;;  %v2308_v9 = vshll.u32 %v2244_v44, 16  ;;  %1226 = vrot.lane.b32.xlu1 %v10574_v42, %s14111_s4  ;;  %v1126_v54 = vpop.permute.xlu0 %1125  ;;  %v1872_v42 = vrot.slane %v10622_v24, 7 }
  0xc6   : > { %v1945_v45 = vsel %vm1936_vm8, %v10179_v20, %v1126_v54  ;;  %v10676_v20 = vsel %vm1454_vm1, %v1476_v27, %v1478_v59  ;;  %v1716_v27 = vsel %vm14089_vm4, %v10589_v63, %v10668_v37 }
  0xc7   : > { %v2307_v12 = vrot.slane %v2305_v48, 1  ;;  %v2310_v0 = vrot.slane %v2308_v9, 2  ;;  %v1213_v14 = vpop.permute.xlu1 %1212  ;;  %1285 = vrot.lane.b32.xlu0 %v1189_v46, %s9994_s0  ;;  %v1873_v63 = vsel %vm14095_vm5, %v1870_v36, %v1872_v42 }
  0xc8   : > { %v1988_v28 = vsel %vm1980_vm9, %v1945_v45, %v1213_v14 }
  0xc9   : > { %v10664_v16 = vor.u32 %v2310_v0, %v2307_v12  ;;  %1429 = vrot.lane.b32.xlu1 %v1362_v58, %s14084_s5  ;;  %v1272_v10 = vpop.permute.xlu0 %1271  ;;  %v1366_v58 = vsel %vm1310_vm3, %v10643_v31, %v10722_v15 }
  0xca   : > { %v2031_v22 = vsel %vm2023_vm10, %v1988_v28, %v1272_v10 }
  0xcb   : > { %v1416_v49 = vpop.permute.xlu1 %1415  ;;  %v2312_v1 = vsel %vm1310_vm3, %v10586_v43, %v10664_v16  ;;  %1516 = vrot.lane.b32.xlu0 %v10598_v5, %s9996_s30  ;;  %v820_v43 = vld [vmem:[%s10157_s29 + $0x74] sm:$0xf]  ;;  %v10700_v5 = vcombine.low %v818_v3, %v819_v21 }
  0xcc   : > { %9477 = vmatmul.mubr.msk.bf16.gmra.mrb[4].mxu0 %vm2484_vm7, %v2312_v1  ;;  %v2074_v56 = vsel %vm2066_vm11, %v2031_v22, %v1416_v49  ;;  %v10715_v8 = vcombine.low %v819_v21, %v820_v43  ;;  %v821_v49 = vld [vmem:[%s10157_s29 + $0x78] sm:$0xf] }
  0xcd   : > { %1575 = vrot.lane.b32.xlu1 %v10676_v20, %s14082_s10  ;;  %9480 = vmatprep.mubr.msk.bf16.mxu0 %vm14096_vm6, %v10002_v4  ;;  %v1503_v2 = vpop.permute.xlu0 %1502  ;;  %v1718_v36 = vshrl.u32 %v10700_v5, 16  ;;  %v1721_v3 = vshll.u32 %v10700_v5, 16 }
  0xce   : > { %v2117_v23 = vsel %vm2109_vm12, %v2074_v56, %v1503_v2  ;;  %v1480_v44 = vrot.slane %v10715_v8, 2  ;;  %v1064_v21 = vshll.u32 %v10715_v8, 16  ;;  %v1068_v22 = vshrl.u32 %v10715_v8, 16 }
  0xcf   : > { %v1562_v51 = vpop.permute.xlu1 %1561  ;;  %1827 = vrot.lane.b32.xlu0 %v1716_v27, %s10000_s6  ;;  %v1720_v47 = vrot.slane %v1718_v36, 6  ;;  %v1723_v53 = vrot.slane %v1721_v3, 7  ;;  %v1054_v56 = vor.u32 %v1052_v11, %v1050_v25  ;;  %v1058_v2 = vrot.slane %v1056_v19, 1 }
  0xd0   : > { %v2160_v13 = vsel %vm2152_vm13, %v2117_v23, %v1562_v51  ;;  %v1367_v11 = vrot.slane %v1068_v22, 1  ;;  %v1368_v19 = vrot.slane %v1064_v21, 2  ;;  %v1192_v32 = vrot.slane %v10715_v8, 1 }
  0xd1   : > { %1914 = vrot.lane.b32.xlu1 %v1873_v63, %s14080_s1  ;;  %v1814_v50 = vpop.permute.xlu0 %1813  ;;  %v10750_v31 = vor.u32 %v1723_v53, %v1720_v47  ;;  %v1059_v24 = vsel %vm951_vm2, %v1054_v56, %v1058_v2 }
  0xd2   : > { %v2203_v30 = vsel %vm2195_vm14, %v2160_v13, %v1814_v50  ;;  %v10796_v36 = vor.u32 %v1368_v19, %v1367_v11 }
  0xd3   : > { %v1901_v6 = vpop.permute.xlu1 %1900  ;;  %1141 = vrot.lane.b32.xlu0 %v1051_v17, %s9997_s2  ;;  %v1725_v41 = vsel %vm14089_vm4, %v10668_v37, %v10750_v31 }
  0xd4   : > { %v2246_v39 = vsel %vm2238_vm15, %v2203_v30, %v1901_v6  ;;  %v10808_v6 = vsel %vm1164_vm0, %v1190_v61, %v1192_v32 }
  0xd5   : > { %v2313_v48 = vshrl.u32 %v2246_v39, 16  ;;  %v2316_v9 = vshll.u32 %v2246_v39, 16  ;;  %1228 = vrot.lane.b32.xlu1 %v1189_v46, %s14111_s4  ;;  %v1128_v54 = vpop.permute.xlu0 %1127  ;;  %v10748_v46 = vsel %vm1454_vm1, %v1478_v59, %v1480_v44 }
  0xd6   : > { %v1947_v45 = vsel %vm1936_vm8, %v10213_v55, %v1128_v54  ;;  %v1874_v55 = vrot.slane %v10700_v5, 7  ;;  %v1370_v54 = vsel %vm1310_vm3, %v10722_v15, %v10796_v36 }
  0xd7   : > { %v2315_v12 = vrot.slane %v2313_v48, 1  ;;  %v2318_v0 = vrot.slane %v2316_v9, 2  ;;  %v1215_v18 = vpop.permute.xlu1 %1214  ;;  %1287 = vrot.lane.b32.xlu0 %v1191_v40, %s9994_s0 }
  0xd8   : > { %v1990_v28 = vsel %vm1980_vm9, %v1947_v45, %v1215_v18  ;;  %v1875_v37 = vsel %vm14095_vm5, %v1872_v42, %v1874_v55 }
  0xd9   : > { %v10740_v14 = vor.u32 %v2318_v0, %v2315_v12  ;;  %1431 = vrot.lane.b32.xlu1 %v1366_v58, %s14084_s5  ;;  %v1274_v10 = vpop.permute.xlu0 %1273 }
  0xda   : > { %v2033_v1 = vsel %vm2023_vm10, %v1990_v28, %v1274_v10 }
  0xdb   : > { %v1418_v27 = vpop.permute.xlu1 %1417  ;;  %v2320_v59 = vsel %vm1310_vm3, %v10664_v16, %v10740_v14  ;;  %1518 = vrot.lane.b32.xlu0 %v10676_v20, %s9996_s30  ;;  %v10775_v16 = vcombine.low %v820_v43, %v821_v49  ;;  %v822_v43 = vld [vmem:[%s10157_s29 + $0x7c] sm:$0xf] }
  0xdc   : > { %9481 = vmatmul.mubr.msk.bf16.gmra.mrb[8].mxu0 %vm2484_vm7, %v2320_v59  ;;  %v2076_v20 = vsel %vm2066_vm11, %v2033_v1, %v1418_v27  ;;  %v10798_v3 = vcombine.low %v821_v49, %v822_v43  ;;  %v823_v27 = vld [vmem:[%s10157_s29 + $0x80] sm:$0xf] }
  0xdd   : > { %1577 = vrot.lane.b32.xlu1 %v10748_v46, %s14082_s10  ;;  %9484 = vmatprep.mubr.msk.bf16.mxu0 %vm14096_vm6, %v10002_v4  ;;  %v1505_v63 = vpop.permute.xlu0 %1504  ;;  %v1727_v42 = vshrl.u32 %v10775_v16, 16  ;;  %v1730_v23 = vshll.u32 %v10775_v16, 16  ;;  %v1876_v18 = vrot.slane %v10775_v16, 7 }
  0xde   : > { %v2119_v25 = vsel %vm2109_vm12, %v2076_v20, %v1505_v63  ;;  %v1482_v58 = vrot.slane %v10798_v3, 2  ;;  %v1072_v49 = vshll.u32 %v10798_v3, 16  ;;  %v1076_v1 = vshrl.u32 %v10798_v3, 16 }
  0xdf   : > { %v1564_v52 = vpop.permute.xlu1 %1563  ;;  %1829 = vrot.lane.b32.xlu0 %v1725_v41, %s10000_s6  ;;  %v1729_v9 = vrot.slane %v1727_v42, 6  ;;  %v1732_v47 = vrot.slane %v1730_v23, 7  ;;  %v1062_v20 = vor.u32 %v1060_v7, %v1058_v2  ;;  %v10852_v63 = vrot.slane %v1064_v21, 1 }
  0xe0   : > { %v2162_v51 = vsel %vm2152_vm13, %v2119_v25, %v1564_v52  ;;  %v1877_v7 = vsel %vm14095_vm5, %v1874_v55, %v1876_v18  ;;  %v1372_v21 = vrot.slane %v1072_v49, 2  ;;  %v1194_v25 = vrot.slane %v10798_v3, 1 }
  0xe1   : > { %1916 = vrot.lane.b32.xlu1 %v1875_v37, %s14080_s1  ;;  %v1816_v17 = vpop.permute.xlu0 %1815  ;;  %v10823_v28 = vor.u32 %v1732_v47, %v1729_v9  ;;  %v1067_v5 = vsel %vm951_vm2, %v1062_v20, %v10852_v63 }
  0xe2   : > { %v2205_v13 = vsel %vm2195_vm14, %v2162_v51, %v1816_v17 }
  0xe3   : > { %v1903_v50 = vpop.permute.xlu1 %1902  ;;  %1143 = vrot.lane.b32.xlu0 %v1059_v24, %s9997_s2 }
  0xe4   : > { %v2248_v30 = vsel %vm2238_vm15, %v2205_v13, %v1903_v50  ;;  %v10893_v50 = vsel %vm1164_vm0, %v1192_v32, %v1194_v25 }
  0xe5   : > { %v2321_v39 = vshrl.u32 %v2248_v30, 16  ;;  %v2324_v48 = vshll.u32 %v2248_v30, 16  ;;  %1230 = vrot.lane.b32.xlu1 %v1191_v40, %s14111_s4  ;;  %v1130_v53 = vpop.permute.xlu0 %1129 }
  0xe6   : > { %v1949_v61 = vsel %vm1936_vm8, %v10259_v38, %v1130_v53  ;;  %v10831_v38 = vsel %vm1454_vm1, %v1480_v44, %v1482_v58  ;;  %v1734_v44 = vsel %vm14089_vm4, %v10750_v31, %v10823_v28  ;;  %v1371_v31 = vrot.slane %v1076_v1, 1 }
  0xe7   : > { %v2323_v12 = vrot.slane %v2321_v39, 1  ;;  %v2326_v0 = vrot.slane %v2324_v48, 2  ;;  %v1217_v45 = vpop.permute.xlu1 %1216  ;;  %1289 = vrot.lane.b32.xlu0 %v10808_v6, %s9994_s0  ;;  %v10004_v39 = vmov 0  }
  0xe8   : > { %v1992_v15 = vsel %vm1980_vm9, %v1949_v61, %v1217_v45  ;;  %v10883_v23 = vor.u32 %v1372_v21, %v1371_v31  ;;  %9732 = vset.pattern.permute.xlu1 %v10004_v39  ;;  %3309 = vst.msk [vmem:[#allocation2 + $0xb0] sm:$0xff] %vm1980_vm9, %v10004_v39  ;;  %8290 = vst [vmem:[#allocation8] sm:$0xf] %v10004_v39  ;;  %9731 = vset.pattern.permute.xlu0 %v10004_v39 }
  0xe9   : > { %v10819_v40 = vor.u32 %v2326_v0, %v2323_v12  ;;  %1433 = vrot.lane.b32.xlu1 %v1370_v54, %s14084_s5  ;;  %v1276_v10 = vpop.permute.xlu0 %1275  ;;  %8291 = vst [vmem:[#allocation8 + $0x4] sm:$0x1] %v10004_v39  ;;  %8331 = vst [vmem:[#allocation8 + $0x14] sm:$0x8] %v10004_v39 }
  0xea   : > { %v2035_v59 = vsel %vm2023_vm10, %v1992_v15, %v1276_v10  ;;  %8332 = vst [vmem:[#allocation8 + $0x18] sm:$0xf] %v10004_v39  ;;  %v1374_v54 = vsel %vm1310_vm3, %v10796_v36, %v10883_v23 }
  0xeb   : > { %v1420_v41 = vpop.permute.xlu1 %1419  ;;  %v2328_v56 = vsel %vm1310_vm3, %v10740_v14, %v10819_v40  ;;  %1520 = vrot.lane.b32.xlu0 %v10748_v46, %s9996_s30  ;;  %v10857_v14 = vld [vmem:[%s10157_s29 + $0x84] sm:$0xf]  ;;  %v10859_v46 = vcombine.low %v822_v43, %v823_v27 }
  0xec   : > { %9485 = vmatmul.mubr.msk.bf16.gmra.mrb[12].mxu0 %vm2484_vm7, %v2328_v56  ;;  %v2078_v37 = vsel %vm2066_vm11, %v2035_v59, %v1420_v41  ;;  %v10875_v52 = vcombine.low %v823_v27, %v10857_v14  ;;  %v825_v56 = vld [vmem:[%s10157_s29 + $0x88] sm:$0xf] }
  0xed   : > { %1579 = vrot.lane.b32.xlu1 %v10831_v38, %s14082_s10  ;;  %9488 = vmatprep.mubr.msk.bf16.mxu0 %vm14096_vm6, %v10002_v4  ;;  %v1507_v11 = vpop.permute.xlu0 %1506  ;;  %v1736_v55 = vshrl.u32 %v10859_v46, 16  ;;  %v1739_v43 = vshll.u32 %v10859_v46, 16  ;;  %v1878_v27 = vrot.slane %v10859_v46, 7 }
  0xee   : > { %v2121_v2 = vsel %vm2109_vm12, %v2078_v37, %v1507_v11  ;;  %v1484_v30 = vrot.slane %v10875_v52, 2  ;;  %v1080_v59 = vshll.u32 %v10875_v52, 16  ;;  %v1084_v41 = vshrl.u32 %v10875_v52, 16 }
  0xef   : > { %v1566_v19 = vpop.permute.xlu1 %1565  ;;  %1831 = vrot.lane.b32.xlu0 %v1734_v44, %s10000_s6  ;;  %v1738_v32 = vrot.slane %v1736_v55, 6  ;;  %v1741_v47 = vrot.slane %v1739_v43, 7  ;;  %v1070_v11 = vor.u32 %v1068_v22, %v10852_v63 }
  0xf0   : > { %v2164_v24 = vsel %vm2152_vm13, %v2121_v2, %v1566_v19  ;;  %v10921_v15 = vsel %vm1454_vm1, %v1482_v58, %v1484_v30  ;;  %v1375_v22 = vrot.slane %v1084_v41, 1 }
  0xf1   : > { %1918 = vrot.lane.b32.xlu1 %v1877_v7, %s14080_s1  ;;  %v1818_v42 = vpop.permute.xlu0 %1817  ;;  %v10923_v36 = vor.u32 %v1741_v47, %v1738_v32  ;;  %v1074_v7 = vrot.slane %v1072_v49, 1  ;;  %v1376_v49 = vrot.slane %v1080_v59, 2 }
  0xf2   : > { %v2207_v51 = vsel %vm2195_vm14, %v2164_v24, %v1818_v42 }
  0xf3   : > { %v1905_v17 = vpop.permute.xlu1 %1904  ;;  %1145 = vrot.lane.b32.xlu0 %v1067_v5, %s9997_s2  ;;  %v1743_v37 = vsel %vm14089_vm4, %v10823_v28, %v10923_v36  ;;  %v1879_v28 = vsel %vm14095_vm5, %v1876_v18, %v1878_v27  ;;  %v1075_v16 = vsel %vm951_vm2, %v1070_v11, %v1074_v7  ;;  %v10973_v24 = vor.u32 %v1376_v49, %v1375_v22 }
  0xf4   : > { %v2250_v13 = vsel %vm2238_vm15, %v2207_v51, %v1905_v17 }
  0xf5   : > { %v2329_v48 = vshrl.u32 %v2250_v13, 16  ;;  %v2332_v9 = vshll.u32 %v2250_v13, 16  ;;  %1232 = vrot.lane.b32.xlu1 %v10808_v6, %s14111_s4  ;;  %v1132_v53 = vpop.permute.xlu0 %1131 }
  0xf6   : > { %v1951_v61 = vsel %vm1936_vm8, %v10293_v62, %v1132_v53 }
  0xf7   : > { %v2331_v12 = vrot.slane %v2329_v48, 1  ;;  %v2334_v0 = vrot.slane %v2332_v9, 2  ;;  %v1219_v45 = vpop.permute.xlu1 %1218  ;;  %1291 = vrot.lane.b32.xlu0 %v10893_v50, %s9994_s0 }
  0xf8   : > { %v1994_v10 = vsel %vm1980_vm9, %v1951_v61, %v1219_v45 }
  0xf9   : > { %v10913_v6 = vor.u32 %v2334_v0, %v2331_v12  ;;  %1435 = vrot.lane.b32.xlu1 %v1374_v54, %s14084_s5  ;;  %v1278_v62 = vpop.permute.xlu0 %1277  ;;  %v1378_v12 = vsel %vm1310_vm3, %v10883_v23, %v10973_v24 }
  0xfa   : > { %v2037_v44 = vsel %vm2023_vm10, %v1994_v10, %v1278_v62 }
  0xfb   : > { %v1422_v20 = vpop.permute.xlu1 %1421  ;;  %v2336_v58 = vsel %vm1310_vm3, %v10819_v40, %v10913_v6  ;;  %1522 = vrot.lane.b32.xlu0 %v10831_v38, %s9996_s30  ;;  %v826_v40 = vld [vmem:[%s10157_s29 + $0x8c] sm:$0xf]  ;;  %v10951_v38 = vcombine.low %v10857_v14, %v825_v56  ;;  %v1196_v14 = vrot.slane %v10875_v52, 1 }
  0xfc   : > { %9489 = vmatmul.mubr.msk.bf16.gmra.mrb[16].mxu0 %vm2484_vm7, %v2336_v58  ;;  %v2080_v31 = vsel %vm2066_vm11, %v2037_v44, %v1422_v20  ;;  %v10966_v19 = vcombine.low %v825_v56, %v826_v40  ;;  %v827_v58 = vld [vmem:[%s10157_s29 + $0x90] sm:$0xf] }
  0xfd   : > { %1581 = vrot.lane.b32.xlu1 %v10921_v15, %s14082_s10  ;;  %9492 = vmatprep.mubr.msk.bf16.mxu0 %vm14096_vm6, %v10002_v4  ;;  %v1509_v21 = vpop.permute.xlu0 %1508  ;;  %v1745_v18 = vshrl.u32 %v10951_v38, 16  ;;  %v1748_v5 = vshll.u32 %v10951_v38, 16  ;;  %v1197_v13 = vsel %vm1164_vm0, %v1194_v25, %v1196_v14  ;;  %v1880_v56 = vrot.slane %v10951_v38, 7 }
  0xfe   : > { %v2123_v63 = vsel %vm2109_vm12, %v2080_v31, %v1509_v21  ;;  %v1486_v48 = vrot.slane %v10966_v19, 2  ;;  %v1088_v44 = vshll.u32 %v10966_v19, 16  ;;  %v1092_v20 = vshrl.u32 %v10966_v19, 16 }
  0xff   : > { %v1568_v2 = vpop.permute.xlu1 %1567  ;;  %1833 = vrot.lane.b32.xlu0 %v1743_v37, %s10000_s6  ;;  %v1747_v47 = vrot.slane %v1745_v18, 6  ;;  %v1750_v53 = vrot.slane %v1748_v5, 7  ;;  %v1078_v21 = vor.u32 %v1076_v1, %v1074_v7 }
 0x100   : > { %v2166_v55 = vsel %vm2152_vm13, %v2123_v63, %v1568_v2  ;;  %v1379_v1 = vrot.slane %v1092_v20, 1 }
 0x101   : > { %1920 = vrot.lane.b32.xlu1 %v1879_v28, %s14080_s1  ;;  %v1820_v43 = vpop.permute.xlu0 %1819  ;;  %v11002_v23 = vor.u32 %v1750_v53, %v1747_v47  ;;  %v1082_v28 = vrot.slane %v1080_v59, 1  ;;  %v1380_v59 = vrot.slane %v1088_v44, 2 }
 0x102   : > { %v2209_v42 = vsel %vm2195_vm14, %v2166_v55, %v1820_v43 }
 0x103   : > { %v1907_v51 = vpop.permute.xlu1 %1906  ;;  %1147 = vrot.lane.b32.xlu0 %v1075_v16, %s9997_s2  ;;  %v1752_v31 = vsel %vm14089_vm4, %v10923_v36, %v11002_v23  ;;  %v1881_v36 = vsel %vm14095_vm5, %v1878_v27, %v1880_v56  ;;  %v1083_v46 = vsel %vm951_vm2, %v1078_v21, %v1082_v28  ;;  %v11050_v55 = vor.u32 %v1380_v59, %v1379_v1 }
 0x104   : > { %v2252_v17 = vsel %vm2238_vm15, %v2209_v42, %v1907_v51 }
 0x105   : > { %v2337_v9 = vshrl.u32 %v2252_v17, 16  ;;  %v2340_v32 = vshll.u32 %v2252_v17, 16  ;;  %1234 = vrot.lane.b32.xlu1 %v10893_v50, %s14111_s4  ;;  %v1134_v54 = vpop.permute.xlu0 %1133  ;;  %v11000_v50 = vsel %vm1454_vm1, %v1484_v30, %v1486_v48 }
 0x106   : > { %v1953_v25 = vsel %vm1936_vm8, %v10345_v34, %v1134_v54 }
 0x107   : > { %v2339_v0 = vrot.slane %v2337_v9, 1  ;;  %v2342_v61 = vrot.slane %v2340_v32, 2  ;;  %v1221_v45 = vpop.permute.xlu1 %1220  ;;  %1293 = vrot.lane.b32.xlu0 %v1197_v13, %s9994_s0 }
 0x108   : > { %v1996_v62 = vsel %vm1980_vm9, %v1953_v25, %v1221_v45 }
 0x109   : > { %v10992_v10 = vor.u32 %v2342_v61, %v2339_v0  ;;  %1437 = vrot.lane.b32.xlu1 %v1378_v12, %s14084_s5  ;;  %v1280_v34 = vpop.permute.xlu0 %1279  ;;  %v1382_v0 = vsel %vm1310_vm3, %v10973_v24, %v11050_v55 }
 0x10a   : > { %v2039_v37 = vsel %vm2023_vm10, %v1996_v62, %v1280_v34 }
 0x10b   : > { %v1424_v11 = vpop.permute.xlu1 %1423  ;;  %v2344_v30 = vsel %vm1310_vm3, %v10913_v6, %v10992_v10  ;;  %1524 = vrot.lane.b32.xlu0 %v10921_v15, %s9996_s30  ;;  %v828_v6 = vld [vmem:[%s10157_s29 + $0x94] sm:$0xf]  ;;  %v11028_v15 = vcombine.low %v826_v40, %v827_v58  ;;  %v1198_v40 = vrot.slane %v10966_v19, 1 }
 0x10c   : > { %9493 = vmatmul.mubr.msk.bf16.gmra.mrb[20].mxu0 %vm2484_vm7, %v2344_v30  ;;  %v2082_v22 = vsel %vm2066_vm11, %v2039_v37, %v1424_v11  ;;  %v11043_v2 = vcombine.low %v827_v58, %v828_v6  ;;  %v829_v30 = vld [vmem:[%s10157_s29 + $0x98] sm:$0xf] }
 0x10d   : > { %1583 = vrot.lane.b32.xlu1 %v11000_v50, %s14082_s10  ;;  %9496 = vmatprep.mubr.msk.bf16.mxu0 %vm14096_vm6, %v10002_v4  ;;  %v1511_v49 = vpop.permute.xlu0 %1510  ;;  %v1754_v27 = vshrl.u32 %v11028_v15, 16  ;;  %v1757_v16 = vshll.u32 %v11028_v15, 16  ;;  %v1199_v17 = vsel %vm1164_vm0, %v1196_v14, %v1198_v40  ;;  %v1882_v58 = vrot.slane %v11028_v15, 7 }
 0x10e   : > { %v2125_v7 = vsel %vm2109_vm12, %v2082_v22, %v1511_v49  ;;  %v1488_v9 = vrot.slane %v11043_v2, 2  ;;  %v1096_v37 = vshll.u32 %v11043_v2, 16  ;;  %v1100_v11 = vshrl.u32 %v11043_v2, 16 }
 0x10f   : > { %v1570_v63 = vpop.permute.xlu1 %1569  ;;  %1835 = vrot.lane.b32.xlu0 %v1752_v31, %s10000_s6  ;;  %v1756_v53 = vrot.slane %v1754_v27, 6  ;;  %v1759_v54 = vrot.slane %v1757_v16, 7  ;;  %v1086_v49 = vor.u32 %v1084_v41, %v1082_v28 }
 0x110   : > { %v2168_v18 = vsel %vm2152_vm13, %v2125_v7, %v1570_v63  ;;  %v1383_v41 = vrot.slane %v1100_v11, 1 }
 0x111   : > { %1922 = vrot.lane.b32.xlu1 %v1881_v36, %s14080_s1  ;;  %v1822_v5 = vpop.permute.xlu0 %1821  ;;  %v11078_v24 = vor.u32 %v1759_v54, %v1756_v53  ;;  %v1090_v36 = vrot.slane %v1088_v44, 1  ;;  %v1384_v44 = vrot.slane %v1096_v37, 2 }
 0x112   : > { %v2211_v43 = vsel %vm2195_vm14, %v2168_v18, %v1822_v5 }
 0x113   : > { %v1909_v42 = vpop.permute.xlu1 %1908  ;;  %1149 = vrot.lane.b32.xlu0 %v1083_v46, %s9997_s2  ;;  %v1761_v22 = vsel %vm14089_vm4, %v11002_v23, %v11078_v24  ;;  %v1883_v23 = vsel %vm14095_vm5, %v1880_v56, %v1882_v58  ;;  %v1091_v38 = vsel %vm951_vm2, %v1086_v49, %v1090_v36  ;;  %v11126_v18 = vor.u32 %v1384_v44, %v1383_v41 }
 0x114   : > { %v2254_v51 = vsel %vm2238_vm15, %v2211_v43, %v1909_v42 }
 0x115   : > { %v2345_v32 = vshrl.u32 %v2254_v51, 16  ;;  %v2348_v47 = vshll.u32 %v2254_v51, 16  ;;  %1236 = vrot.lane.b32.xlu1 %v1197_v13, %s14111_s4  ;;  %v1136_v12 = vpop.permute.xlu0 %1135  ;;  %v11076_v13 = vsel %vm1454_vm1, %v1486_v48, %v1488_v9 }
 0x116   : > { %v1955_v45 = vsel %vm1936_vm8, %v10377_v60, %v1136_v12 }
 0x117   : > { %v2347_v61 = vrot.slane %v2345_v32, 1  ;;  %v2350_v25 = vrot.slane %v2348_v47, 2  ;;  %v1223_v14 = vpop.permute.xlu1 %1222  ;;  %1295 = vrot.lane.b32.xlu0 %v1199_v17, %s9994_s0 }
 0x118   : > { %v1998_v34 = vsel %vm1980_vm9, %v1955_v45, %v1223_v14 }
 0x119   : > { %v11068_v62 = vor.u32 %v2350_v25, %v2347_v61  ;;  %1439 = vrot.lane.b32.xlu1 %v1382_v0, %s14084_s5  ;;  %v1282_v60 = vpop.permute.xlu0 %1281  ;;  %v1386_v61 = vsel %vm1310_vm3, %v11050_v55, %v11126_v18 }
 0x11a   : > { %v2041_v31 = vsel %vm2023_vm10, %v1998_v34, %v1282_v60 }
 0x11b   : > { %v1426_v21 = vpop.permute.xlu1 %1425  ;;  %v2352_v48 = vsel %vm1310_vm3, %v10992_v10, %v11068_v62  ;;  %1526 = vrot.lane.b32.xlu0 %v11000_v50, %s9996_s30  ;;  %v830_v10 = vld [vmem:[%s10157_s29 + $0x9c] sm:$0xf]  ;;  %v11104_v50 = vcombine.low %v828_v6, %v829_v30  ;;  %v1200_v6 = vrot.slane %v11043_v2, 1 }
 0x11c   : > { %9497 = vmatmul.mubr.msk.bf16.gmra.mrb[24].mxu0 %vm2484_vm7, %v2352_v48  ;;  %v2084_v1 = vsel %vm2066_vm11, %v2041_v31, %v1426_v21  ;;  %v11119_v63 = vcombine.low %v829_v30, %v830_v10  ;;  %v11161_v48 = vld [vmem:[%s10157_s29 + $0xa0] sm:$0xf] }
 0x11d   : > { %1585 = vrot.lane.b32.xlu1 %v11076_v13, %s14082_s10  ;;  %9500 = vmatprep.mubr.msk.bf16.mxu0 %vm14096_vm6, %v10002_v4  ;;  %v1513_v59 = vpop.permute.xlu0 %1512  ;;  %v1763_v56 = vshrl.u32 %v11104_v50, 16  ;;  %v1766_v46 = vshll.u32 %v11104_v50, 16  ;;  %v1201_v51 = vsel %vm1164_vm0, %v1198_v40, %v1200_v6  ;;  %v1884_v30 = vrot.slane %v11104_v50, 7 }
 0x11e   : > { %v2127_v28 = vsel %vm2109_vm12, %v2084_v1, %v1513_v59  ;;  %v1490_v32 = vrot.slane %v11119_v63, 2  ;;  %v1104_v31 = vshll.u32 %v11119_v63, 16  ;;  %v1108_v21 = vshrl.u32 %v11119_v63, 16 }
 0x11f   : > { %v1572_v7 = vpop.permute.xlu1 %1571  ;;  %1837 = vrot.lane.b32.xlu0 %v1761_v22, %s10000_s6  ;;  %v1765_v54 = vrot.slane %v1763_v56, 6  ;;  %v1768_v12 = vrot.slane %v1766_v46, 7  ;;  %v1094_v59 = vor.u32 %v1092_v20, %v1090_v36 }
 0x120   : > { %v2170_v27 = vsel %vm2152_vm13, %v2127_v28, %v1572_v7  ;;  %v1387_v20 = vrot.slane %v1108_v21, 1 }
 0x121   : > { %1924 = vrot.lane.b32.xlu1 %v1883_v23, %s14080_s1  ;;  %v1824_v16 = vpop.permute.xlu0 %1823  ;;  %v11154_v55 = vor.u32 %v1768_v12, %v1765_v54  ;;  %v1098_v23 = vrot.slane %v1096_v37, 1  ;;  %v1388_v37 = vrot.slane %v1104_v31, 2 }
 0x122   : > { %v2213_v5 = vsel %vm2195_vm14, %v2170_v27, %v1824_v16 }
 0x123   : > { %v1911_v43 = vpop.permute.xlu1 %1910  ;;  %1151 = vrot.lane.b32.xlu0 %v1091_v38, %s9997_s2  ;;  %v1770_v1 = vsel %vm14089_vm4, %v11078_v24, %v11154_v55  ;;  %v1885_v24 = vsel %vm14095_vm5, %v1882_v58, %v1884_v30  ;;  %v1099_v15 = vsel %vm951_vm2, %v1094_v59, %v1098_v23  ;;  %v11208_v27 = vor.u32 %v1388_v37, %v1387_v20 }
 0x124   : > { %v2256_v42 = vsel %vm2238_vm15, %v2213_v5, %v1911_v43  ;;  %v1102_v20 = vor.u32 %v1100_v11, %v1098_v23 }
 0x125   : > { %v2353_v47 = vshrl.u32 %v2256_v42, 16  ;;  %v2356_v53 = vshll.u32 %v2256_v42, 16  ;;  %1238 = vrot.lane.b32.xlu1 %v1199_v17, %s14111_s4  ;;  %v1138_v0 = vpop.permute.xlu0 %1137  ;;  %v11152_v17 = vsel %vm1454_vm1, %v1488_v9, %v1490_v32 }
 0x126   : > { %v1957_v14 = vsel %vm1936_vm8, %v10408_v26, %v1138_v0 }
 0x127   : > { %v2355_v25 = vrot.slane %v2353_v47, 1  ;;  %v2358_v45 = vrot.slane %v2356_v53, 2  ;;  %v1225_v40 = vpop.permute.xlu1 %1224  ;;  %1297 = vrot.lane.b32.xlu0 %v1201_v51, %s9994_s0 }
 0x128   : > { %v2000_v60 = vsel %vm1980_vm9, %v1957_v14, %v1225_v40 }
 0x129   : > { %v11144_v34 = vor.u32 %v2358_v45, %v2355_v25  ;;  %1441 = vrot.lane.b32.xlu1 %v1386_v61, %s14084_s5  ;;  %v1284_v26 = vpop.permute.xlu0 %1283  ;;  %v1390_v25 = vsel %vm1310_vm3, %v11126_v18, %v11208_v27  ;;  %v11239_v18 = vld [vmem:[%s10157_s29 + $0xa8] sm:$0xf] }
 0x12a   : > { %v2043_v22 = vsel %vm2023_vm10, %v2000_v60, %v1284_v26 }
 0x12b   : > { %v1428_v49 = vpop.permute.xlu1 %1427  ;;  %v2360_v9 = vsel %vm1310_vm3, %v11068_v62, %v11144_v34  ;;  %1528 = vrot.lane.b32.xlu0 %v11076_v13, %s9996_s30  ;;  %v835_v62 = vld [vmem:[%s10157_s29 + $0xa4] sm:$0xf]  ;;  %v11183_v13 = vcombine.low %v830_v10, %v11161_v48  ;;  %v11198_v10 = vrot.slane %v11119_v63, 1 }
 0x12c   : > { %9501 = vmatmul.mubr.msk.bf16.gmra.mrb[28].mxu0 %vm2484_vm7, %v2360_v9  ;;  %v2086_v41 = vsel %vm2066_vm11, %v2043_v22, %v1428_v49  ;;  %v11201_v7 = vcombine.low %v11161_v48, %v835_v62 }
 0x12d   : > { %1587 = vrot.lane.b32.xlu1 %v11152_v17, %s14082_s10  ;;  %9504 = vmatprep.mubr.msk.bf16.mxu0 %vm14096_vm6, %v10002_v4  ;;  %v1515_v44 = vpop.permute.xlu0 %1514  ;;  %v1772_v58 = vshrl.u32 %v11183_v13, 16  ;;  %v1775_v38 = vshll.u32 %v11183_v13, 16  ;;  %v1203_v42 = vsel %vm1164_vm0, %v1200_v6, %v11198_v10  ;;  %v1886_v49 = vrot.slane %v11183_v13, 7 }
 0x12e   : > { %v2129_v36 = vsel %vm2109_vm12, %v2086_v41, %v1515_v44  ;;  %v11218_v47 = vrot.slane %v11201_v7, 2  ;;  %v1392_v9 = vshrl.u32 %v11201_v7, 16  ;;  %v11253_v44 = vcombine.low %v835_v62, %v11239_v18 }
 0x12f   : > { %v1574_v28 = vpop.permute.xlu1 %1573  ;;  %1839 = vrot.lane.b32.xlu0 %v1770_v1, %s10000_s6  ;;  %v1774_v12 = vrot.slane %v1772_v58, 6  ;;  %v1777_v0 = vrot.slane %v1775_v38, 7  ;;  %v1395_v1 = vshll.u32 %v11201_v7, 16 }
 0x130   : > { %v2172_v56 = vsel %vm2152_vm13, %v2129_v36, %v1574_v28  ;;  %v1394_v36 = vrot.slane %v1392_v9, 1  ;;  %v1261_v28 = vrot.slane %v11201_v7, 1  ;;  %v1781_v58 = vshrl.u32 %v11253_v44, 16 }
 0x131   : > { %1926 = vrot.lane.b32.xlu1 %v1885_v24, %s14080_s1  ;;  %v1826_v46 = vpop.permute.xlu0 %1825  ;;  %v11236_v26 = vor.u32 %v1777_v0, %v1774_v12  ;;  %v1397_v11 = vrot.slane %v1395_v1, 2 }
 0x132   : > { %v2215_v16 = vsel %vm2195_vm14, %v2172_v56, %v1826_v46  ;;  %v1783_v0 = vrot.slane %v1781_v58, 6 }
 0x133   : > { %v1913_v5 = vpop.permute.xlu1 %1912  ;;  %1153 = vrot.lane.b32.xlu0 %v1099_v15, %s9997_s2  ;;  %v1779_v24 = vsel %vm14089_vm4, %v11154_v55, %v11236_v26  ;;  %v1887_v55 = vsel %vm14095_vm5, %v1884_v30, %v1886_v49  ;;  %v1784_v30 = vshll.u32 %v11253_v44, 16  ;;  %v11288_v46 = vor.u32 %v1397_v11, %v1394_v36  ;;  %v842_v11 = vld [vmem:[%s10157_s29 + $0xb0] sm:$0xf] }
 0x134   : > { %v2258_v43 = vsel %vm2238_vm15, %v2215_v16, %v1913_v5 }
 0x135   : > { %v2361_v53 = vshrl.u32 %v2258_v43, 16  ;;  %v2364_v54 = vshll.u32 %v2258_v43, 16  ;;  %1240 = vrot.lane.b32.xlu1 %v1201_v51, %s14111_s4  ;;  %v1140_v61 = vpop.permute.xlu0 %1139  ;;  %v11234_v51 = vsel %vm1454_vm1, %v1490_v32, %v11218_v47  ;;  %v837_v43 = vld [vmem:[%s10157_s29 + $0xac] sm:$0x1] }
 0x136   : > { %v1959_v6 = vsel %vm1936_vm8, %v10439_v57, %v1140_v61 }
 0x137   : > { %v2363_v45 = vrot.slane %v2361_v53, 1  ;;  %v2366_v14 = vrot.slane %v2364_v54, 2  ;;  %v1227_v40 = vpop.permute.xlu1 %1226  ;;  %1299 = vrot.lane.b32.xlu0 %v1203_v42, %s9994_s0  ;;  %v1262_v54 = vsel %vm1164_vm0, %v11198_v10, %v1261_v28 }
 0x138   : > { %v2002_v22 = vsel %vm1980_vm9, %v1959_v6, %v1227_v40  ;;  %v1399_v40 = vsel %vm1310_vm3, %v11208_v27, %v11288_v46 }
 0x139   : > { %v11227_v60 = vor.u32 %v2366_v14, %v2363_v45  ;;  %1443 = vrot.lane.b32.xlu1 %v1390_v25, %s14084_s5  ;;  %v1286_v57 = vpop.permute.xlu0 %1285  ;;  %v1786_v45 = vrot.slane %v1784_v30, 7  ;;  %v11303_v14 = vcombine.low %v11161_v48, %v11161_v48 }
 0x13a   : > { %v2045_v59 = vsel %vm2023_vm10, %v2002_v22, %v1286_v57  ;;  %v11309_v22 = vcombine.low %v11239_v18, %v837_v43 }
 0x13b   : > { %v1430_v41 = vpop.permute.xlu1 %1429  ;;  %v2368_v32 = vsel %vm1310_vm3, %v11144_v34, %v11227_v60  ;;  %1530 = vrot.lane.b32.xlu0 %v11152_v17, %s9996_s30  ;;  %v11264_v34 = vrot.slane %v1104_v31, 1  ;;  %v11269_v17 = vld [vmem:[%s10157_s29 + $0xac] sm:$0xf] }
 0x13c   : > { %9505 = vmatmul.mubr.msk.bf16.gmra.mrb[32].mxu0 %vm2484_vm7, %v2368_v32  ;;  %v2088_v62 = vsel %vm2066_vm11, %v2045_v59, %v1430_v41  ;;  %v8795_v15 = vcombine.low %v11239_v18, %v11269_v17  ;;  %v833_v59 = vld [vmem:[%s10157_s29 + $0xa4] sm:$0x1]  ;;  %v1888_v41 = vrot.slane %v11253_v44, 7  ;;  %v1404_v36 = vshll.u32 %v11309_v22, 16 }
 0x13d   : > { %1589 = vrot.lane.b32.xlu1 %v11234_v51, %s14082_s10  ;;  %9508 = vmatprep.mubr.msk.bf16.mxu0 %vm14096_vm6, %v10002_v4  ;;  %v1517_v37 = vpop.permute.xlu0 %1516  ;;  %v1107_v50 = vsel %vm951_vm2, %v1102_v20, %v11264_v34  ;;  %v1112_v20 = vshll.u32 %v11303_v14, 16  ;;  %v11354_v13 = vcombine.low %v11269_v17, %v842_v11 }
 0x13e   : > { %v2131_v31 = vsel %vm2109_vm12, %v2088_v62, %v1517_v37  ;;  %v11298_v12 = vrot.slane %v8795_v15, 2  ;;  %v8788_v37 = vcombine.low %v11161_v48, %v833_v59  ;;  %v1889_v48 = vsel %vm14095_vm5, %v1886_v49, %v1888_v41 }
 0x13f   : > { %v1576_v23 = vpop.permute.xlu1 %1575  ;;  %1841 = vrot.lane.b32.xlu0 %v1779_v24, %s10000_s6  ;;  %v11322_v24 = vor.u32 %v1786_v45, %v1783_v0 }
 0x140   : > { %v2174_v38 = vsel %vm2152_vm13, %v2131_v31, %v1576_v23  ;;  %v1552_v27 = vsel %vm1454_vm1, %v11218_v47, %v11298_v12 }
 0x141   : > { %1928 = vrot.lane.b32.xlu1 %v1887_v55, %s14080_s1  ;;  %v1828_v56 = vpop.permute.xlu0 %1827  ;;  %v1401_v55 = vshrl.u32 %v11309_v22, 16  ;;  %v1788_v58 = vsel %vm14089_vm4, %v11236_v26, %v11322_v24  ;;  %v1406_v26 = vrot.slane %v1404_v36, 2 }
 0x142   : > { %v2217_v16 = vsel %vm2195_vm14, %v2174_v38, %v1828_v56  ;;  %v11358_v38 = vrot.slane %v8788_v37, 1 }
 0x143   : > { %v1915_v5 = vpop.permute.xlu1 %1914  ;;  %1155 = vrot.lane.b32.xlu0 %v1107_v50, %s9997_s2  ;;  %v839_v50 = vld [vmem:[%s10157_s29 + $0xac] sm:$0x3]  ;;  %v1403_v56 = vrot.slane %v1401_v55, 1 }
 0x144   : > { %v2260_v53 = vsel %vm2238_vm15, %v2217_v16, %v1915_v5  ;;  %v8793_v43 = vcombine.low %v11239_v18, %v839_v50 }
 0x145   : > { %v2369_v61 = vshrl.u32 %v2260_v53, 16  ;;  %v2372_v25 = vshll.u32 %v2260_v53, 16  ;;  %1242 = vrot.lane.b32.xlu1 %v1203_v42, %s14111_s4  ;;  %v1142_v6 = vpop.permute.xlu0 %1141  ;;  %v1790_v53 = vshrl.u32 %v11354_v13, 16  ;;  %v11374_v45 = vor.u32 %v1406_v26, %v1403_v56 }
 0x146   : > { %v1961_v1 = vsel %vm1936_vm8, %v10485_v33, %v1142_v6 }
 0x147   : > { %v2371_v57 = vrot.slane %v2369_v61, 1  ;;  %v2374_v9 = vrot.slane %v2372_v25, 2  ;;  %v1229_v42 = vpop.permute.xlu1 %1228  ;;  %1301 = vrot.lane.b32.xlu0 %v1262_v54, %s9994_s0  ;;  %v1793_v54 = vshll.u32 %v11354_v13, 16  ;;  %v1205_v25 = vsel %vm1164_vm0, %v11198_v10, %v11358_v38 }
 0x148   : > { %v2004_v33 = vsel %vm1980_vm9, %v1961_v1, %v1229_v42  ;;  %v11384_v1 = vrot.slane %v8793_v43, 2  ;;  %v1792_v59 = vrot.slane %v1790_v53, 6 }
 0x149   : > { %v11316_v32 = vor.u32 %v2374_v9, %v2371_v57  ;;  %1445 = vrot.lane.b32.xlu1 %v1399_v40, %s14084_s5  ;;  %v1288_v62 = vpop.permute.xlu0 %1287 }
 0x14a   : > { %v2047_v31 = vsel %vm2023_vm10, %v2004_v33, %v1288_v62  ;;  %v1408_v33 = vsel %vm1310_vm3, %v11288_v46, %v11374_v45 }
 0x14b   : > { %v1432_v23 = vpop.permute.xlu1 %1431  ;;  %v2376_v15 = vsel %vm1310_vm3, %v11227_v60, %v11316_v32  ;;  %1532 = vrot.lane.b32.xlu0 %v11234_v51, %s9996_s30  ;;  %v1110_v60 = vor.u32 %v1108_v21, %v11264_v34  ;;  %v11349_v51 = vrot.slane %v1112_v20, 1  ;;  %v843_v21 = vld [vmem:[%s10157_s29 + $0xb4] sm:$0x3]  ;;  %v1263_v34 = vrot.slane %v11309_v22, 1 }
 0x14c   : > { %9509 = vmatmul.mubr.msk.bf16.gmra.mrb[36].mxu0 %vm2484_vm7, %v2376_v15  ;;  %v2090_v49 = vsel %vm2066_vm11, %v2047_v31, %v1432_v23  ;;  %v8796_v6 = vcombine.low %v842_v11, %v843_v21  ;;  %v1495_v11 = vsel %vm1454_vm1, %v11218_v47, %v11384_v1  ;;  %v1116_v47 = vshrl.u32 %v11303_v14, 16 }
 0x14d   : > { %1591 = vrot.lane.b32.xlu1 %v1552_v27, %s14082_s10  ;;  %9512 = vmatprep.mubr.msk.bf16.mxu0 %vm14096_vm6, %v10002_v4  ;;  %v1519_v30 = vpop.permute.xlu0 %1518  ;;  %v1115_v17 = vsel %vm951_vm2, %v1110_v60, %v11349_v51  ;;  %v1264_v9 = vsel %vm1164_vm0, %v1261_v28, %v1263_v34  ;;  %v1795_v27 = vrot.slane %v1793_v54, 7  ;;  %v8817_v50 = vcombine.low %v843_v21, %v843_v21 }
 0x14e   : > { %v2133_v16 = vsel %vm2109_vm12, %v2090_v49, %v1519_v30  ;;  %v11390_v62 = vrot.slane %v8796_v6, 2  ;;  %v1118_v26 = vor.u32 %v1116_v47, %v11349_v51 }
 0x14f   : > { %v1578_v5 = vpop.permute.xlu1 %1577  ;;  %1843 = vrot.lane.b32.xlu0 %v1788_v58, %s10000_s6  ;;  %v1796_v31 = vor.u32 %v1795_v27, %v1792_v59 }
 0x150   : > { %v2176_v0 = vsel %vm2152_vm13, %v2133_v16, %v1578_v5  ;;  %v1554_v15 = vsel %vm1454_vm1, %v11298_v12, %v11390_v62  ;;  %v1802_v16 = vshll.u32 %v8817_v50, 16 }
 0x151   : > { %1930 = vrot.lane.b32.xlu1 %v1889_v48, %s14080_s1  ;;  %v1830_v61 = vpop.permute.xlu0 %1829  ;;  %v1797_v12 = vsel %vm14089_vm4, %v11322_v24, %v1796_v31  ;;  %v1799_v24 = vshrl.u32 %v8817_v50, 16 }
 0x152   : > { %v2219_v18 = vsel %vm2195_vm14, %v2176_v0, %v1830_v61  ;;  %v1804_v54 = vrot.slane %v1802_v16, 7  ;;  %v9790_v61 = vld [vmem:[%s10157_s29 + $0xb4] ss:$0 sps:$4 sm:$0x77]   ;;  %s14113_s29 = sld [smem:[#allocation11_spill]] }
 0x153   : > { %v1917_v40 = vpop.permute.xlu1 %1916  ;;  %1157 = vrot.lane.b32.xlu0 %v1115_v17, %s9997_s2  ;;  %v1801_v51 = vrot.slane %v1799_v24, 6 }
 0x154   : > { %v2262_v57 = vsel %vm2238_vm15, %v2219_v18, %v1917_v40 }
 0x155   : > { %v2377_v42 = vshrl.u32 %v2262_v57, 16  ;;  %v2380_v10 = vshll.u32 %v2262_v57, 16  ;;  %1244 = vrot.lane.b32.xlu1 %v1205_v25, %s14111_s4  ;;  %v1144_v20 = vpop.permute.xlu0 %1143 }
 0x156   : > { %v1963_v7 = vsel %vm1936_vm8, %v10563_v29, %v1144_v20  ;;  %v1890_v29 = vrot.slane %v11354_v13, 7 }
 0x157   : > { %v2379_v37 = vrot.slane %v2377_v42, 1  ;;  %v2382_v55 = vrot.slane %v2380_v10, 2  ;;  %v1231_v28 = vpop.permute.xlu1 %1230  ;;  %1303 = vrot.lane.b32.xlu0 %v1264_v9, %s9994_s0  ;;  %v1805_v9 = vor.u32 %v1804_v54, %v1801_v51  ;;  %v1892_v10 = vrot.slane %v9790_v61, 7 }
 0x158   : > { %v2006_v46 = vsel %vm1980_vm9, %v1963_v7, %v1231_v28 }
 0x159   : > { %v2383_v36 = vor.u32 %v2382_v55, %v2379_v37  ;;  %1447 = vrot.lane.b32.xlu1 %v1408_v33, %s14084_s5  ;;  %v1290_v23 = vpop.permute.xlu0 %1289 }
 0x15a   : > { %v2049_v48 = vsel %vm2023_vm10, %v2006_v46, %v1290_v23 }
 0x15b   : > { %v1434_v58 = vpop.permute.xlu1 %1433  ;;  %v2384_v60 = vsel %vm1310_vm3, %v11316_v32, %v2383_v36  ;;  %1534 = vrot.lane.b32.xlu0 %v1495_v11, %s9996_s30  ;;  %v1891_v32 = vsel %vm14095_vm5, %v1888_v41, %v1890_v29 }
 0x15c   : > { %9513 = vmatmul.mubr.msk.bf16.gmra.mrb[40].mxu0 %vm2484_vm7, %v2384_v60  ;;  %v2092_v13 = vsel %vm2066_vm11, %v2049_v48, %v1434_v58 }
 0x15d   : > { %1593 = vrot.lane.b32.xlu1 %v1554_v15, %s14082_s10  ;;  %9516 = vmatprep.mubr.msk.bf16.mxu0 %vm14096_vm6, %v10002_v4  ;;  %v1521_v49 = vpop.permute.xlu0 %1520 }
 0x15e   : > { %v2135_v30 = vsel %vm2109_vm12, %v2092_v13, %v1521_v49 }
 0x15f   : > { %v1580_v56 = vpop.permute.xlu1 %1579  ;;  %1845 = vrot.lane.b32.xlu0 %v1797_v12, %s10000_s6 }
 0x160   : > { %v2178_v5 = vsel %vm2152_vm13, %v2135_v30, %v1580_v56 }
 0x161   : > { %1932 = vrot.lane.b32.xlu1 %v1891_v32, %s14080_s1  ;;  %v1832_v21 = vpop.permute.xlu0 %1831 }
 0x162   : > { %v2221_v43 = vsel %vm2195_vm14, %v2178_v5, %v1832_v21 }
 0x163   : > { %v1919_v44 = vpop.permute.xlu1 %1918  ;;  %1159 = vrot.lane.b32.xlu0 %v1118_v26, %s9997_s2  ;;  %s14090_s2 = smov 96  }
 0x164   : > { %v2264_v41 = vsel %vm2238_vm15, %v2221_v43, %v1919_v44 }
 0x165   : > { %v2385_v17 = vshrl.u32 %v2264_v41, 16  ;;  %v2388_v53 = vshll.u32 %v2264_v41, 16  ;;  %1246 = vrot.lane.b32.xlu1 %v11358_v38, %s14111_s4  ;;  %v1146_v0 = vpop.permute.xlu0 %1145 }
 0x166   : > { %v1965_v18 = vsel %vm1936_vm8, %v10645_v35, %v1146_v0  ;;  %v1806_v35 = vsel %vm14089_vm4, %v1796_v31, %v1805_v9  ;;  %vm4139_vm4 = vcmask 130049  }
 0x167   : > { %v2387_v25 = vrot.slane %v2385_v17, 1  ;;  %v2390_v6 = vrot.slane %v2388_v53, 2  ;;  %v1233_v40 = vpop.permute.xlu1 %1232  ;;  %1305 = vrot.lane.b32.xlu0 %v1263_v34, %s9994_s0  ;;  %4140 = vst.msk [vmem:[#allocation3 + $0x38] sm:$0xfe] %vm4139_vm4, %v10004_v39  ;;  %vm4129_vm4 = vcmask 130055  }
 0x168   : > { %v2008_v38 = vsel %vm1980_vm9, %v1965_v18, %v1233_v40 }
 0x169   : > { %v2391_v57 = vor.u32 %v2390_v6, %v2387_v25  ;;  %1449 = vrot.lane.b32.xlu1 %v11374_v45, %s14084_s5  ;;  %v1292_v42 = vpop.permute.xlu0 %1291  ;;  %v1893_v45 = vsel %vm14095_vm5, %v1890_v29, %v1892_v10  ;;  %vm4555_vm5 = vcmask 785408   ;;  %s14123_s5 = sld [smem:[#allocation17_spill]] }
 0x16a   : > { %v2051_v59 = vsel %vm2023_vm10, %v2008_v38, %v1292_v42 }
 0x16b   : > { %v1436_v27 = vpop.permute.xlu1 %1435  ;;  %v2392_v20 = vsel %vm1310_vm3, %v2383_v36, %v2391_v57  ;;  %1536 = vrot.lane.b32.xlu0 %v11384_v1, %s9996_s30  ;;  %s14112_s30 = sld [smem:[#allocation13_spill]] }
 0x16c   : > { %9517 = vmatmul.mubr.msk.bf16.gmra.mrb[44].mxu0 %vm2484_vm7, %v2392_v20  ;;  %v2094_v22 = vsel %vm2066_vm11, %v2051_v59, %v1436_v27 }
 0x16d   : > { %1595 = vrot.lane.b32.xlu1 %v11390_v62, %s14082_s10  ;;  %9520 = vmatprep.mubr.msk.bf16.mxu0 %vm14096_vm6, %v10002_v4  ;;  %v1523_v34 = vpop.permute.xlu0 %1522  ;;  %s10007_s10 = smov 112  }
 0x16e   : > { %v2137_v33 = vsel %vm2109_vm12, %v2094_v22, %v1523_v34 }
 0x16f   : > { %v1582_v37 = vpop.permute.xlu1 %1581  ;;  %1847 = vrot.lane.b32.xlu0 %v1806_v35, %s10000_s6  ;;  %s14116_s6 = sld [smem:[#allocation15_spill]] }
 0x170   : > { %v2180_v62 = vsel %vm2152_vm13, %v2137_v33, %v1582_v37 }
 0x171   : > { %1934 = vrot.lane.b32.xlu1 %v1893_v45, %s14080_s1  ;;  %v2905_v1 = vld [vmem:[%s14112_s30 + $0x80] sm:$0xff]  ;;  %v1834_v55 = vpop.permute.xlu0 %1833  ;;  %v2906_v7 = vld [vmem:[%s14112_s30 + $0x88] sm:$0xff]  ;;  %v2908_v23 = vld [vmem:[%s14112_s30 + $0x98] sm:$0xff]  ;;  %s14119_s1 = smov 64  }
 0x172   : > { %v2223_v28 = vsel %vm2195_vm14, %v2180_v62, %v1834_v55  ;;  %v2907_v29 = vld [vmem:[%s14112_s30 + $0x90] sm:$0xff]  ;;  %v2910_v12 = vld [vmem:[%s14112_s30 + $0xa8] sm:$0xff]  ;;  %v2909_v32 = vld [vmem:[%s14112_s30 + $0xa0] sm:$0xff] }
 0x173   : > { %v1921_v36 = vpop.permute.xlu1 %1920  ;;  %3012 = vperm.xlu0 %9731, %v2905_v1   ;;  %v2912_v26 = vld [vmem:[%s14112_s30 + $0xb8] sm:$0xff]  ;;  %v2911_v5 = vld [vmem:[%s14112_s30 + $0xb0] sm:$0xff]  ;;  %v2890_v44 = vld [vmem:[%s14112_s30 + $0x8] sm:$0xff] }
 0x174   : > { %v2266_v11 = vsel %vm2238_vm15, %v2223_v28, %v1921_v36  ;;  %v2889_v53 = vld [vmem:[%s14112_s30] sm:$0xff]  ;;  %v2892_v6 = vld [vmem:[%s14112_s30 + $0x18] sm:$0xff]  ;;  %v2891_v40 = vld [vmem:[%s14112_s30 + $0x10] sm:$0xff] }
 0x175   : > { %v2393_v31 = vshrl.u32 %v2266_v11, 16  ;;  %v2396_v46 = vshll.u32 %v2266_v11, 16  ;;  %3017 = vperm.xlu1 %9732, %v2906_v7   ;;  %v1148_v15 = vpop.permute.xlu0 %1147  ;;  %v2894_v59 = vld [vmem:[%s14112_s30 + $0x28] sm:$0xff]  ;;  %v2893_v35 = vld [vmem:[%s14112_s30 + $0x20] sm:$0xff]  ;;  %v2896_v45 = vld [vmem:[%s14112_s30 + $0x38] sm:$0xff] }
 0x176   : > { %v1967_v60 = vsel %vm1936_vm8, %v10715_v8, %v1148_v15  ;;  %v2895_v1 = vld [vmem:[%s14112_s30 + $0x30] sm:$0xff]  ;;  %v2914_v11 = vld [vmem:[%s14112_s30 + $0xc8] sm:$0xff]  ;;  %v2913_v15 = vld [vmem:[%s14112_s30 + $0xc0] sm:$0xff] }
 0x177   : > { %v2395_v48 = vrot.slane %v2393_v31, 1  ;;  %v2398_v58 = vrot.slane %v2396_v46, 2  ;;  %v1235_v47 = vpop.permute.xlu1 %1234  ;;  %3027 = vperm.xlu0 %9731, %v2908_v23  }
 0x178   : > { %v2010_v13 = vsel %vm1980_vm9, %v1967_v60, %v1235_v47 }
 0x179   : > { %v2399_v50 = vor.u32 %v2398_v58, %v2395_v48  ;;  %3022 = vperm.xlu1 %9732, %v2907_v29   ;;  %v1294_v49 = vpop.permute.xlu0 %1293 }
 0x17a   : > { %v2053_v30 = vsel %vm2023_vm10, %v2010_v13, %v1294_v49  ;;  %v2897_v13 = vld [vmem:[%s14112_s30 + $0x40] sm:$0xff] }
 0x17b   : > { %v1438_v56 = vpop.permute.xlu1 %1437  ;;  %v2400_v8 = vsel %vm1310_vm3, %v2391_v57, %v2399_v50  ;;  %3037 = vperm.xlu0 %9731, %v2910_v12  }
 0x17c   : > { %9521 = vmatmul.mubr.msk.bf16.gmra.mrb[48].mxu0 %vm2484_vm7, %v2400_v8  ;;  %v2096_v24 = vsel %vm2066_vm11, %v2053_v30, %v1438_v56 }
 0x17d   : > { %3032 = vperm.xlu1 %9732, %v2909_v32   ;;  %9524 = vmatprep.mubr.msk.bf16.mxu0 %vm14096_vm6, %v10002_v4  ;;  %v1525_v16 = vpop.permute.xlu0 %1524 }
 0x17e   : > { %v2139_v21 = vsel %vm2109_vm12, %v2096_v24, %v1525_v16 }
 0x17f   : > { %v1584_v43 = vpop.permute.xlu1 %1583  ;;  %3047 = vperm.xlu0 %9731, %v2912_v26   ;;  %v2904_v26 = vld [vmem:[%s14112_s30 + $0x78] sm:$0xff] }
 0x180   : > { %v2182_v41 = vsel %vm2152_vm13, %v2139_v21, %v1584_v43 }
 0x181   : > { %3042 = vperm.xlu1 %9732, %v2911_v5   ;;  %v1836_v17 = vpop.permute.xlu0 %1835  ;;  %v2903_v5 = vld [vmem:[%s14112_s30 + $0x70] sm:$0xff] }
 0x182   : > { %v2225_v51 = vsel %vm2195_vm14, %v2182_v41, %v1836_v17 }
 0x183   : > { %v1923_v54 = vpop.permute.xlu1 %1922  ;;  %2937 = vperm.xlu0 %9731, %v2890_v44   ;;  %v2916_v44 = vld [vmem:[%s14112_s30 + $0xd8] sm:$0xff] }
 0x184   : > { %v2268_v0 = vsel %vm2238_vm15, %v2225_v51, %v1923_v54 }
 0x185   : > { %v2401_v61 = vshrl.u32 %v2268_v0, 16  ;;  %v2404_v25 = vshll.u32 %v2268_v0, 16  ;;  %2932 = vperm.xlu1 %9732, %v2889_v53   ;;  %v1150_v18 = vpop.permute.xlu0 %1149  ;;  %v2915_v53 = vld [vmem:[%s14112_s30 + $0xd0] sm:$0xff] }
 0x186   : > { %v1969_v38 = vsel %vm1936_vm8, %v10798_v3, %v1150_v18 }
 0x187   : > { %v2403_v57 = vrot.slane %v2401_v61, 1  ;;  %v2406_v9 = vrot.slane %v2404_v25, 2  ;;  %v1237_v42 = vpop.permute.xlu1 %1236  ;;  %2947 = vperm.xlu0 %9731, %v2892_v6   ;;  %v2900_v6 = vld [vmem:[%s14112_s30 + $0x58] sm:$0xff] }
 0x188   : > { %v2012_v27 = vsel %vm1980_vm9, %v1969_v38, %v1237_v42 }
 0x189   : > { %v2407_v10 = vor.u32 %v2406_v9, %v2403_v57  ;;  %2942 = vperm.xlu1 %9732, %v2891_v40   ;;  %v1296_v20 = vpop.permute.xlu0 %1295  ;;  %v2899_v9 = vld [vmem:[%s14112_s30 + $0x50] sm:$0xff] }
 0x18a   : > { %v2055_v22 = vsel %vm2023_vm10, %v2012_v27, %v1296_v20  ;;  %v2918_v20 = vld [vmem:[%s14112_s30 + $0xe8] sm:$0xff] }
 0x18b   : > { %v1440_v34 = vpop.permute.xlu1 %1439  ;;  %v2408_v3 = vsel %vm1310_vm3, %v2399_v50, %v2407_v10  ;;  %2957 = vperm.xlu0 %9731, %v2894_v59   ;;  %v2898_v50 = vld [vmem:[%s14112_s30 + $0x48] sm:$0xff] }
 0x18c   : > { %9525 = vmatmul.mubr.msk.bf16.gmra.mrb[52].mxu0 %vm2484_vm7, %v2408_v3  ;;  %v2098_v33 = vsel %vm2066_vm11, %v2055_v22, %v1440_v34  ;;  %v2917_v22 = vld [vmem:[%s14112_s30 + $0xe0] sm:$0xff] }
 0x18d   : > { %2952 = vperm.xlu1 %9732, %v2893_v35   ;;  %9528 = vmatprep.mubr.msk.bf16.mxu0 %vm14096_vm6, %v10002_v4  ;;  %v1527_v37 = vpop.permute.xlu0 %1526 }
 0x18e   : > { %v2141_v62 = vsel %vm2109_vm12, %v2098_v33, %v1527_v37 }
 0x18f   : > { %v11527_v55 = vpop.f32.mrb[0].mxu0  ;;  %v1586_v7 = vpop.permute.xlu1 %1585  ;;  %2967 = vperm.xlu0 %9731, %v2896_v45  }
 0x190   : > { %v9474_v28 = vpop.f32.mrb[1].mxu0  ;;  %v2184_v31 = vsel %vm2152_vm13, %v2141_v62, %v1586_v7 }
 0x191   : > { %2962 = vperm.xlu1 %9732, %v2895_v1   ;;  %v11529_v36 = vpop.f32.mrb[2].mxu0  ;;  %v1838_v23 = vpop.permute.xlu0 %1837  ;;  %v2902_v1 = vld [vmem:[%s14112_s30 + $0x68] sm:$0xff]  ;;  %v2901_v28 = vld [vmem:[%s14112_s30 + $0x60] sm:$0xff] }
 0x192   : > { %v9475_v46 = vpop.f32.mrb[3].mxu0  ;;  %v2227_v29 = vsel %vm2195_vm14, %v2184_v31, %v1838_v23 }
 0x193   : > { %v1925_v48 = vpop.permute.xlu1 %1924  ;;  %3057 = vperm.xlu0 %9731, %v2914_v11   ;;  %v2920_v46 = vld [vmem:[%s14112_s30 + $0xf8] sm:$0xff] }
 0x194   : > { %v2270_v58 = vsel %vm2238_vm15, %v2227_v29, %v1925_v48  ;;  %v2919_v29 = vld [vmem:[%s14112_s30 + $0xf0] sm:$0xff] }
 0x195   : > { %v2409_v60 = vshrl.u32 %v2270_v58, 16  ;;  %v2412_v47 = vshll.u32 %v2270_v58, 16  ;;  %3052 = vperm.xlu1 %9732, %v2913_v15   ;;  %v1152_v12 = vpop.permute.xlu0 %1151 }
 0x196   : > { %v1971_v30 = vsel %vm1936_vm8, %v10875_v52, %v1152_v12  ;;  %v2922_v12 = vld [vmem:[%s14112_s30 + $0x108] sm:$0xff] }
 0x197   : > { %v2411_v49 = vrot.slane %v2409_v60, 1  ;;  %v2414_v32 = vrot.slane %v2412_v47, 2  ;;  %v1239_v56 = vpop.permute.xlu1 %1238  ;;  %2977 = vperm.xlu0 %9731, %v2898_v50  }
 0x198   : > { %v2014_v24 = vsel %vm1980_vm9, %v1971_v30, %v1239_v56  ;;  %v2921_v30 = vld [vmem:[%s14112_s30 + $0x100] sm:$0xff] }
 0x199   : > { %v2415_v8 = vor.u32 %v2414_v32, %v2411_v49  ;;  %2972 = vperm.xlu1 %9732, %v2897_v13   ;;  %v1298_v16 = vpop.permute.xlu0 %1297 }
 0x19a   : > { %v2057_v21 = vsel %vm2023_vm10, %v2014_v24, %v1298_v16 }
 0x19b   : > { %v1442_v43 = vpop.permute.xlu1 %1441  ;;  %v2416_v52 = vsel %vm1310_vm3, %v2407_v10, %v2415_v8  ;;  %3007 = vperm.xlu0 %9731, %v2904_v26  }
 0x19c   : > { %9529 = vmatmul.mubr.msk.bf16.gmra.mrb[56].mxu0 %vm2484_vm7, %v2416_v52  ;;  %v2100_v41 = vsel %vm2066_vm11, %v2057_v21, %v1442_v43  ;;  %v2923_v43 = vld [vmem:[%s14112_s30 + $0x110] sm:$0xff] }
 0x19d   : > { %3002 = vperm.xlu1 %9732, %v2903_v5   ;;  %9532 = vmatprep.mubr.msk.bf16.mxu0 %vm14096_vm6, %v10002_v4  ;;  %v1529_v17 = vpop.permute.xlu0 %1528  ;;  %v2924_v5 = vld [vmem:[%s14112_s30 + $0x118] sm:$0xff] }
 0x19e   : > { %v2143_v51 = vsel %vm2109_vm12, %v2100_v41, %v1529_v17 }
 0x19f   : > { %v1588_v54 = vpop.permute.xlu1 %1587  ;;  %v11568_v0 = vpop.f32.mrb[4].mxu0  ;;  %3067 = vperm.xlu0 %9731, %v2916_v44  }
 0x1a0   : > { %v9478_v61 = vpop.f32.mrb[5].mxu0  ;;  %v2186_v18 = vsel %vm2152_vm13, %v2143_v51, %v1588_v54  ;;  %v2926_v51 = vld [vmem:[%s14112_s30 + $0x128] sm:$0xff] }
 0x1a1   : > { %3062 = vperm.xlu1 %9732, %v2915_v53   ;;  %v11570_v25 = vpop.f32.mrb[6].mxu0  ;;  %v1840_v40 = vpop.permute.xlu0 %1839 }
 0x1a2   : > { %v9479_v57 = vpop.f32.mrb[7].mxu0  ;;  %v2229_v38 = vsel %vm2195_vm14, %v2186_v18, %v1840_v40 }
 0x1a3   : > { %v1927_v42 = vpop.permute.xlu1 %1926  ;;  %2987 = vperm.xlu0 %9731, %v2900_v6   ;;  %v2925_v6 = vld [vmem:[%s14112_s30 + $0x120] sm:$0xff]  ;;  %v2928_v57 = vld [vmem:[%s14112_s30 + $0x138] sm:$0xff] }
 0x1a4   : > { %v2272_v10 = vsel %vm2238_vm15, %v2229_v38, %v1927_v42  ;;  %v2927_v42 = vld [vmem:[%s14112_s30 + $0x130] sm:$0xff] }
 0x1a5   : > { %v2417_v59 = vshrl.u32 %v2272_v10, 16  ;;  %v2420_v27 = vshll.u32 %v2272_v10, 16  ;;  %2982 = vperm.xlu1 %9732, %v2899_v9   ;;  %v1154_v35 = vpop.permute.xlu0 %1153 }
 0x1a6   : > { %v1973_v45 = vsel %vm1936_vm8, %v10966_v19, %v1154_v35 }
 0x1a7   : > { %v2419_v34 = vrot.slane %v2417_v59, 1  ;;  %v2422_v3 = vrot.slane %v2420_v27, 2  ;;  %v1241_v33 = vpop.permute.xlu1 %1240  ;;  %3077 = vperm.xlu0 %9731, %v2918_v20  }
 0x1a8   : > { %v2016_v62 = vsel %vm1980_vm9, %v1973_v45, %v1241_v33  ;;  %v2929_v45 = vld [vmem:[%s14112_s30 + $0x140] sm:$0xf] }
 0x1a9   : > { %v2423_v37 = vor.u32 %v2422_v3, %v2419_v34  ;;  %3072 = vperm.xlu1 %9732, %v2917_v22   ;;  %v1300_v7 = vpop.permute.xlu0 %1299 }
 0x1aa   : > { %v2059_v11 = vsel %vm2023_vm10, %v2016_v62, %v1300_v7 }
 0x1ab   : > { %v1444_v31 = vpop.permute.xlu1 %1443  ;;  %v2424_v19 = vsel %vm1310_vm3, %v2415_v8, %v2423_v37  ;;  %2997 = vperm.xlu0 %9731, %v2902_v1  }
 0x1ac   : > { %9533 = vmatmul.mubr.msk.bf16.gmra.mrb[60].mxu0 %vm2484_vm7, %v2424_v19  ;;  %v2102_v23 = vsel %vm2066_vm11, %v2059_v11, %v1444_v31 }
 0x1ad   : > { %2992 = vperm.xlu1 %9732, %v2901_v28   ;;  %9536 = vmatprep.mubr.msk.bf16.mxu0 %vm14096_vm6, %v10002_v4  ;;  %v1531_v15 = vpop.permute.xlu0 %1530 }
 0x1ae   : > { %v2145_v48 = vsel %vm2109_vm12, %v2102_v23, %v1531_v15 }
 0x1af   : > { %v1590_v58 = vpop.permute.xlu1 %1589  ;;  %v11609_v60 = vpop.f32.mrb[8].mxu0  ;;  %3087 = vperm.xlu0 %9731, %v2920_v46  }
 0x1b0   : > { %v9482_v47 = vpop.f32.mrb[9].mxu0  ;;  %v2188_v13 = vsel %vm2152_vm13, %v2145_v48, %v1590_v58 }
 0x1b1   : > { %v11611_v50 = vpop.f32.mrb[10].mxu0  ;;  %3082 = vperm.xlu1 %9732, %v2919_v29   ;;  %v1842_v49 = vpop.permute.xlu0 %1841 }
 0x1b2   : > { %v9483_v32 = vpop.f32.mrb[11].mxu0  ;;  %v2231_v56 = vsel %vm2195_vm14, %v2188_v13, %v1842_v49 }
 0x1b3   : > { %v1929_v8 = vpop.permute.xlu1 %1928  ;;  %3097 = vperm.xlu0 %9731, %v2922_v12  }
 0x1b4   : > { %v2274_v26 = vsel %vm2238_vm15, %v2231_v56, %v1929_v8 }
 0x1b5   : > { %v2425_v24 = vshrl.u32 %v2274_v26, 16  ;;  %v2428_v16 = vshll.u32 %v2274_v26, 16  ;;  %3092 = vperm.xlu1 %9732, %v2921_v30   ;;  %v1156_v21 = vpop.permute.xlu0 %1155 }
 0x1b6   : > { %v1975_v41 = vsel %vm1936_vm8, %v11043_v2, %v1156_v21 }
 0x1b7   : > { %v2427_v52 = vrot.slane %v2425_v24, 1  ;;  %v2430_v44 = vrot.slane %v2428_v16, 2  ;;  %v1243_v17 = vpop.permute.xlu1 %1242  ;;  %3107 = vperm.xlu0 %9731, %v2924_v5  }
 0x1b8   : > { %v2018_v54 = vsel %vm1980_vm9, %v1975_v41, %v1243_v17 }
 0x1b9   : > { %v2431_v53 = vor.u32 %v2430_v44, %v2427_v52  ;;  %3102 = vperm.xlu1 %9732, %v2923_v43   ;;  %v1302_v61 = vpop.permute.xlu0 %1301 }
 0x1ba   : > { %v2061_v18 = vsel %vm2023_vm10, %v2018_v54, %v1302_v61 }
 0x1bb   : > { %v1446_v40 = vpop.permute.xlu1 %1445  ;;  %v2432_v2 = vsel %vm1310_vm3, %v2423_v37, %v2431_v53  ;;  %3117 = vperm.xlu0 %9731, %v2926_v51  }
 0x1bc   : > { %9537 = vmatmul.mubr.msk.bf16.gmra.mrb[64].mxu0 %vm2484_vm7, %v2432_v2  ;;  %v2104_v9 = vsel %vm2066_vm11, %v2061_v18, %v1446_v40 }
 0x1bd   : > { %9540 = vmatprep.mubr.msk.bf16.mxu0 %vm14096_vm6, %v10002_v4  ;;  %3112 = vperm.xlu1 %9732, %v2925_v6   ;;  %v1533_v38 = vpop.permute.xlu0 %1532 }
 0x1be   : > { %v2147_v10 = vsel %vm2109_vm12, %v2104_v9, %v1533_v38 }
 0x1bf   : > { %v1592_v59 = vpop.permute.xlu1 %1591  ;;  %v11650_v27 = vpop.f32.mrb[12].mxu0  ;;  %3127 = vperm.xlu0 %9731, %v2928_v57  }
 0x1c0   : > { %v9486_v20 = vpop.f32.mrb[13].mxu0  ;;  %v2190_v22 = vsel %vm2152_vm13, %v2147_v10, %v1592_v59 }
 0x1c1   : > { %v11652_v35 = vpop.f32.mrb[14].mxu0  ;;  %3122 = vperm.xlu1 %9732, %v2927_v42   ;;  %v1844_v34 = vpop.permute.xlu0 %1843 }
 0x1c2   : > { %v9487_v3 = vpop.f32.mrb[15].mxu0  ;;  %v2233_v33 = vsel %vm2195_vm14, %v2190_v22, %v1844_v34 }
 0x1c3   : > { %v1931_v37 = vpop.permute.xlu1 %1930 }
 0x1c4   : > { %v2276_v1 = vsel %vm2238_vm15, %v2233_v33, %v1931_v37 }
 0x1c5   : > { %v2433_v62 = vshrl.u32 %v2276_v1, 16  ;;  %v2436_v7 = vshll.u32 %v2276_v1, 16  ;;  %3132 = vperm.xlu1 %9732, %v2929_v45   ;;  %v1158_v28 = vpop.permute.xlu0 %1157 }
 0x1c6   : > { %v1977_v19 = vsel %vm1936_vm8, %v11119_v63, %v1158_v28 }
 0x1c7   : > { %v2435_v11 = vrot.slane %v2433_v62, 1  ;;  %v2438_v31 = vrot.slane %v2436_v7, 2  ;;  %v1245_v46 = vpop.permute.xlu1 %1244 }
 0x1c8   : > { %v2020_v15 = vsel %vm1980_vm9, %v1977_v19, %v1245_v46 }
 0x1c9   : > { %v2439_v23 = vor.u32 %v2438_v31, %v2435_v11  ;;  %v1304_v29 = vpop.permute.xlu0 %1303 }
 0x1ca   : > { %v2063_v48 = vsel %vm2023_vm10, %v2020_v15, %v1304_v29 }
 0x1cb   : > { %v1448_v58 = vpop.permute.xlu1 %1447  ;;  %v2440_v47 = vsel %vm1310_vm3, %v2431_v53, %v2439_v23 }
 0x1cc   : > { %9541 = vmatmul.mubr.msk.bf16.gmra.mrb[68].mxu0 %vm2484_vm7, %v2440_v47  ;;  %v2106_v12 = vsel %vm2066_vm11, %v2063_v48, %v1448_v58  ;;  %v11712_v58 = vld [vmem:[%s14113_s29] ss:$0 sm:$0xff] }
 0x1cd   : > { %9544 = vmatprep.mubr.msk.bf16.mxu0 %vm14096_vm6, %v10002_v4  ;;  %v1535_v13 = vpop.permute.xlu0 %1534 }
 0x1ce   : > { %v2149_v63 = vsel %vm2109_vm12, %v2106_v12, %v1535_v13  ;;  %v2760_v12 = vmul.f32 %v11712_v58, %v11529_v36  ;;  %v2759_v13 = vmul.f32 %v11712_v58, %v11527_v55  ;;  %v2761_v36 = vmul.f32 %v11712_v58, %v11568_v0 }
 0x1cf   : > { %v1594_v49 = vpop.permute.xlu1 %1593  ;;  %v11670_v32 = vpop.f32.mrb[16].mxu0  ;;  %v2763_v0 = vmul.f32 %v11712_v58, %v11609_v60 }
 0x1d0   : > { %v9490_v30 = vpop.f32.mrb[17].mxu0  ;;  %v2192_v8 = vsel %vm2152_vm13, %v2149_v63, %v1594_v49  ;;  %v11725_v49 = vld [vmem:[%s14114_s7] ss:$0 sm:$0xff] }
 0x1d1   : > { %v11672_v56 = vpop.f32.mrb[18].mxu0  ;;  %v1846_v26 = vpop.permute.xlu0 %1845 }
 0x1d2   : > { %v9491_v24 = vpop.f32.mrb[19].mxu0  ;;  %v2235_v16 = vsel %vm2195_vm14, %v2192_v8, %v1846_v26  ;;  %v2808_v8 = vadd.f32 %v11725_v49, %v2760_v12  ;;  %v2762_v26 = vmul.f32 %v11712_v58, %v11570_v25 }
 0x1d3   : > { %v1933_v5 = vpop.permute.xlu1 %1932  ;;  %v2807_v24 = vadd.f32 %v11725_v49, %v2759_v13 }
 0x1d4   : > { %v2278_v21 = vsel %vm2238_vm15, %v2235_v16, %v1933_v5 }
 0x1d5   : > { %v2441_v43 = vshrl.u32 %v2278_v21, 16  ;;  %v2444_v52 = vshll.u32 %v2278_v21, 16  ;;  %v1160_v44 = vpop.permute.xlu0 %1159  ;;  %v2848_v25 = vmax.f32 %v2807_v24, 0.0 }
 0x1d6   : > { %v1979_v53 = vsel %vm1936_vm8, %v11303_v14, %v1160_v44  ;;  %v2810_v44 = vadd.f32 %v11725_v49, %v2762_v26  ;;  %vm3284_vm8 = vcmask 130051  }
 0x1d7   : > { %v2443_v41 = vrot.slane %v2441_v43, 1  ;;  %v2446_v17 = vrot.slane %v2444_v52, 2  ;;  %v1247_v51 = vpop.permute.xlu1 %1246  ;;  %v2849_v52 = vmax.f32 %v2808_v8, 0.0 }
 0x1d8   : > { %v2022_v61 = vsel %vm1980_vm9, %v1979_v53, %v1247_v51  ;;  %v2809_v53 = vadd.f32 %v11725_v49, %v2761_v36 }
 0x1d9   : > { %v2447_v54 = vor.u32 %v2446_v17, %v2443_v41  ;;  %v1306_v6 = vpop.permute.xlu0 %1305  ;;  %v2764_v41 = vmul.f32 %v11712_v58, %v11611_v50  ;;  %v2811_v50 = vadd.f32 %v11725_v49, %v2763_v0 }
 0x1da   : > { %v2065_v18 = vsel %vm2023_vm10, %v2022_v61, %v1306_v6  ;;  %vm3221_vm10 = vcmask 1042432  }
 0x1db   : > { %v1450_v40 = vpop.permute.xlu1 %1449  ;;  %v2448_v2 = vsel %vm1310_vm3, %v2439_v23, %v2447_v54 }
 0x1dc   : > { %9545 = vmatmul.mubr.msk.bf16.gmra.mrb[72].mxu0 %vm2484_vm7, %v2448_v2  ;;  %v2108_v57 = vsel %vm2066_vm11, %v2065_v18, %v1450_v40  ;;  %v2851_v18 = vmax.f32 %v2810_v44, 0.0  ;;  %v2812_v40 = vadd.f32 %v11725_v49, %v2764_v41  ;;  %v2766_v2 = vmul.f32 %v11712_v58, %v11652_v35 }
 0x1dd   : > { %9548 = vmatprep.mubr.msk.bf16.mxu0 %vm14096_vm6, %v10002_v4  ;;  %v1537_v9 = vpop.permute.xlu0 %1536 }
 0x1de   : > { %v2151_v14 = vsel %vm2109_vm12, %v2108_v57, %v1537_v9  ;;  %v2850_v57 = vmax.f32 %v2809_v53, 0.0  ;;  %v2765_v9 = vmul.f32 %v11712_v58, %v11650_v27  ;;  %vm3828_vm12 = vcmask 1044480  }
 0x1df   : > { %v1596_v38 = vpop.permute.xlu1 %1595  ;;  %v11687_v42 = vpop.f32.mrb[20].mxu0 }
 0x1e0   : > { %v9494_v10 = vpop.f32.mrb[21].mxu0  ;;  %v2194_v20 = vsel %vm2152_vm13, %v2151_v14, %v1596_v38 }
 0x1e1   : > { %v11689_v59 = vpop.f32.mrb[22].mxu0  ;;  %v1848_v22 = vpop.permute.xlu0 %1847 }
 0x1e2   : > { %v9495_v34 = vpop.f32.mrb[23].mxu0  ;;  %v2237_v3 = vsel %vm2195_vm14, %v2194_v20, %v1848_v22  ;;  %vm3307_vm14 = vcmask 130053  }
 0x1e3   : > { %v1935_v45 = vpop.permute.xlu1 %1934  ;;  %v2853_v34 = vmax.f32 %v2812_v40, 0.0  ;;  %3308 = vst.msk [vmem:[#allocation2 + $0xa8] sm:$0xe0] %vm3307_vm14, %v10004_v39  ;;  %vm3890_vm14 = vcmask 556032  }
 0x1e4   : > { %v2280_v33 = vsel %vm2238_vm15, %v2237_v3, %v1935_v45  ;;  %v2814_v3 = vadd.f32 %v11725_v49, %v2766_v2  ;;  %v2852_v45 = vmax.f32 %v2811_v50, 0.0 }
 0x1e5   : > { %v2449_v37 = vshrl.u32 %v2280_v33, 16  ;;  %v2452_v1 = vshll.u32 %v2280_v33, 16  ;;  %v2813_v33 = vadd.f32 %v11725_v49, %v2765_v9 }
 0x1e7   : > { %v2451_v62 = vrot.slane %v2449_v37, 1  ;;  %v2454_v7 = vrot.slane %v2452_v1, 2 }
 0x1e9   : > { %v2455_v28 = vor.u32 %v2454_v7, %v2451_v62 }
 0x1eb   : > { %v2456_v11 = vsel %vm1310_vm3, %v2447_v54, %v2455_v28 }
 0x1ec   : > { %9549 = vmatmul.mubr.msk.bf16.gmra.mrb[76].mxu0 %vm2484_vm7, %v2456_v11  ;;  %v2768_v11 = vmul.f32 %v11712_v58, %v11672_v56 }
 0x1ed   : > { %9552 = vmatprep.mubr.msk.bf16.mxu0 %vm14096_vm6, %v10002_v4 }
 0x1ee   : > { %v2816_v56 = vadd.f32 %v11725_v49, %v2768_v11 }
 0x1ef   : > { %v11698_v31 = vpop.f32.mrb[24].mxu0 }
 0x1f0   : > { %v9498_v19 = vpop.f32.mrb[25].mxu0  ;;  %v2857_v50 = vmax.f32 %v2816_v56, 0.0 }
 0x1f1   : > { %v11700_v46 = vpop.f32.mrb[26].mxu0  ;;  %v2854_v19 = vmax.f32 %v2813_v33, 0.0  ;;  %v2770_v33 = vmul.f32 %v11712_v58, %v11689_v59 }
 0x1f2   : > { %v9499_v23 = vpop.f32.mrb[27].mxu0  ;;  %v11702_v15 = vpop.permute.xlu0 %3012 }
 0x1f3   : > { %v2767_v23 = vmul.f32 %v11712_v58, %v11670_v32 }
 0x1f4   : > { %v11704_v29 = vpop.permute.xlu1 %3017  ;;  %9553 = vmatmul.mubr.msk.bf16.gmra.mrb[80].mxu0 %vm2484_vm7, %v2455_v28  ;;  %v2855_v28 = vmax.f32 %v2814_v3, 0.0  ;;  %vm3305_vm7 = vcmask 126976  }
 0x1f6   : > { %v11707_v48 = vpop.permute.xlu0 %3027 }
 0x1f8   : > { %v11714_v47 = vpop.permute.xlu1 %3022 }
 0x1fa   : > { %v11720_v63 = vpop.permute.xlu0 %3037 }
 0x1fc   : > { %v11727_v30 = vpop.permute.xlu1 %3032 }
 0x1fe   : > { %v11735_v55 = vpop.permute.xlu0 %3047 }
 0x1ff   : > { %v2642_v16 = vpop.f32.mrb[28].mxu0 }
 0x200   : > { %v11737_v5 = vpop.permute.xlu1 %3042  ;;  %v9502_v21 = vpop.f32.mrb[29].mxu0 }
 0x201   : > { %v2645_v43 = vpop.f32.mrb[30].mxu0 }
 0x202   : > { %v9503_v17 = vpop.f32.mrb[31].mxu0  ;;  %v2938_v51 = vpop.permute.xlu0 %2937 }
 0x203   : > { %v3136_v61 = vmul.f32 %v2938_v51, %v2849_v52  ;;  %v2815_v51 = vadd.f32 %v11725_v49, %v2767_v23 }
 0x204   : > { %v2933_v54 = vpop.permute.xlu1 %2932 }
 0x205   : > { %v3135_v6 = vmul.f32 %v2933_v54, %v2848_v25  ;;  %v2774_v25 = vmul.f32 %v11712_v58, %v2645_v43  ;;  %v2773_v54 = vmul.f32 %v11712_v58, %v2642_v16 }
 0x206   : > { %v2948_v38 = vpop.permute.xlu0 %2947 }
 0x207   : > { %v3179_v14 = vpack.c.bf16 %v3136_v61, %v3135_v6  ;;  %v3138_v10 = vmul.f32 %v2948_v38, %v2851_v18  ;;  %v2822_v9 = vadd.f32 %v11725_v49, %v2774_v25  ;;  %v2856_v38 = vmax.f32 %v2815_v51, 0.0 }
 0x208   : > { %v2943_v60 = vpop.permute.xlu1 %2942  ;;  %v2821_v16 = vadd.f32 %v11725_v49, %v2773_v54 }
 0x209   : > { %v3222_v20 = vrot.slane %v3179_v14, 5  ;;  %v3137_v22 = vmul.f32 %v2943_v60, %v2850_v57 }
 0x20a   : > { %v2958_v37 = vpop.permute.xlu0 %2957 }
 0x20b   : > { %3285 = vst.msk [vmem:[#allocation2 + $0x8] sm:$0xf8] %vm3284_vm8, %v3222_v20  ;;  %v3180_v35 = vpack.c.bf16 %v3138_v10, %v3137_v22  ;;  %v3140_v62 = vmul.f32 %v2958_v37, %v2853_v34  ;;  %vm3912_vm8 = vcmask 1041408  }
 0x20c   : > { %v2953_v1 = vpop.permute.xlu1 %2952 }
 0x20d   : > { %v3223_v27 = vrot.slane %v3180_v35, 5  ;;  %v3139_v7 = vmul.f32 %v2953_v1, %v2852_v45  ;;  %v2863_v35 = vmax.f32 %v2822_v9, 0.0  ;;  %v2769_v1 = vmul.f32 %v11712_v58, %v11687_v42 }
 0x20e   : > { %v2968_v8 = vpop.permute.xlu0 %2967 }
 0x20f   : > { %v3224_v12 = vsel %vm3221_vm10, %v3222_v20, %v3223_v27  ;;  %v3181_v13 = vpack.c.bf16 %v3140_v62, %v3139_v7  ;;  %v2650_v26 = vpop.f32.mrb[32].mxu0  ;;  %v3142_v36 = vmul.f32 %v2968_v8, %v2855_v28  ;;  %v2862_v62 = vmax.f32 %v2821_v16, 0.0 }
 0x210   : > { %3286 = vst.msk [vmem:[#allocation2 + $0x10] sm:$0xff] %vm1980_vm9, %v3224_v12  ;;  %v2963_v24 = vpop.permute.xlu1 %2962  ;;  %v2775_v21 = vmul.f32 %v11712_v58, %v2650_v26  ;;  %v9506_v52 = vpop.f32.mrb[33].mxu0  ;;  %v2817_v23 = vadd.f32 %v11725_v49, %v2769_v1 }
 0x211   : > { %v3225_v44 = vrot.slane %v3181_v13, 5  ;;  %v3141_v41 = vmul.f32 %v2963_v24, %v2854_v19  ;;  %v2653_v17 = vpop.f32.mrb[34].mxu0 }
 0x212   : > { %v2823_v32 = vadd.f32 %v11725_v49, %v2775_v21  ;;  %v2776_v53 = vmul.f32 %v11712_v58, %v2653_v17  ;;  %v9507_v0 = vpop.f32.mrb[35].mxu0  ;;  %v11767_v18 = vpop.permute.xlu0 %3057 }
 0x213   : > { %v3226_v61 = vsel %vm3221_vm10, %v3223_v27, %v3225_v44  ;;  %v3182_v6 = vpack.c.bf16 %v3142_v36, %v3141_v41  ;;  %v2772_v41 = vmul.f32 %v11712_v58, %v11700_v46 }
 0x214   : > { %3287 = vst.msk [vmem:[#allocation2 + $0x18] sm:$0xff] %vm1980_vm9, %v3226_v61  ;;  %v2864_v40 = vmax.f32 %v2823_v32, 0.0  ;;  %v2824_v2 = vadd.f32 %v11725_v49, %v2776_v53  ;;  %v11771_v43 = vpop.permute.xlu1 %3052  ;;  %v2858_v32 = vmax.f32 %v2817_v23, 0.0  ;;  %v2771_v53 = vmul.f32 %v11712_v58, %v11698_v31 }
 0x215   : > { %v3227_v57 = vrot.slane %v3182_v6, 5 }
 0x216   : > { %v2865_v14 = vmax.f32 %v2824_v2, 0.0  ;;  %v2978_v10 = vpop.permute.xlu0 %2977  ;;  %v3151_v20 = vmul.f32 %v11702_v15, %v2864_v40  ;;  %v2820_v2 = vadd.f32 %v11725_v49, %v2772_v41 }
 0x217   : > { %v3228_v60 = vsel %vm3221_vm10, %v3225_v44, %v3227_v57  ;;  %v3144_v3 = vmul.f32 %v2978_v10, %v2857_v50  ;;  %v2819_v50 = vadd.f32 %v11725_v49, %v2771_v53 }
 0x218   : > { %3288 = vst.msk [vmem:[#allocation2 + $0x20] sm:$0xff] %vm1980_vm9, %v3228_v60  ;;  %v3152_v22 = vmul.f32 %v11704_v29, %v2865_v14  ;;  %v2973_v34 = vpop.permute.xlu1 %2972  ;;  %v2818_v29 = vadd.f32 %v11725_v49, %v2770_v33  ;;  %v2861_v10 = vmax.f32 %v2820_v2, 0.0 }
 0x219   : > { %v3143_v45 = vmul.f32 %v2973_v34, %v2856_v38 }
 0x21a   : > { %v3187_v37 = vpack.c.bf16 %v3152_v22, %v3151_v20  ;;  %v3008_v7 = vpop.permute.xlu0 %3007  ;;  %v2859_v44 = vmax.f32 %v2818_v29, 0.0  ;;  %v2860_v22 = vmax.f32 %v2819_v50, 0.0 }
 0x21b   : > { %v3183_v27 = vpack.c.bf16 %v3144_v3, %v3143_v45  ;;  %v3150_v11 = vmul.f32 %v3008_v7, %v2863_v35 }
 0x21c   : > { %v3003_v28 = vpop.permute.xlu1 %3002  ;;  %v3237_v36 = vrot.slane %v3187_v37, 5 }
 0x21d   : > { %v3229_v19 = vrot.slane %v3183_v27, 5  ;;  %v3149_v15 = vmul.f32 %v3003_v28, %v2862_v62 }
 0x21e   : > { %v11786_v59 = vpop.permute.xlu0 %3067 }
 0x21f   : > { %v3230_v12 = vsel %vm3221_vm10, %v3227_v57, %v3229_v19  ;;  %v3186_v13 = vpack.c.bf16 %v3150_v11, %v3149_v15  ;;  %v2658_v8 = vpop.f32.mrb[36].mxu0 }
 0x220   : > { %3289 = vst.msk [vmem:[#allocation2 + $0x28] sm:$0xff] %vm1980_vm9, %v3230_v12  ;;  %v11789_v42 = vpop.permute.xlu1 %3062  ;;  %v2777_v26 = vmul.f32 %v11712_v58, %v2658_v8  ;;  %v9510_v24 = vpop.f32.mrb[37].mxu0 }
 0x221   : > { %v3235_v21 = vrot.slane %v3186_v13, 5  ;;  %v2661_v52 = vpop.f32.mrb[38].mxu0 }
 0x222   : > { %v2825_v17 = vadd.f32 %v11725_v49, %v2777_v26  ;;  %v2778_v56 = vmul.f32 %v11712_v58, %v2661_v52  ;;  %v9511_v25 = vpop.f32.mrb[39].mxu0  ;;  %v2988_v51 = vpop.permute.xlu0 %2987 }
 0x223   : > { %v3238_v0 = vsel %vm3221_vm10, %v3235_v21, %v3237_v36  ;;  %v3146_v40 = vmul.f32 %v2988_v51, %v2859_v44 }
 0x224   : > { %3293 = vst.msk [vmem:[#allocation2 + $0x48] sm:$0xff] %vm1980_vm9, %v3238_v0  ;;  %v2866_v54 = vmax.f32 %v2825_v17, 0.0  ;;  %v2826_v61 = vadd.f32 %v11725_v49, %v2778_v56  ;;  %v2983_v6 = vpop.permute.xlu1 %2982 }
 0x225   : > { %v3145_v46 = vmul.f32 %v2983_v6, %v2858_v32 }
 0x226   : > { %v2867_v57 = vmax.f32 %v2826_v61, 0.0  ;;  %v11803_v14 = vpop.permute.xlu0 %3077  ;;  %v3153_v31 = vmul.f32 %v11714_v47, %v2866_v54 }
 0x227   : > { %v3184_v9 = vpack.c.bf16 %v3146_v40, %v3145_v46 }
 0x228   : > { %v3154_v38 = vmul.f32 %v11707_v48, %v2867_v57  ;;  %v11807_v16 = vpop.permute.xlu1 %3072 }
 0x229   : > { %v3231_v60 = vrot.slane %v3184_v9, 5 }
 0x22a   : > { %v3188_v20 = vpack.c.bf16 %v3154_v38, %v3153_v31  ;;  %v2998_v3 = vpop.permute.xlu0 %2997 }
 0x22b   : > { %v3232_v34 = vsel %vm3221_vm10, %v3229_v19, %v3231_v60  ;;  %v3148_v35 = vmul.f32 %v2998_v3, %v2861_v10  ;;  %v3318_v29 = vld [vmem:[#allocation2 + $0x48] sm:$0xff] }
 0x22c   : > { %v3239_v45 = vrot.slane %v3188_v20, 5  ;;  %3290 = vst.msk [vmem:[#allocation2 + $0x30] sm:$0xff] %vm1980_vm9, %v3232_v34  ;;  %v2993_v33 = vpop.permute.xlu1 %2992  ;;  %v3400_v26 = vshll.u32 %v3318_v29, 16  ;;  %v3404_v32 = vshrl.u32 %v3318_v29, 16 }
 0x22d   : > { %v3147_v37 = vmul.f32 %v2993_v33, %v2860_v22 }
 0x22e   : > { %v3240_v1 = vsel %vm3221_vm10, %v3237_v36, %v3239_v45  ;;  %v3402_v56 = vrot.slane %v3400_v26, 1 }
 0x22f   : > { %3294 = vst.msk [vmem:[#allocation2 + $0x50] sm:$0xff] %vm1980_vm9, %v3240_v1  ;;  %v3185_v48 = vpack.c.bf16 %v3148_v35, %v3147_v37  ;;  %v2666_v47 = vpop.f32.mrb[40].mxu0 }
 0x230   : > { %v2779_v62 = vmul.f32 %v11712_v58, %v2666_v47  ;;  %v9514_v27 = vpop.f32.mrb[41].mxu0  ;;  %v3406_v6 = vor.u32 %v3404_v32, %v3402_v56 }
 0x231   : > { %v3233_v7 = vrot.slane %v3185_v48, 5  ;;  %v2669_v28 = vpop.f32.mrb[42].mxu0 }
 0x232   : > { %v2827_v11 = vadd.f32 %v11725_v49, %v2779_v62  ;;  %v2780_v19 = vmul.f32 %v11712_v58, %v2669_v28  ;;  %v9515_v15 = vpop.f32.mrb[43].mxu0 }
 0x233   : > { %v3234_v23 = vsel %vm3221_vm10, %v3231_v60, %v3233_v7  ;;  %v3236_v12 = vsel %vm3221_vm10, %v3233_v7, %v3235_v21  ;;  %v3315_v52 = vld [vmem:[#allocation2 + $0x30] sm:$0xff] }
 0x234   : > { %3291 = vst.msk [vmem:[#allocation2 + $0x38] sm:$0xff] %vm1980_vm9, %v3234_v23  ;;  %3292 = vst.msk [vmem:[#allocation2 + $0x40] sm:$0xff] %vm1980_vm9, %v3236_v12  ;;  %v2868_v13 = vmax.f32 %v2827_v11, 0.0  ;;  %v2828_v8 = vadd.f32 %v11725_v49, %v2780_v19  ;;  %v3376_v25 = vshll.u32 %v3315_v52, 16  ;;  %v3380_v10 = vshrl.u32 %v3315_v52, 16 }
 0x236   : > { %v2869_v24 = vmax.f32 %v2828_v8, 0.0  ;;  %v11821_v36 = vld [vmem:[#allocation2 + $0x50] sm:$0xff]  ;;  %v3155_v44 = vmul.f32 %v11727_v30, %v2868_v13  ;;  %v11827_v2 = vrot.slane %v3376_v25, 1 }
 0x237   : > { %v3408_v17 = vshll.u32 %v11821_v36, 16  ;;  %v3412_v12 = vshrl.u32 %v11821_v36, 16 }
 0x238   : > { %v3156_v41 = vmul.f32 %v11720_v63, %v2869_v24  ;;  %v3382_v35 = vor.u32 %v3380_v10, %v11827_v2 }
 0x239   : > { %v3410_v54 = vrot.slane %v3408_v17, 1 }
 0x23a   : > { %v3189_v21 = vpack.c.bf16 %v3156_v41, %v3155_v44 }
 0x23b   : > { %v3316_v53 = vld [vmem:[#allocation2 + $0x38] sm:$0xff]  ;;  %v3317_v0 = vld [vmem:[#allocation2 + $0x40] sm:$0xff]  ;;  %v3411_v60 = vsel %vm951_vm2, %v3406_v6, %v3410_v54  ;;  %v3414_v41 = vor.u32 %v3412_v12, %v3410_v54 }
 0x23c   : > { %v3241_v51 = vrot.slane %v3189_v21, 5  ;;  %v3384_v61 = vshll.u32 %v3316_v53, 16  ;;  %v3392_v40 = vshll.u32 %v3317_v0, 16  ;;  %v3388_v57 = vshrl.u32 %v3316_v53, 16 }
 0x23d   : > { %v3396_v9 = vshrl.u32 %v3317_v0, 16  ;;  %v11836_v1 = vmax.bf16 %v3411_v60, %v3318_v29 }
 0x23e   : > { %v3242_v46 = vsel %vm3221_vm10, %v3239_v45, %v3241_v51  ;;  %v3386_v30 = vrot.slane %v3384_v61, 1  ;;  %v3394_v50 = vrot.slane %v3392_v40, 1 }
 0x23f   : > { %3295 = vst.msk [vmem:[#allocation2 + $0x58] sm:$0xff] %vm1980_vm9, %v3242_v46  ;;  %v2674_v63 = vpop.f32.mrb[44].mxu0  ;;  %v3611_v29 = vrot.slane %v11836_v1, 1 }
 0x240   : > { %v2781_v31 = vmul.f32 %v11712_v58, %v2674_v63  ;;  %v9518_v38 = vpop.f32.mrb[45].mxu0  ;;  %v3390_v20 = vor.u32 %v3388_v57, %v3386_v30  ;;  %v3398_v34 = vor.u32 %v3396_v9, %v3394_v50  ;;  %v3387_v7 = vsel %vm951_vm2, %v3382_v35, %v3386_v30 }
 0x241   : > { %v2677_v22 = vpop.f32.mrb[46].mxu0  ;;  %v11846_v8 = vmax.bf16 %v3387_v7, %v3315_v52 }
 0x242   : > { %v2829_v3 = vadd.f32 %v11725_v49, %v2781_v31  ;;  %v2782_v45 = vmul.f32 %v11712_v58, %v2677_v22  ;;  %v9519_v33 = vpop.f32.mrb[47].mxu0  ;;  %v3395_v37 = vsel %vm951_vm2, %v3390_v20, %v3394_v50  ;;  %v3403_v47 = vsel %vm951_vm2, %v3398_v34, %v3402_v56  ;;  %v3313_v31 = vld [vmem:[#allocation2 + $0x20] sm:$0xff]  ;;  %v3312_v20 = vld [vmem:[#allocation2 + $0x18] sm:$0xff]  ;;  %v11876_v22 = vld [vmem:[#allocation2 + $0x28] sm:$0xff] }
 0x243   : > { %v11838_v48 = vmax.bf16 %v3395_v37, %v3316_v53  ;;  %v3531_v28 = vmax.bf16 %v3403_v47, %v3317_v0  ;;  %v11884_v33 = vld [vmem:[#allocation2 + $0x10] sm:$0xf0]  ;;  %v3360_v35 = vshll.u32 %v3313_v31, 16 }
 0x244   : > { %v2870_v62 = vmax.f32 %v2829_v3, 0.0  ;;  %v2830_v27 = vadd.f32 %v11725_v49, %v2782_v45  ;;  %v3548_v12 = vshll.u32 %v11884_v33, 16 }
 0x245   : > { %v3607_v11 = vrot.slane %v11838_v48, 1  ;;  %v3609_v23 = vrot.slane %v3531_v28, 1 }
 0x246   : > { %v2871_v19 = vmax.f32 %v2830_v27, 0.0  ;;  %v3320_v15 = vld [vmem:[#allocation2 + $0x58] sm:$0xff]  ;;  %v3157_v26 = vmul.f32 %v11737_v5, %v2870_v62  ;;  %v3352_v62 = vshll.u32 %v3312_v20, 16 }
 0x247   : > { %v3416_v13 = vshll.u32 %v3320_v15, 16  ;;  %v3610_v44 = vsel %vm1164_vm0, %v3607_v11, %v3609_v23  ;;  %v3612_v21 = vsel %vm1164_vm0, %v3609_v23, %v3611_v29  ;;  %v3420_v37 = vshrl.u32 %v3320_v15, 16 }
 0x248   : > { %v3158_v24 = vmul.f32 %v11735_v55, %v2871_v19  ;;  %v3665_v56 = vmax.bf16 %v3610_v44, %v11846_v8  ;;  %v3666_v32 = vmax.bf16 %v3612_v21, %v11838_v48  ;;  %v3354_v44 = vrot.slane %v3352_v62, 1 }
 0x249   : > { %v3418_v17 = vrot.slane %v3416_v13, 1 }
 0x24a   : > { %v3190_v25 = vpack.c.bf16 %v3158_v24, %v3157_v26  ;;  %v11857_v53 = vrot.slane %v3665_v56, 3  ;;  %v3840_v0 = vrot.slane %v3666_v32, 3  ;;  %v3362_v26 = vrot.slane %v3360_v35, 1 }
 0x24b   : > { %v3419_v52 = vsel %vm951_vm2, %v3414_v41, %v3418_v17  ;;  %v3422_v19 = vor.u32 %v3420_v37, %v3418_v17  ;;  %v3364_v56 = vshrl.u32 %v3313_v31, 16 }
 0x24c   : > { %v3243_v5 = vrot.slane %v3190_v25, 5  ;;  %v11860_v55 = vmax.bf16 %v3419_v52, %v11821_v36  ;;  %v11866_v6 = vsel %vm3828_vm12, %v11857_v53, %v3840_v0  ;;  %v3550_v25 = vrot.slane %v3548_v12, 1 }
 0x24e   : > { %v3244_v54 = vsel %vm3221_vm10, %v3241_v51, %v3243_v5  ;;  %v3613_v61 = vrot.slane %v11860_v55, 1 }
 0x24f   : > { %3296 = vst.msk [vmem:[#allocation2 + $0x60] sm:$0xff] %vm1980_vm9, %v3244_v54  ;;  %v2682_v40 = vpop.f32.mrb[48].mxu0  ;;  %v3366_v54 = vor.u32 %v3364_v56, %v3362_v26 }
 0x250   : > { %v2783_v46 = vmul.f32 %v11712_v58, %v2682_v40  ;;  %v9522_v30 = vpop.f32.mrb[49].mxu0  ;;  %v3614_v57 = vsel %vm1164_vm0, %v3611_v29, %v3613_v61  ;;  %v11892_v29 = vld [vmem:[#allocation2 + $0x10] sm:$0xff] }
 0x251   : > { %v2685_v36 = vpop.f32.mrb[50].mxu0  ;;  %v3667_v63 = vmax.bf16 %v3614_v57, %v3531_v28  ;;  %v3368_v28 = vshll.u32 %v11876_v22, 16  ;;  %v3344_v17 = vshll.u32 %v11892_v29, 16 }
 0x252   : > { %v2831_v50 = vadd.f32 %v11725_v49, %v2783_v46  ;;  %v2784_v51 = vmul.f32 %v11712_v58, %v2685_v36  ;;  %v9523_v9 = vpop.f32.mrb[51].mxu0  ;;  %v3546_v46 = vshrl.u32 %v11884_v33, 16 }
 0x253   : > { %v11873_v38 = vrot.slane %v3667_v63, 3  ;;  %v11901_v21 = vrot.slane %v3368_v28, 1  ;;  %v3346_v9 = vrot.slane %v3344_v17, 1  ;;  %v3348_v28 = vshrl.u32 %v11892_v29, 16 }
 0x254   : > { %v2872_v60 = vmax.f32 %v2831_v50, 0.0  ;;  %v2832_v10 = vadd.f32 %v11725_v49, %v2784_v51  ;;  %v3551_v37 = vor.u32 %v3550_v25, %v3546_v46 }
 0x255   : > { %v11880_v34 = vsel %vm3828_vm12, %v3840_v0, %v11873_v38  ;;  %v3356_v0 = vshrl.u32 %v3312_v20, 16 }
 0x256   : > { %v2873_v3 = vmax.f32 %v2832_v10, 0.0  ;;  %v11882_v45 = vld [vmem:[#allocation2 + $0x60] sm:$0xff]  ;;  %v3159_v27 = vmul.f32 %v11771_v43, %v2872_v60 }
 0x257   : > { %v3424_v47 = vshll.u32 %v11882_v45, 16  ;;  %v3358_v63 = vor.u32 %v3356_v0, %v3354_v44  ;;  %v3428_v56 = vshrl.u32 %v11882_v45, 16 }
 0x258   : > { %v3160_v7 = vmul.f32 %v11767_v18, %v2873_v3  ;;  %v11899_v18 = vld [vmem:[#allocation2 + $0x8] sm:$0xf8] }
 0x259   : > { %v3426_v23 = vrot.slane %v3424_v47, 1  ;;  %v3363_v35 = vsel %vm951_vm2, %v3358_v63, %v3362_v26 }
 0x25a   : > { %v3191_v13 = vpack.c.bf16 %v3160_v7, %v3159_v27 }
 0x25b   : > { %v3427_v24 = vsel %vm951_vm2, %v3422_v19, %v3426_v23  ;;  %v11925_v19 = vmax.bf16 %v3363_v35, %v3312_v20  ;;  %v9793_v20 = vld [vmem:[%s14115_s28 + $0x4] ss:$12 sps:$4 sm:$0xff]  }
 0x25c   : > { %v11895_v41 = vrot.slane %v3191_v13, 5  ;;  %v11897_v43 = vmax.bf16 %v3427_v24, %v3320_v15  ;;  %v3339_v15 = vshll.u32 %v11899_v18, 16  ;;  %v3337_v24 = vshrl.u32 %v11899_v18, 16  ;;  %3948 = vmatprep.mubr.bf16.mxu1 %v9793_v20 }
 0x25e   : > { %v3246_v32 = vsel %vm3221_vm10, %v3243_v5, %v11895_v41  ;;  %v3615_v52 = vrot.slane %v11897_v43, 1  ;;  %v3371_v5 = vsel %vm951_vm2, %v3366_v54, %v11901_v21  ;;  %v3341_v62 = vrot.slane %v3339_v15, 1 }
 0x25f   : > { %3297 = vst.msk [vmem:[#allocation2 + $0x68] sm:$0xff] %vm1980_vm9, %v3246_v32  ;;  %v2690_v40 = vpop.f32.mrb[52].mxu0  ;;  %v11920_v27 = vmax.bf16 %v3371_v5, %v3313_v31  ;;  %v3350_v31 = vor.u32 %v3348_v28, %v3346_v9 }
 0x260   : > { %v2785_v30 = vmul.f32 %v11712_v58, %v2690_v40  ;;  %v9526_v57 = vpop.f32.mrb[53].mxu0  ;;  %v3616_v36 = vsel %vm1164_vm0, %v3613_v61, %v3615_v52  ;;  %v3342_v54 = vor.u32 %v3341_v62, %v3337_v24  ;;  %v3430_v40 = vor.u32 %v3428_v56, %v3426_v23 }
 0x261   : > { %v2693_v50 = vpop.f32.mrb[54].mxu0  ;;  %v3668_v51 = vmax.bf16 %v3616_v36, %v11836_v1  ;;  %v3552_v1 = vsel %vm951_vm2, %v3551_v37, %v3354_v44  ;;  %v3601_v32 = vrot.slane %v11920_v27, 1  ;;  %v3355_v46 = vsel %vm951_vm2, %v3350_v31, %v3354_v44 }
 0x262   : > { %v2833_v60 = vadd.f32 %v11725_v49, %v2785_v30  ;;  %v2786_v10 = vmul.f32 %v11712_v58, %v2693_v50  ;;  %v9527_v3 = vpop.f32.mrb[55].mxu0  ;;  %v3573_v25 = vmax.bf16 %v3552_v1, %v11884_v33  ;;  %v3599_v30 = vrot.slane %v11925_v19, 1 }
 0x263   : > { %v3844_v47 = vrot.slane %v3668_v51, 3  ;;  %v3347_v33 = vsel %vm951_vm2, %v3342_v54, %v3346_v9  ;;  %v3372_v23 = vshrl.u32 %v11876_v22, 16 }
 0x264   : > { %v2874_v61 = vmax.f32 %v2833_v60, 0.0  ;;  %v2834_v7 = vadd.f32 %v11725_v49, %v2786_v10  ;;  %v3598_v63 = vrot.slane %v3573_v25, 1  ;;  %v3602_v5 = vsel %vm1164_vm0, %v3599_v30, %v3601_v32 }
 0x265   : > { %v11929_v12 = vsel %vm3828_vm12, %v11873_v38, %v3844_v47  ;;  %v3524_v44 = vmax.bf16 %v3347_v33, %v11899_v18  ;;  %v3374_v3 = vor.u32 %v3372_v23, %v11901_v21 }
 0x266   : > { %v2875_v13 = vmax.f32 %v2834_v7, 0.0  ;;  %v11931_v26 = vld [vmem:[#allocation2 + $0x68] sm:$0xff]  ;;  %v3161_v38 = vmul.f32 %v11789_v42, %v2874_v61  ;;  %v3600_v51 = vsel %vm1164_vm0, %v3598_v63, %v3599_v30 }
 0x267   : > { %v3432_v17 = vshll.u32 %v11931_v26, 16  ;;  %v3660_v37 = vmax.bf16 %v3600_v51, %v3524_v44  ;;  %v3379_v62 = vsel %vm951_vm2, %v3374_v3, %v11827_v2  ;;  %v3436_v20 = vshrl.u32 %v11931_v26, 16 }
 0x268   : > { %v3162_v0 = vmul.f32 %v11786_v59, %v2875_v13  ;;  %v3525_v59 = vmax.bf16 %v3355_v46, %v11892_v29  ;;  %v11970_v24 = vmax.bf16 %v3379_v62, %v11876_v22 }
 0x269   : > { %v3434_v15 = vrot.slane %v3432_v17, 1  ;;  %v3829_v56 = vrot.slane %v3660_v37, 3  ;;  %v3088_v37 = vpop.permute.xlu0 %3087 }
 0x26a   : > { %v3192_v57 = vpack.c.bf16 %v3162_v0, %v3161_v38  ;;  %v3661_v10 = vmax.bf16 %v3602_v5, %v3525_v59  ;;  %v3603_v0 = vrot.slane %v11970_v24, 1 }
 0x26b   : > { %v3435_v36 = vsel %vm951_vm2, %v3430_v40, %v3434_v15  ;;  %v3438_v40 = vor.u32 %v3436_v20, %v3434_v15 }
 0x26c   : > { %v3247_v50 = vrot.slane %v3192_v57, 5  ;;  %v11949_v42 = vmax.bf16 %v3435_v36, %v11882_v45  ;;  %v3830_v1 = vrot.slane %v3661_v10, 3  ;;  %v3604_v57 = vsel %vm1164_vm0, %v3601_v32, %v3603_v0 }
 0x26d   : > { %v3662_v59 = vmax.bf16 %v3604_v57, %v11925_v19 }
 0x26e   : > { %v3248_v9 = vsel %vm3221_vm10, %v11895_v41, %v3247_v50  ;;  %v3617_v60 = vrot.slane %v11949_v42, 1 }
 0x26f   : > { %3298 = vst.msk [vmem:[#allocation2 + $0x70] sm:$0xff] %vm1980_vm9, %v3248_v9  ;;  %v2698_v45 = vpop.f32.mrb[56].mxu0  ;;  %v3832_v9 = vrot.slane %v3662_v59, 3 }
 0x270   : > { %v2787_v35 = vmul.f32 %v11712_v58, %v2698_v45  ;;  %v9530_v29 = vpop.f32.mrb[57].mxu0  ;;  %v3618_v18 = vsel %vm1164_vm0, %v3615_v52, %v3617_v60 }
 0x271   : > { %v2701_v41 = vpop.f32.mrb[58].mxu0  ;;  %v3669_v61 = vmax.bf16 %v3618_v18, %v11860_v55  ;;  %v3831_v55 = vsel %vm3828_vm12, %v3829_v56, %v3830_v1  ;;  %v3833_v29 = vsel %vm3828_vm12, %v3830_v1, %v3832_v9  ;;  %v3083_v18 = vpop.permute.xlu1 %3082 }
 0x272   : > { %v2835_v7 = vadd.f32 %v11725_v49, %v2787_v35  ;;  %v2788_v21 = vmul.f32 %v11712_v58, %v2701_v41  ;;  %v9531_v28 = vpop.f32.mrb[59].mxu0  ;;  %v3605_v41 = vrot.slane %v11846_v8, 1 }
 0x273   : > { %v3846_v13 = vrot.slane %v3669_v61, 3 }
 0x274   : > { %v2876_v31 = vmax.f32 %v2835_v7, 0.0  ;;  %v2836_v52 = vadd.f32 %v11725_v49, %v2788_v21 }
 0x275   : > { %v3847_v17 = vsel %vm3828_vm12, %v3844_v47, %v3846_v13 }
 0x276   : > { %v2877_v2 = vmax.f32 %v2836_v52, 0.0  ;;  %9143 = vmatprep.subr.bf16.mxu1 %v3847_v17  ;;  %v3323_v25 = vld [vmem:[#allocation2 + $0x70] sm:$0xff]  ;;  %v3163_v22 = vmul.f32 %v11807_v16, %v2876_v31 }
 0x277   : > { %9144 = vmatpush3.bf16.msra.mxu1 %v3831_v55  ;;  %v3440_v38 = vshll.u32 %v3323_v25, 16 }
 0x278   : > { %v3164_v54 = vmul.f32 %v11803_v14, %v2877_v2 }
 0x279   : > { %v3442_v46 = vrot.slane %v3440_v38, 1 }
 0x27a   : > { %v3193_v30 = vpack.c.bf16 %v3164_v54, %v3163_v22 }
 0x27b   : > { %v3443_v47 = vsel %vm951_vm2, %v3438_v40, %v3442_v46 }
 0x27c   : > { %v3249_v33 = vrot.slane %v3193_v30, 5  ;;  %v11982_v36 = vmax.bf16 %v3443_v47, %v11931_v26 }
 0x27e   : > { %v3250_v63 = vsel %vm3221_vm10, %v3247_v50, %v3249_v33  ;;  %v3619_v5 = vrot.slane %v11982_v36, 1 }
 0x27f   : > { %3299 = vst.msk [vmem:[#allocation2 + $0x78] sm:$0xff] %vm1980_vm9, %v3250_v63  ;;  %v2706_v14 = vpop.f32.mrb[60].mxu0 }
 0x280   : > { %v2789_v16 = vmul.f32 %v11712_v58, %v2706_v14  ;;  %v9534_v15 = vpop.f32.mrb[61].mxu0  ;;  %v3620_v23 = vsel %vm1164_vm0, %v3617_v60, %v3619_v5  ;;  %v3093_v14 = vpop.permute.xlu1 %3092 }
 0x281   : > { %v2709_v44 = vpop.f32.mrb[62].mxu0  ;;  %v3670_v32 = vmax.bf16 %v3620_v23, %v11897_v43  ;;  %v3444_v43 = vshrl.u32 %v3323_v25, 16 }
 0x282   : > { %v2837_v26 = vadd.f32 %v11725_v49, %v2789_v16  ;;  %v2790_v51 = vmul.f32 %v11712_v58, %v2709_v44  ;;  %v9535_v50 = vpop.f32.mrb[63].mxu0  ;;  %v3098_v16 = vpop.permute.xlu0 %3097 }
 0x283   : > { %v3848_v10 = vrot.slane %v3670_v32, 3  ;;  %v3446_v21 = vor.u32 %v3444_v43, %v3442_v46 }
 0x284   : > { %v2878_v3 = vmax.f32 %v2837_v26, 0.0  ;;  %v2838_v19 = vadd.f32 %v11725_v49, %v2790_v51 }
 0x285   : > { %v3849_v45 = vsel %vm3828_vm12, %v3846_v13, %v3848_v10  ;;  %v3606_v13 = vsel %vm1164_vm0, %v3603_v0, %v3605_v41 }
 0x286   : > { %v2879_v35 = vmax.f32 %v2838_v19, 0.0  ;;  %9145 = vmatprep.subr.bf16.mxu1 %v3849_v45  ;;  %v3324_v60 = vld [vmem:[#allocation2 + $0x78] sm:$0xff]  ;;  %v3165_v61 = vmul.f32 %v3083_v18, %v2878_v3  ;;  %v3663_v55 = vmax.bf16 %v3606_v13, %v11920_v27 }
 0x287   : > { %9146 = vmatpush3.bf16.msra.mxu1 %v3833_v29  ;;  %v3448_v62 = vshll.u32 %v3324_v60, 16 }
 0x288   : > { %v3166_v7 = vmul.f32 %v3088_v37, %v2879_v35  ;;  %v3834_v30 = vrot.slane %v3663_v55, 3 }
 0x289   : > { %v3450_v28 = vrot.slane %v3448_v62, 1 }
 0x28a   : > { %v3194_v31 = vpack.c.bf16 %v3166_v7, %v3165_v61  ;;  %v3835_v59 = vsel %vm3828_vm12, %v3832_v9, %v3834_v30 }
 0x28b   : > { %v3451_v52 = vsel %vm951_vm2, %v3446_v21, %v3450_v28 }
 0x28c   : > { %v3251_v56 = vrot.slane %v3194_v31, 5  ;;  %v11999_v17 = vmax.bf16 %v3451_v52, %v3323_v25 }
 0x28e   : > { %v3252_v1 = vsel %vm3221_vm10, %v3249_v33, %v3251_v56  ;;  %v3621_v2 = vrot.slane %v11999_v17, 1 }
 0x28f   : > { %3300 = vst.msk [vmem:[#allocation2 + $0x80] sm:$0xff] %vm1980_vm9, %v3252_v1  ;;  %v2714_v8 = vpop.f32.mrb[64].mxu0  ;;  %v3108_v1 = vpop.permute.xlu0 %3107 }
 0x290   : > { %v2791_v20 = vmul.f32 %v11712_v58, %v2714_v8  ;;  %v9538_v38 = vpop.f32.mrb[65].mxu0  ;;  %v3622_v22 = vsel %vm1164_vm0, %v3619_v5, %v3621_v2 }
 0x291   : > { %v2717_v54 = vpop.f32.mrb[66].mxu0  ;;  %v3671_v0 = vmax.bf16 %v3622_v22, %v11949_v42  ;;  %v3452_v42 = vshrl.u32 %v3324_v60, 16 }
 0x292   : > { %v2839_v25 = vadd.f32 %v11725_v49, %v2791_v20  ;;  %v2792_v40 = vmul.f32 %v11712_v58, %v2717_v54  ;;  %v9539_v46 = vpop.f32.mrb[67].mxu0 }
 0x293   : > { %v3850_v47 = vrot.slane %v3671_v0, 3  ;;  %v3454_v32 = vor.u32 %v3452_v42, %v3450_v28 }
 0x294   : > { %v2880_v57 = vmax.f32 %v2839_v25, 0.0  ;;  %v2840_v27 = vadd.f32 %v11725_v49, %v2792_v40 }
 0x295   : > { %v3851_v33 = vsel %vm3828_vm12, %v3848_v10, %v3850_v47  ;;  %v3608_v10 = vsel %vm1164_vm0, %v3605_v41, %v3607_v11 }
 0x296   : > { %v2881_v63 = vmax.f32 %v2840_v27, 0.0  ;;  %9147 = vmatprep.subr.bf16.mxu1 %v3851_v33  ;;  %v3325_v5 = vld [vmem:[#allocation2 + $0x80] sm:$0xff]  ;;  %v3167_v23 = vmul.f32 %v3093_v14, %v2880_v57  ;;  %v3664_v35 = vmax.bf16 %v3608_v10, %v11970_v24 }
 0x297   : > { %9148 = vmatpush3.bf16.msra.mxu1 %v3835_v59  ;;  %v3456_v15 = vshll.u32 %v3325_v5, 16 }
 0x298   : > { %v3168_v44 = vmul.f32 %v3098_v16, %v2881_v63  ;;  %v3836_v61 = vrot.slane %v3664_v35, 3 }
 0x299   : > { %v3458_v26 = vrot.slane %v3456_v15, 1 }
 0x29a   : > { %v3195_v51 = vpack.c.bf16 %v3168_v44, %v3167_v23  ;;  %v3837_v52 = vsel %vm3828_vm12, %v3834_v30, %v3836_v61 }
 0x29b   : > { %v3459_v50 = vsel %vm951_vm2, %v3454_v32, %v3458_v26  ;;  %v3839_v32 = vsel %vm3828_vm12, %v3836_v61, %v11857_v53 }
 0x29c   : > { %v3253_v3 = vrot.slane %v3195_v51, 5  ;;  %v12017_v19 = vmax.bf16 %v3459_v50, %v3324_v60  ;;  %v3118_v50 = vpop.permute.xlu0 %3117 }
 0x29e   : > { %v3254_v9 = vsel %vm3221_vm10, %v3251_v56, %v3253_v3  ;;  %v3623_v45 = vrot.slane %v12017_v19, 1  ;;  %v3103_v56 = vpop.permute.xlu1 %3102 }
 0x29f   : > { %3301 = vst.msk [vmem:[#allocation2 + $0x88] sm:$0xff] %vm1980_vm9, %v3254_v9  ;;  %v2722_v29 = vpop.f32.mrb[68].mxu0 }
 0x2a0   : > { %v2793_v18 = vmul.f32 %v11712_v58, %v2722_v29  ;;  %v9542_v37 = vpop.f32.mrb[69].mxu0  ;;  %v3624_v43 = vsel %vm1164_vm0, %v3621_v2, %v3623_v45 }
 0x2a1   : > { %v2725_v48 = vpop.f32.mrb[70].mxu0  ;;  %v3672_v11 = vmax.bf16 %v3624_v43, %v11982_v36  ;;  %v3460_v36 = vshrl.u32 %v3325_v5, 16 }
 0x2a2   : > { %v2841_v60 = vadd.f32 %v11725_v49, %v2793_v18  ;;  %v2794_v62 = vmul.f32 %v11712_v58, %v2725_v48  ;;  %v9543_v41 = vpop.f32.mrb[71].mxu0  ;;  %v3113_v51 = vpop.permute.xlu1 %3112  ;;  %v9984_v48 = vld [vmem:[%s14113_s29] ss:$0 sm:$0xff]  ;;  %s10005_s29 = smov 80  }
 0x2a3   : > { %v3852_v7 = vrot.slane %v3672_v11, 3  ;;  %v3462_v20 = vor.u32 %v3460_v36, %v3458_v26 }
 0x2a4   : > { %v2882_v21 = vmax.f32 %v2841_v60, 0.0  ;;  %v2842_v24 = vadd.f32 %v11725_v49, %v2794_v62 }
 0x2a5   : > { %v3853_v28 = vsel %vm3828_vm12, %v3850_v47, %v3852_v7 }
 0x2a6   : > { %v2883_v31 = vmax.f32 %v2842_v24, 0.0  ;;  %9149 = vmatprep.subr.bf16.mxu1 %v3853_v28  ;;  %v3326_v13 = vld [vmem:[#allocation2 + $0x88] sm:$0xff]  ;;  %v3169_v55 = vmul.f32 %v3103_v56, %v2882_v21 }
 0x2a7   : > { %9150 = vmatpush3.bf16.msra.mxu1 %v3837_v52  ;;  %v3464_v2 = vshll.u32 %v3326_v13, 16 }
 0x2a8   : > { %v3170_v8 = vmul.f32 %v3108_v1, %v2883_v31  ;;  %v3128_v1 = vpop.permute.xlu0 %3127 }
 0x2a9   : > { %v3466_v38 = vrot.slane %v3464_v2, 1 }
 0x2aa   : > { %v3196_v22 = vpack.c.bf16 %v3170_v8, %v3169_v55  ;;  %v3123_v55 = vpop.permute.xlu1 %3122 }
 0x2ab   : > { %v3467_v54 = vsel %vm951_vm2, %v3462_v20, %v3466_v38 }
 0x2ac   : > { %v3255_v0 = vrot.slane %v3196_v22, 5  ;;  %v12032_v25 = vmax.bf16 %v3467_v54, %v3325_v5 }
 0x2ae   : > { %v3256_v40 = vsel %vm3221_vm10, %v3253_v3, %v3255_v0  ;;  %v3625_v46 = vrot.slane %v12032_v25, 1 }
 0x2af   : > { %3302 = vst.msk [vmem:[#allocation2 + $0x90] sm:$0xff] %vm1980_vm9, %v3256_v40  ;;  %v2730_v30 = vpop.f32.mrb[72].mxu0 }
 0x2b0   : > { %v2795_v47 = vmul.f32 %v11712_v58, %v2730_v30  ;;  %v9546_v57 = vpop.f32.mrb[73].mxu0  ;;  %v3626_v27 = vsel %vm1164_vm0, %v3623_v45, %v3625_v46 }
 0x2b1   : > { %v2733_v33 = vpop.f32.mrb[74].mxu0  ;;  %v3673_v63 = vmax.bf16 %v3626_v27, %v11999_v17  ;;  %v3468_v17 = vshrl.u32 %v3326_v13, 16 }
 0x2b2   : > { %v2843_v59 = vadd.f32 %v11725_v49, %v2795_v47  ;;  %v2796_v5 = vmul.f32 %v11712_v58, %v2733_v33  ;;  %v9547_v14 = vpop.f32.mrb[75].mxu0 }
 0x2b3   : > { %v3854_v16 = vrot.slane %v3673_v63, 3  ;;  %v3470_v9 = vor.u32 %v3468_v17, %v3466_v38  ;;  %v3133_v14 = vpop.permute.xlu1 %3132 }
 0x2b4   : > { %v2884_v42 = vmax.f32 %v2843_v59, 0.0  ;;  %v2844_v15 = vadd.f32 %v11725_v49, %v2796_v5 }
 0x2b5   : > { %v3855_v23 = vsel %vm3828_vm12, %v3852_v7, %v3854_v16  ;;  %v9985_v7 = vld [vmem:[%s14114_s7] ss:$0 sm:$0xff] }
 0x2b6   : > { %v2885_v44 = vmax.f32 %v2844_v15, 0.0  ;;  %9151 = vmatprep.subr.bf16.mxu1 %v3855_v23  ;;  %v3327_v26 = vld [vmem:[#allocation2 + $0x90] sm:$0xff]  ;;  %v3171_v3 = vmul.f32 %v3113_v51, %v2884_v42 }
 0x2b7   : > { %9152 = vmatpush3.bf16.msra.mxu1 %v3839_v32  ;;  %v3472_v10 = vshll.u32 %v3327_v26, 16 }
 0x2b8   : > { %v3172_v58 = vmul.f32 %v3118_v50, %v2885_v44  ;;  %v3335_v50 = vld [vmem:[#allocation2 + $0xb0] sm:$0x7f] }
 0x2b9   : > { %v3474_v45 = vrot.slane %v3472_v10, 1 }
 0x2ba   : > { %v3197_v35 = vpack.c.bf16 %v3172_v58, %v3171_v3  ;;  %v3562_v3 = vshll.u32 %v3335_v50, 16 }
 0x2bb   : > { %v3475_v49 = vsel %vm951_vm2, %v3470_v9, %v3474_v45 }
 0x2bc   : > { %v3257_v29 = vrot.slane %v3197_v35, 5  ;;  %v12047_v18 = vmax.bf16 %v3475_v49, %v3326_v13  ;;  %v3564_v49 = vrot.slane %v3562_v3, 1  ;;  %v9802_v3 = vld [vmem:[%s14115_s28 + $0x48] ss:$12 sps:$4 sm:$0xff]  }
 0x2be   : > { %v3258_v37 = vsel %vm3221_vm10, %v3255_v0, %v3257_v29  ;;  %v3627_v53 = vrot.slane %v12047_v18, 1 }
 0x2bf   : > { %3303 = vst.msk [vmem:[#allocation2 + $0x98] sm:$0xff] %vm1980_vm9, %v3258_v37  ;;  %v2738_v43 = vpop.f32.mrb[76].mxu0 }
 0x2c0   : > { %v2797_v11 = vmul.f32 %v9984_v48, %v2738_v43  ;;  %v9550_v60 = vpop.f32.mrb[77].mxu0  ;;  %v3628_v62 = vsel %vm1164_vm0, %v3625_v46, %v3627_v53 }
 0x2c1   : > { %v2741_v41 = vpop.f32.mrb[78].mxu0  ;;  %v3674_v61 = vmax.bf16 %v3628_v62, %v12017_v19  ;;  %v3476_v19 = vshrl.u32 %v3327_v26, 16 }
 0x2c2   : > { %v2845_v21 = vadd.f32 %v9985_v7, %v2797_v11  ;;  %v2798_v24 = vmul.f32 %v9984_v48, %v2741_v41  ;;  %v9551_v28 = vpop.f32.mrb[79].mxu0 }
 0x2c3   : > { %v3856_v31 = vrot.slane %v3674_v61, 3  ;;  %v3478_v46 = vor.u32 %v3476_v19, %v3474_v45 }
 0x2c4   : > { %v2886_v52 = vmax.f32 %v2845_v21, 0.0  ;;  %v2846_v13 = vadd.f32 %v9985_v7, %v2798_v24 }
 0x2c5   : > { %v3857_v56 = vsel %vm3828_vm12, %v3854_v16, %v3856_v31 }
 0x2c6   : > { %v2887_v36 = vmax.f32 %v2846_v13, 0.0  ;;  %9153 = vmatprep.subr.bf16.mxu1 %v3857_v56  ;;  %v3328_v2 = vld [vmem:[#allocation2 + $0x98] sm:$0xff]  ;;  %v3173_v38 = vmul.f32 %v3123_v55, %v2886_v52 }
 0x2c7   : > { %v2746_v8 = vpop.f32.mrb[80].mxu0  ;;  %9154 = vmatpush3.bf16.msra.mxu1 %v11866_v6  ;;  %v3480_v20 = vshll.u32 %v3328_v2, 16  ;;  %v3484_v58 = vshrl.u32 %v3328_v2, 16 }
 0x2c8   : > { %v3174_v22 = vmul.f32 %v3128_v1, %v2887_v36  ;;  %v2799_v54 = vmul.f32 %v9984_v48, %v2746_v8  ;;  %v9554_v0 = vpop.f32.mrb[81].mxu0 }
 0x2c9   : > { %v2749_v40 = vpop.f32.mrb[82].mxu0  ;;  %v3482_v30 = vrot.slane %v3480_v20, 1  ;;  %v9791_v20 = vld [vmem:[%s14115_s28] ss:$12 sps:$4 sm:$0xff]  }
 0x2ca   : > { %v3198_v47 = vpack.c.bf16 %v3174_v22, %v3173_v38  ;;  %v2847_v57 = vadd.f32 %v9985_v7, %v2799_v54  ;;  %v9555_v27 = vpop.f32.mrb[83].mxu0  ;;  %v9794_v40 = vld [vmem:[%s14115_s28 + $0x1c] ss:$12 sps:$4 sm:$0xff]  }
 0x2cb   : > { %v3483_v33 = vsel %vm951_vm2, %v3478_v46, %v3482_v30  ;;  %v3486_v45 = vor.u32 %v3484_v58, %v3482_v30  ;;  %v9803_v58 = vld [vmem:[%s14115_s28 + $0x64] ss:$12 sps:$4 sm:$0xff]  }
 0x2cc   : > { %v3259_v63 = vrot.slane %v3198_v47, 5  ;;  %v2888_v59 = vmax.f32 %v2847_v57, 0.0  ;;  %v12063_v5 = vmax.bf16 %v3483_v33, %v3327_v26 }
 0x2ce   : > { %v3260_v6 = vsel %vm3221_vm10, %v3257_v29, %v3259_v63  ;;  %v3175_v16 = vmul.f32 %v3133_v14, %v2888_v59  ;;  %v3629_v42 = vrot.slane %v12063_v5, 1 }
 0x2cf   : > { %3304 = vst.msk [vmem:[#allocation2 + $0xa0] sm:$0xff] %vm1980_vm9, %v3260_v6 }
 0x2d0   : > { %v3199_v15 = vpack.c.bf16 %v3175_v16, %v3175_v16  ;;  %v3630_v23 = vsel %vm1164_vm0, %v3627_v53, %v3629_v42  ;;  %v9796_v16 = vld [vmem:[%s14115_s28 + $0x18] ss:$12 sps:$4 sm:$0xff]  }
 0x2d1   : > { %v3675_v44 = vmax.bf16 %v3630_v23, %v12032_v25  ;;  %v3566_v25 = vshrl.u32 %v3335_v50, 16  ;;  %v9797_v23 = vld [vmem:[%s14115_s28 + $0x34] ss:$12 sps:$4 sm:$0xff]   ;;  %v9799_v50 = vld [vmem:[%s14115_s28 + $0x30] ss:$12 sps:$4 sm:$0xff]  }
 0x2d2   : > { %v3261_v32 = vrot.slane %v3199_v15, 5 }
 0x2d3   : > { %v3858_v51 = vrot.slane %v3675_v44, 3  ;;  %v3568_v41 = vor.u32 %v3566_v25, %v3564_v49 }
 0x2d4   : > { %v3262_v26 = vsel %vm3221_vm10, %v3259_v63, %v3261_v32 }
 0x2d5   : > { %3306 = vst.msk [vmem:[#allocation2 + $0xa8] sm:$0x1f] %vm3305_vm7, %v3262_v26  ;;  %v3859_v17 = vsel %vm3828_vm12, %v3856_v31, %v3858_v51  ;;  %vm4092_vm7 = vcmask 129024  }
 0x2d6   : > { %9155 = vmatprep.subr.bf16.mxu1 %v3859_v17  ;;  %v3329_v10 = vld [vmem:[#allocation2 + $0xa0] sm:$0xff]  ;;  %4093 = vst.msk [vmem:[#allocation3] sm:$0x7f] %vm4092_vm7, %v10004_v39  ;;  %vm4416_vm7 = vsmask.f32 5376 }
 0x2d7   : > { %9156 = vmatpush3.bf16.msra.mxu1 %v11880_v34  ;;  %v3488_v9 = vshll.u32 %v3329_v10, 16  ;;  %v3492_v48 = vshrl.u32 %v3329_v10, 16  ;;  %v3334_v34 = vld [vmem:[#allocation2 + $0xb0] sm:$0x3f] }
 0x2d8   : > { %v3576_v1 = vmax.bf16 %v3568_v41, %v3334_v34  ;;  %v9800_v17 = vld [vmem:[%s14115_s28 + $0x4c] ss:$12 sps:$4 sm:$0xff]  }
 0x2d9   : > { %v3490_v35 = vrot.slane %v3488_v9, 1  ;;  %v9805_v9 = vld [vmem:[%s14115_s28 + $0x60] ss:$12 sps:$4 sm:$0xff]  }
 0x2da   : > { %v3637_v54 = vrot.slane %v3576_v1, 1 }
 0x2db   : > { %v3491_v29 = vsel %vm951_vm2, %v3486_v45, %v3490_v35  ;;  %v3494_v61 = vor.u32 %v3492_v48, %v3490_v35  ;;  %v9806_v45 = vld [vmem:[%s14115_s28 + $0x7c] ss:$12 sps:$4 sm:$0xff]   ;;  %v3705_v35 = vld [vmem:[%s14115_s28 + $0x90] sm:$0x33] }
 0x2dc   : > { %v3542_v37 = vmax.bf16 %v3491_v29, %v3328_v2  ;;  %v3333_v53 = vld [vmem:[#allocation2 + $0xa8] sm:$0xff]  ;;  %v8866_v25 = vcombine.high %v3705_v35, %v3705_v35  ;;  %v8865_v29 = vcombine.low %v3705_v35, %v3705_v35  ;;  %v9814_v48 = vld [vmem:[%s14115_s28 + $0x50] ss:$12 sps:$4 sm:$0xff]  }
 0x2dd   : > { %v3331_v43 = vld [vmem:[#allocation2 + $0xa8] sm:$0x3f]  ;;  %v3554_v11 = vshll.u32 %v3333_v53, 16  ;;  %v3558_v21 = vshrl.u32 %v3333_v53, 16 }
 0x2de   : > { %v3631_v60 = vrot.slane %v3542_v37, 1  ;;  %v3496_v62 = vshll.u32 %v3331_v43, 16  ;;  %v3500_v46 = vshrl.u32 %v3331_v43, 16  ;;  %v3330_v14 = vld [vmem:[#allocation2 + $0xa8] sm:$0x1f] }
 0x2df   : > { %v3556_v7 = vrot.slane %v3554_v11, 1  ;;  %v9813_v43 = vld [vmem:[%s14115_s28 + $0x38] ss:$12 sps:$4 sm:$0xff]   ;;  %v9815_v11 = vld [vmem:[%s14115_s28 + $0x68] ss:$12 sps:$4 sm:$0xff]  }
 0x2e0   : > { %v3632_v24 = vsel %vm1164_vm0, %v3629_v42, %v3631_v60  ;;  %v3498_v56 = vrot.slane %v3496_v62, 1  ;;  %v9817_v62 = vld [vmem:[%s14115_s28 + $0x98] ss:$0 sps:$4 sm:$0x33]  }
 0x2e1   : > { %v3676_v28 = vmax.bf16 %v3632_v24, %v12047_v18  ;;  %v3557_v31 = vsel %vm951_vm2, %v3494_v61, %v3556_v7  ;;  %v3560_v52 = vor.u32 %v3558_v21, %v3556_v7 }
 0x2e2   : > { %v3574_v13 = vmax.bf16 %v3557_v31, %v3329_v10  ;;  %v3499_v22 = vsel %vm951_vm2, %v3494_v61, %v3498_v56  ;;  %v3502_v63 = vor.u32 %v3500_v46, %v3498_v56 }
 0x2e3   : > { %v3860_v36 = vrot.slane %v3676_v28, 3  ;;  %v3565_v2 = vsel %vm951_vm2, %v3560_v52, %v3564_v49  ;;  %v3543_v33 = vmax.bf16 %v3499_v22, %v3329_v10  ;;  %v9808_v49 = vld [vmem:[%s14115_s28 + $0x78] ss:$12 sps:$4 sm:$0xff]  }
 0x2e4   : > { %v3633_v55 = vrot.slane %v3574_v13, 1  ;;  %v3575_v8 = vmax.bf16 %v3565_v2, %v3333_v53  ;;  %v3544_v6 = vmax.bf16 %v3502_v63, %v3330_v14  ;;  %v9812_v53 = vld [vmem:[%s14115_s28 + $0x20] ss:$12 sps:$4 sm:$0xff]  }
 0x2e5   : > { %v3861_v19 = vsel %vm3828_vm12, %v3858_v51, %v3860_v36 }
 0x2e6   : > { %9157 = vmatprep.subr.bf16.mxu1 %v3861_v19  ;;  %v3634_v18 = vsel %vm1164_vm0, %v3631_v60, %v3633_v55  ;;  %v3635_v38 = vrot.slane %v3575_v8, 1  ;;  %v3680_v44 = vmax.bf16 %v3637_v54, %v3544_v6  ;;  %v9816_v60 = vld [vmem:[%s14115_s28 + $0x80] ss:$12 sps:$4 sm:$0xff]  }
 0x2e7   : > { %9158 = vmatpush3.bf16.msra.mxu1 %v11929_v12  ;;  %v3677_v0 = vmax.bf16 %v3634_v18, %v12063_v5 }
 0x2e8   : > { %9556 = vmatprep.subr.bf16.mxu1 %v10002_v4  ;;  %v3636_v30 = vsel %vm1164_vm0, %v3633_v55, %v3635_v38  ;;  %v3638_v47 = vsel %vm1164_vm0, %v3635_v38, %v3637_v54  ;;  %v3868_v51 = vrot.slane %v3680_v44, 3 }
 0x2e9   : > { %v3862_v57 = vrot.slane %v3677_v0, 3  ;;  %v3678_v27 = vmax.bf16 %v3636_v30, %v3542_v37  ;;  %v3679_v5 = vmax.bf16 %v3638_v47, %v3543_v33  ;;  %v9811_v37 = vld [vmem:[%s14115_s28 + $0x8] ss:$12 sps:$4 sm:$0xff]   ;;  %s14121_s28 = sld [smem:[#allocation18_spill]] }
 0x2ea   : > { %3949 = vmatmul.mubr.bf16.vlgmr.msra.gmra.mrb[0].mxu1 %v9791_v20  ;;  %v3914_v10 = vsel %vm3912_vm8, %v3868_v51, 0 }
 0x2eb   : > { %v3863_v12 = vsel %vm3828_vm12, %v3860_v36, %v3862_v57  ;;  %v3864_v59 = vrot.slane %v3678_v27, 3  ;;  %3956 = vmatprep.mubr.bf16.mxu1 %v9794_v40  ;;  %v3866_v15 = vrot.slane %v3679_v5, 3 }
 0x2ec   : > { %9557 = vmatpush3.bf16.msra.mxu1 %v3863_v12 }
 0x2ed   : > { %9558 = vmatprep.subr.bf16.mxu1 %v10002_v4  ;;  %v3865_v42 = vsel %vm3828_vm12, %v3862_v57, %v3864_v59  ;;  %v3867_v32 = vsel %vm3828_vm12, %v3864_v59, %v3866_v15  ;;  %v3869_v26 = vsel %vm3828_vm12, %v3866_v15, %v3868_v51 }
 0x2f0   : > { %9559 = vmatpush3.bf16.msra.mxu1 %v3865_v42 }
 0x2f1   : > { %9560 = vmatprep.subr.bf16.mxu1 %v10002_v4 }
 0x2f2   : > { %3957 = vmatmul.mubr.bf16.gmra.mrb[4].mxu1 %v9796_v16 }
 0x2f3   : > { %3964 = vmatprep.mubr.bf16.mxu1 %v9797_v23 }
 0x2f4   : > { %9561 = vmatpush3.bf16.msra.mxu1 %v3867_v32 }
 0x2f5   : > { %9562 = vmatprep.subr.bf16.mxu1 %v10002_v4 }
 0x2f8   : > { %9563 = vmatpush3.bf16.msra.mxu1 %v3869_v26 }
 0x2f9   : > { %9564 = vmatprep.subr.bf16.mxu1 %v10002_v4 }
 0x2fa   : > { %3965 = vmatmul.mubr.bf16.gmra.mrb[8].mxu1 %v9799_v50 }
 0x2fb   : > { %3972 = vmatprep.mubr.bf16.mxu1 %v9800_v17 }
 0x2fc   : > { %9565 = vmatpush3.bf16.msra.mxu1 %v3914_v10 }
 0x2fd   : > { %4802 = vmatprep.subr.bf16.mxu1 %v10004_v39 }
 0x302   : > { %3973 = vmatmul.mubr.bf16.gmra.mrb[12].mxu1 %v9802_v3 }
 0x303   : > { %3980 = vmatprep.mubr.bf16.mxu1 %v9803_v58 }
 0x30a   : > { %3981 = vmatmul.mubr.bf16.gmra.mrb[16].mxu1 %v9805_v9 }
 0x30b   : > { %3988 = vmatprep.mubr.bf16.mxu1 %v9806_v45 }
 0x312   : > { %3989 = vmatmul.mubr.bf16.gmra.mrb[20].mxu1 %v9808_v49 }
 0x313   : > { %3996 = vmatprep.mubr.bf16.mxu1 %v8866_v25 }
 0x31a   : > { %3997 = vmatmul.mubr.bf16.gmra.mrb[24].mxu1 %v8865_v29 }
 0x31b   : > { %9566 = vmatprep.mubr.msk.bf16.mxu1 %vm14096_vm6, %v10002_v4 }
 0x322   : > { %9567 = vmatmul.mubr.msk.bf16.vlgmr.msra.gmra.mrb[28].mxu1 %vm3890_vm14, %v9811_v37 }
 0x323   : > { %9570 = vmatprep.mubr.msk.bf16.mxu1 %vm14096_vm6, %v10002_v4 }
 0x32a   : > { %9571 = vmatmul.mubr.msk.bf16.gmra.mrb[32].mxu1 %vm3890_vm14, %v9812_v53 }
 0x32b   : > { %9574 = vmatprep.mubr.msk.bf16.mxu1 %vm14096_vm6, %v10002_v4 }
 0x332   : > { %9575 = vmatmul.mubr.msk.bf16.gmra.mrb[36].mxu1 %vm3890_vm14, %v9813_v43 }
 0x333   : > { %9578 = vmatprep.mubr.msk.bf16.mxu1 %vm14096_vm6, %v10002_v4 }
 0x33a   : > { %9579 = vmatmul.mubr.msk.bf16.gmra.mrb[40].mxu1 %vm3890_vm14, %v9814_v48 }
 0x33b   : > { %9582 = vmatprep.mubr.msk.bf16.mxu1 %vm14096_vm6, %v10002_v4 }
 0x342   : > { %9583 = vmatmul.mubr.msk.bf16.gmra.mrb[44].mxu1 %vm3890_vm14, %v9815_v11 }
 0x343   : > { %9586 = vmatprep.mubr.msk.bf16.mxu1 %vm14096_vm6, %v10002_v4 }
 0x34a   : > { %9587 = vmatmul.mubr.msk.bf16.gmra.mrb[48].mxu1 %vm3890_vm14, %v9816_v60 }
 0x34b   : > { %9590 = vmatprep.mubr.msk.bf16.mxu1 %vm14096_vm6, %v10002_v4  ;;  %vm4570_vm6 = vcmask 916480  }
 0x352   : > { %9591 = vmatmul.mubr.msk.bf16.gmra.mrb[52].mxu1 %vm3890_vm14, %v9817_v62  ;;  %vm4294_vm14 = vsmask.f32 2304 }
 0x3bd   : > { %v9159_v41 = vpop.f32.mrb[0].mxu1 }
 0x3be   : > { %v9160_v61 = vpop.f32.mrb[1].mxu1 }
 0x3bf   : > { %v9161_v7 = vadd.f32 %v9160_v61, %v9159_v41  ;;  %v9162_v21 = vpop.f32.mrb[2].mxu1 }
 0x3c0   : > { %v9163_v34 = vpop.f32.mrb[3].mxu1 }
 0x3c1   : > { %v9164_v24 = vadd.f32 %v9163_v34, %v9162_v21 }
 0x3c5   : > { %v9165_v28 = vpop.f32.mrb[4].mxu1 }
 0x3c6   : > { %v9166_v31 = vpop.f32.mrb[5].mxu1 }
 0x3c7   : > { %v9167_v52 = vadd.f32 %v9166_v31, %v9165_v28  ;;  %v9168_v13 = vpop.f32.mrb[6].mxu1 }
 0x3c8   : > { %v9169_v56 = vpop.f32.mrb[7].mxu1 }
 0x3c9   : > { %v9170_v1 = vadd.f32 %v9169_v56, %v9168_v13 }
 0x3cd   : > { %v9171_v36 = vpop.f32.mrb[8].mxu1 }
 0x3ce   : > { %v9172_v2 = vpop.f32.mrb[9].mxu1 }
 0x3cf   : > { %v9173_v55 = vadd.f32 %v9172_v2, %v9171_v36  ;;  %v9174_v8 = vpop.f32.mrb[10].mxu1 }
 0x3d0   : > { %v9175_v19 = vpop.f32.mrb[11].mxu1 }
 0x3d1   : > { %v9176_v20 = vadd.f32 %v9175_v19, %v9174_v8 }
 0x3d5   : > { %v9177_v18 = vpop.f32.mrb[12].mxu1 }
 0x3d6   : > { %v9178_v38 = vpop.f32.mrb[13].mxu1 }
 0x3d7   : > { %v9179_v22 = vadd.f32 %v9178_v38, %v9177_v18  ;;  %v9180_v54 = vpop.f32.mrb[14].mxu1 }
 0x3d8   : > { %v9181_v0 = vpop.f32.mrb[15].mxu1 }
 0x3d9   : > { %v9182_v40 = vadd.f32 %v9181_v0, %v9180_v54 }
 0x3dd   : > { %v9183_v46 = vpop.f32.mrb[16].mxu1 }
 0x3de   : > { %v9184_v30 = vpop.f32.mrb[17].mxu1 }
 0x3df   : > { %v12176_v47 = vadd.f32 %v9184_v30, %v9183_v46  ;;  %v9186_v57 = vpop.f32.mrb[18].mxu1  ;;  %v9819_v30 = vld [vmem:[%s14116_s6 + $0x8] sm:$0xff]  }
 0x3e0   : > { %v9187_v27 = vpop.f32.mrb[19].mxu1 }
 0x3e1   : > { %v12178_v33 = vadd.f32 %v9187_v27, %v9186_v57 }
 0x3e5   : > { %v9189_v63 = vpop.f32.mrb[20].mxu1 }
 0x3e6   : > { %v9190_v12 = vpop.f32.mrb[21].mxu1 }
 0x3e7   : > { %v12180_v59 = vadd.f32 %v9190_v12, %v9189_v63  ;;  %v9192_v5 = vpop.f32.mrb[22].mxu1 }
 0x3e8   : > { %v9193_v14 = vpop.f32.mrb[23].mxu1 }
 0x3e9   : > { %v12182_v6 = vadd.f32 %v9193_v14, %v9192_v5 }
 0x3ed   : > { %v9195_v16 = vpop.f32.mrb[24].mxu1 }
 0x3ee   : > { %v9196_v42 = vpop.f32.mrb[25].mxu1 }
 0x3ef   : > { %v12184_v15 = vadd.f32 %v9196_v42, %v9195_v16  ;;  %v9198_v23 = vpop.f32.mrb[26].mxu1 }
 0x3f0   : > { %v9199_v44 = vpop.f32.mrb[27].mxu1 }
 0x3f5   : > { %v4038_v32 = vpop.f32.mrb[28].mxu1 }
 0x3f6   : > { %v4039_v51 = vadd.f32 %v9161_v7, %v4038_v32  ;;  %v9568_v50 = vpop.f32.mrb[29].mxu1  ;;  %v9820_v32 = vld [vmem:[%s14116_s6 + $0x10] sm:$0xff]  }
 0x3f7   : > { %v4041_v26 = vpop.f32.mrb[30].mxu1 }
 0x3f8   : > { %v4042_v17 = vadd.f32 %v9164_v24, %v4041_v26  ;;  %v9569_v10 = vpop.f32.mrb[31].mxu1  ;;  %v9818_v24 = vld [vmem:[%s14116_s6] sm:$0xff]  }
 0x3f9   : > { %4803 = vmatpush1.bf16.msra.mxu1 %v9818_v24 }
 0x3fa   : > { %v4094_v3 = vpack.c.bf16 %v4042_v17, %v4039_v51  ;;  %4804 = vmatprep.subr.bf16.mxu1 %v10004_v39 }
 0x3fc   : > { %v4108_v58 = vrot.slane %v4094_v3, 1 }
 0x3fd   : > { %v4046_v9 = vpop.f32.mrb[32].mxu1  ;;  %4805 = vmatpush1.bf16.msra.mxu1 %v9819_v30 }
 0x3fe   : > { %4130 = vst.msk [vmem:[#allocation3] sm:$0x80] %vm4129_vm4, %v4108_v58  ;;  %v4047_v45 = vadd.f32 %v9167_v52, %v4046_v9  ;;  %v9572_v35 = vpop.f32.mrb[33].mxu1  ;;  %4806 = vmatprep.subr.bf16.mxu1 %v10004_v39  ;;  %vm4137_vm4 = vcmask 122880  }
 0x3ff   : > { %v4049_v49 = vpop.f32.mrb[34].mxu1 }
 0x400   : > { %v4050_v25 = vadd.f32 %v9170_v1, %v4049_v49  ;;  %v9573_v29 = vpop.f32.mrb[35].mxu1 }
 0x401   : > { %4807 = vmatpush1.bf16.msra.mxu1 %v9820_v32 }
 0x402   : > { %v4095_v37 = vpack.c.bf16 %v4050_v25, %v4047_v45  ;;  %4808 = vmatprep.subr.bf16.mxu1 %v10004_v39 }
 0x404   : > { %v4109_v53 = vrot.slane %v4095_v37, 1 }
 0x405   : > { %v4054_v43 = vpop.f32.mrb[36].mxu1  ;;  %v4148_v34 = vld [vmem:[#allocation3] sm:$0xfc] }
 0x406   : > { %v4110_v48 = vsel %vm1164_vm0, %v4108_v58, %v4109_v53  ;;  %v4055_v11 = vadd.f32 %v9173_v55, %v4054_v43  ;;  %v9576_v60 = vpop.f32.mrb[37].mxu1  ;;  %v4235_v36 = vrot.slane %v4148_v34, 1  ;;  %v4162_v55 = vshll.u32 %v4148_v34, 16  ;;  %v4153_v18 = vld [vmem:[#allocation3] sm:$0x80] }
 0x407   : > { %4131 = vst.msk [vmem:[#allocation3 + $0x8] sm:$0xff] %vm1980_vm9, %v4110_v48  ;;  %v4057_v62 = vpop.f32.mrb[38].mxu1  ;;  %v4296_v27 = vshrl.u32 %v4153_v18, 16  ;;  %v4299_v63 = vshll.u32 %v4153_v18, 16  ;;  %v4358_v5 = vrot.slane %v4153_v18, 6  ;;  %v4160_v23 = vshrl.u32 %v4148_v34, 16 }
 0x408   : > { %v4058_v41 = vadd.f32 %v9176_v20, %v4057_v62  ;;  %v9577_v61 = vpop.f32.mrb[39].mxu1  ;;  %v4150_v20 = vld [vmem:[#allocation3] sm:$0xc0] }
 0x409   : > { %v4265_v57 = vrot.slane %v4150_v20, 5  ;;  %v4298_v35 = vrot.slane %v4296_v27, 5  ;;  %v4301_v49 = vrot.slane %v4299_v63, 6 }
 0x40a   : > { %v4096_v7 = vpack.c.bf16 %v4058_v41, %v4055_v11 }
 0x40b   : > { %v4302_v34 = vor.u32 %v4301_v49, %v4298_v35 }
 0x40c   : > { %v4111_v21 = vrot.slane %v4096_v7, 1 }
 0x40d   : > { %v4062_v28 = vpop.f32.mrb[40].mxu1 }
 0x40e   : > { %v4112_v31 = vsel %vm1164_vm0, %v4109_v53, %v4111_v21  ;;  %v4063_v52 = vadd.f32 %v9179_v22, %v4062_v28  ;;  %v9580_v13 = vpop.f32.mrb[41].mxu1  ;;  %v12192_v56 = vld [vmem:[#allocation3 + $0x8] sm:$0xff] }
 0x40f   : > { %4132 = vst.msk [vmem:[#allocation3 + $0x10] sm:$0xff] %vm1980_vm9, %v4112_v31  ;;  %v4065_v1 = vpop.f32.mrb[42].mxu1  ;;  %v4236_v2 = vrot.slane %v12192_v56, 1  ;;  %v4266_v22 = vrot.slane %v12192_v56, 5  ;;  %v4167_v0 = vshll.u32 %v12192_v56, 16  ;;  %v4171_v46 = vshrl.u32 %v12192_v56, 16 }
 0x410   : > { %v4066_v8 = vadd.f32 %v9182_v40, %v4065_v1  ;;  %v9581_v19 = vpop.f32.mrb[43].mxu1  ;;  %v4164_v40 = vrot.slane %v4162_v55, 1  ;;  %v4359_v42 = vrot.slane %v12192_v56, 6  ;;  %v4157_v44 = vld [vmem:[#allocation3 + $0x8] sm:$0xf0] }
 0x411   : > { %v4237_v38 = vsel %vm1164_vm0, %v4235_v36, %v4236_v2  ;;  %v4267_v16 = vsel %vm3221_vm10, %v4265_v57, %v4266_v22  ;;  %v4303_v10 = vrot.slane %v4171_v46, 5  ;;  %v4304_v3 = vrot.slane %v4167_v0, 6  ;;  %v4155_v60 = vld [vmem:[#allocation3 + $0x8] sm:$0xf8] }
 0x412   : > { %v4097_v54 = vpack.c.bf16 %v4066_v8, %v4063_v52  ;;  %4248 = vrot.lane.b32.xlu0 %v4237_v38, %s14117_s9  ;;  %v4165_v45 = vor.u32 %v4164_v40, %v4160_v23  ;;  %v12223_v29 = vrot.slane %v4167_v0, 1  ;;  %v4470_v37 = vrot.slane %v4157_v44, 3 }
 0x413   : > { %v4360_v43 = vsel %vm3912_vm8, %v4358_v5, %v4359_v42  ;;  %v4418_v62 = vshrl.u32 %v4157_v44, 16  ;;  %v12236_v41 = vor.u32 %v4304_v3, %v4303_v10  ;;  %v4421_v7 = vshll.u32 %v4157_v44, 16 }
 0x414   : > { %v4113_v12 = vrot.slane %v4097_v54, 1  ;;  %v4170_v52 = vsel %vm951_vm2, %v4165_v45, %v12223_v29  ;;  %v4389_v13 = vrot.slane %v4155_v60, 2  ;;  %v4173_v3 = vor.u32 %v4171_v46, %v12223_v29 }
 0x415   : > { %v4070_v14 = vpop.f32.mrb[44].mxu1  ;;  %v4420_v19 = vrot.slane %v4418_v62, 2  ;;  %v4306_v54 = vsel %vm4294_vm14, %v4302_v34, %v12236_v41 }
 0x416   : > { %v4114_v51 = vsel %vm1164_vm0, %v4111_v21, %v4113_v12  ;;  %v4071_v50 = vadd.f32 %v12176_v47, %v4070_v14  ;;  %4280 = vrot.lane.b32.xlu0 %v4267_v16, %s14118_s8  ;;  %v9584_v26 = vpop.f32.mrb[45].mxu1  ;;  %v12216_v17 = vld [vmem:[#allocation3 + $0x10] sm:$0xff]  ;;  %v9821_v21 = vld [vmem:[%s14116_s6 + $0x18] sm:$0xff]  }
 0x417   : > { %4133 = vst.msk [vmem:[#allocation3 + $0x18] sm:$0xff] %vm1980_vm9, %v4114_v51  ;;  %v4073_v58 = vpop.f32.mrb[46].mxu1  ;;  %v4238_v9 = vrot.slane %v12216_v17, 1  ;;  %v4471_v53 = vrot.slane %v12216_v17, 3  ;;  %v4268_v11 = vrot.slane %v12216_v17, 5  ;;  %v4361_v24 = vrot.slane %v12216_v17, 6  ;;  %4809 = vmatpush1.bf16.msra.mxu1 %v9821_v21 }
 0x418   : > { %v4074_v25 = vadd.f32 %v12178_v33, %v4073_v58  ;;  %v9585_v47 = vpop.f32.mrb[47].mxu1  ;;  %v12244_v28 = vshll.u32 %v12216_v17, 16  ;;  %v12249_v1 = vshrl.u32 %v12216_v17, 16  ;;  %4810 = vmatprep.subr.bf16.mxu1 %v10004_v39  ;;  %v4390_v57 = vrot.slane %v12216_v17, 2  ;;  %v9822_v26 = vld [vmem:[%s14116_s6 + $0x20] sm:$0xff]  }
 0x419   : > { %v4239_v48 = vsel %vm1164_vm0, %v4236_v2, %v4238_v9  ;;  %v4472_v61 = vsel %vm3828_vm12, %v4470_v37, %v4471_v53  ;;  %v4269_v2 = vsel %vm3221_vm10, %v4266_v22, %v4268_v11  ;;  %v4423_v22 = vrot.slane %v4421_v7, 3 }
 0x41a   : > { %v4098_v33 = vpack.c.bf16 %v4074_v25, %v4071_v50  ;;  %4373 = vrot.lane.b32.xlu0 %v4360_v43, %s10005_s29  ;;  %4250 = vrot.lane.b32.xlu1 %v4239_v48, %s14117_s9  ;;  %v4619_v55 = vshrl.u32 %v4472_v61, 16  ;;  %v4622_v8 = vshll.u32 %v4472_v61, 16  ;;  %v4177_v40 = vrot.slane %v12244_v28, 1  ;;  %v9823_v25 = vld [vmem:[%s14116_s6 + $0x28] sm:$0xff]  }
 0x41b   : > { %v4425_v5 = vrot.slane %v12249_v1, 2  ;;  %v4426_v14 = vrot.slane %v12244_v28, 3  ;;  %v4307_v16 = vrot.slane %v12249_v1, 5  ;;  %v4308_v32 = vrot.slane %v12244_v28, 6  ;;  %4811 = vmatpush1.bf16.msra.mxu1 %v9822_v26 }
 0x41c   : > { %v4115_v31 = vrot.slane %v4098_v33, 1  ;;  %v4624_v44 = vrot.slane %v4622_v8, 2  ;;  %v4391_v10 = vsel %vm1454_vm1, %v4389_v13, %v4390_v57  ;;  %v4178_v37 = vsel %vm951_vm2, %v4173_v3, %v4177_v40  ;;  %4812 = vmatprep.subr.bf16.mxu1 %v10004_v39 }
 0x41d   : > { %v4078_v36 = vpop.f32.mrb[48].mxu1  ;;  %v12293_v49 = vor.u32 %v4426_v14, %v4425_v5  ;;  %v4424_v43 = vor.u32 %v4423_v22, %v4420_v19  ;;  %v12301_v48 = vor.u32 %v4308_v32, %v4307_v16 }
 0x41e   : > { %v4116_v20 = vsel %vm1164_vm0, %v4113_v12, %v4115_v31  ;;  %v4079_v18 = vadd.f32 %v12180_v59, %v4078_v36  ;;  %4214 = vrot.lane.b32.xlu0 %v4170_v52, %s14111_s4  ;;  %4282 = vrot.lane.b32.xlu1 %v4269_v2, %s14118_s8  ;;  %v9588_v38 = vpop.f32.mrb[49].mxu1  ;;  %v12263_v0 = vld [vmem:[#allocation3 + $0x18] sm:$0xff]  ;;  %v4362_v59 = vsel %vm3912_vm8, %v4359_v42, %v4361_v24  ;;  %v4621_v42 = vrot.slane %v4619_v55, 1 }
 0x41f   : > { %4134 = vst.msk [vmem:[#allocation3 + $0x20] sm:$0xff] %vm1980_vm9, %v4116_v20  ;;  %v4081_v30 = vpop.f32.mrb[50].mxu1  ;;  %v4473_v27 = vrot.slane %v12263_v0, 3  ;;  %v4428_v21 = vsel %vm4416_vm7, %v4424_v43, %v12293_v49  ;;  %4813 = vmatpush1.bf16.msra.mxu1 %v9823_v25  ;;  %v4310_v52 = vsel %vm4294_vm14, %v12236_v41, %v12301_v48  ;;  %v4270_v13 = vrot.slane %v12263_v0, 5 }
 0x420   : > { %v4082_v63 = vadd.f32 %v12182_v6, %v4081_v30  ;;  %v9589_v12 = vpop.f32.mrb[51].mxu1  ;;  %v12325_v36 = vshll.u32 %v12263_v0, 16  ;;  %v12328_v2 = vshrl.u32 %v12263_v0, 16  ;;  %4814 = vmatprep.subr.bf16.mxu1 %v10004_v39  ;;  %v4363_v19 = vrot.slane %v12263_v0, 6  ;;  %v9825_v30 = vld [vmem:[%s14116_s6 + $0x38] sm:$0xff]  }
 0x421   : > { %v4474_v23 = vsel %vm3828_vm12, %v4471_v53, %v4473_v27  ;;  %v4625_v53 = vor.u32 %v4624_v44, %v4621_v42  ;;  %v4271_v20 = vsel %vm3221_vm10, %v4268_v11, %v4270_v13  ;;  %v9826_v12 = vld [vmem:[%s14116_s6 + $0x40] sm:$0xff]  }
 0x422   : > { %v4099_v51 = vpack.c.bf16 %v4082_v63, %v4079_v18  ;;  %4341 = vrot.lane.b32.xlu0 %v4306_v54, %s14119_s1  ;;  %4375 = vrot.lane.b32.xlu1 %v4362_v59, %s10005_s29  ;;  %v4627_v6 = vshrl.u32 %v4474_v23, 16  ;;  %v4630_v50 = vshll.u32 %v4474_v23, 16  ;;  %v4240_v18 = vrot.slane %v12263_v0, 1 }
 0x423   : > { %v4429_v38 = vrot.slane %v12328_v2, 2  ;;  %v4430_v54 = vrot.slane %v12325_v36, 3  ;;  %v4364_v11 = vsel %vm3912_vm8, %v4361_v24, %v4363_v19  ;;  %v4185_v59 = vrot.slane %v12325_v36, 1 }
 0x424   : > { %v4117_v58 = vrot.slane %v4099_v51, 1  ;;  %v4629_v45 = vrot.slane %v4627_v6, 1  ;;  %v4632_v35 = vrot.slane %v4630_v50, 2  ;;  %v4312_v63 = vrot.slane %v12325_v36, 6 }
 0x425   : > { %v4086_v47 = vpop.f32.mrb[52].mxu1  ;;  %v4241_v5 = vsel %vm1164_vm0, %v4238_v9, %v4240_v18  ;;  %v4431_v14 = vor.u32 %v4430_v54, %v4429_v38  ;;  %v4181_v23 = vor.u32 %v12249_v1, %v4177_v40 }
 0x426   : > { %v4118_v46 = vsel %vm1164_vm0, %v4115_v31, %v4117_v58  ;;  %v4087_v29 = vadd.f32 %v12184_v15, %v4086_v47  ;;  %4402 = vrot.lane.b32.xlu0 %v4391_v10, %s14090_s2  ;;  %4216 = vrot.lane.b32.xlu1 %v4178_v37, %s14111_s4  ;;  %v12308_v60 = vor.u32 %v4632_v35, %v4629_v45  ;;  %v9592_v62 = vpop.f32.mrb[53].mxu1  ;;  %v4392_v15 = vrot.slane %v12263_v0, 2  ;;  %v9824_v31 = vld [vmem:[%s14116_s6 + $0x30] sm:$0xff]  }
 0x427   : > { %4135 = vst.msk [vmem:[#allocation3 + $0x28] sm:$0xff] %vm1980_vm9, %v4118_v46  ;;  %v4089_v33 = vpop.f32.mrb[54].mxu1  ;;  %4815 = vmatpush1.bf16.msra.mxu1 %v9824_v31  ;;  %v12353_v22 = vld [vmem:[#allocation3 + $0x20] sm:$0xff]  ;;  %v4186_v9 = vsel %vm951_vm2, %v4181_v23, %v4185_v59  ;;  %v4432_v32 = vsel %vm4416_vm7, %v12293_v49, %v4431_v14 }
 0x428   : > { %v4100_v61 = vpack.c.bf16 %v4087_v29, %v4087_v29  ;;  %v4634_v7 = vsel %vm1310_vm3, %v4625_v53, %v12308_v60  ;;  %v9593_v34 = vpop.f32.mrb[55].mxu1  ;;  %v4393_v41 = vsel %vm1454_vm1, %v4390_v57, %v4392_v15  ;;  %4816 = vmatprep.subr.bf16.mxu1 %v10004_v39  ;;  %v4311_v57 = vrot.slane %v12328_v2, 5 }
 0x429   : > { %8884 = vmatprep.mubr.msk.bf16.mxu1 %vm1980_vm9, %v4634_v7  ;;  %v12373_v16 = vshll.u32 %v12353_v22, 16  ;;  %v12376_v24 = vshrl.u32 %v12353_v22, 16  ;;  %v4475_v42 = vrot.slane %v12353_v22, 3  ;;  %v4242_v51 = vrot.slane %v12353_v22, 1 }
 0x42a   : > { %v4119_v55 = vrot.slane %v4100_v61, 1  ;;  %4454 = vrot.lane.b32.xlu0 %v4428_v21, %s10007_s10  ;;  %4343 = vrot.lane.b32.xlu1 %v4310_v52, %s14119_s1  ;;  %v4313_v44 = vor.u32 %v4312_v63, %v4311_v57  ;;  %v4394_v40 = vrot.slane %v12353_v22, 2  ;;  %v4272_v49 = vrot.slane %v12353_v22, 5 }
 0x42b   : > { %4817 = vmatpush1.bf16.msra.mxu1 %v9825_v30  ;;  %v4433_v6 = vrot.slane %v12376_v24, 2  ;;  %v4434_v50 = vrot.slane %v12373_v16, 3  ;;  %v4476_v28 = vsel %vm3828_vm12, %v4473_v27, %v4475_v42  ;;  %v4243_v26 = vsel %vm1164_vm0, %v4240_v18, %v4242_v51 }
 0x42c   : > { %v4120_v8 = vsel %vm1164_vm0, %v4117_v58, %v4119_v55  ;;  %4138 = vst.msk [vmem:[#allocation3 + $0x38] sm:$0x1] %vm4137_vm4, %v4119_v55  ;;  %4818 = vmatprep.subr.bf16.mxu1 %v10004_v39  ;;  %v4314_v1 = vsel %vm4294_vm14, %v12301_v48, %v4313_v44  ;;  %v4315_v3 = vrot.slane %v12376_v24, 5  ;;  %v4316_v58 = vrot.slane %v12373_v16, 6 }
 0x42d   : > { %4136 = vst.msk [vmem:[#allocation3 + $0x30] sm:$0xff] %vm1980_vm9, %v4120_v8  ;;  %v4435_v10 = vor.u32 %v4434_v50, %v4433_v6  ;;  %v4644_v45 = vshrl.u32 %v4476_v28, 16  ;;  %v4395_v27 = vsel %vm1454_vm1, %v4392_v15, %v4394_v40  ;;  %v4647_v53 = vshll.u32 %v4476_v28, 16 }
 0x42e   : > { %4404 = vrot.lane.b32.xlu1 %v4393_v41, %s14090_s2  ;;  %4284 = vrot.lane.b32.xlu0 %v4271_v20, %s14118_s8  ;;  %v4317_v25 = vor.u32 %v4316_v58, %v4315_v3  ;;  %s14120_s2 = smov 96   ;;  %v12413_v47 = vld [vmem:[#allocation3 + $0x28] sm:$0xff]  ;;  %v4365_v43 = vrot.slane %v12353_v22, 6  ;;  %v4273_v46 = vsel %vm3221_vm10, %v4270_v13, %v4272_v49  ;;  %v4193_v7 = vrot.slane %v12373_v16, 1 }
 0x42f   : > { %4819 = vmatpush1.bf16.msra.mxu1 %v9826_v12  ;;  %v4436_v35 = vsel %vm4416_vm7, %v4431_v14, %v4435_v10  ;;  %v4646_v37 = vrot.slane %v4644_v45, 1  ;;  %v4649_v48 = vrot.slane %v4647_v53, 2  ;;  %v4396_v62 = vrot.slane %v12413_v47, 2 }
 0x430   : > { %v4318_v29 = vsel %vm4294_vm14, %v4313_v44, %v4317_v25  ;;  %v4366_v61 = vsel %vm3912_vm8, %v4363_v19, %v4365_v43  ;;  %v4274_v34 = vrot.slane %v12413_v47, 5  ;;  %v12437_v31 = vshll.u32 %v12413_v47, 16 }
 0x431   : > { %v12423_v33 = vor.u32 %v4649_v48, %v4646_v37  ;;  %v4397_v15 = vsel %vm1454_vm1, %v4394_v40, %v4396_v62  ;;  %v12440_v52 = vshrl.u32 %v12413_v47, 16  ;;  %v4189_v13 = vor.u32 %v12328_v2, %v4185_v59 }
 0x432   : > { %4377 = vrot.lane.b32.xlu0 %v4364_v11, %s10005_s29  ;;  %4252 = vrot.lane.b32.xlu1 %v4241_v5, %s14117_s9  ;;  %v4367_v36 = vrot.slane %v12413_v47, 6  ;;  %v4275_v8 = vsel %vm3221_vm10, %v4272_v49, %v4274_v34  ;;  %v4438_v19 = vrot.slane %v12437_v31, 3  ;;  %v4201_v38 = vrot.slane %v12437_v31, 1 }
 0x433   : > { %v12432_v21 = vsel %vm1310_vm3, %v12308_v60, %v12423_v33  ;;  %v4244_v60 = vrot.slane %v12413_v47, 1  ;;  %v4194_v55 = vsel %vm951_vm2, %v4189_v13, %v4193_v7  ;;  %v4437_v41 = vrot.slane %v12440_v52, 2  ;;  %v12465_v16 = vld [vmem:[#allocation3 + $0x38] sm:$0x3f] }
 0x434   : > { %v4368_v20 = vsel %vm3912_vm8, %v4365_v43, %v4367_v36  ;;  %v4319_v54 = vrot.slane %v12440_v52, 5  ;;  %v4320_v30 = vrot.slane %v12437_v31, 6  ;;  %v4149_v11 = vld [vmem:[#allocation3 + $0x30] sm:$0x1f]  ;;  %v4197_v59 = vor.u32 %v12376_v24, %v4193_v7  ;;  %v4154_v13 = vld [vmem:[#allocation3 + $0x38] sm:$0x3] }
 0x435   : > { %v4245_v2 = vsel %vm1164_vm0, %v4242_v51, %v4244_v60  ;;  %v4439_v18 = vor.u32 %v4438_v19, %v4437_v41  ;;  %v4246_v5 = vrot.slane %v4149_v11, 1  ;;  %v12463_v14 = vld [vmem:[#allocation3 + $0x30] sm:$0xff]  ;;  %v4400_v24 = vrot.slane %v12465_v16, 2 }
 0x436   : > { %4456 = vrot.lane.b32.xlu1 %v4432_v32, %s10007_s10  ;;  %4218 = vrot.lane.b32.xlu0 %v4186_v9, %s14111_s4  ;;  %v4202_v63 = vsel %vm951_vm2, %v4197_v59, %v4201_v38  ;;  %v4321_v12 = vor.u32 %v4320_v30, %v4319_v54  ;;  %v12467_v23 = vld [vmem:[#allocation3 + $0x30] sm:$0xf]  ;;  %v4398_v9 = vrot.slane %v12463_v14, 2  ;;  %v4324_v6 = vshrl.u32 %v12463_v14, 16  ;;  %v4954_v30 = vld [vmem:[%s14056_s12 + $0x58] sm:$0xff]  ;;  %v4953_v59 = vld [vmem:[%s14056_s12 + $0x50] sm:$0xff] }
 0x437   : > { %v4440_v57 = vsel %vm4416_vm7, %v4435_v10, %v4439_v18  ;;  %v4207_v44 = vshll.u32 %v12467_v23, 16  ;;  %v4247_v51 = vsel %vm1164_vm0, %v4244_v60, %v4246_v5  ;;  %v4327_v50 = vshll.u32 %v12463_v14, 16  ;;  %v4943_v11 = vld [vmem:[%s14056_s12] sm:$0xff] }
 0x438   : > { %v4322_v32 = vsel %vm4294_vm14, %v4317_v25, %v4321_v12  ;;  %v4276_v28 = vrot.slane %v12463_v14, 5  ;;  %v4399_v40 = vsel %vm1454_vm1, %v4396_v62, %v4398_v9  ;;  %v4441_v10 = vrot.slane %v4324_v6, 2 }
 0x439   : > { %v4442_v3 = vrot.slane %v4327_v50, 3  ;;  %v4211_v58 = vshrl.u32 %v12467_v23, 16  ;;  %v4326_v25 = vrot.slane %v4324_v6, 5  ;;  %v4329_v37 = vrot.slane %v4327_v50, 6  ;;  %v4950_v6 = vld [vmem:[%s14056_s12 + $0x38] sm:$0xff] }
 0x43a   : > { %4345 = vrot.lane.b32.xlu1 %v4314_v1, %s14119_s1  ;;  %4254 = vrot.lane.b32.xlu0 %v4243_v26, %s14117_s9  ;;  %v4209_v1 = vrot.slane %v4207_v44, 1  ;;  %v4401_v26 = vsel %vm1454_vm1, %v4398_v9, %v4400_v24  ;;  %v4449_v62 = vshll.u32 %v12465_v16, 16  ;;  %v4946_v9 = vld [vmem:[%s14056_s12 + $0x18] sm:$0xff]  ;;  %v4951_v44 = vld [vmem:[%s14056_s12 + $0x40] sm:$0xff]  ;;  %vm4540_vm4 = vcmask 654336  }
 0x43b   : > { %v4443_v49 = vor.u32 %v4442_v3, %v4441_v10  ;;  %v4330_v48 = vor.u32 %v4329_v37, %v4326_v25  ;;  %v4141_v10 = vld [vmem:[#allocation3] sm:$0xfe] }
 0x43c   : > { %v4213_v45 = vor.u32 %v4211_v58, %v4209_v1  ;;  %v4451_v60 = vrot.slane %v4449_v62, 3 }
 0x43d   : > { %v4444_v43 = vsel %vm4416_vm7, %v4439_v18, %v4443_v49  ;;  %v4331_v31 = vsel %vm4294_vm14, %v4321_v12, %v4330_v48  ;;  %v4947_v12 = vld [vmem:[%s14056_s12 + $0x20] sm:$0xff] }
 0x43e   : > { %4406 = vrot.lane.b32.xlu1 %v4395_v27, %s14120_s2  ;;  %4458 = vrot.lane.b32.xlu0 %v4436_v35, %s10007_s10  ;;  %v4369_v27 = vrot.slane %v12463_v14, 6  ;;  %v4277_v35 = vsel %vm3221_vm10, %v4274_v34, %v4276_v28 }
 0x440   : > { %v4370_v53 = vsel %vm3912_vm8, %v4367_v36, %v4369_v27 }
 0x442   : > { %4286 = vrot.lane.b32.xlu1 %v4273_v46, %s14118_s8  ;;  %4347 = vrot.lane.b32.xlu0 %v4318_v29, %s14119_s1  ;;  %v4152_v46 = vld [vmem:[#allocation3 + $0x38] sm:$0x1]  ;;  %v4446_v29 = vshrl.u32 %v12465_v16, 16  ;;  %v4949_v16 = vld [vmem:[%s14056_s12 + $0x30] sm:$0xff] }
 0x443   : > { %v4333_v34 = vshrl.u32 %v4152_v46, 16 }
 0x444   : > { %v4448_v36 = vrot.slane %v4446_v29, 2 }
 0x446   : > { %4379 = vrot.lane.b32.xlu1 %v4366_v61, %s10005_s29  ;;  %4408 = vrot.lane.b32.xlu0 %v4397_v15, %s14120_s2  ;;  %v4205_v61 = vor.u32 %v12440_v52, %v4201_v38  ;;  %v4278_v15 = vrot.slane %v4152_v46, 5  ;;  %v4452_v19 = vor.u32 %v4451_v60, %v4448_v36 }
 0x448   : > { %v4210_v7 = vsel %vm951_vm2, %v4205_v61, %v4209_v1  ;;  %v4279_v41 = vsel %vm3221_vm10, %v4276_v28, %v4278_v15  ;;  %v4453_v18 = vsel %vm4416_vm7, %v4443_v49, %v4452_v19  ;;  %v4952_v1 = vld [vmem:[%s14056_s12 + $0x48] sm:$0xff] }
 0x44a   : > { %4220 = vrot.lane.b32.xlu1 %v4194_v55, %s14111_s4  ;;  %4288 = vrot.lane.b32.xlu0 %v4275_v8, %s14118_s8  ;;  %v4336_v55 = vshll.u32 %v4152_v46, 16  ;;  %v4371_v8 = vrot.slane %v4154_v13, 6 }
 0x44c   : > { %v4338_v52 = vrot.slane %v4336_v55, 6 }
 0x44e   : > { %4381 = vrot.lane.b32.xlu0 %v4368_v20, %s10005_s29  ;;  %4256 = vrot.lane.b32.xlu1 %v4245_v2, %s14117_s9  ;;  %v4335_v20 = vrot.slane %v4333_v34, 5  ;;  %v4372_v2 = vsel %vm3912_vm8, %v4369_v27, %v4371_v8  ;;  %v4477_v8 = vrot.slane %v12413_v47, 3 }
 0x450   : > { %v4339_v38 = vor.u32 %v4338_v52, %v4335_v20 }
 0x452   : > { %4460 = vrot.lane.b32.xlu1 %v4440_v57, %s10007_s10  ;;  %4222 = vrot.lane.b32.xlu0 %v4202_v63, %s14111_s4  ;;  %v4340_v54 = vsel %vm4294_vm14, %v4330_v48, %v4339_v38  ;;  %v4945_v57 = vld [vmem:[%s14056_s12 + $0x10] sm:$0xff]  ;;  %v4955_v63 = vld [vmem:[%s14056_s12 + $0x60] sm:$0xf] }
 0x456   : > { %4349 = vrot.lane.b32.xlu1 %v4322_v32, %s14119_s1  ;;  %4258 = vrot.lane.b32.xlu0 %v4247_v51, %s14117_s9  ;;  %v4948_v32 = vld [vmem:[%s14056_s12 + $0x28] sm:$0xff] }
 0x45a   : > { %4410 = vrot.lane.b32.xlu1 %v4399_v40, %s14120_s2  ;;  %4412 = vrot.lane.b32.xlu0 %v4401_v26, %s14120_s2 }
 0x45e   : > { %4290 = vrot.lane.b32.xlu1 %v4277_v35, %s14118_s8  ;;  %4226 = vrot.lane.b32.xlu0 %v4213_v45, %s14111_s4 }
 0x462   : > { %4383 = vrot.lane.b32.xlu1 %v4370_v53, %s10005_s29  ;;  %4462 = vrot.lane.b32.xlu0 %v4444_v43, %s10007_s10 }
 0x466   : > { %4351 = vrot.lane.b32.xlu0 %v4331_v31, %s14119_s1  ;;  %4224 = vrot.lane.b32.xlu1 %v4210_v7, %s14111_s4  ;;  %s8765_s4 = sshll.u32 %s14147_s3, 3 }
 0x46a   : > { %4292 = vrot.lane.b32.xlu0 %v4279_v41, %s14118_s8  ;;  %4260 = vrot.lane.b32.xlu1 %v4246_v5, %s14117_s9  ;;  %v4944_v5 = vld [vmem:[%s14056_s12 + $0x8] sm:$0xff]  ;;  %s14122_s8 = sld [smem:[#allocation16_spill]] }
 0x46e   : > { %4385 = vrot.lane.b32.xlu0 %v4372_v2, %s10005_s29  ;;  %4464 = vrot.lane.b32.xlu1 %v4453_v18, %s10007_s10  ;;  %s789_s29 = scalar_lea.vmem %s14070_s26, %s8765_s4 }
 0x472   : > { %4466 = vrot.lane.b32.xlu0 %v4452_v19, %s10007_s10  ;;  %4353 = vrot.lane.b32.xlu1 %v4340_v54, %s14119_s1  ;;  %s14125_s10 = sld [smem:[#allocation19_spill]] }
 0x476   : > { %5013 = vperm.xlu0 %9731, %v4954_v30   ;;  %4414 = vrot.lane.b32.xlu1 %v4400_v24, %s14120_s2 }
 0x47a   : > { %4958 = vperm.xlu0 %9731, %v4943_v11   ;;  %5008 = vperm.xlu1 %9732, %v4953_v59  }
 0x47e   : > { %4968 = vperm.xlu0 %9731, %v4945_v57   ;;  %5018 = vperm.xlu1 %9732, %v4955_v63   ;;  %v4478_v57 = vsel %vm3828_vm12, %v4475_v42, %v4477_v8 }
 0x482   : > { %4978 = vperm.xlu0 %9731, %v4947_v12   ;;  %4963 = vperm.xlu1 %9732, %v4944_v5  }
 0x484   : > { %v4249_v24 = vpop.permute.xlu0 %4248 }
 0x486   : > { %4988 = vperm.xlu0 %9731, %v4949_v16   ;;  %4973 = vperm.xlu1 %9732, %v4946_v9  }
 0x488   : > { %v4281_v51 = vpop.permute.xlu0 %4280 }
 0x48a   : > { %4998 = vperm.xlu0 %9731, %v4951_v44   ;;  %4983 = vperm.xlu1 %9732, %v4948_v32   ;;  %v4664_v32 = vshll.u32 %v4478_v57, 16 }
 0x48c   : > { %v4374_v50 = vpop.permute.xlu0 %4373  ;;  %v4251_v28 = vpop.permute.xlu1 %4250 }
 0x48e   : > { %4993 = vperm.xlu1 %9732, %v4950_v6  }
 0x490   : > { %v4215_v40 = vpop.permute.xlu0 %4214  ;;  %v4283_v26 = vpop.permute.xlu1 %4282 }
 0x491   : > { %v4485_v3 = vsel %vm1980_vm9, %v4141_v10, %v4215_v40 }
 0x492   : > { %5003 = vperm.xlu1 %9732, %v4952_v1   ;;  %v4499_v27 = vsel %vm2066_vm11, %v4485_v3, %v4249_v24 }
 0x493   : > { %v4513_v25 = vsel %vm2152_vm13, %v4499_v27, %v4281_v51 }
 0x494   : > { %v4342_v58 = vpop.permute.xlu0 %4341  ;;  %v4376_v45 = vpop.permute.xlu1 %4375 }
 0x495   : > { %v4527_v48 = vsel %vm2238_vm15, %v4513_v25, %v4342_v58 }
 0x496   : > { %v4542_v29 = vsel %vm4540_vm4, %v4527_v48, %v4374_v50 }
 0x498   : > { %v4403_v35 = vpop.permute.xlu0 %4402  ;;  %v4217_v49 = vpop.permute.xlu1 %4216 }
 0x499   : > { %v4487_v37 = vsel %vm1980_vm9, %v12192_v56, %v4217_v49  ;;  %v4557_v7 = vsel %vm4555_vm5, %v4542_v29, %v4403_v35 }
 0x49a   : > { %v4501_v46 = vsel %vm2066_vm11, %v4487_v37, %v4251_v28 }
 0x49b   : > { %v4515_v15 = vsel %vm2152_vm13, %v4501_v46, %v4283_v26  ;;  %v4666_v26 = vrot.slane %v4664_v32, 2 }
 0x49c   : > { %v4455_v53 = vpop.permute.xlu0 %4454  ;;  %v4344_v43 = vpop.permute.xlu1 %4343 }
 0x49d   : > { %v4572_v34 = vsel %vm4570_vm6, %v4557_v7, %v4455_v53  ;;  %v4529_v56 = vsel %vm2238_vm15, %v4515_v15, %v4344_v43 }
 0x49e   : > { %v4603_v36 = vshrl.u32 %v4572_v34, 16  ;;  %v4606_v60 = vshll.u32 %v4572_v34, 16  ;;  %v4544_v55 = vsel %vm4540_vm4, %v4529_v56, %v4376_v45 }
 0x4a0   : > { %v4405_v62 = vpop.permute.xlu1 %4404  ;;  %v4285_v61 = vpop.permute.xlu0 %4284  ;;  %v4605_v52 = vrot.slane %v4603_v36, 1  ;;  %v4608_v38 = vrot.slane %v4606_v60, 2 }
 0x4a1   : > { %v4559_v41 = vsel %vm4555_vm5, %v4544_v55, %v4405_v62 }
 0x4a2   : > { %v4609_v24 = vor.u32 %v4608_v38, %v4605_v52 }
 0x4a4   : > { %v4378_v31 = vpop.permute.xlu0 %4377  ;;  %v4253_v13 = vpop.permute.xlu1 %4252 }
 0x4a8   : > { %v4457_v19 = vpop.permute.xlu1 %4456  ;;  %v4219_v20 = vpop.permute.xlu0 %4218 }
 0x4a9   : > { %v4574_v2 = vsel %vm4570_vm6, %v4559_v41, %v4457_v19  ;;  %v4489_v18 = vsel %vm1980_vm9, %v12216_v17, %v4219_v20  ;;  %v4661_v17 = vshrl.u32 %v4478_v57, 16 }
 0x4aa   : > { %v4610_v54 = vshrl.u32 %v4574_v2, 16  ;;  %v4613_v30 = vshll.u32 %v4574_v2, 16  ;;  %v4503_v11 = vsel %vm2066_vm11, %v4489_v18, %v4253_v13  ;;  %v4158_v2 = vld [vmem:[#allocation3 + $0x38] sm:$0x7f] }
 0x4ab   : > { %v4517_v59 = vsel %vm2152_vm13, %v4503_v11, %v4285_v61  ;;  %v4663_v40 = vrot.slane %v4661_v17, 1 }
 0x4ac   : > { %v4612_v63 = vrot.slane %v4610_v54, 1  ;;  %v4615_v12 = vrot.slane %v4613_v30, 2  ;;  %v4346_v5 = vpop.permute.xlu1 %4345  ;;  %v4255_v16 = vpop.permute.xlu0 %4254 }
 0x4ad   : > { %v4531_v9 = vsel %vm2238_vm15, %v4517_v59, %v4346_v5  ;;  %v4667_v49 = vor.u32 %v4666_v26, %v4663_v40 }
 0x4ae   : > { %v4616_v44 = vor.u32 %v4615_v12, %v4612_v63  ;;  %v4546_v51 = vsel %vm4540_vm4, %v4531_v9, %v4378_v31  ;;  %v4481_v63 = vrot.slane %v4158_v2, 3 }
 0x4af   : > { %v4668_v48 = vsel %vm1310_vm3, %v12423_v33, %v4667_v49 }
 0x4b0   : > { %v4407_v6 = vpop.permute.xlu1 %4406  ;;  %v4459_v50 = vpop.permute.xlu0 %4458  ;;  %v4617_v28 = vsel %vm1310_vm3, %v4609_v24, %v4616_v44 }
 0x4b1   : > { %v4561_v1 = vsel %vm4555_vm5, %v4546_v51, %v4407_v6  ;;  %4835 = vmatmul.mubr.bf16.vlgmr.msra.gmra.mrb[56].mxu1 %v4617_v28 }
 0x4b2   : > { %v4576_v42 = vsel %vm4570_vm6, %v4561_v1, %v4459_v50  ;;  %8885 = vmatprep.mubr.msk.bf16.mxu1 %vm1980_vm9, %v12432_v21  ;;  %v4479_v21 = vrot.slane %v12463_v14, 3 }
 0x4b3   : > { %v4635_v10 = vshrl.u32 %v4576_v42, 16  ;;  %v4638_v3 = vshll.u32 %v4576_v42, 16 }
 0x4b4   : > { %v4287_v58 = vpop.permute.xlu1 %4286  ;;  %v4348_v45 = vpop.permute.xlu0 %4347  ;;  %v4480_v7 = vsel %vm3828_vm12, %v4477_v8, %v4479_v21 }
 0x4b5   : > { %v4637_v27 = vrot.slane %v4635_v10, 1  ;;  %v4640_v35 = vrot.slane %v4638_v3, 2  ;;  %v4678_v14 = vshrl.u32 %v4480_v7, 16  ;;  %v4681_v13 = vshll.u32 %v4480_v7, 16 }
 0x4b7   : > { %v4641_v25 = vor.u32 %v4640_v35, %v4637_v27  ;;  %v4680_v41 = vrot.slane %v4678_v14, 1  ;;  %v4683_v19 = vrot.slane %v4681_v13, 2 }
 0x4b8   : > { %v4380_v37 = vpop.permute.xlu1 %4379  ;;  %v4409_v53 = vpop.permute.xlu0 %4408 }
 0x4b9   : > { %v4642_v43 = vsel %vm1310_vm3, %v4616_v44, %v4641_v25  ;;  %v4684_v11 = vor.u32 %v4683_v19, %v4680_v41 }
 0x4ba   : > { %4843 = vmatmul.mubr.bf16.gmra.mrb[60].mxu1 %v4642_v43 }
 0x4bb   : > { %8886 = vmatprep.mubr.msk.bf16.mxu1 %vm1980_vm9, %v4668_v48  ;;  %v4685_v24 = vsel %vm1310_vm3, %v4667_v49, %v4684_v11 }
 0x4bc   : > { %v4221_v46 = vpop.permute.xlu1 %4220  ;;  %v4289_v29 = vpop.permute.xlu0 %4288 }
 0x4bd   : > { %v4491_v62 = vsel %vm1980_vm9, %v12263_v0, %v4221_v46 }
 0x4be   : > { %v4505_v61 = vsel %vm2066_vm11, %v4491_v62, %v4255_v16 }
 0x4bf   : > { %v4519_v15 = vsel %vm2152_vm13, %v4505_v61, %v4287_v58 }
 0x4c0   : > { %v4382_v34 = vpop.permute.xlu0 %4381  ;;  %v4257_v56 = vpop.permute.xlu1 %4256  ;;  %v4533_v31 = vsel %vm2238_vm15, %v4519_v15, %v4348_v45  ;;  %v4715_v15 = vshll.u32 %v4481_v63, 16 }
 0x4c1   : > { %v4548_v33 = vsel %vm4540_vm4, %v4533_v31, %v4380_v37 }
 0x4c2   : > { %v4563_v36 = vsel %vm4555_vm5, %v4548_v33, %v4409_v53 }
 0x4c4   : > { %v4461_v60 = vpop.permute.xlu1 %4460  ;;  %v4223_v55 = vpop.permute.xlu0 %4222 }
 0x4c5   : > { %v4578_v0 = vsel %vm4570_vm6, %v4563_v36, %v4461_v60  ;;  %v4493_v52 = vsel %vm1980_vm9, %v12353_v22, %v4223_v55  ;;  %v4482_v22 = vsel %vm3828_vm12, %v4479_v21, %v4481_v63 }
 0x4c6   : > { %v4652_v20 = vshrl.u32 %v4578_v0, 16  ;;  %v4655_v8 = vshll.u32 %v4578_v0, 16  ;;  %v4507_v57 = vsel %vm2066_vm11, %v4493_v52, %v4257_v56  ;;  %v4695_v51 = vshrl.u32 %v4482_v22, 16 }
 0x4c7   : > { %v4521_v9 = vsel %vm2152_vm13, %v4507_v57, %v4289_v29  ;;  %v4698_v6 = vshll.u32 %v4482_v22, 16  ;;  %v4717_v0 = vrot.slane %v4715_v15, 2  ;;  %v9827_v22 = vld [vmem:[%s14121_s28 + $0x40] sm:$0xff]  }
 0x4c8   : > { %v4654_v18 = vrot.slane %v4652_v20, 1  ;;  %v4657_v38 = vrot.slane %v4655_v8, 2  ;;  %v4350_v54 = vpop.permute.xlu1 %4349  ;;  %v4259_v30 = vpop.permute.xlu0 %4258  ;;  %v4697_v26 = vrot.slane %v4695_v51, 1  ;;  %9213 = vmatprep.subr.bf16.mxu0 %v9827_v22  ;;  %9692 = vmatprep.subr.bf16.mxu1 %v9827_v22  ;;  %v9831_v51 = vld [vmem:[%s14121_s28 + $0x50] sm:$0xff]  }
 0x4c9   : > { %v4535_v44 = vsel %vm2238_vm15, %v4521_v9, %v4350_v54  ;;  %v4700_v10 = vrot.slane %v4698_v6, 2 }
 0x4ca   : > { %v4658_v59 = vor.u32 %v4657_v38, %v4654_v18  ;;  %v4550_v50 = vsel %vm4540_vm4, %v4535_v44, %v4382_v34  ;;  %v9828_v44 = vld [vmem:[%s14121_s28] sm:$0xff]  }
 0x4cb   : > { %v4701_v37 = vor.u32 %v4700_v10, %v4697_v26  ;;  %9214 = vmatpush3.bf16.msra.mxu0 %v9828_v44  ;;  %9700 = vmatpush3.bf16.msra.mxu1 %v9828_v44 }
 0x4cc   : > { %v4411_v12 = vpop.permute.xlu1 %4410  ;;  %v4413_v5 = vpop.permute.xlu0 %4412  ;;  %v4659_v16 = vsel %vm1310_vm3, %v4641_v25, %v4658_v59 }
 0x4cd   : > { %4851 = vmatmul.mubr.bf16.gmra.mrb[64].mxu1 %v4659_v16  ;;  %v4565_v28 = vsel %vm4555_vm5, %v4550_v50, %v4411_v12  ;;  %v4702_v61 = vsel %vm1310_vm3, %v4684_v11, %v4701_v37  ;;  %v9832_v50 = vld [vmem:[%s14121_s28 + $0x10] sm:$0xff]  }
 0x4ce   : > { %8887 = vmatprep.mubr.msk.bf16.mxu1 %vm1980_vm9, %v4685_v24 }
 0x4d0   : > { %v4291_v17 = vpop.permute.xlu1 %4290  ;;  %v4227_v32 = vpop.permute.xlu0 %4226 }
 0x4d1   : > { %v4497_v34 = vsel %vm1980_vm9, %v12467_v23, %v4227_v32  ;;  %v9830_v32 = vld [vmem:[%s14121_s28 + $0x8] sm:$0xff]  }
 0x4d4   : > { %v4384_v1 = vpop.permute.xlu1 %4383  ;;  %v4463_v42 = vpop.permute.xlu0 %4462 }
 0x4d5   : > { %v4580_v40 = vsel %vm4570_vm6, %v4565_v28, %v4463_v42  ;;  %v12656_v28 = vld [vmem:[%s14122_s8] ss:$0 sm:$0xff] }
 0x4d6   : > { %v4669_v3 = vshrl.u32 %v4580_v40, 16  ;;  %v4672_v58 = vshll.u32 %v4580_v40, 16  ;;  %v12661_v42 = vld [vmem:[%s14123_s5] ss:$0 sm:$0xff] }
 0x4d8   : > { %v4671_v45 = vrot.slane %v4669_v3, 1  ;;  %v4674_v27 = vrot.slane %v4672_v58, 2  ;;  %v4352_v35 = vpop.permute.xlu0 %4351  ;;  %v4225_v49 = vpop.permute.xlu1 %4224 }
 0x4d9   : > { %v4495_v25 = vsel %vm1980_vm9, %v12413_v47, %v4225_v49  ;;  %v4712_v47 = vshrl.u32 %v4481_v63, 16 }
 0x4da   : > { %v4675_v53 = vor.u32 %v4674_v27, %v4671_v45  ;;  %v4509_v43 = vsel %vm2066_vm11, %v4495_v25, %v4259_v30 }
 0x4db   : > { %v4523_v48 = vsel %vm2152_vm13, %v4509_v43, %v4291_v17  ;;  %v4714_v55 = vrot.slane %v4712_v47, 1  ;;  %v9829_v17 = vld [vmem:[%s14121_s28 + $0x48] sm:$0xff]  }
 0x4dc   : > { %v4261_v21 = vpop.permute.xlu1 %4260  ;;  %v4676_v46 = vsel %vm1310_vm3, %v4658_v59, %v4675_v53  ;;  %v4537_v29 = vsel %vm2238_vm15, %v4523_v48, %v4352_v35  ;;  %v4293_v62 = vpop.permute.xlu0 %4292  ;;  %9215 = vmatprep.subr.bf16.mxu0 %v9829_v17  ;;  %9693 = vmatprep.subr.bf16.mxu1 %v9829_v17 }
 0x4dd   : > { %4859 = vmatmul.mubr.bf16.gmra.mrb[68].mxu1 %v4676_v46  ;;  %v4552_v7 = vsel %vm4540_vm4, %v4537_v29, %v4384_v1  ;;  %v4511_v33 = vsel %vm2066_vm11, %v4497_v34, %v4261_v21  ;;  %v4718_v2 = vor.u32 %v4717_v0, %v4714_v55  ;;  %9216 = vmatpush3.bf16.msra.mxu0 %v9830_v32  ;;  %v9834_v55 = vld [vmem:[%s14121_s28 + $0x18] sm:$0xff]  }
 0x4de   : > { %8888 = vmatprep.mubr.msk.bf16.mxu1 %vm1980_vm9, %v4702_v61  ;;  %v4567_v56 = vsel %vm4555_vm5, %v4552_v7, %v4413_v5  ;;  %v4525_v20 = vsel %vm2152_vm13, %v4511_v33, %v4293_v62  ;;  %vm5034_vm13 = vcmask 260096   ;;  %9701 = vmatpush3.bf16.msra.mxu1 %v9830_v32 }
 0x4df   : > { %v4719_v59 = vsel %vm1310_vm3, %v4701_v37, %v4718_v2  ;;  %5035 = vst.msk [vmem:[#allocation4] sm:$0x7f] %vm5034_vm13, %v10004_v39  ;;  %9217 = vmatprep.subr.bf16.mxu0 %v9831_v51  ;;  %9694 = vmatprep.subr.bf16.mxu1 %v9831_v51 }
 0x4e0   : > { %v4465_v31 = vpop.permute.xlu1 %4464  ;;  %v4386_v60 = vpop.permute.xlu0 %4385 }
 0x4e1   : > { %v4582_v14 = vsel %vm4570_vm6, %v4567_v56, %v4465_v31  ;;  %9218 = vmatpush3.bf16.msra.mxu0 %v9832_v50 }
 0x4e2   : > { %v4686_v13 = vshrl.u32 %v4582_v14, 16  ;;  %v4689_v36 = vshll.u32 %v4582_v14, 16  ;;  %9702 = vmatpush3.bf16.msra.mxu1 %v9832_v50 }
 0x4e4   : > { %v4688_v41 = vrot.slane %v4686_v13, 1  ;;  %v4691_v19 = vrot.slane %v4689_v36, 2  ;;  %v4354_v8 = vpop.permute.xlu1 %4353  ;;  %v4467_v30 = vpop.permute.xlu0 %4466  ;;  %v9833_v13 = vld [vmem:[%s14121_s28 + $0x58] sm:$0xff]  }
 0x4e5   : > { %v4539_v52 = vsel %vm2238_vm15, %v4525_v20, %v4354_v8  ;;  %9219 = vmatprep.subr.bf16.mxu0 %v9833_v13  ;;  %9695 = vmatprep.subr.bf16.mxu1 %v9833_v13 }
 0x4e6   : > { %v4692_v23 = vor.u32 %v4691_v19, %v4688_v41  ;;  %v4554_v18 = vsel %vm4540_vm4, %v4539_v52, %v4386_v60  ;;  %9220 = vmatpush3.bf16.msra.mxu0 %v9834_v55  ;;  %9703 = vmatpush3.bf16.msra.mxu1 %v9834_v55  ;;  %vm5079_vm4 = vcmask 253952  }
 0x4e8   : > { %v4415_v38 = vpop.permute.xlu1 %4414  ;;  %v4693_v54 = vsel %vm1310_vm3, %v4675_v53, %v4692_v23 }
 0x4e9   : > { %v4569_v11 = vsel %vm4555_vm5, %v4554_v18, %v4415_v38  ;;  %4867 = vmatmul.mubr.bf16.gmra.mrb[72].mxu1 %v4693_v54 }
 0x4ea   : > { %v4584_v57 = vsel %vm4570_vm6, %v4569_v11, %v4467_v30  ;;  %8889 = vmatprep.mubr.msk.bf16.mxu1 %vm1980_vm9, %v4719_v59  ;;  %vm5081_vm6 = vcmask 261121  }
 0x4eb   : > { %v4703_v63 = vshrl.u32 %v4584_v57, 16  ;;  %v4706_v12 = vshll.u32 %v4584_v57, 16  ;;  %5082 = vst.msk [vmem:[#allocation4 + $0x38] sm:$0xfe] %vm5081_vm6, %v10004_v39 }
 0x4ed   : > { %v4705_v5 = vrot.slane %v4703_v63, 1  ;;  %v4708_v16 = vrot.slane %v4706_v12, 2 }
 0x4ef   : > { %v4709_v9 = vor.u32 %v4708_v16, %v4705_v5 }
 0x4f1   : > { %v4710_v24 = vsel %vm1310_vm3, %v4692_v23, %v4709_v9 }
 0x4f2   : > { %4875 = vmatmul.mubr.bf16.gmra.mrb[76].mxu1 %v4710_v24 }
 0x4f3   : > { %8890 = vmatprep.mubr.msk.bf16.mxu1 %vm1980_vm9, %v4718_v2  ;;  %vm5071_vm9 = vcmask 261127  }
 0x4f5   : > { %v12663_v40 = vpop.permute.xlu0 %5013 }
 0x4f9   : > { %v12648_v6 = vpop.permute.xlu1 %5008  ;;  %v4959_v53 = vpop.permute.xlu0 %4958 }
 0x4fa   : > { %4883 = vmatmul.mubr.bf16.gmra.mrb[80].mxu1 %v4709_v9 }
 0x4fd   : > { %v12666_v3 = vpop.permute.xlu1 %5018  ;;  %v4969_v36 = vpop.permute.xlu0 %4968 }
 0x501   : > { %v4964_v43 = vpop.permute.xlu1 %4963  ;;  %v4979_v51 = vpop.permute.xlu0 %4978 }
 0x505   : > { %v4974_v60 = vpop.permute.xlu1 %4973 }
 0x509   : > { %v4984_v50 = vpop.permute.xlu1 %4983 }
 0x584   : > { %v4836_v1 = vpop.f32.mrb[56].mxu1 }
 0x585   : > { %v4897_v26 = vmul.f32 %v12656_v28, %v4836_v1  ;;  %v4838_v10 = vpop.f32.mrb[57].mxu1 }
 0x586   : > { %v4839_v58 = vpop.f32.mrb[58].mxu1 }
 0x587   : > { %v4917_v45 = vadd.f32 %v12661_v42, %v4897_v26  ;;  %v4898_v27 = vmul.f32 %v12656_v28, %v4839_v58  ;;  %v4841_v35 = vpop.f32.mrb[59].mxu1 }
 0x589   : > { %v4930_v49 = vmax.f32 %v4917_v45, 0.0  ;;  %v4918_v25 = vadd.f32 %v12661_v42, %v4898_v27 }
 0x58b   : > { %v4931_v37 = vmax.f32 %v4918_v25, 0.0  ;;  %v5021_v48 = vmul.f32 %v4959_v53, %v4930_v49 }
 0x58d   : > { %v5022_v21 = vmul.f32 %v4964_v43, %v4931_v37  ;;  %v4844_v46 = vpop.f32.mrb[60].mxu1 }
 0x58e   : > { %v4899_v29 = vmul.f32 %v12656_v28, %v4844_v46  ;;  %v4846_v62 = vpop.f32.mrb[61].mxu1 }
 0x58f   : > { %v5036_v61 = vpack.c.bf16 %v5022_v21, %v5021_v48  ;;  %v4847_v7 = vpop.f32.mrb[62].mxu1 }
 0x590   : > { %v4919_v47 = vadd.f32 %v12661_v42, %v4899_v29  ;;  %v4900_v15 = vmul.f32 %v12656_v28, %v4847_v7  ;;  %v4849_v34 = vpop.f32.mrb[63].mxu1 }
 0x591   : > { %v5050_v56 = vrot.slane %v5036_v61, 1 }
 0x592   : > { %v4932_v31 = vmax.f32 %v4919_v47, 0.0  ;;  %v4920_v33 = vadd.f32 %v12661_v42, %v4900_v15  ;;  %v9835_v47 = vld [vmem:[%s14121_s28 + $0x60] sm:$0xff]  }
 0x593   : > { %5072 = vst.msk [vmem:[#allocation4] sm:$0x80] %vm5071_vm9, %v5050_v56  ;;  %9221 = vmatprep.subr.bf16.mxu0 %v9835_v47  ;;  %9696 = vmatprep.subr.bf16.mxu1 %v9835_v47 }
 0x594   : > { %v4933_v14 = vmax.f32 %v4920_v33, 0.0  ;;  %v5023_v0 = vmul.f32 %v4969_v36, %v4932_v31  ;;  %v9836_v33 = vld [vmem:[%s14121_s28 + $0x20] sm:$0xff]  }
 0x595   : > { %9222 = vmatpush3.bf16.msra.mxu0 %v9836_v33  ;;  %9704 = vmatpush3.bf16.msra.mxu1 %v9836_v33 }
 0x596   : > { %v5024_v41 = vmul.f32 %v4974_v60, %v4933_v14 }
 0x598   : > { %v5037_v19 = vpack.c.bf16 %v5024_v41, %v5023_v0 }
 0x59a   : > { %v5051_v20 = vrot.slane %v5037_v19, 1  ;;  %v5095_v18 = vld [vmem:[#allocation4] sm:$0x80] }
 0x59b   : > { %v5237_v57 = vshrl.u32 %v5095_v18, 16  ;;  %v5240_v63 = vshll.u32 %v5095_v18, 16  ;;  %v5284_v16 = vrot.slane %v5095_v18, 6  ;;  %v5090_v24 = vld [vmem:[#allocation4] sm:$0xfc] }
 0x59c   : > { %v5052_v8 = vsel %vm1164_vm0, %v5050_v56, %v5051_v20  ;;  %v5177_v1 = vrot.slane %v5090_v24, 1  ;;  %v5104_v26 = vshll.u32 %v5090_v24, 16  ;;  %v5092_v35 = vld [vmem:[#allocation4] sm:$0xc0]  ;;  %v5102_v7 = vshrl.u32 %v5090_v24, 16 }
 0x59d   : > { %5073 = vst.msk [vmem:[#allocation4 + $0x8] sm:$0xff] %vm2066_vm11, %v5052_v8  ;;  %v5239_v10 = vrot.slane %v5237_v57, 5  ;;  %v5242_v58 = vrot.slane %v5240_v63, 6  ;;  %v5207_v21 = vrot.slane %v5092_v35, 5  ;;  %v4989_v57 = vpop.permute.xlu0 %4988  ;;  %v4994_v63 = vpop.permute.xlu1 %4993 }
 0x59e   : > { %v5106_v29 = vrot.slane %v5104_v26, 1 }
 0x59f   : > { %v5243_v62 = vor.u32 %v5242_v58, %v5239_v10 }
 0x5a0   : > { %v4852_v52 = vpop.f32.mrb[64].mxu1  ;;  %v5107_v60 = vor.u32 %v5106_v29, %v5102_v7 }
 0x5a1   : > { %v4901_v23 = vmul.f32 %v12656_v28, %v4852_v52  ;;  %v4854_v2 = vpop.f32.mrb[65].mxu1 }
 0x5a2   : > { %v4855_v38 = vpop.f32.mrb[66].mxu1 }
 0x5a3   : > { %v4921_v54 = vadd.f32 %v12661_v42, %v4901_v23  ;;  %v4902_v30 = vmul.f32 %v12656_v28, %v4855_v38  ;;  %v4857_v11 = vpop.f32.mrb[67].mxu1 }
 0x5a4   : > { %v12686_v59 = vld [vmem:[#allocation4 + $0x8] sm:$0xff] }
 0x5a5   : > { %v4934_v12 = vmax.f32 %v4921_v54, 0.0  ;;  %v4922_v5 = vadd.f32 %v12661_v42, %v4902_v30  ;;  %v5285_v9 = vrot.slane %v12686_v59, 6  ;;  %v5109_v22 = vshll.u32 %v12686_v59, 16  ;;  %v12728_v55 = vld [vmem:[#allocation4 + $0x8] sm:$0xf0] }
 0x5a6   : > { %v5178_v32 = vrot.slane %v12686_v59, 1  ;;  %v5113_v49 = vshrl.u32 %v12686_v59, 16  ;;  %v5208_v43 = vrot.slane %v12686_v59, 5  ;;  %v5097_v52 = vld [vmem:[#allocation4 + $0x8] sm:$0xf8]  ;;  %v5343_v23 = vshrl.u32 %v12728_v55, 16 }
 0x5a7   : > { %v4935_v44 = vmax.f32 %v4922_v5, 0.0  ;;  %v5286_v17 = vsel %vm3912_vm8, %v5284_v16, %v5285_v9  ;;  %v5025_v45 = vmul.f32 %v4979_v51, %v4934_v12  ;;  %v5245_v25 = vrot.slane %v5109_v22, 6 }
 0x5a8   : > { %5299 = vrot.lane.b32.xlu0 %v5286_v17, %s14117_s9  ;;  %v5179_v53 = vsel %vm1164_vm0, %v5177_v1, %v5178_v32  ;;  %v5244_v48 = vrot.slane %v5113_v49, 5  ;;  %v5209_v34 = vsel %vm3221_vm10, %v5207_v21, %v5208_v43  ;;  %v12716_v56 = vrot.slane %v5109_v22, 1 }
 0x5a9   : > { %v5026_v27 = vmul.f32 %v4984_v50, %v4935_v44  ;;  %v5346_v38 = vshll.u32 %v12728_v55, 16  ;;  %v5315_v11 = vrot.slane %v5097_v52, 2  ;;  %v5345_v24 = vrot.slane %v5343_v23, 2 }
 0x5aa   : > { %v12706_v61 = vor.u32 %v5245_v25, %v5244_v48  ;;  %v5112_v8 = vsel %vm951_vm2, %v5107_v60, %v12716_v56  ;;  %v9837_v60 = vld [vmem:[%s14121_s28 + $0x68] sm:$0xff]   ;;  %v5115_v52 = vor.u32 %v5113_v49, %v12716_v56 }
 0x5ab   : > { %v5038_v37 = vpack.c.bf16 %v5026_v27, %v5025_v45  ;;  %v5348_v51 = vrot.slane %v5346_v38, 3  ;;  %9223 = vmatprep.subr.bf16.mxu0 %v9837_v60  ;;  %9697 = vmatprep.subr.bf16.mxu1 %v9837_v60 }
 0x5ac   : > { %5190 = vrot.lane.b32.xlu0 %v5179_v53, %s14119_s1  ;;  %v12720_v31 = vsel %vm4294_vm14, %v5243_v62, %v12706_v61 }
 0x5ad   : > { %v12704_v46 = vrot.slane %v5038_v37, 1  ;;  %v5349_v48 = vor.u32 %v5348_v51, %v5345_v24 }
 0x5af   : > { %v5054_v15 = vsel %vm1164_vm0, %v5051_v20, %v12704_v46 }
 0x5b0   : > { %5074 = vst.msk [vmem:[#allocation4 + $0x10] sm:$0xff] %vm2066_vm11, %v5054_v15  ;;  %5222 = vrot.lane.b32.xlu0 %v5209_v34, %s14120_s2  ;;  %v4860_v14 = vpop.f32.mrb[68].mxu1 }
 0x5b1   : > { %v4903_v13 = vmul.f32 %v12656_v28, %v4860_v14  ;;  %v4862_v36 = vpop.f32.mrb[69].mxu1 }
 0x5b2   : > { %v4863_v0 = vpop.f32.mrb[70].mxu1 }
 0x5b3   : > { %v4923_v41 = vadd.f32 %v12661_v42, %v4903_v13  ;;  %v4904_v19 = vmul.f32 %v12656_v28, %v4863_v0  ;;  %v4865_v20 = vpop.f32.mrb[71].mxu1  ;;  %v9838_v0 = vld [vmem:[%s14121_s28 + $0x28] sm:$0xff]  }
 0x5b4   : > { %5156 = vrot.lane.b32.xlu0 %v5112_v8, %s14117_s9  ;;  %v4999_v20 = vpop.permute.xlu0 %4998  ;;  %v5004_v8 = vpop.permute.xlu1 %5003  ;;  %9224 = vmatpush3.bf16.msra.mxu0 %v9838_v0 }
 0x5b5   : > { %v4936_v2 = vmax.f32 %v4923_v41, 0.0  ;;  %v4924_v18 = vadd.f32 %v12661_v42, %v4904_v19  ;;  %9705 = vmatpush3.bf16.msra.mxu1 %v9838_v0 }
 0x5b7   : > { %v4937_v54 = vmax.f32 %v4924_v18, 0.0  ;;  %v12738_v30 = vld [vmem:[#allocation4 + $0x10] sm:$0xff]  ;;  %v5027_v22 = vmul.f32 %v4989_v57, %v4936_v2 }
 0x5b8   : > { %v5316_v12 = vrot.slane %v12738_v30, 2  ;;  %v5287_v5 = vrot.slane %v12738_v30, 6  ;;  %v12743_v16 = vshll.u32 %v12738_v30, 16  ;;  %v12746_v17 = vshrl.u32 %v12738_v30, 16 }
 0x5b9   : > { %v5028_v44 = vmul.f32 %v4994_v63, %v4937_v54  ;;  %v5180_v26 = vrot.slane %v12738_v30, 1  ;;  %v5210_v7 = vrot.slane %v12738_v30, 5 }
 0x5ba   : > { %v5317_v50 = vsel %vm1454_vm1, %v5315_v11, %v5316_v12  ;;  %v5288_v1 = vsel %vm3912_vm8, %v5285_v9, %v5287_v5  ;;  %v5351_v10 = vrot.slane %v12743_v16, 3  ;;  %v5350_v45 = vrot.slane %v12746_v17, 2 }
 0x5bb   : > { %v5039_v58 = vpack.c.bf16 %v5028_v44, %v5027_v22  ;;  %5328 = vrot.lane.b32.xlu0 %v5317_v50, %s14119_s1  ;;  %5301 = vrot.lane.b32.xlu1 %v5288_v1, %s14117_s9  ;;  %v5248_v35 = vrot.slane %v12746_v17, 5  ;;  %v5249_v25 = vrot.slane %v12743_v16, 6  ;;  %v5181_v62 = vsel %vm1164_vm0, %v5178_v32, %v5180_v26 }
 0x5bc   : > { %v4868_v27 = vpop.f32.mrb[72].mxu1  ;;  %v12764_v21 = vor.u32 %v5351_v10, %v5350_v45  ;;  %v5211_v41 = vsel %vm3221_vm10, %v5208_v43, %v5210_v7 }
 0x5bd   : > { %v5055_v37 = vrot.slane %v5039_v58, 1  ;;  %v4905_v53 = vmul.f32 %v12656_v28, %v4868_v27  ;;  %v4870_v9 = vpop.f32.mrb[73].mxu1  ;;  %v12772_v47 = vor.u32 %v5249_v25, %v5248_v35 }
 0x5be   : > { %v4871_v29 = vpop.f32.mrb[74].mxu1  ;;  %v5353_v14 = vsel %vm4416_vm7, %v5349_v48, %v12764_v21 }
 0x5bf   : > { %v5056_v15 = vsel %vm1164_vm0, %v12704_v46, %v5055_v37  ;;  %v4925_v34 = vadd.f32 %v12661_v42, %v4905_v53  ;;  %v4906_v33 = vmul.f32 %v12656_v28, %v4871_v29  ;;  %5192 = vrot.lane.b32.xlu1 %v5181_v62, %s14119_s1  ;;  %v4873_v13 = vpop.f32.mrb[75].mxu1  ;;  %5379 = vrot.lane.b32.xlu0 %v5353_v14, %s14120_s2 }
 0x5c0   : > { %5075 = vst.msk [vmem:[#allocation4 + $0x18] sm:$0xff] %vm2066_vm11, %v5056_v15  ;;  %v12786_v32 = vsel %vm4294_vm14, %v12706_v61, %v12772_v47  ;;  %v5119_v61 = vrot.slane %v12743_v16, 1  ;;  %v9839_v13 = vld [vmem:[%s14121_s28 + $0x70] sm:$0xff]  }
 0x5c1   : > { %v4938_v46 = vmax.f32 %v4925_v34, 0.0  ;;  %v4926_v36 = vadd.f32 %v12661_v42, %v4906_v33  ;;  %9225 = vmatprep.subr.bf16.mxu0 %v9839_v13  ;;  %9698 = vmatprep.subr.bf16.mxu1 %v9839_v13 }
 0x5c2   : > { %v5120_v54 = vsel %vm951_vm2, %v5115_v52, %v5119_v61  ;;  %v5123_v60 = vor.u32 %v12746_v17, %v5119_v61 }
 0x5c3   : > { %v4939_v19 = vmax.f32 %v4926_v36, 0.0  ;;  %5224 = vrot.lane.b32.xlu1 %v5211_v41, %s14120_s2  ;;  %v5029_v23 = vmul.f32 %v4999_v20, %v4938_v46  ;;  %v9840_v46 = vld [vmem:[%s14121_s28 + $0x30] sm:$0xff]  }
 0x5c4   : > { %9226 = vmatpush3.bf16.msra.mxu0 %v9840_v46  ;;  %9706 = vmatpush3.bf16.msra.mxu1 %v9840_v46 }
 0x5c5   : > { %v5030_v2 = vmul.f32 %v5004_v8, %v4939_v19  ;;  %v4876_v18 = vpop.f32.mrb[76].mxu1 }
 0x5c6   : > { %v4907_v43 = vmul.f32 %v12656_v28, %v4876_v18  ;;  %v4878_v38 = vpop.f32.mrb[77].mxu1 }
 0x5c7   : > { %v5040_v11 = vpack.c.bf16 %v5030_v2, %v5029_v23  ;;  %5158 = vrot.lane.b32.xlu1 %v5120_v54, %s14117_s9  ;;  %v4879_v57 = vpop.f32.mrb[78].mxu1  ;;  %v12808_v63 = vld [vmem:[#allocation4 + $0x18] sm:$0xff] }
 0x5c8   : > { %v4927_v16 = vadd.f32 %v12661_v42, %v4907_v43  ;;  %v4908_v49 = vmul.f32 %v12656_v28, %v4879_v57  ;;  %v4881_v56 = vpop.f32.mrb[79].mxu1  ;;  %v5318_v24 = vrot.slane %v12808_v63, 2  ;;  %v5289_v22 = vrot.slane %v12808_v63, 6 }
 0x5c9   : > { %v5057_v44 = vrot.slane %v5040_v11, 1  ;;  %v5182_v51 = vrot.slane %v12808_v63, 1  ;;  %v12816_v50 = vshll.u32 %v12808_v63, 16  ;;  %v12819_v1 = vshrl.u32 %v12808_v63, 16 }
 0x5ca   : > { %v4940_v10 = vmax.f32 %v4927_v16, 0.0  ;;  %v4928_v58 = vadd.f32 %v12661_v42, %v4908_v49  ;;  %v5319_v45 = vsel %vm1454_vm1, %v5316_v12, %v5318_v24  ;;  %v5290_v27 = vsel %vm3912_vm8, %v5287_v5, %v5289_v22 }
 0x5cb   : > { %v5058_v35 = vsel %vm1164_vm0, %v5055_v37, %v5057_v44  ;;  %5330 = vrot.lane.b32.xlu1 %v5319_v45, %s14119_s1  ;;  %5303 = vrot.lane.b32.xlu0 %v5290_v27, %s14117_s9  ;;  %v5183_v12 = vsel %vm1164_vm0, %v5180_v26, %v5182_v51  ;;  %v5127_v9 = vrot.slane %v12816_v50, 1  ;;  %v5354_v5 = vrot.slane %v12819_v1, 2 }
 0x5cc   : > { %5076 = vst.msk [vmem:[#allocation4 + $0x20] sm:$0xff] %vm2066_vm11, %v5058_v35  ;;  %v4941_v25 = vmax.f32 %v4928_v58, 0.0  ;;  %v5252_v37 = vrot.slane %v12819_v1, 5  ;;  %v5253_v48 = vrot.slane %v12816_v50, 6  ;;  %v5031_v29 = vmul.f32 %v12648_v6, %v4940_v10  ;;  %v9841_v6 = vld [vmem:[%s14121_s28 + $0x78] sm:$0xff]  }
 0x5cd   : > { %v4884_v53 = vpop.f32.mrb[80].mxu1  ;;  %v5355_v33 = vrot.slane %v12816_v50, 3  ;;  %v5128_v20 = vsel %vm951_vm2, %v5123_v60, %v5127_v9  ;;  %9227 = vmatprep.subr.bf16.mxu0 %v9841_v6  ;;  %9699 = vmatprep.subr.bf16.mxu1 %v9841_v6 }
 0x5ce   : > { %v5032_v62 = vmul.f32 %v12663_v40, %v4941_v25  ;;  %v4909_v15 = vmul.f32 %v12656_v28, %v4884_v53  ;;  %v4886_v34 = vpop.f32.mrb[81].mxu1  ;;  %v5254_v14 = vor.u32 %v5253_v48, %v5252_v37 }
 0x5cf   : > { %5194 = vrot.lane.b32.xlu1 %v5183_v12, %s14119_s1  ;;  %v4887_v26 = vpop.f32.mrb[82].mxu1  ;;  %v12866_v8 = vor.u32 %v5355_v33, %v5354_v5 }
 0x5d0   : > { %v5041_v28 = vpack.c.bf16 %v5032_v62, %v5031_v29  ;;  %v4929_v40 = vadd.f32 %v12661_v42, %v4909_v15  ;;  %v4888_v36 = vpop.f32.mrb[83].mxu1  ;;  %v12861_v0 = vsel %vm4294_vm14, %v12772_v47, %v5254_v14  ;;  %v9842_v42 = vld [vmem:[%s14121_s28 + $0x38] sm:$0xff]  }
 0x5d1   : > { %v5357_v43 = vsel %vm4416_vm7, %v12764_v21, %v12866_v8  ;;  %9228 = vmatpush3.bf16.msra.mxu0 %v9842_v42  ;;  %9707 = vmatpush3.bf16.msra.mxu1 %v9842_v42 }
 0x5d2   : > { %v5059_v41 = vrot.slane %v5041_v28, 1  ;;  %v4942_v19 = vmax.f32 %v4929_v40, 0.0  ;;  %9594 = vmatprep.subr.bf16.mxu1 %v10002_v4  ;;  %9626 = vmatprep.subr.bf16.mxu0 %v10002_v4 }
 0x5d3   : > { %5160 = vrot.lane.b32.xlu1 %v5128_v20, %s14117_s9  ;;  %v12872_v17 = vld [vmem:[#allocation4 + $0x20] sm:$0xff] }
 0x5d4   : > { %v5060_v47 = vsel %vm1164_vm0, %v5057_v44, %v5059_v41  ;;  %v5033_v61 = vmul.f32 %v12666_v3, %v4942_v19  ;;  %v5320_v52 = vrot.slane %v12872_v17, 2  ;;  %v12879_v23 = vshll.u32 %v12872_v17, 16 }
 0x5d5   : > { %5077 = vst.msk [vmem:[#allocation4 + $0x28] sm:$0xff] %vm2066_vm11, %v5060_v47  ;;  %v12882_v2 = vshrl.u32 %v12872_v17, 16 }
 0x5d6   : > { %v5042_v18 = vpack.c.bf16 %v5033_v61, %v5033_v61  ;;  %v5321_v3 = vsel %vm1454_vm1, %v5318_v24, %v5320_v52  ;;  %v5257_v21 = vrot.slane %v12879_v23, 6  ;;  %v5359_v33 = vrot.slane %v12879_v23, 3 }
 0x5d7   : > { %5381 = vrot.lane.b32.xlu1 %v5357_v43, %s14120_s2  ;;  %5332 = vrot.lane.b32.xlu0 %v5321_v3, %s14119_s1  ;;  %v5256_v54 = vrot.slane %v12882_v2, 5  ;;  %v5358_v6 = vrot.slane %v12882_v2, 2 }
 0x5d8   : > { %v5061_v38 = vrot.slane %v5042_v18, 1 }
 0x5d9   : > { %v5258_v57 = vor.u32 %v5257_v21, %v5256_v54  ;;  %v5360_v43 = vor.u32 %v5359_v33, %v5358_v6 }
 0x5da   : > { %v5062_v11 = vsel %vm1164_vm0, %v5059_v41, %v5061_v38  ;;  %5080 = vst.msk [vmem:[#allocation4 + $0x38] sm:$0x1] %vm5079_vm4, %v5061_v38  ;;  %v5212_v38 = vrot.slane %v12808_v63, 5 }
 0x5db   : > { %5078 = vst.msk [vmem:[#allocation4 + $0x30] sm:$0xff] %vm2066_vm11, %v5062_v11  ;;  %v12899_v16 = vsel %vm4294_vm14, %v5254_v14, %v5258_v57 }
 0x5dc   : > { %v12901_v49 = vld [vmem:[#allocation4 + $0x28] sm:$0xff] }
 0x5dd   : > { %v12911_v27 = vshrl.u32 %v12901_v49, 16  ;;  %v12929_v26 = vshll.u32 %v12901_v49, 16 }
 0x5df   : > { %v5260_v36 = vrot.slane %v12911_v27, 5  ;;  %v5261_v61 = vrot.slane %v12929_v26, 6  ;;  %v5362_v33 = vrot.slane %v12911_v27, 2 }
 0x5e1   : > { %v12903_v56 = vld [vmem:[#allocation4 + $0x38] sm:$0x3f]  ;;  %v5262_v11 = vor.u32 %v5261_v61, %v5260_v36 }
 0x5e2   : > { %v5096_v24 = vld [vmem:[#allocation4 + $0x38] sm:$0x3]  ;;  %v5326_v10 = vrot.slane %v12903_v56, 2  ;;  %v12906_v58 = vld [vmem:[#allocation4 + $0x30] sm:$0x1f]  ;;  %v5371_v53 = vshrl.u32 %v12903_v56, 16 }
 0x5e3   : > { %v5094_v44 = vld [vmem:[#allocation4 + $0x38] sm:$0x1]  ;;  %v12908_v45 = vld [vmem:[#allocation4 + $0x30] sm:$0xff]  ;;  %v5188_v35 = vrot.slane %v12906_v58, 1  ;;  %v5297_v12 = vrot.slane %v5096_v24, 6  ;;  %v5374_v29 = vshll.u32 %v12903_v56, 16 }
 0x5e4   : > { %v5295_v25 = vrot.slane %v12908_v45, 6  ;;  %v12916_v5 = vld [vmem:[#allocation4 + $0x30] sm:$0xf]  ;;  %5340 = vrot.lane.b32.xlu0 %v5326_v10, %s14119_s1  ;;  %v5218_v37 = vrot.slane %v12908_v45, 5  ;;  %v5220_v48 = vrot.slane %v5094_v44, 5  ;;  %v5373_v15 = vrot.slane %v5371_v53, 2 }
 0x5e5   : > { %v5149_v62 = vshll.u32 %v12916_v5, 16  ;;  %5202 = vrot.lane.b32.xlu1 %v5188_v35, %s14119_s1  ;;  %v5376_v34 = vrot.slane %v5374_v29, 3  ;;  %v5265_v14 = vshrl.u32 %v12908_v45, 16  ;;  %v5268_v28 = vshll.u32 %v12908_v45, 16  ;;  %v6080_v56 = vld [vmem:[%s14056_s12] sm:$0xff]  ;;  %v6082_v58 = vld [vmem:[%s14056_s12 + $0x10] sm:$0xff] }
 0x5e6   : > { %v5298_v13 = vsel %vm3912_vm8, %v5295_v25, %v5297_v12  ;;  %v5221_v40 = vsel %vm3221_vm10, %v5218_v37, %v5220_v48  ;;  %v5153_v41 = vshrl.u32 %v12916_v5, 16  ;;  %v5274_v19 = vshrl.u32 %v5094_v44, 16 }
 0x5e7   : > { %v12935_v46 = vrot.slane %v5149_v62, 1  ;;  %v12945_v60 = vor.u32 %v5376_v34, %v5373_v15  ;;  %v5277_v20 = vshll.u32 %v5094_v44, 16  ;;  %v5267_v42 = vrot.slane %v5265_v14, 5 }
 0x5e8   : > { %5311 = vrot.lane.b32.xlu0 %v5298_v13, %s14117_s9  ;;  %v5270_v47 = vrot.slane %v5268_v28, 6  ;;  %v5276_v3 = vrot.slane %v5274_v19, 5  ;;  %v12957_v44 = vsel %vm4294_vm14, %v5258_v57, %v5262_v11  ;;  %v5361_v53 = vsel %vm4416_vm7, %v12866_v8, %v5360_v43 }
 0x5e9   : > { %5234 = vrot.lane.b32.xlu1 %v5221_v40, %s14120_s2  ;;  %v5155_v18 = vor.u32 %v5153_v41, %v12935_v46  ;;  %v5279_v54 = vrot.slane %v5277_v20, 6  ;;  %v5291_v48 = vrot.slane %v12872_v17, 6  ;;  %v5213_v29 = vsel %vm3221_vm10, %v5210_v7, %v5212_v38 }
 0x5ea   : > { %v5271_v21 = vor.u32 %v5270_v47, %v5267_v42  ;;  %v5135_v62 = vrot.slane %v12879_v23, 1  ;;  %v5131_v57 = vor.u32 %v12819_v1, %v5127_v9  ;;  %v5322_v34 = vrot.slane %v12901_v49, 2 }
 0x5eb   : > { %v5280_v24 = vor.u32 %v5279_v54, %v5276_v3  ;;  %v5292_v8 = vsel %vm3912_vm8, %v5289_v22, %v5291_v48  ;;  %v5363_v7 = vrot.slane %v12929_v26, 3  ;;  %v5184_v13 = vrot.slane %v12872_v17, 1 }
 0x5ec   : > { %5391 = vrot.lane.b32.xlu0 %v12945_v60, %s14120_s2  ;;  %v12960_v12 = vsel %vm4294_vm14, %v5262_v11, %v5271_v21  ;;  %v5136_v23 = vsel %vm951_vm2, %v5131_v57, %v5135_v62  ;;  %v5323_v50 = vsel %vm1454_vm1, %v5320_v52, %v5322_v34  ;;  %v5214_v9 = vrot.slane %v12872_v17, 5  ;;  %v6086_v11 = vld [vmem:[%s14056_s12 + $0x30] sm:$0xff]  ;;  %v6091_v57 = vld [vmem:[%s14056_s12 + $0x58] sm:$0xff] }
 0x5ed   : > { %5168 = vrot.lane.b32.xlu1 %v5155_v18, %s14117_s9  ;;  %v12971_v15 = vsel %vm4294_vm14, %v5271_v21, %v5280_v24  ;;  %v5364_v1 = vor.u32 %v5363_v7, %v5362_v33  ;;  %v5185_v22 = vsel %vm1164_vm0, %v5182_v51, %v5184_v13  ;;  %v5293_v40 = vrot.slane %v12901_v49, 6  ;;  %v6087_v24 = vld [vmem:[%s14056_s12 + $0x38] sm:$0xff]  ;;  %v6092_v33 = vld [vmem:[%s14056_s12 + $0x60] sm:$0xf] }
 0x5ee   : > { %v5215_v36 = vsel %vm3221_vm10, %v5212_v38, %v5214_v9  ;;  %v5143_v52 = vrot.slane %v12929_v26, 1  ;;  %v5139_v41 = vor.u32 %v12882_v2, %v5135_v62  ;;  %v5324_v19 = vrot.slane %v12908_v45, 2  ;;  %v6090_v62 = vld [vmem:[%s14056_s12 + $0x50] sm:$0xff] }
 0x5ef   : > { %v5365_v6 = vsel %vm4416_vm7, %v5360_v43, %v5364_v1  ;;  %v5294_v51 = vsel %vm3912_vm8, %v5291_v48, %v5293_v40  ;;  %v5186_v42 = vrot.slane %v12901_v49, 1  ;;  %v5366_v26 = vrot.slane %v5265_v14, 2  ;;  %v6088_v48 = vld [vmem:[%s14056_s12 + $0x40] sm:$0xff] }
 0x5f0   : > { %5383 = vrot.lane.b32.xlu0 %v5361_v53, %s14120_s2  ;;  %v5144_v20 = vsel %vm951_vm2, %v5139_v41, %v5143_v52  ;;  %v5325_v47 = vsel %vm1454_vm1, %v5322_v34, %v5324_v19  ;;  %v5367_v61 = vrot.slane %v5268_v28, 3  ;;  %v5216_v18 = vrot.slane %v12901_v49, 5 }
 0x5f1   : > { %5226 = vrot.lane.b32.xlu1 %v5213_v29, %s14120_s2  ;;  %v5187_v2 = vsel %vm1164_vm0, %v5184_v13, %v5186_v42  ;;  %v5296_v43 = vsel %vm3912_vm8, %v5293_v40, %v5295_v25  ;;  %v5147_v14 = vor.u32 %v12911_v27, %v5143_v52  ;;  %v5327_v25 = vsel %vm1454_vm1, %v5324_v19, %v5326_v10  ;;  %v6081_v10 = vld [vmem:[%s14056_s12 + $0x8] sm:$0xff]  ;;  %v5083_v40 = vld [vmem:[#allocation4] sm:$0xfe] }
 0x5f2   : > { %v5368_v3 = vor.u32 %v5367_v61, %v5366_v26  ;;  %v5217_v38 = vsel %vm3221_vm10, %v5214_v9, %v5216_v18  ;;  %v5189_v21 = vsel %vm1164_vm0, %v5186_v42, %v5188_v35  ;;  %v6083_v35 = vld [vmem:[%s14056_s12 + $0x18] sm:$0xff]  ;;  %v6089_v29 = vld [vmem:[%s14056_s12 + $0x48] sm:$0xff]  ;;  %vm14124_vm14 = vmmov 0  }
 0x5f3   : > { %v5152_v54 = vsel %vm951_vm2, %v5147_v14, %v12935_v46  ;;  %v5219_v46 = vsel %vm3221_vm10, %v5216_v18, %v5218_v37  ;;  %v6084_v37 = vld [vmem:[%s14056_s12 + $0x20] sm:$0xff] }
 0x5f4   : > { %5305 = vrot.lane.b32.xlu0 %v5292_v8, %s14117_s9  ;;  %v5369_v28 = vsel %vm4416_vm7, %v5364_v1, %v5368_v3  ;;  %v5378_v27 = vsel %vm4416_vm7, %v5368_v3, %v12945_v60  ;;  %v6085_v60 = vld [vmem:[%s14056_s12 + $0x28] sm:$0xff]  ;;  %vm14126_vm7 = vcmask 1040384  }
 0x5f5   : > { %5162 = vrot.lane.b32.xlu1 %v5136_v23, %s14117_s9  ;;  %vm14127_vm13 = vmmov %vm14126_vm7 }
 0x5f6   : > { %vm14128_vm6 = vmmov %vm14126_vm7 }
 0x5f7   : > { %vm14129_vm9 = vmmov %vm14128_vm6 }
 0x5f8   : > { %5334 = vrot.lane.b32.xlu0 %v5323_v50, %s14119_s1  ;;  %vm14130_vm4 = vmmov %vm14128_vm6 }
 0x5f9   : > { %5196 = vrot.lane.b32.xlu1 %v5185_v22, %s14119_s1 }
 0x5fc   : > { %5385 = vrot.lane.b32.xlu0 %v5365_v6, %s14120_s2 }
 0x5fd   : > { %5228 = vrot.lane.b32.xlu1 %v5215_v36, %s14120_s2 }
 0x600   : > { %5307 = vrot.lane.b32.xlu0 %v5294_v51, %s14117_s9 }
 0x601   : > { %5164 = vrot.lane.b32.xlu1 %v5144_v20, %s14117_s9 }
 0x604   : > { %5336 = vrot.lane.b32.xlu0 %v5325_v47, %s14119_s1 }
 0x605   : > { %5198 = vrot.lane.b32.xlu1 %v5187_v2, %s14119_s1 }
 0x608   : > { %5309 = vrot.lane.b32.xlu0 %v5296_v43, %s14117_s9 }
 0x609   : > { %5230 = vrot.lane.b32.xlu1 %v5217_v38, %s14120_s2 }
 0x60c   : > { %5387 = vrot.lane.b32.xlu0 %v5369_v28, %s14120_s2 }
 0x60d   : > { %5166 = vrot.lane.b32.xlu1 %v5152_v54, %s14117_s9 }
 0x610   : > { %5338 = vrot.lane.b32.xlu0 %v5327_v25, %s14119_s1 }
 0x611   : > { %5200 = vrot.lane.b32.xlu1 %v5189_v21, %s14119_s1 }
 0x614   : > { %5389 = vrot.lane.b32.xlu0 %v5378_v27, %s14120_s2 }
 0x615   : > { %5232 = vrot.lane.b32.xlu1 %v5219_v46, %s14120_s2 }
 0x618   : > { %6095 = vperm.xlu0 %9731, %v6080_v56  }
 0x619   : > { %6100 = vperm.xlu1 %9732, %v6081_v10  }
 0x61a   : > { %v5300_v53 = vpop.permute.xlu0 %5299 }
 0x61b   : > { %v5453_v19 = vsel %vm2066_vm11, %v12720_v31, %v5300_v53 }
 0x61c   : > { %6105 = vperm.xlu0 %9731, %v6082_v58  }
 0x61d   : > { %6110 = vperm.xlu1 %9732, %v6083_v35  }
 0x61e   : > { %v5191_v8 = vpop.permute.xlu0 %5190 }
 0x620   : > { %6115 = vperm.xlu0 %9731, %v6084_v37  }
 0x621   : > { %6120 = vperm.xlu1 %9732, %v6085_v60  }
 0x622   : > { %v5223_v7 = vpop.permute.xlu0 %5222 }
 0x624   : > { %6125 = vperm.xlu0 %9731, %v6086_v11  }
 0x625   : > { %6130 = vperm.xlu1 %9732, %v6087_v24  }
 0x626   : > { %v5157_v50 = vpop.permute.xlu0 %5156 }
 0x627   : > { %v5410_v36 = vsel %vm2066_vm11, %v5083_v40, %v5157_v50 }
 0x628   : > { %6135 = vperm.xlu0 %9731, %v6088_v48   ;;  %v5424_v20 = vsel %vm2238_vm15, %v5410_v36, %v5191_v8 }
 0x629   : > { %6140 = vperm.xlu1 %9732, %v6089_v29   ;;  %v5438_v26 = vsel %vm4555_vm5, %v5424_v20, %v5223_v7  ;;  %v5398_v7 = vrot.slane %v12808_v63, 3 }
 0x62a   : > { %v5536_v38 = vshrl.u32 %v5438_v26, 16  ;;  %v5539_v14 = vshll.u32 %v5438_v26, 16 }
 0x62c   : > { %6145 = vperm.xlu0 %9731, %v6090_v62   ;;  %v5538_v35 = vrot.slane %v5536_v38, 1  ;;  %v5541_v37 = vrot.slane %v5539_v14, 2 }
 0x62d   : > { %v5302_v34 = vpop.permute.xlu1 %5301  ;;  %6150 = vperm.xlu1 %9732, %v6091_v57   ;;  %v5329_v22 = vpop.permute.xlu0 %5328 }
 0x62e   : > { %v5473_v42 = vsel %vm2238_vm15, %v5453_v19, %v5329_v22  ;;  %v5456_v31 = vsel %vm2066_vm11, %v12786_v32, %v5302_v34  ;;  %v5542_v29 = vor.u32 %v5541_v37, %v5538_v35 }
 0x630   : > { %6155 = vperm.xlu0 %9731, %v6092_v33  }
 0x631   : > { %v5193_v23 = vpop.permute.xlu1 %5192  ;;  %v5380_v41 = vpop.permute.xlu0 %5379 }
 0x635   : > { %v5225_v13 = vpop.permute.xlu1 %5224 }
 0x639   : > { %v5159_v1 = vpop.permute.xlu1 %5158 }
 0x63a   : > { %v5412_v9 = vsel %vm2066_vm11, %v12686_v59, %v5159_v1  ;;  %v5487_v59 = vsel %vm4555_vm5, %v5473_v42, %v5380_v41 }
 0x63b   : > { %v5426_v52 = vsel %vm2238_vm15, %v5412_v9, %v5193_v23  ;;  %v5551_v43 = vshrl.u32 %v5487_v59, 16  ;;  %v5554_v3 = vshll.u32 %v5487_v59, 16  ;;  %v5395_v9 = vrot.slane %v12728_v55, 3 }
 0x63c   : > { %v5440_v47 = vsel %vm4555_vm5, %v5426_v52, %v5225_v13  ;;  %v5396_v13 = vrot.slane %v12738_v30, 3 }
 0x63d   : > { %v5331_v6 = vpop.permute.xlu1 %5330  ;;  %v5543_v2 = vshrl.u32 %v5440_v47, 16  ;;  %v5546_v18 = vshll.u32 %v5440_v47, 16  ;;  %v5553_v46 = vrot.slane %v5551_v43, 1  ;;  %v5556_v56 = vrot.slane %v5554_v3, 2  ;;  %v5304_v53 = vpop.permute.xlu0 %5303 }
 0x63e   : > { %v5475_v28 = vsel %vm2238_vm15, %v5456_v31, %v5331_v6  ;;  %v5399_v22 = vsel %vm3828_vm12, %v5396_v13, %v5398_v7  ;;  %v5397_v41 = vsel %vm3828_vm12, %v5395_v9, %v5396_v13  ;;  %v5459_v55 = vsel %vm2066_vm11, %v12861_v0, %v5304_v53 }
 0x63f   : > { %v5545_v25 = vrot.slane %v5543_v2, 1  ;;  %v5548_v21 = vrot.slane %v5546_v18, 2  ;;  %v5557_v48 = vor.u32 %v5556_v56, %v5553_v46  ;;  %v5575_v19 = vshrl.u32 %v5399_v22, 16 }
 0x640   : > { %v5578_v26 = vshll.u32 %v5399_v22, 16  ;;  %v5400_v2 = vrot.slane %v12872_v17, 3 }
 0x641   : > { %v13086_v51 = vpop.permute.xlu1 %5194  ;;  %v13099_v24 = vor.u32 %v5548_v21, %v5545_v25 }
 0x643   : > { %v5550_v8 = vsel %vm1310_vm3, %v5542_v29, %v13099_v24 }
 0x645   : > { %v5161_v61 = vpop.permute.xlu1 %5160 }
 0x646   : > { %v5414_v20 = vsel %vm2066_vm11, %v12738_v30, %v5161_v61 }
 0x649   : > { %v5382_v54 = vpop.permute.xlu1 %5381  ;;  %v5333_v57 = vpop.permute.xlu0 %5332 }
 0x64a   : > { %v5489_v27 = vsel %vm4555_vm5, %v5475_v28, %v5382_v54  ;;  %v5477_v18 = vsel %vm2238_vm15, %v5459_v55, %v5333_v57 }
 0x64b   : > { %v5558_v10 = vshrl.u32 %v5489_v27, 16  ;;  %v5561_v58 = vshll.u32 %v5489_v27, 16 }
 0x64d   : > { %v5560_v60 = vrot.slane %v5558_v10, 1  ;;  %v5563_v11 = vrot.slane %v5561_v58, 2 }
 0x64f   : > { %v13101_v32 = vor.u32 %v5563_v11, %v5560_v60  ;;  %v5567_v60 = vshrl.u32 %v5397_v41, 16  ;;  %v5570_v11 = vshll.u32 %v5397_v41, 16  ;;  %v5402_v41 = vrot.slane %v12901_v49, 3 }
 0x651   : > { %v5565_v62 = vsel %vm1310_vm3, %v5557_v48, %v13101_v32  ;;  %v5569_v22 = vrot.slane %v5567_v60, 1  ;;  %v5572_v9 = vrot.slane %v5570_v11, 2 }
 0x652   : > { %5883 = vmatprep.mubr.bf16.mxu0 %v5565_v62 }
 0x653   : > { %5884 = vmatmul.mubr.bf16.vlgmr.msra.gmra.mrb[84].mxu0 %v5550_v8  ;;  %v5577_v8 = vrot.slane %v5575_v19, 1 }
 0x656   : > { %v5341_v34 = vpop.permute.xlu0 %5340 }
 0x657   : > { %v5203_v33 = vpop.permute.xlu1 %5202 }
 0x65a   : > { %v5312_v23 = vpop.permute.xlu0 %5311 }
 0x65b   : > { %v5471_v50 = vsel %vm2066_vm11, %v12971_v15, %v5312_v23  ;;  %v5235_v1 = vpop.permute.xlu1 %5234 }
 0x65c   : > { %v5485_v40 = vsel %vm2238_vm15, %v5471_v50, %v5341_v34  ;;  %v5580_v34 = vrot.slane %v5578_v26, 2 }
 0x65e   : > { %v5392_v6 = vpop.permute.xlu0 %5391 }
 0x65f   : > { %v5499_v36 = vsel %vm4555_vm5, %v5485_v40, %v5392_v6  ;;  %v5169_v52 = vpop.permute.xlu1 %5168 }
 0x660   : > { %v5691_v42 = vshrl.u32 %v5499_v36, 16  ;;  %v5694_v47 = vshll.u32 %v5499_v36, 16  ;;  %v5422_v15 = vsel %vm2066_vm11, %v12916_v5, %v5169_v52  ;;  %v5428_v5 = vsel %vm2238_vm15, %v5414_v20, %v13086_v51  ;;  %v9843_v51 = vld [vmem:[%s14121_s28 + $0x80] sm:$0xff]  }
 0x661   : > { %v5436_v59 = vsel %vm2238_vm15, %v5422_v15, %v5203_v33  ;;  %v5401_v33 = vsel %vm3828_vm12, %v5398_v7, %v5400_v2 }
 0x662   : > { %v5693_v43 = vrot.slane %v5691_v42, 1  ;;  %v5696_v3 = vrot.slane %v5694_v47, 2  ;;  %v5450_v38 = vsel %vm4555_vm5, %v5436_v59, %v5235_v1  ;;  %v5384_v30 = vpop.permute.xlu0 %5383  ;;  %v9844_v1 = vld [vmem:[%s14121_s28 + $0x88] sm:$0xff]   ;;  %v5600_v40 = vshrl.u32 %v5401_v33, 16 }
 0x663   : > { %v5683_v61 = vshrl.u32 %v5450_v38, 16  ;;  %v5686_v14 = vshll.u32 %v5450_v38, 16  ;;  %v5491_v31 = vsel %vm4555_vm5, %v5477_v18, %v5384_v30  ;;  %v5227_v0 = vpop.permute.xlu1 %5226  ;;  %v5603_v36 = vshll.u32 %v5401_v33, 16 }
 0x664   : > { %v5591_v28 = vshrl.u32 %v5491_v31, 16  ;;  %v5594_v54 = vshll.u32 %v5491_v31, 16  ;;  %v5442_v25 = vsel %vm4555_vm5, %v5428_v5, %v5227_v0  ;;  %v13130_v21 = vor.u32 %v5696_v3, %v5693_v43 }
 0x665   : > { %v5685_v27 = vrot.slane %v5683_v61, 1  ;;  %v5688_v46 = vrot.slane %v5686_v14, 2  ;;  %v5583_v56 = vshrl.u32 %v5442_v25, 16  ;;  %v5586_v10 = vshll.u32 %v5442_v25, 16 }
 0x666   : > { %v5593_v58 = vrot.slane %v5591_v28, 1  ;;  %v5596_v35 = vrot.slane %v5594_v54, 2  ;;  %v5306_v37 = vpop.permute.xlu0 %5305  ;;  %5931 = vmatprep.mubr.bf16.mxu1 %v13130_v21  ;;  %v5573_v47 = vor.u32 %v5572_v9, %v5569_v22  ;;  %v5602_v59 = vrot.slane %v5600_v40, 1 }
 0x667   : > { %v13136_v53 = vor.u32 %v5688_v46, %v5685_v27  ;;  %v5585_v48 = vrot.slane %v5583_v56, 1  ;;  %v5588_v29 = vrot.slane %v5586_v10, 2  ;;  %v5163_v62 = vpop.permute.xlu1 %5162  ;;  %v5462_v52 = vsel %vm2066_vm11, %v12899_v16, %v5306_v37 }
 0x668   : > { %v5597_v57 = vor.u32 %v5596_v35, %v5593_v58  ;;  %v5416_v19 = vsel %vm2066_vm11, %v12808_v63, %v5163_v62  ;;  %v5605_v26 = vrot.slane %v5603_v36, 2  ;;  %v5403_v30 = vsel %vm3828_vm12, %v5400_v2, %v5402_v41 }
 0x669   : > { %v5589_v23 = vor.u32 %v5588_v29, %v5585_v48  ;;  %5932 = vmatmul.mubr.bf16.vlgmr.msra.gmra.mrb[84].mxu1 %v13136_v53  ;;  %v5625_v27 = vshrl.u32 %v5403_v30, 16  ;;  %v5628_v46 = vshll.u32 %v5403_v30, 16  ;;  %v5404_v56 = vrot.slane %v12908_v45, 3 }
 0x66a   : > { %v5335_v13 = vpop.permute.xlu0 %5334  ;;  %9595 = vmatpush3.bf16.msra.mxu1 %v9843_v51  ;;  %v5598_v50 = vsel %vm1310_vm3, %v13101_v32, %v5597_v57  ;;  %9598 = vmatprep.mubr.msk.bf16.mxu1 %vm14124_vm14, %v10002_v4  ;;  %v5581_v32 = vor.u32 %v5580_v34, %v5577_v8  ;;  %v5606_v54 = vor.u32 %v5605_v26, %v5602_v59  ;;  %v5100_v51 = vld [vmem:[#allocation4 + $0x38] sm:$0x7f] }
 0x66b   : > { %5891 = vmatprep.mubr.bf16.mxu0 %v5598_v50  ;;  %v5197_v6 = vpop.permute.xlu1 %5196  ;;  %v5590_v7 = vsel %vm1310_vm3, %v13099_v24, %v5589_v23  ;;  %9596 = vmatprep.subr.bf16.mxu1 %v10002_v4  ;;  %v5479_v20 = vsel %vm2238_vm15, %v5462_v52, %v5335_v13  ;;  %v5627_v11 = vrot.slane %v5625_v27, 1  ;;  %v5630_v48 = vrot.slane %v5628_v46, 2 }
 0x66c   : > { %5892 = vmatmul.mubr.bf16.gmra.mrb[88].mxu0 %v5590_v7  ;;  %v5430_v24 = vsel %vm2238_vm15, %v5416_v19, %v5197_v6  ;;  %v5582_v3 = vsel %vm1310_vm3, %v5573_v47, %v5581_v32  ;;  %v5607_v60 = vsel %vm1310_vm3, %v5581_v32, %v5606_v54  ;;  %v5405_v29 = vsel %vm3828_vm12, %v5402_v41, %v5404_v56 }
 0x66d   : > { %v5650_v33 = vshrl.u32 %v5405_v29, 16  ;;  %v5631_v13 = vor.u32 %v5630_v48, %v5627_v11  ;;  %v5653_v50 = vshll.u32 %v5405_v29, 16 }
 0x66e   : > { %v5386_v42 = vpop.permute.xlu0 %5385  ;;  %9597 = vmatpush3.bf16.msra.mxu1 %v9844_v1 }
 0x66f   : > { %v5493_v15 = vsel %vm4555_vm5, %v5479_v20, %v5386_v42  ;;  %v5229_v55 = vpop.permute.xlu1 %5228  ;;  %v5652_v41 = vrot.slane %v5650_v33, 1  ;;  %v5632_v42 = vsel %vm1310_vm3, %v5606_v54, %v5631_v13  ;;  %v5655_v47 = vrot.slane %v5653_v50, 2 }
 0x670   : > { %v5616_v18 = vshrl.u32 %v5493_v15, 16  ;;  %v5619_v43 = vshll.u32 %v5493_v15, 16  ;;  %v5444_v16 = vsel %vm4555_vm5, %v5430_v24, %v5229_v55 }
 0x671   : > { %v5608_v38 = vshrl.u32 %v5444_v16, 16  ;;  %v5611_v63 = vshll.u32 %v5444_v16, 16  ;;  %9599 = vmatmul.mubr.msk.bf16.vlgmr.msra.gmra.mrb[88].mxu1 %vm2066_vm11, %v5582_v3  ;;  %v5656_v16 = vor.u32 %v5655_v47, %v5652_v41 }
 0x672   : > { %v5618_v61 = vrot.slane %v5616_v18, 1  ;;  %v5621_v14 = vrot.slane %v5619_v43, 2  ;;  %v5308_v31 = vpop.permute.xlu0 %5307  ;;  %9602 = vmatprep.mubr.msk.bf16.mxu1 %vm14124_vm14, %v10002_v4 }
 0x673   : > { %v5610_v5 = vrot.slane %v5608_v38, 1  ;;  %v5613_v0 = vrot.slane %v5611_v63, 2  ;;  %v5165_v28 = vpop.permute.xlu1 %5164  ;;  %v5465_v1 = vsel %vm2066_vm11, %v12957_v44, %v5308_v31 }
 0x674   : > { %v5622_v25 = vor.u32 %v5621_v14, %v5618_v61  ;;  %v5418_v45 = vsel %vm2066_vm11, %v12872_v17, %v5165_v28 }
 0x675   : > { %v5614_v10 = vor.u32 %v5613_v0, %v5610_v5 }
 0x676   : > { %v5337_v58 = vpop.permute.xlu0 %5336  ;;  %v5623_v35 = vsel %vm1310_vm3, %v5597_v57, %v5622_v25  ;;  %v13178_v57 = vrot.slane %v5100_v51, 3 }
 0x677   : > { %5899 = vmatprep.mubr.bf16.mxu0 %v5623_v35  ;;  %v5199_v2 = vpop.permute.xlu1 %5198  ;;  %v5615_v37 = vsel %vm1310_vm3, %v5589_v23, %v5614_v10  ;;  %v5481_v17 = vsel %vm2238_vm15, %v5465_v1, %v5337_v58 }
 0x678   : > { %5900 = vmatmul.mubr.bf16.gmra.mrb[92].mxu0 %v5615_v37  ;;  %v5432_v8 = vsel %vm2238_vm15, %v5418_v45, %v5199_v2  ;;  %v5407_v7 = vsel %vm3828_vm12, %v5404_v56, %v13178_v57  ;;  %v5700_v29 = vshrl.u32 %v13178_v57, 16  ;;  %v5703_v45 = vshll.u32 %v13178_v57, 16 }
 0x679   : > { %9603 = vmatmul.mubr.msk.bf16.gmra.mrb[92].mxu1 %vm2066_vm11, %v5607_v60  ;;  %v5675_v55 = vshrl.u32 %v5407_v7, 16  ;;  %v5678_v18 = vshll.u32 %v5407_v7, 16  ;;  %vm6218_vm12 = vcmask 523265  }
 0x67a   : > { %v5310_v62 = vpop.permute.xlu0 %5309  ;;  %9606 = vmatprep.mubr.msk.bf16.mxu1 %vm14124_vm14, %v10002_v4  ;;  %v5705_v33 = vrot.slane %v5703_v45, 2  ;;  %6219 = vst.msk [vmem:[#allocation5 + $0x38] sm:$0xfe] %vm6218_vm12, %v10004_v39  ;;  %vm6412_vm12 = vcmask 818176  }
 0x67b   : > { %v5231_v34 = vpop.permute.xlu1 %5230  ;;  %v5468_v3 = vsel %vm2066_vm11, %v12960_v12, %v5310_v62  ;;  %v5677_v14 = vrot.slane %v5675_v55, 1  ;;  %v5680_v54 = vrot.slane %v5678_v18, 2  ;;  %v13240_v55 = vld [vmem:[%s14055_s11] ss:$0 sm:$0xff] }
 0x67c   : > { %v5446_v23 = vsel %vm4555_vm5, %v5432_v8, %v5231_v34  ;;  %v5702_v34 = vrot.slane %v5700_v29, 1 }
 0x67d   : > { %v5633_v22 = vshrl.u32 %v5446_v23, 16  ;;  %v5636_v9 = vshll.u32 %v5446_v23, 16  ;;  %v5681_v51 = vor.u32 %v5680_v54, %v5677_v14 }
 0x67e   : > { %v5388_v6 = vpop.permute.xlu0 %5387  ;;  %v5706_v23 = vor.u32 %v5705_v33, %v5702_v34 }
 0x67f   : > { %v5635_v40 = vrot.slane %v5633_v22, 1  ;;  %v5638_v36 = vrot.slane %v5636_v9, 2  ;;  %v5495_v32 = vsel %vm4555_vm5, %v5481_v17, %v5388_v6  ;;  %v5167_v52 = vpop.permute.xlu1 %5166  ;;  %v5682_v8 = vsel %vm1310_vm3, %v5656_v16, %v5681_v51 }
 0x680   : > { %v5641_v19 = vshrl.u32 %v5495_v32, 16  ;;  %v5644_v20 = vshll.u32 %v5495_v32, 16  ;;  %v5420_v38 = vsel %vm2066_vm11, %v12901_v49, %v5167_v52  ;;  %v5657_v49 = vsel %vm1310_vm3, %v5631_v13, %v5656_v16 }
 0x681   : > { %9607 = vmatmul.mubr.msk.bf16.gmra.mrb[96].mxu1 %vm2066_vm11, %v5632_v42  ;;  %v5639_v59 = vor.u32 %v5638_v36, %v5635_v40  ;;  %v5707_v57 = vsel %vm1310_vm3, %v5681_v51, %v5706_v23 }
 0x682   : > { %v5643_v44 = vrot.slane %v5641_v19, 1  ;;  %v5646_v24 = vrot.slane %v5644_v20, 2  ;;  %v5339_v15 = vpop.permute.xlu0 %5338  ;;  %9610 = vmatprep.mubr.msk.bf16.mxu1 %vm14124_vm14, %v10002_v4 }
 0x683   : > { %v5201_v26 = vpop.permute.xlu1 %5200  ;;  %v5483_v63 = vsel %vm2238_vm15, %v5468_v3, %v5339_v15  ;;  %v5640_v28 = vsel %vm1310_vm3, %v5614_v10, %v5639_v59 }
 0x684   : > { %v5647_v43 = vor.u32 %v5646_v24, %v5643_v44  ;;  %v5434_v31 = vsel %vm2238_vm15, %v5420_v38, %v5201_v26  ;;  %v13235_v44 = vld [vmem:[%s14125_s10] ss:$0 sm:$0xff] }
 0x686   : > { %v5390_v30 = vpop.permute.xlu0 %5389  ;;  %v5648_v61 = vsel %vm1310_vm3, %v5622_v25, %v5647_v43 }
 0x687   : > { %v5497_v5 = vsel %vm4555_vm5, %v5483_v63, %v5390_v30  ;;  %5907 = vmatprep.mubr.bf16.mxu0 %v5648_v61  ;;  %v5233_v0 = vpop.permute.xlu1 %5232 }
 0x688   : > { %v5666_v27 = vshrl.u32 %v5497_v5, 16  ;;  %v5669_v12 = vshll.u32 %v5497_v5, 16  ;;  %v5448_v46 = vsel %vm4555_vm5, %v5434_v31, %v5233_v0  ;;  %5908 = vmatmul.mubr.bf16.gmra.mrb[96].mxu0 %v5640_v28  ;;  %vm6216_vm5 = vcmask 516096  }
 0x689   : > { %v5658_v56 = vshrl.u32 %v5448_v46, 16  ;;  %v5661_v58 = vshll.u32 %v5448_v46, 16  ;;  %9611 = vmatmul.mubr.msk.bf16.gmra.mrb[100].mxu1 %vm2066_vm11, %v5657_v49  ;;  %6483 = vst.msk [vmem:[#allocation6 + $0x4] sm:$0x1] %vm6216_vm5, %v10004_v39  ;;  %7390 = vst.msk [vmem:[#allocation7 + $0x4] sm:$0x1] %vm6216_vm5, %v10004_v39 }
 0x68a   : > { %v5668_v25 = vrot.slane %v5666_v27, 1  ;;  %v5671_v35 = vrot.slane %v5669_v12, 2  ;;  %9614 = vmatprep.mubr.msk.bf16.mxu1 %vm14124_vm14, %v10002_v4 }
 0x68b   : > { %v5660_v2 = vrot.slane %v5658_v56, 1  ;;  %v5663_v37 = vrot.slane %v5661_v58, 2 }
 0x68c   : > { %v5672_v10 = vor.u32 %v5671_v35, %v5668_v25 }
 0x68d   : > { %v5664_v60 = vor.u32 %v5663_v37, %v5660_v2 }
 0x68e   : > { %v5673_v11 = vsel %vm1310_vm3, %v5647_v43, %v5672_v10  ;;  %v5698_v48 = vsel %vm1310_vm3, %v5672_v10, %v13130_v21 }
 0x68f   : > { %5915 = vmatprep.mubr.bf16.mxu0 %v5673_v11  ;;  %v5665_v62 = vsel %vm1310_vm3, %v5639_v59, %v5664_v60  ;;  %v5690_v21 = vsel %vm1310_vm3, %v5664_v60, %v13136_v53 }
 0x690   : > { %5916 = vmatmul.mubr.bf16.gmra.mrb[100].mxu0 %v5665_v62 }
 0x691   : > { %5923 = vmatprep.mubr.bf16.mxu0 %v5698_v48  ;;  %9615 = vmatmul.mubr.msk.bf16.gmra.mrb[104].mxu1 %vm2066_vm11, %v5682_v8 }
 0x692   : > { %9618 = vmatprep.mubr.msk.bf16.mxu1 %vm14124_vm14, %v10002_v4 }
 0x697   : > { %v6096_v38 = vpop.permute.xlu0 %6095 }
 0x698   : > { %5924 = vmatmul.mubr.bf16.gmra.mrb[104].mxu0 %v5690_v21  ;;  %v6101_v63 = vpop.permute.xlu1 %6100 }
 0x699   : > { %9619 = vmatmul.mubr.msk.bf16.gmra.mrb[108].mxu1 %vm2066_vm11, %v5707_v57  ;;  %9640 = vmatprep.mubr.msk.bf16.mxu0 %vm14124_vm14, %v10002_v4 }
 0x69a   : > { %9622 = vmatprep.mubr.msk.bf16.mxu1 %vm14124_vm14, %v10002_v4 }
 0x69b   : > { %v6106_v45 = vpop.permute.xlu0 %6105 }
 0x69c   : > { %v6111_v8 = vpop.permute.xlu1 %6110 }
 0x6a1   : > { %9623 = vmatmul.mubr.msk.bf16.gmra.mrb[112].mxu1 %vm2066_vm11, %v5706_v23  ;;  %vm6208_vm11 = vcmask 523271  }
 0x726   : > { %v9229_v53 = vpop.f32.mrb[84].mxu0 }
 0x727   : > { %v9230_v13 = vpop.f32.mrb[85].mxu0 }
 0x728   : > { %v9231_v50 = vadd.f32 %v9230_v13, %v9229_v53  ;;  %v9232_v1 = vpop.f32.mrb[86].mxu0 }
 0x729   : > { %v9233_v22 = vpop.f32.mrb[87].mxu0 }
 0x72a   : > { %v9234_v9 = vadd.f32 %v9233_v22, %v9232_v1 }
 0x73c   : > { %v9265_v17 = vpop.f32.mrb[84].mxu1 }
 0x73d   : > { %v9266_v6 = vpop.f32.mrb[85].mxu1 }
 0x73e   : > { %v13230_v7 = vadd.f32 %v9266_v6, %v9265_v17  ;;  %v9268_v40 = vpop.f32.mrb[86].mxu1  ;;  %v6116_v6 = vpop.permute.xlu0 %6115 }
 0x73f   : > { %v9235_v36 = vpop.f32.mrb[88].mxu0  ;;  %v9269_v32 = vpop.f32.mrb[87].mxu1 }
 0x740   : > { %v9236_v52 = vpop.f32.mrb[89].mxu0  ;;  %v6121_v40 = vpop.permute.xlu1 %6120 }
 0x741   : > { %v9237_v41 = vadd.f32 %v9236_v52, %v9235_v36  ;;  %v9238_v19 = vpop.f32.mrb[90].mxu0 }
 0x742   : > { %v9239_v20 = vpop.f32.mrb[91].mxu0 }
 0x743   : > { %v9240_v42 = vadd.f32 %v9239_v20, %v9238_v19 }
 0x744   : > { %v5973_v47 = vpop.f32.mrb[88].mxu1 }
 0x745   : > { %v5974_v24 = vadd.f32 %v9231_v50, %v5973_v47  ;;  %v9600_v15 = vpop.f32.mrb[89].mxu1 }
 0x746   : > { %v5976_v59 = vpop.f32.mrb[90].mxu1 }
 0x747   : > { %v6034_v26 = vmul.f32 %v13235_v44, %v5974_v24  ;;  %v5977_v18 = vadd.f32 %v9234_v9, %v5976_v59  ;;  %v9601_v43 = vpop.f32.mrb[91].mxu1 }
 0x749   : > { %v6054_v16 = vadd.f32 %v13240_v55, %v6034_v26  ;;  %v6035_v3 = vmul.f32 %v13235_v44, %v5977_v18 }
 0x74b   : > { %v6067_v30 = vmax.f32 %v6054_v16, 0.0  ;;  %v6055_v61 = vadd.f32 %v13240_v55, %v6035_v3  ;;  %v9241_v14 = vpop.f32.mrb[92].mxu0 }
 0x74c   : > { %v9242_v31 = vpop.f32.mrb[93].mxu0  ;;  %v5981_v5 = vpop.f32.mrb[92].mxu1 }
 0x74d   : > { %v6068_v0 = vmax.f32 %v6055_v61, 0.0  ;;  %v9243_v28 = vadd.f32 %v9242_v31, %v9241_v14  ;;  %v5982_v54 = vadd.f32 %v9237_v41, %v5981_v5  ;;  %v9244_v27 = vpop.f32.mrb[94].mxu0  ;;  %v9604_v12 = vpop.f32.mrb[93].mxu1  ;;  %v6158_v46 = vmul.f32 %v6096_v38, %v6067_v30 }
 0x74e   : > { %v9245_v49 = vpop.f32.mrb[95].mxu0  ;;  %v5984_v56 = vpop.f32.mrb[94].mxu1 }
 0x74f   : > { %v6159_v58 = vmul.f32 %v6101_v63, %v6068_v0  ;;  %v6036_v25 = vmul.f32 %v13235_v44, %v5982_v54  ;;  %v9246_v35 = vadd.f32 %v9245_v49, %v9244_v27  ;;  %v5985_v2 = vadd.f32 %v9240_v42, %v5984_v56  ;;  %v9605_v37 = vpop.f32.mrb[95].mxu1 }
 0x751   : > { %v6173_v10 = vpack.c.bf16 %v6159_v58, %v6158_v46  ;;  %v6056_v51 = vadd.f32 %v13240_v55, %v6036_v25  ;;  %v6037_v60 = vmul.f32 %v13235_v44, %v5985_v2 }
 0x753   : > { %v6187_v11 = vrot.slane %v6173_v10, 1  ;;  %v6069_v48 = vmax.f32 %v6056_v51, 0.0  ;;  %v6057_v29 = vadd.f32 %v13240_v55, %v6037_v60 }
 0x754   : > { %v5989_v62 = vpop.f32.mrb[96].mxu1 }
 0x755   : > { %6209 = vst.msk [vmem:[#allocation5] sm:$0x80] %vm6208_vm11, %v6187_v11  ;;  %v6070_v34 = vmax.f32 %v6057_v29, 0.0  ;;  %v5990_v33 = vadd.f32 %v9243_v28, %v5989_v62  ;;  %v9608_v23 = vpop.f32.mrb[97].mxu1  ;;  %v6160_v57 = vmul.f32 %v6106_v45, %v6069_v48  ;;  %v6131_v48 = vpop.permute.xlu1 %6130  ;;  %vm6527_vm11 = vcmask 519171  }
 0x756   : > { %v5992_v21 = vpop.f32.mrb[98].mxu1  ;;  %6528 = vst.msk [vmem:[#allocation6 + $0x14] sm:$0x8] %vm6527_vm11, %v10004_v39  ;;  %7430 = vst.msk [vmem:[#allocation7 + $0x14] sm:$0x8] %vm6527_vm11, %v10004_v39 }
 0x757   : > { %v6161_v53 = vmul.f32 %v6111_v8, %v6070_v34  ;;  %v6038_v13 = vmul.f32 %v13235_v44, %v5990_v33  ;;  %v5993_v50 = vadd.f32 %v9246_v35, %v5992_v21  ;;  %v9609_v1 = vpop.f32.mrb[99].mxu1  ;;  %vm14137_vm11 = vsmask.f32 1280 }
 0x759   : > { %v6174_v22 = vpack.c.bf16 %v6161_v53, %v6160_v57  ;;  %v6058_v9 = vadd.f32 %v13240_v55, %v6038_v13  ;;  %v6039_v17 = vmul.f32 %v13235_v44, %v5993_v50 }
 0x75b   : > { %v6188_v36 = vrot.slane %v6174_v22, 1  ;;  %v6071_v32 = vmax.f32 %v6058_v9, 0.0  ;;  %v6059_v52 = vadd.f32 %v13240_v55, %v6039_v17  ;;  %v9247_v41 = vpop.f32.mrb[96].mxu0 }
 0x75c   : > { %v9248_v19 = vpop.f32.mrb[97].mxu0  ;;  %v5997_v20 = vpop.f32.mrb[100].mxu1 }
 0x75d   : > { %v6189_v42 = vsel %vm1164_vm0, %v6187_v11, %v6188_v36  ;;  %v6072_v47 = vmax.f32 %v6059_v52, 0.0  ;;  %v9249_v24 = vadd.f32 %v9248_v19, %v9247_v41  ;;  %v9250_v15 = vpop.f32.mrb[98].mxu0  ;;  %v9612_v59 = vpop.f32.mrb[101].mxu1  ;;  %v6162_v43 = vmul.f32 %v6116_v6, %v6071_v32 }
 0x75e   : > { %6210 = vst.msk [vmem:[#allocation5 + $0x8] sm:$0xff] %vm2238_vm15, %v6189_v42  ;;  %v9251_v26 = vpop.f32.mrb[99].mxu0  ;;  %v6000_v18 = vpop.f32.mrb[102].mxu1 }
 0x75f   : > { %v6163_v16 = vmul.f32 %v6121_v40, %v6072_v47  ;;  %v5998_v3 = vadd.f32 %v9249_v24, %v5997_v20  ;;  %v9252_v38 = vadd.f32 %v9251_v26, %v9250_v15  ;;  %v9613_v63 = vpop.f32.mrb[103].mxu1  ;;  %v6126_v11 = vpop.permute.xlu0 %6125 }
 0x760   : > { %v6141_v26 = vpop.permute.xlu1 %6140 }
 0x761   : > { %v6175_v30 = vpack.c.bf16 %v6163_v16, %v6162_v43  ;;  %v6040_v61 = vmul.f32 %v13235_v44, %v5998_v3  ;;  %v6001_v14 = vadd.f32 %v9252_v38, %v6000_v18 }
 0x763   : > { %v6190_v31 = vrot.slane %v6175_v30, 1  ;;  %v6060_v5 = vadd.f32 %v13240_v55, %v6040_v61  ;;  %v6041_v0 = vmul.f32 %v13235_v44, %v6001_v14  ;;  %v9253_v28 = vpop.f32.mrb[100].mxu0  ;;  %v6136_v59 = vpop.permute.xlu0 %6135 }
 0x764   : > { %v9254_v54 = vpop.f32.mrb[101].mxu0  ;;  %v6005_v27 = vpop.f32.mrb[104].mxu1 }
 0x765   : > { %v6191_v12 = vsel %vm1164_vm0, %v6188_v36, %v6190_v31  ;;  %v6073_v46 = vmax.f32 %v6060_v5, 0.0  ;;  %v6061_v49 = vadd.f32 %v13240_v55, %v6041_v0  ;;  %v9255_v56 = vadd.f32 %v9254_v54, %v9253_v28  ;;  %v9256_v58 = vpop.f32.mrb[102].mxu0  ;;  %v9616_v25 = vpop.f32.mrb[105].mxu1  ;;  %v13262_v29 = vld [vmem:[#allocation5 + $0x8] sm:$0xf0] }
 0x766   : > { %6211 = vst.msk [vmem:[#allocation5 + $0x10] sm:$0xff] %vm2238_vm15, %v6191_v12  ;;  %v9257_v35 = vpop.f32.mrb[103].mxu0  ;;  %v6008_v2 = vpop.f32.mrb[106].mxu1  ;;  %v6310_v53 = vshll.u32 %v13262_v29, 16  ;;  %v13269_v36 = vld [vmem:[#allocation5 + $0x8] sm:$0xff]  ;;  %v6308_v16 = vshrl.u32 %v13262_v29, 16 }
 0x767   : > { %v6074_v37 = vmax.f32 %v6061_v49, 0.0  ;;  %v6006_v10 = vadd.f32 %v9255_v56, %v6005_v27  ;;  %v9258_v51 = vadd.f32 %v9257_v35, %v9256_v58  ;;  %v9617_v60 = vpop.f32.mrb[107].mxu1  ;;  %v6164_v45 = vmul.f32 %v6126_v11, %v6073_v46  ;;  %v6146_v56 = vpop.permute.xlu0 %6145 }
 0x768   : > { %v6312_v15 = vrot.slane %v6310_v53, 1  ;;  %v6236_v43 = vshll.u32 %v13269_v36, 16  ;;  %v6240_v11 = vshrl.u32 %v13269_v36, 16 }
 0x769   : > { %v6165_v62 = vmul.f32 %v6131_v48, %v6074_v37  ;;  %v6042_v8 = vmul.f32 %v13235_v44, %v6006_v10  ;;  %v6009_v34 = vadd.f32 %v9258_v51, %v6008_v2  ;;  %v6220_v2 = vld [vmem:[#allocation5] sm:$0x80] }
 0x76a   : > { %v6313_v5 = vor.u32 %v6312_v15, %v6308_v16  ;;  %v6238_v46 = vrot.slane %v6236_v43, 1 }
 0x76b   : > { %v6176_v33 = vpack.c.bf16 %v6165_v62, %v6164_v45  ;;  %v6062_v23 = vadd.f32 %v13240_v55, %v6042_v8  ;;  %v6043_v21 = vmul.f32 %v13235_v44, %v6009_v34  ;;  %v9259_v57 = vpop.f32.mrb[104].mxu0  ;;  %v6151_v8 = vpop.permute.xlu1 %6150 }
 0x76c   : > { %v9260_v13 = vpop.f32.mrb[105].mxu0  ;;  %v6013_v50 = vpop.f32.mrb[108].mxu1 }
 0x76d   : > { %v6192_v1 = vrot.slane %v6176_v33, 1  ;;  %v6075_v22 = vmax.f32 %v6062_v23, 0.0  ;;  %v6063_v9 = vadd.f32 %v13240_v55, %v6043_v21  ;;  %v9261_v17 = vadd.f32 %v9260_v13, %v9259_v57  ;;  %v9262_v6 = vpop.f32.mrb[106].mxu0  ;;  %v9620_v40 = vpop.f32.mrb[109].mxu1  ;;  %v6222_v32 = vld [vmem:[#allocation5 + $0x10] sm:$0xff] }
 0x76e   : > { %v9263_v52 = vpop.f32.mrb[107].mxu0  ;;  %v6016_v41 = vpop.f32.mrb[110].mxu1  ;;  %v6244_v19 = vshll.u32 %v6222_v32, 16  ;;  %v6248_v48 = vshrl.u32 %v6222_v32, 16  ;;  %v6233_v33 = vshrl.u32 %v6220_v2, 16  ;;  %v6242_v23 = vor.u32 %v6240_v11, %v6238_v46 }
 0x76f   : > { %v6193_v20 = vsel %vm1164_vm0, %v6190_v31, %v6192_v1  ;;  %v6076_v42 = vmax.f32 %v6063_v9, 0.0  ;;  %v6014_v47 = vadd.f32 %v9261_v17, %v6013_v50  ;;  %v9621_v24 = vpop.f32.mrb[111].mxu1  ;;  %v9264_v18 = vadd.f32 %v9263_v52, %v9262_v6 }
 0x770   : > { %6212 = vst.msk [vmem:[#allocation5 + $0x18] sm:$0xff] %vm2238_vm15, %v6193_v20  ;;  %v6166_v3 = vmul.f32 %v6136_v59, %v6075_v22  ;;  %v6246_v30 = vrot.slane %v6244_v19, 1  ;;  %v6239_v50 = vsel %vm951_vm2, %v6233_v33, %v6238_v46 }
 0x771   : > { %v6167_v38 = vmul.f32 %v6141_v26, %v6076_v42  ;;  %v6044_v63 = vmul.f32 %v13235_v44, %v6014_v47  ;;  %v6017_v61 = vadd.f32 %v9264_v18, %v6016_v41 }
 0x772   : > { %v6314_v49 = vsel %vm951_vm2, %v6313_v5, %v6246_v30  ;;  %v6250_v53 = vor.u32 %v6248_v48, %v6246_v30  ;;  %v6247_v9 = vsel %vm951_vm2, %v6242_v23, %v6246_v30 }
 0x773   : > { %v6177_v14 = vpack.c.bf16 %v6167_v38, %v6166_v3  ;;  %v6064_v31 = vadd.f32 %v13240_v55, %v6044_v63  ;;  %v6045_v0 = vmul.f32 %v13235_v44, %v6017_v61  ;;  %v6326_v62 = vmax.bf16 %v6314_v49, %v13262_v29 }
 0x774   : > { %v6021_v28 = vpop.f32.mrb[112].mxu1  ;;  %v6300_v19 = vmax.bf16 %v6247_v9, %v13269_v36 }
 0x775   : > { %v6194_v54 = vrot.slane %v6177_v14, 1  ;;  %v6022_v27 = vadd.f32 %v13230_v7, %v6021_v28  ;;  %v9624_v12 = vpop.f32.mrb[113].mxu1  ;;  %v6077_v58 = vmax.f32 %v6064_v31, 0.0  ;;  %v6065_v25 = vadd.f32 %v13240_v55, %v6045_v0 }
 0x776   : > { %v6024_v35 = vpop.f32.mrb[114].mxu1  ;;  %v6336_v6 = vrot.slane %v6326_v62, 5 }
 0x777   : > { %v6195_v37 = vsel %vm1164_vm0, %v6192_v1, %v6194_v54  ;;  %v6046_v10 = vmul.f32 %v13235_v44, %v6022_v27  ;;  %v9625_v51 = vpop.f32.mrb[115].mxu1  ;;  %v6223_v60 = vld [vmem:[#allocation5 + $0x18] sm:$0xff]  ;;  %v6078_v7 = vmax.f32 %v6065_v25, 0.0  ;;  %v6168_v21 = vmul.f32 %v6146_v56, %v6077_v58  ;;  %v6156_v1 = vpop.permute.xlu0 %6155 }
 0x778   : > { %6213 = vst.msk [vmem:[#allocation5 + $0x20] sm:$0xff] %vm2238_vm15, %v6195_v37  ;;  %v6252_v45 = vshll.u32 %v6223_v60, 16  ;;  %v6256_v15 = vshrl.u32 %v6223_v60, 16 }
 0x779   : > { %v6066_v34 = vadd.f32 %v13240_v55, %v6046_v10  ;;  %v6169_v57 = vmul.f32 %v6151_v8, %v6078_v7  ;;  %v6299_v55 = vmax.bf16 %v6239_v50, %v6220_v2 }
 0x77a   : > { %v6254_v44 = vrot.slane %v6252_v45, 1 }
 0x77b   : > { %v6079_v13 = vmax.f32 %v6066_v34, 0.0  ;;  %v6178_v22 = vpack.c.bf16 %v6169_v57, %v6168_v21  ;;  %v6357_v24 = vmax.bf16 %v6336_v6, %v6299_v55 }
 0x77c   : > { %v6255_v17 = vsel %vm951_vm2, %v6250_v53, %v6254_v44  ;;  %v6258_v16 = vor.u32 %v6256_v15, %v6254_v44 }
 0x77d   : > { %v6170_v29 = vmul.f32 %v6156_v1, %v6079_v13  ;;  %v6301_v40 = vmax.bf16 %v6255_v17, %v6222_v32  ;;  %v6196_v52 = vrot.slane %v6178_v22, 1  ;;  %v6391_v36 = vrot.slane %v6357_v24, 7 }
 0x77f   : > { %v6179_v41 = vpack.c.bf16 %v6170_v29, %v6170_v29  ;;  %v6337_v20 = vrot.slane %v6301_v40, 5  ;;  %v6224_v42 = vld [vmem:[#allocation5 + $0x20] sm:$0xff]  ;;  %v6197_v47 = vsel %vm1164_vm0, %v6194_v54, %v6196_v52 }
 0x780   : > { %v6260_v59 = vshll.u32 %v6224_v42, 16  ;;  %6214 = vst.msk [vmem:[#allocation5 + $0x28] sm:$0xff] %vm2238_vm15, %v6197_v47  ;;  %v6264_v0 = vshrl.u32 %v6224_v42, 16 }
 0x781   : > { %v6198_v26 = vrot.slane %v6179_v41, 1  ;;  %v6338_v18 = vsel %vm3221_vm10, %v6336_v6, %v6337_v20 }
 0x782   : > { %v6358_v43 = vmax.bf16 %v6338_v18, %v6300_v19  ;;  %v6262_v32 = vrot.slane %v6260_v59, 1 }
 0x783   : > { %v6199_v3 = vsel %vm1164_vm0, %v6196_v52, %v6198_v26  ;;  %6217 = vst.msk [vmem:[#allocation5 + $0x38] sm:$0x1] %vm6216_vm5, %v6198_v26  ;;  %vm14132_vm5 = vmmov %vm14130_vm4 }
 0x784   : > { %6215 = vst.msk [vmem:[#allocation5 + $0x30] sm:$0xff] %vm2238_vm15, %v6199_v3  ;;  %v6392_v38 = vrot.slane %v6358_v43, 7  ;;  %v6263_v63 = vsel %vm951_vm2, %v6258_v16, %v6262_v32  ;;  %v6266_v12 = vor.u32 %v6264_v0, %v6262_v32  ;;  %v9847_v0 = vld [vmem:[%s14057_s13 + $0x10] ss:$0 sps:$4 sm:$0x33]  }
 0x785   : > { %v6302_v30 = vmax.bf16 %v6263_v63, %v6223_v60 }
 0x786   : > { %v6393_v61 = vsel %vm14126_vm7, %v6391_v36, %v6392_v38  ;;  %vm6500_vm7 = vcmask 1044484  }
 0x787   : > { %9627 = vmatpush3.bf16.msra.mxu0 %v6393_v61  ;;  %v6339_v14 = vrot.slane %v6302_v30, 5  ;;  %v6225_v31 = vld [vmem:[#allocation5 + $0x28] sm:$0xff] }
 0x788   : > { %9628 = vmatprep.subr.bf16.mxu0 %v10002_v4  ;;  %v6268_v28 = vshll.u32 %v6225_v31, 16  ;;  %v6272_v25 = vshrl.u32 %v6225_v31, 16 }
 0x789   : > { %v6340_v5 = vsel %vm3221_vm10, %v6337_v20, %v6339_v14 }
 0x78a   : > { %v6359_v54 = vmax.bf16 %v6340_v5, %v6301_v40  ;;  %v6231_v27 = vld [vmem:[#allocation5 + $0x38] sm:$0x7f]  ;;  %v6270_v46 = vrot.slane %v6268_v28, 1  ;;  %v9855_v28 = vld [vmem:[%s14058_s14 + $0x40] sm:$0xff]  }
 0x78b   : > { %v6226_v49 = vld [vmem:[#allocation5 + $0x30] sm:$0xff]  ;;  %v6316_v56 = vshll.u32 %v6231_v27, 16  ;;  %v6228_v51 = vld [vmem:[#allocation5 + $0x38] sm:$0x3]  ;;  %v6320_v60 = vshrl.u32 %v6231_v27, 16  ;;  %9290 = vmatprep.subr.bf16.mxu1 %v9855_v28 }
 0x78c   : > { %v6394_v58 = vrot.slane %v6359_v54, 7  ;;  %v6276_v35 = vshll.u32 %v6226_v49, 16  ;;  %v6271_v2 = vsel %vm951_vm2, %v6266_v12, %v6270_v46  ;;  %v6280_v37 = vshrl.u32 %v6226_v49, 16  ;;  %v6230_v57 = vld [vmem:[#allocation5 + $0x38] sm:$0x3f]  ;;  %v9856_v54 = vld [vmem:[%s14058_s14] sm:$0xff]  }
 0x78d   : > { %v6318_v10 = vrot.slane %v6316_v56, 1  ;;  %v6303_v7 = vmax.bf16 %v6271_v2, %v6224_v42  ;;  %v6274_v48 = vor.u32 %v6272_v25, %v6270_v46  ;;  %v6284_v23 = vshll.u32 %v6228_v51, 16  ;;  %v6227_v16 = vld [vmem:[#allocation5 + $0x38] sm:$0x1]  ;;  %9291 = vmatpush3.bf16.msra.mxu1 %v9856_v54  ;;  %v9859_v46 = vld [vmem:[%s14058_s14 + $0x50] sm:$0xff]  }
 0x78e   : > { %v6395_v11 = vsel %vm14127_vm13, %v6392_v38, %v6394_v58  ;;  %v6278_v45 = vrot.slane %v6276_v35, 1  ;;  %v6288_v41 = vshrl.u32 %v6228_v51, 16  ;;  %v9846_v5 = vld [vmem:[%s14057_s13 + $0x8] sm:$0xff]   ;;  %vm6520_vm13 = vcmask 519169  }
 0x78f   : > { %9629 = vmatpush3.bf16.msra.mxu0 %v6395_v11  ;;  %v6322_v62 = vor.u32 %v6320_v60, %v6318_v10  ;;  %v6341_v8 = vrot.slane %v6303_v7, 5  ;;  %v6286_v9 = vrot.slane %v6284_v23, 1  ;;  %v9857_v27 = vld [vmem:[%s14058_s14 + $0x48] sm:$0xff]  }
 0x790   : > { %9630 = vmatprep.subr.bf16.mxu0 %v10002_v4  ;;  %v6279_v34 = vsel %vm951_vm2, %v6274_v48, %v6278_v45  ;;  %v6282_v33 = vor.u32 %v6280_v37, %v6278_v45  ;;  %v9858_v12 = vld [vmem:[%s14058_s14 + $0x8] sm:$0xff]   ;;  %9292 = vmatprep.subr.bf16.mxu1 %v9857_v27 }
 0x791   : > { %v6304_v21 = vmax.bf16 %v6279_v34, %v6225_v31  ;;  %v6342_v53 = vsel %vm3221_vm10, %v6339_v14, %v6341_v8  ;;  %v6328_v13 = vmax.bf16 %v6322_v62, %v6230_v57  ;;  %v6290_v15 = vor.u32 %v6288_v41, %v6286_v9  ;;  %v9845_v31 = vld [vmem:[%s14057_s13] sm:$0xff]   ;;  %9293 = vmatpush3.bf16.msra.mxu1 %v9858_v12 }
 0x792   : > { %v6319_v44 = vsel %vm951_vm2, %v6282_v33, %v6318_v10  ;;  %v6360_v50 = vmax.bf16 %v6342_v53, %v6302_v30  ;;  %v6287_v52 = vsel %vm951_vm2, %v6282_v33, %v6286_v9  ;;  %9294 = vmatprep.subr.bf16.mxu1 %v9859_v46  ;;  %v9862_v9 = vld [vmem:[%s14058_s14 + $0x18] sm:$0xff]   ;;  %v9867_v41 = vld [vmem:[%s14058_s14 + $0x20] sm:$0xff]  }
 0x793   : > { %v6343_v1 = vrot.slane %v6304_v21, 5  ;;  %v6327_v22 = vmax.bf16 %v6319_v44, %v6226_v49  ;;  %v6347_v55 = vrot.slane %v6328_v13, 5  ;;  %v6305_v59 = vmax.bf16 %v6287_v52, %v6226_v49  ;;  %v9860_v49 = vld [vmem:[%s14058_s14 + $0x10] sm:$0xff]   ;;  %v9861_v44 = vld [vmem:[%s14058_s14 + $0x58] sm:$0xff]  }
 0x794   : > { %v6396_v17 = vrot.slane %v6360_v50, 7  ;;  %v6306_v32 = vmax.bf16 %v6290_v15, %v6227_v16 }
 0x795   : > { %v6344_v6 = vsel %vm3221_vm10, %v6341_v8, %v6343_v1  ;;  %v6345_v29 = vrot.slane %v6327_v22, 5  ;;  %9295 = vmatpush3.bf16.msra.mxu1 %v9860_v49 }
 0x796   : > { %v6361_v40 = vmax.bf16 %v6344_v6, %v6303_v7  ;;  %v6397_v19 = vsel %vm14128_vm6, %v6394_v58, %v6396_v17  ;;  %v6364_v3 = vmax.bf16 %v6347_v55, %v6306_v32  ;;  %vm14133_vm6 = vmmov %vm14130_vm4  ;;  %v9864_v6 = vld [vmem:[%s14058_s14 + $0x80] sm:$0xff]   ;;  %9296 = vmatprep.subr.bf16.mxu1 %v9861_v44 }
 0x797   : > { %v6346_v20 = vsel %vm3221_vm10, %v6343_v1, %v6345_v29  ;;  %9631 = vmatpush3.bf16.msra.mxu0 %v6397_v19  ;;  %v6348_v24 = vsel %vm3221_vm10, %v6345_v29, %v6347_v55  ;;  %vm14131_vm10 = vmmov %vm14130_vm4  ;;  %v9865_v29 = vld [vmem:[%s14058_s14 + $0x60] sm:$0xff]  }
 0x798   : > { %v6398_v42 = vrot.slane %v6361_v40, 7  ;;  %v6362_v47 = vmax.bf16 %v6346_v20, %v6304_v21  ;;  %9632 = vmatprep.subr.bf16.mxu0 %v10002_v4  ;;  %v6363_v43 = vmax.bf16 %v6348_v24, %v6305_v59  ;;  %v6404_v63 = vrot.slane %v6364_v3, 7  ;;  %v9866_v40 = vld [vmem:[%s14058_s14 + $0xc8] sm:$0xff]  }
 0x799   : > { %9297 = vmatpush3.bf16.msra.mxu1 %v9862_v9 }
 0x79a   : > { %v6399_v26 = vsel %vm14129_vm9, %v6396_v17, %v6398_v42  ;;  %v6400_v18 = vrot.slane %v6362_v47, 7  ;;  %v6402_v38 = vrot.slane %v6363_v43, 7  ;;  %vm13363_vm9 = vmor %vm14133_vm6, %vm6500_vm7  ;;  %v9863_v17 = vld [vmem:[%s14058_s14 + $0xc0] sm:$0xff]   ;;  %9298 = vmatprep.subr.bf16.mxu1 %v9865_v29 }
 0x79b   : > { %9633 = vmatpush3.bf16.msra.mxu0 %v6399_v26  ;;  %vm14138_vm7 = vmmov %vm14137_vm11 }
 0x79c   : > { %9634 = vmatprep.subr.bf16.mxu0 %v10002_v4  ;;  %v6401_v36 = vsel %vm14130_vm4, %v6398_v42, %v6400_v18  ;;  %v6403_v30 = vsel %vm14131_vm10, %v6400_v18, %v6402_v38  ;;  %v6405_v61 = vsel %vm14132_vm5, %v6402_v38, %v6404_v63  ;;  %v9868_v42 = vld [vmem:[%s14058_s14 + $0x88] sm:$0xff]   ;;  %vm6525_vm4 = vcmask 518144   ;;  %vm14139_vm6 = vmmov %vm14132_vm5 }
 0x79d   : > { %v6423_v14 = vsel %vm3912_vm8, %v6405_v61, 0  ;;  %vm6481_vm8 = vcmask 519168   ;;  %9299 = vmatpush3.bf16.msra.mxu1 %v9867_v41  ;;  %v9869_v61 = vld [vmem:[%s14058_s14 + $0x68] sm:$0xff]   ;;  %vm6615_vm10 = vsmask.f32 256 }
 0x79e   : > { %6482 = vst.msk [vmem:[#allocation6] sm:$0xf] %vm6481_vm8, %v10004_v39  ;;  %6529 = vst.msk [vmem:[#allocation6 + $0x18] sm:$0xf] %vm6481_vm8, %v10004_v39  ;;  %9300 = vmatprep.subr.bf16.mxu1 %v9869_v61 }
 0x79f   : > { %9635 = vmatpush3.bf16.msra.mxu0 %v6401_v36  ;;  %7389 = vst.msk [vmem:[#allocation7] sm:$0xf] %vm6481_vm8, %v10004_v39  ;;  %7431 = vst.msk [vmem:[#allocation7 + $0x18] sm:$0xf] %vm6481_vm8, %v10004_v39 }
 0x7a0   : > { %9636 = vmatprep.subr.bf16.mxu0 %v10002_v4 }
 0x7a3   : > { %9637 = vmatpush3.bf16.msra.mxu0 %v6403_v30 }
 0x7a4   : > { %9638 = vmatprep.subr.bf16.mxu0 %v10002_v4 }
 0x7a5   : > { %v6535_v34 = vld [vmem:[#allocation6] sm:$0xc]  ;;  %v13409_v3 = vld [vmem:[#allocation6 + $0x18] sm:$0x3] }
 0x7a6   : > { %v13435_v12 = vcombine.low %v13409_v3, %v13409_v3 }
 0x7a7   : > { %9639 = vmatpush3.bf16.msra.mxu0 %v6423_v14  ;;  %v9870_v14 = vld [vmem:[%s14058_s14 + $0xd0] sm:$0xff]  }
 0x7a8   : > { %9324 = vmatprep.subr.bf16.mxu0 %v9863_v17  ;;  %v6677_v17 = vshll.u32 %v13435_v12, 16 }
 0x7aa   : > { %9641 = vmatmul.mubr.msk.bf16.vlgmr.msra.gmra.mrb[108].mxu0 %vm6412_vm12, %v9845_v31 }
 0x7ab   : > { %9644 = vmatprep.mubr.msk.bf16.mxu0 %vm14124_vm14, %v10002_v4  ;;  %9325 = vmatpush3.bf16.msra.mxu0 %v9864_v6  ;;  %v9877_v6 = vld [vmem:[%s14058_s14 + $0x78] sm:$0xff]  }
 0x7ac   : > { %9326 = vmatprep.subr.bf16.mxu0 %v9866_v40 }
 0x7af   : > { %9327 = vmatpush3.bf16.msra.mxu0 %v9868_v42  ;;  %v9880_v42 = vld [vmem:[%s14058_s14 + $0xa0] sm:$0xff]  }
 0x7b0   : > { %9328 = vmatprep.subr.bf16.mxu0 %v9870_v14 }
 0x7b2   : > { %9645 = vmatmul.mubr.msk.bf16.gmra.mrb[112].mxu0 %vm6412_vm12, %v9846_v5  ;;  %v9871_v5 = vld [vmem:[%s14058_s14 + $0x28] sm:$0xff]  }
 0x7b3   : > { %9648 = vmatprep.mubr.msk.bf16.mxu0 %vm14124_vm14, %v10002_v4  ;;  %9301 = vmatpush3.bf16.msra.mxu1 %v9871_v5 }
 0x7ba   : > { %9649 = vmatmul.mubr.msk.bf16.gmra.mrb[116].mxu0 %vm6412_vm12, %v9847_v0  ;;  %v9872_v0 = vld [vmem:[%s14058_s14 + $0x90] sm:$0xff]   ;;  %vm14136_vm12 = vmmov %vm14132_vm5 }
 0x7bb   : > { %9329 = vmatpush3.bf16.msra.mxu0 %v9872_v0  ;;  %v9882_v0 = vld [vmem:[%s14058_s14 + $0xa8] sm:$0xff]  }
 0x87d   : > { %v6459_v56 = vpop.f32.mrb[108].mxu0 }
 0x87e   : > { %v9088_v58 = vpack.c.bf16 %v6459_v56, %v6459_v56  ;;  %v9642_v25 = vpop.f32.mrb[109].mxu0 }
 0x87f   : > { %v6462_v35 = vpop.f32.mrb[110].mxu0 }
 0x880   : > { %v6502_v2 = vrot.slane %v9088_v58, 7  ;;  %v9089_v37 = vpack.c.bf16 %v6462_v35, %v6462_v35  ;;  %v9643_v10 = vpop.f32.mrb[111].mxu0  ;;  %v9873_v35 = vld [vmem:[%s14058_s14 + $0x70] sm:$0xff]  }
 0x881   : > { %9302 = vmatprep.subr.bf16.mxu1 %v9873_v35  ;;  %v6679_v35 = vrot.slane %v6677_v17, 7 }
 0x882   : > { %v6503_v60 = vrot.slane %v6502_v2, 4  ;;  %6521 = vst.msk [vmem:[#allocation6 + $0x4] sm:$0xe] %vm6520_vm13, %v6502_v2  ;;  %v6504_v11 = vrot.slane %v9089_v37, 7  ;;  %v9874_v2 = vld [vmem:[%s14058_s14 + $0xd8] sm:$0xff]   ;;  %v9875_v37 = vld [vmem:[%s14058_s14 + $0x30] sm:$0xff]  }
 0x883   : > { %9330 = vmatprep.subr.bf16.mxu0 %v9874_v2  ;;  %9303 = vmatpush3.bf16.msra.mxu1 %v9875_v37  ;;  %v9883_v2 = vld [vmem:[%s14058_s14 + $0xf0] sm:$0xff]  }
 0x884   : > { %v6505_v7 = vsel %vm13363_vm9, %v6503_v60, %v6504_v11  ;;  %v6506_v33 = vrot.slane %v6504_v11, 4  ;;  %9304 = vmatprep.subr.bf16.mxu1 %v9877_v6  ;;  %v6530_v6 = vld [vmem:[#allocation6] sm:$0xe] }
 0x885   : > { %6522 = vst.msk [vmem:[#allocation6 + $0x8] sm:$0xf] %vm6481_vm8, %v6505_v7  ;;  %v6467_v48 = vpop.f32.mrb[112].mxu0 }
 0x886   : > { %v9090_v45 = vpack.c.bf16 %v6467_v48, %v6467_v48  ;;  %v9646_v62 = vpop.f32.mrb[113].mxu0 }
 0x887   : > { %v6470_v8 = vpop.f32.mrb[114].mxu0  ;;  %v6674_v62 = vshrl.u32 %v13435_v12, 16 }
 0x888   : > { %v6507_v23 = vrot.slane %v9090_v45, 7  ;;  %v9091_v21 = vpack.c.bf16 %v6470_v8, %v6470_v8  ;;  %v9647_v57 = vpop.f32.mrb[115].mxu0  ;;  %v9876_v45 = vld [vmem:[%s14058_s14 + $0x98] sm:$0xff]  }
 0x889   : > { %v13371_v53 = vld [vmem:[#allocation6 + $0x4] sm:$0xf]  ;;  %9331 = vmatpush3.bf16.msra.mxu0 %v9876_v45 }
 0x88a   : > { %v6508_v13 = vsel %vm13363_vm9, %v6506_v33, %v6507_v23  ;;  %v6509_v50 = vrot.slane %v6507_v23, 4  ;;  %v6510_v1 = vrot.slane %v9091_v21, 7  ;;  %v13379_v22 = vcombine.low %v6535_v34, %v13371_v53  ;;  %v6538_v32 = vld [vmem:[#allocation6 + $0x4] sm:$0xe] }
 0x88b   : > { %6523 = vst.msk [vmem:[#allocation6 + $0xc] sm:$0xf] %vm6481_vm8, %v6508_v13  ;;  %v6540_v28 = vld [vmem:[#allocation6 + $0x4] sm:$0x8] }
 0x88c   : > { %v6511_v52 = vsel %vm13363_vm9, %v6509_v50, %v6510_v1  ;;  %v6532_v55 = vld [vmem:[#allocation6 + $0x8] sm:$0xf]  ;;  %v6562_v24 = vshll.u32 %v13379_v22, 16  ;;  %v6512_v18 = vrot.slane %v6510_v1, 4  ;;  %v6560_v27 = vshrl.u32 %v13379_v22, 16 }
 0x88d   : > { %6524 = vst.msk [vmem:[#allocation6 + $0x10] sm:$0xf] %vm6481_vm8, %v6511_v52  ;;  %v6475_v19 = vpop.f32.mrb[116].mxu0  ;;  %v8936_v20 = vcombine.low %v13371_v53, %v6532_v55  ;;  %v13413_v30 = vcombine.low %v6538_v32, %v6532_v55  ;;  %v8941_v46 = vcombine.low %v6540_v28, %v6532_v55  ;;  %v9881_v32 = vld [vmem:[%s14058_s14 + $0xe8] sm:$0xff]  }
 0x88e   : > { %v9092_v47 = vpack.c.bf16 %v6475_v19, %v6475_v19  ;;  %v9650_v15 = vpop.f32.mrb[117].mxu0  ;;  %v6564_v63 = vrot.slane %v6562_v24, 1  ;;  %v9878_v19 = vld [vmem:[%s14058_s14 + $0xe0] sm:$0xff]  }
 0x88f   : > { %v6601_v59 = vrot.slane %v8936_v20, 7  ;;  %v6478_v26 = vpop.f32.mrb[118].mxu0  ;;  %v6617_v10 = vshrl.u32 %v13413_v30, 16  ;;  %v6654_v8 = vrot.slane %v8941_v46, 2  ;;  %v9879_v20 = vld [vmem:[%s14058_s14 + $0x38] sm:$0xff]   ;;  %9332 = vmatprep.subr.bf16.mxu0 %v9878_v19  ;;  %v8931_v19 = vcombine.low %v6530_v6, %v13371_v53 }
 0x890   : > { %v6513_v43 = vrot.slane %v9092_v47, 7  ;;  %v9651_v16 = vpop.f32.mrb[119].mxu0  ;;  %v6565_v25 = vor.u32 %v6564_v63, %v6560_v27  ;;  %9305 = vmatpush3.bf16.msra.mxu1 %v9879_v20  ;;  %9333 = vmatpush3.bf16.msra.mxu0 %v9880_v42 }
 0x891   : > { %6606 = vrot.lane.b32.xlu1 %v6601_v59, %s14119_s1  ;;  %v13477_v29 = vrot.slane %v6617_v10, 7  ;;  %9652 = vmatprep.subr.bf16.mxu1 %v10002_v4  ;;  %v9884_v10 = vld [vmem:[%s14058_s14 + $0xb0] sm:$0xff]  }
 0x892   : > { %v6514_v36 = vsel %vm13363_vm9, %v6512_v18, %v6513_v43  ;;  %v6533_v38 = vld [vmem:[#allocation6 + $0xc] sm:$0xf]  ;;  %9334 = vmatprep.subr.bf16.mxu0 %v9881_v32 }
 0x893   : > { %6526 = vst.msk [vmem:[#allocation6 + $0x14] sm:$0x7] %vm6525_vm4, %v6514_v36  ;;  %v13422_v31 = vcombine.low %v6532_v55, %v6533_v38 }
 0x894   : > { %v13430_v54 = vld [vmem:[#allocation6 + $0x10] sm:$0xf]  ;;  %9335 = vmatpush3.bf16.msra.mxu0 %v9882_v0 }
 0x895   : > { %v13438_v49 = vcombine.low %v6533_v38, %v13430_v54  ;;  %v6567_v56 = vshll.u32 %v13422_v31, 16  ;;  %v13443_v58 = vcombine.low %v13430_v54, %v13430_v54  ;;  %v6571_v7 = vshrl.u32 %v13422_v31, 16  ;;  %9336 = vmatprep.subr.bf16.mxu0 %v9883_v2 }
 0x897   : > { %v6569_v60 = vrot.slane %v6567_v56, 1  ;;  %v6602_v11 = vrot.slane %v13438_v49, 7  ;;  %v6575_v48 = vshll.u32 %v13443_v58, 16  ;;  %v6655_v34 = vrot.slane %v13438_v49, 2 }
 0x898   : > { %v6624_v50 = vshrl.u32 %v13438_v49, 16  ;;  %v6661_v1 = vrot.slane %v6571_v7, 6  ;;  %v6662_v55 = vrot.slane %v6567_v56, 7  ;;  %v6627_v15 = vshll.u32 %v13438_v49, 16  ;;  %9337 = vmatpush3.bf16.msra.mxu0 %v9884_v10 }
 0x899   : > { %v6570_v33 = vsel %vm951_vm2, %v6565_v25, %v6569_v60  ;;  %v6603_v23 = vsel %vm14132_vm5, %v6601_v59, %v6602_v11  ;;  %v6573_v21 = vor.u32 %v6571_v7, %v6569_v60  ;;  %v6577_v57 = vrot.slane %v6575_v48, 1  ;;  %v9885_v7 = vld [vmem:[%s14058_s14 + $0xf8] sm:$0xff]  }
 0x89a   : > { %6582 = vrot.lane.b32.xlu1 %v6570_v33, %s14119_s1  ;;  %6608 = vrot.lane.b32.xlu0 %v6603_v23, %s14119_s1  ;;  %v9853_v44 = vld [vmem:[#allocation6 + $0x14] ss:$0 sps:$4 sm:$0x77]   ;;  %v13468_v13 = vsel %vm1454_vm1, %v6654_v8, %v6655_v34  ;;  %v6626_v24 = vrot.slane %v6624_v50, 7  ;;  %v6579_v18 = vshrl.u32 %v13443_v58, 16  ;;  %v6663_v28 = vor.u32 %v6662_v55, %v6661_v1  ;;  %v9886_v48 = vld [vmem:[%s14058_s14 + $0xb8] sm:$0xff]  }
 0x89b   : > { %v13471_v9 = vld [vmem:[#allocation6 + $0x14] sm:$0xf]  ;;  %v6578_v40 = vsel %vm951_vm2, %v6573_v21, %v6577_v57  ;;  %v6604_v52 = vrot.slane %v9853_v44, 7  ;;  %v6632_v59 = vshrl.u32 %v9853_v44, 16  ;;  %v6635_v63 = vshll.u32 %v9853_v44, 16  ;;  %9338 = vmatprep.subr.bf16.mxu0 %v9885_v7  ;;  %v13568_v33 = vld [vmem:[%s14064_s20 + $0x18] sm:$0xff] }
 0x89c   : > { %v13482_v41 = vcombine.low %v13430_v54, %v13471_v9  ;;  %v8942_v47 = vcombine.low %v13471_v9, %v13409_v3  ;;  %v6629_v36 = vor.u32 %v6627_v15, %v6626_v24  ;;  %v6581_v61 = vor.u32 %v6579_v18, %v6577_v57  ;;  %v13549_v8 = vld [vmem:[%s14064_s20] sm:$0xff]  ;;  %9339 = vmatpush3.bf16.msra.mxu0 %v9886_v48 }
 0x89d   : > { %v6605_v26 = vsel %vm14136_vm12, %v6602_v11, %v6604_v52  ;;  %v6634_v38 = vrot.slane %v6632_v59, 7  ;;  %v6676_v25 = vrot.slane %v6674_v62, 6  ;;  %v8940_v62 = vcombine.low %v13471_v9, %v13471_v9  ;;  %v7358_v23 = vld [vmem:[%s14064_s20 + $0x20] sm:$0xf]  ;;  %v6536_v21 = vld [vmem:[#allocation6 + $0x14] sm:$0x1] }
 0x89e   : > { %6584 = vrot.lane.b32.xlu0 %v6578_v40, %s14119_s1  ;;  %v6665_v43 = vshrl.u32 %v13482_v41, 16  ;;  %v6668_v16 = vshll.u32 %v13482_v41, 16  ;;  %6610 = vrot.lane.b32.xlu1 %v6605_v26, %s14119_s1  ;;  %v13505_v3 = vrot.slane %v8942_v47, 2  ;;  %v13517_v12 = vsel %vm6615_vm10, %v13477_v29, %v6629_v36 }
 0x89f   : > { %v6637_v46 = vor.u32 %v6635_v63, %v6634_v38  ;;  %v6680_v11 = vor.u32 %v6679_v35, %v6676_v25  ;;  %v6592_v57 = vrot.slane %v13422_v31, 1  ;;  %v8935_v44 = vcombine.low %v13430_v54, %v6536_v21 }
 0x8a0   : > { %v6667_v14 = vrot.slane %v6665_v43, 6  ;;  %v6670_v5 = vrot.slane %v6668_v16, 7  ;;  %v13513_v27 = vsel %vm1454_vm1, %v6655_v34, %v13505_v3  ;;  %v13561_v34 = vld [vmem:[%s14064_s20 + $0x10] sm:$0xff]  ;;  %v6591_v50 = vrot.slane %v13379_v22, 1 }
 0x8a1   : > { %v13525_v37 = vsel %vm6615_vm10, %v6626_v24, %v6637_v46  ;;  %v6594_v40 = vrot.slane %v8935_v44, 1  ;;  %v6620_v48 = vshll.u32 %v13413_v30, 16 }
 0x8a2   : > { %6586 = vrot.lane.b32.xlu0 %v6581_v61, %s14119_s1  ;;  %v6671_v56 = vor.u32 %v6670_v5, %v6667_v14  ;;  %6682 = vrot.lane.b32.xlu1 %v6663_v28, %s14119_s1  ;;  %v6593_v9 = vsel %vm1164_vm0, %v6591_v50, %v6592_v57 }
 0x8a3   : > { %v6595_v47 = vsel %vm1164_vm0, %v6592_v57, %v6594_v40 }
 0x8a4   : > { %v6672_v60 = vsel %vm14137_vm11, %v6663_v28, %v6671_v56  ;;  %v6681_v45 = vsel %vm14138_vm7, %v6671_v56, %v6680_v11 }
 0x8a6   : > { %6684 = vrot.lane.b32.xlu0 %v6672_v60, %s14119_s1  ;;  %6642 = vrot.lane.b32.xlu1 %v13413_v30, %s14119_s1  ;;  %v6622_v30 = vor.u32 %v6620_v48, %v13477_v29  ;;  %v9888_v29 = vld [vmem:[%s14058_s14 + $0x108] sm:$0xff]  }
 0x8aa   : > { %6644 = vrot.lane.b32.xlu0 %v13438_v49, %s14119_s1  ;;  %6686 = vrot.lane.b32.xlu1 %v6681_v45, %s14119_s1  ;;  %v13556_v49 = vld [vmem:[%s14064_s20 + $0x8] sm:$0xff] }
 0x8ae   : > { %6646 = vrot.lane.b32.xlu0 %v8940_v62, %s14119_s1  ;;  %7361 = vperm.xlu1 %9732, %v13549_v8  }
 0x8b2   : > { %7366 = vperm.xlu0 %9731, %v13556_v49   ;;  %7371 = vperm.xlu1 %9732, %v13561_v34  }
 0x8b6   : > { %7376 = vperm.xlu0 %9731, %v13568_v33   ;;  %7381 = vperm.xlu1 %9732, %v7358_v23  }
 0x903   : > { %v6607_v1 = vpop.permute.xlu1 %6606 }
 0x904   : > { %v6705_v17 = vsel %vm2238_vm15, %v6593_v9, %v6607_v1  ;;  %v9887_v1 = vld [vmem:[%s14058_s14 + $0x100] sm:$0xff]  }
 0x905   : > { %v6817_v52 = vshrl.u32 %v6705_v17, 16  ;;  %v6820_v55 = vshll.u32 %v6705_v17, 16 }
 0x907   : > { %v6819_v59 = vrot.slane %v6817_v52, 1  ;;  %v6822_v26 = vrot.slane %v6820_v55, 2 }
 0x909   : > { %v6823_v5 = vor.u32 %v6822_v26, %v6819_v59 }
 0x90c   : > { %v6583_v20 = vpop.permute.xlu1 %6582  ;;  %v6609_v42 = vpop.permute.xlu0 %6608 }
 0x90d   : > { %v6698_v24 = vsel %vm2238_vm15, %v8931_v19, %v6583_v20  ;;  %v6708_v54 = vsel %vm2238_vm15, %v6595_v47, %v6609_v42 }
 0x90e   : > { %v6824_v22 = vshrl.u32 %v6708_v54, 16  ;;  %v6827_v15 = vshll.u32 %v6708_v54, 16  ;;  %v6802_v18 = vshrl.u32 %v6698_v24, 16  ;;  %v6805_v43 = vshll.u32 %v6698_v24, 16 }
 0x910   : > { %v6826_v16 = vrot.slane %v6824_v22, 1  ;;  %v6829_v32 = vrot.slane %v6827_v15, 2  ;;  %v6585_v36 = vpop.permute.xlu0 %6584  ;;  %v6611_v38 = vpop.permute.xlu1 %6610  ;;  %v6804_v0 = vrot.slane %v6802_v18, 1  ;;  %v6807_v28 = vrot.slane %v6805_v43, 2 }
 0x911   : > { %v6700_v53 = vsel %vm2238_vm15, %v13422_v31, %v6585_v36  ;;  %v6711_v46 = vsel %vm2238_vm15, %v6594_v40, %v6611_v38 }
 0x912   : > { %v6830_v63 = vor.u32 %v6829_v32, %v6826_v16  ;;  %v6809_v61 = vshrl.u32 %v6700_v53, 16  ;;  %v6812_v14 = vshll.u32 %v6700_v53, 16  ;;  %v6887_v35 = vshrl.u32 %v6711_v46, 16 }
 0x913   : > { %v6890_v2 = vshll.u32 %v6711_v46, 16  ;;  %v6808_v57 = vor.u32 %v6807_v28, %v6804_v0  ;;  %v6691_v53 = vrot.slane %v13422_v31, 7  ;;  %v9889_v46 = vld [vmem:[%s14058_s14 + $0x110] sm:$0xff]  }
 0x914   : > { %v6811_v56 = vrot.slane %v6809_v61, 1  ;;  %v6814_v25 = vrot.slane %v6812_v14, 2  ;;  %v6587_v10 = vpop.permute.xlu0 %6586  ;;  %v6831_v11 = vsel %vm1310_vm3, %v6823_v5, %v6830_v63  ;;  %v6683_v7 = vpop.permute.xlu1 %6682  ;;  %v6889_v62 = vrot.slane %v6887_v35, 1 }
 0x915   : > { %v6702_v60 = vsel %vm2238_vm15, %v13443_v58, %v6587_v10  ;;  %v6892_v23 = vrot.slane %v6890_v2, 2  ;;  %7189 = vmatprep.mubr.bf16.mxu1 %v6831_v11  ;;  %v6723_v50 = vsel %vm2238_vm15, %v13468_v13, %v6683_v7  ;;  %v6692_v13 = vrot.slane %v13482_v41, 7 }
 0x916   : > { %v6815_v45 = vor.u32 %v6814_v25, %v6811_v56  ;;  %v6879_v21 = vshrl.u32 %v6702_v60, 16  ;;  %v6882_v44 = vshll.u32 %v6702_v60, 16  ;;  %v6847_v9 = vshrl.u32 %v6723_v50, 16 }
 0x917   : > { %v6893_v58 = vor.u32 %v6892_v23, %v6889_v62  ;;  %v6850_v17 = vshll.u32 %v6723_v50, 16 }
 0x918   : > { %v6685_v6 = vpop.permute.xlu0 %6684  ;;  %v6881_v40 = vrot.slane %v6879_v21, 1  ;;  %v6884_v52 = vrot.slane %v6882_v44, 2  ;;  %v6816_v19 = vsel %vm1310_vm3, %v6808_v57, %v6815_v45  ;;  %v6643_v20 = vpop.permute.xlu1 %6642  ;;  %v6849_v24 = vrot.slane %v6847_v9, 1  ;;  %v9891_v21 = vld [vmem:[#allocation6 + $0x18] ss:$0 sps:$4 sm:$0x77]  }
 0x919   : > { %v6726_v55 = vsel %vm2238_vm15, %v13513_v27, %v6685_v6  ;;  %7190 = vmatmul.mubr.bf16.vlgmr.msra.gmra.mrb[116].mxu1 %v6816_v19  ;;  %v6852_v54 = vrot.slane %v6850_v17, 2  ;;  %v6714_v22 = vsel %vm2238_vm15, %v6622_v30, %v6643_v20  ;;  %v6894_v15 = vsel %vm1310_vm3, %v6830_v63, %v6893_v58  ;;  %v9890_v44 = vld [vmem:[%s14058_s14 + $0x118] sm:$0xff]  }
 0x91a   : > { %v6854_v42 = vshrl.u32 %v6726_v55, 16  ;;  %v6857_v47 = vshll.u32 %v6726_v55, 16  ;;  %9653 = vmatpush3.bf16.msra.mxu1 %v9887_v1  ;;  %v6832_v26 = vshrl.u32 %v6714_v22, 16  ;;  %7197 = vmatprep.mubr.bf16.mxu1 %v6894_v15  ;;  %v6885_v43 = vor.u32 %v6884_v52, %v6881_v40 }
 0x91b   : > { %9654 = vmatprep.subr.bf16.mxu1 %v10002_v4  ;;  %v6835_v16 = vshll.u32 %v6714_v22, 16  ;;  %v6853_v5 = vor.u32 %v6852_v54, %v6849_v24  ;;  %v6694_v30 = vrot.slane %v9891_v21, 7  ;;  %v6866_v52 = vshll.u32 %v6691_v53, 16 }
 0x91c   : > { %v6856_v27 = vrot.slane %v6854_v42, 1  ;;  %v6859_v59 = vrot.slane %v6857_v47, 2  ;;  %v6645_v18 = vpop.permute.xlu0 %6644  ;;  %v6687_v36 = vpop.permute.xlu1 %6686  ;;  %v6834_v63 = vrot.slane %v6832_v26, 1  ;;  %v6886_v60 = vsel %vm1310_vm3, %v6815_v45, %v6885_v43 }
 0x91d   : > { %v6717_v32 = vsel %vm2238_vm15, %v13517_v12, %v6645_v18  ;;  %v6837_v0 = vrot.slane %v6835_v16, 2  ;;  %v6729_v28 = vsel %vm2238_vm15, %v13505_v3, %v6687_v36  ;;  %v6693_v12 = vsel %vm14139_vm6, %v6691_v53, %v6692_v13  ;;  %v9902_v18 = vld [vmem:[%s14061_s17 + $0x40] sm:$0xff]   ;;  %v9904_v16 = vld [vmem:[%s14061_s17 + $0x48] sm:$0xff]   ;;  %v9906_v36 = vld [vmem:[%s14061_s17 + $0x50] sm:$0xff]  }
 0x91e   : > { %v6860_v38 = vor.u32 %v6859_v59, %v6856_v27  ;;  %v6839_v61 = vshrl.u32 %v6717_v32, 16  ;;  %v6842_v14 = vshll.u32 %v6717_v32, 16  ;;  %9655 = vmatpush3.bf16.msra.mxu1 %v9888_v29  ;;  %v6903_v25 = vshrl.u32 %v6729_v28, 16  ;;  %9365 = vmatprep.subr.bf16.mxu0 %v9902_v18  ;;  %v9905_v32 = vld [vmem:[%s14061_s17 + $0x8] sm:$0xff]  }
 0x91f   : > { %v6906_v35 = vshll.u32 %v6729_v28, 16  ;;  %9656 = vmatprep.subr.bf16.mxu1 %v10002_v4  ;;  %v6838_v10 = vor.u32 %v6837_v0, %v6834_v63  ;;  %v6871_v9 = vshrl.u32 %v6693_v12, 16  ;;  %v6874_v17 = vshll.u32 %v6693_v12, 16 }
 0x920   : > { %v6841_v56 = vrot.slane %v6839_v61, 1  ;;  %v6844_v31 = vrot.slane %v6842_v14, 2  ;;  %v6647_v2 = vpop.permute.xlu0 %6646  ;;  %v6861_v11 = vsel %vm1310_vm3, %v6853_v5, %v6860_v38  ;;  %v6905_v48 = vrot.slane %v6903_v25, 1 }
 0x921   : > { %v6720_v3 = vsel %vm2238_vm15, %v13525_v37, %v6647_v2  ;;  %v6908_v62 = vrot.slane %v6906_v35, 2  ;;  %7198 = vmatmul.mubr.bf16.gmra.mrb[120].mxu1 %v6886_v60  ;;  %7245 = vmatprep.mubr.bf16.mxu0 %v6861_v11  ;;  %v6873_v19 = vrot.slane %v6871_v9, 1  ;;  %v6876_v20 = vrot.slane %v6874_v17, 2 }
 0x922   : > { %v6845_v7 = vor.u32 %v6844_v31, %v6841_v56  ;;  %v6895_v23 = vshrl.u32 %v6720_v3, 16  ;;  %v6898_v57 = vshll.u32 %v6720_v3, 16  ;;  %7205 = vmatprep.mubr.bf16.mxu1 %v6893_v58  ;;  %9657 = vmatpush3.bf16.msra.mxu1 %v9889_v46  ;;  %v6863_v58 = vshrl.u32 %v6691_v53, 16  ;;  %v9907_v53 = vld [vmem:[%s14061_s17 + $0x10] sm:$0xff]  }
 0x923   : > { %v6909_v50 = vor.u32 %v6908_v62, %v6905_v48  ;;  %9658 = vmatprep.subr.bf16.mxu1 %v10002_v4  ;;  %v6695_v42 = vsel %vm14132_vm5, %v6692_v13, %v6694_v30  ;;  %v6868_v24 = vrot.slane %v6866_v52, 2  ;;  %v6877_v54 = vor.u32 %v6876_v20, %v6873_v19  ;;  %v8986_v19 = vld [vmem:[%s14060_s16] ss:$0 sm:$0xff] }
 0x924   : > { %v6897_v37 = vrot.slane %v6895_v23, 1  ;;  %v6846_v45 = vsel %vm1310_vm3, %v6838_v10, %v6845_v7  ;;  %v6900_v1 = vrot.slane %v6898_v57, 2  ;;  %v6865_v47 = vrot.slane %v6863_v58, 1 }
 0x925   : > { %7246 = vmatmul.mubr.bf16.vlgmr.msra.gmra.mrb[120].mxu0 %v6846_v45  ;;  %v6910_v6 = vsel %vm1310_vm3, %v6860_v38, %v6909_v50  ;;  %v6912_v22 = vshrl.u32 %v6695_v42, 16  ;;  %v6915_v15 = vshll.u32 %v6695_v42, 16 }
 0x926   : > { %v6901_v40 = vor.u32 %v6900_v1, %v6897_v37  ;;  %7253 = vmatprep.mubr.bf16.mxu0 %v6910_v6  ;;  %9659 = vmatpush3.bf16.msra.mxu1 %v9890_v44  ;;  %v6869_v29 = vor.u32 %v6868_v24, %v6865_v47 }
 0x927   : > { %v6914_v59 = vrot.slane %v6912_v22, 1  ;;  %v6917_v26 = vrot.slane %v6915_v15, 2 }
 0x928   : > { %v6902_v55 = vsel %vm1310_vm3, %v6845_v7, %v6901_v40  ;;  %v6878_v27 = vsel %vm1310_vm3, %v6869_v29, %v6877_v54 }
 0x929   : > { %7206 = vmatmul.mubr.bf16.gmra.mrb[124].mxu1 %v6885_v43  ;;  %v6918_v41 = vor.u32 %v6917_v26, %v6914_v59  ;;  %v9903_v43 = vld [vmem:[%s14061_s17] sm:$0xff]  }
 0x92a   : > { %9660 = vmatprep.mubr.msk.bf16.mxu1 %vm14124_vm14, %v10002_v4  ;;  %9366 = vmatpush3.bf16.msra.mxu0 %v9903_v43 }
 0x92b   : > { %v6919_v13 = vsel %vm1310_vm3, %v6877_v54, %v6918_v41  ;;  %9367 = vmatprep.subr.bf16.mxu0 %v9904_v16 }
 0x92d   : > { %7254 = vmatmul.mubr.bf16.gmra.mrb[124].mxu0 %v6902_v55  ;;  %v7362_v43 = vpop.permute.xlu1 %7361 }
 0x92e   : > { %7261 = vmatprep.mubr.bf16.mxu0 %v6909_v50  ;;  %9368 = vmatpush3.bf16.msra.mxu0 %v9905_v32 }
 0x92f   : > { %9369 = vmatprep.subr.bf16.mxu0 %v9906_v36 }
 0x931   : > { %9661 = vmatmul.mubr.msk.bf16.vlgmr.msra.gmra.mrb[128].mxu1 %vm2238_vm15, %v6878_v27 }
 0x932   : > { %9664 = vmatprep.mubr.msk.bf16.mxu1 %vm14124_vm14, %v10002_v4  ;;  %9370 = vmatpush3.bf16.msra.mxu0 %v9907_v53 }
 0x935   : > { %7262 = vmatmul.mubr.bf16.gmra.mrb[128].mxu0 %v6901_v40  ;;  %v8985_v40 = vld [vmem:[%s14059_s15] ss:$0 sm:$0xff] }
 0x939   : > { %9665 = vmatmul.mubr.msk.bf16.gmra.mrb[132].mxu1 %vm2238_vm15, %v6919_v13 }
 0x93a   : > { %9668 = vmatprep.mubr.msk.bf16.mxu1 %vm14124_vm14, %v10002_v4 }
 0x941   : > { %9669 = vmatmul.mubr.msk.bf16.gmra.mrb[136].mxu1 %vm2238_vm15, %v6918_v41 }
 0x9ec   : > { %v9306_v38 = vpop.f32.mrb[116].mxu1 }
 0x9ed   : > { %v9307_v63 = vpop.f32.mrb[117].mxu1 }
 0x9ee   : > { %v9308_v61 = vadd.f32 %v9307_v63, %v9306_v38  ;;  %v9309_v14 = vpop.f32.mrb[118].mxu1  ;;  %v7367_v63 = vpop.permute.xlu0 %7366 }
 0x9ef   : > { %v9310_v5 = vpop.f32.mrb[119].mxu1 }
 0x9f0   : > { %v9311_v0 = vadd.f32 %v9310_v5, %v9309_v14 }
 0x9f4   : > { %v9312_v28 = vpop.f32.mrb[120].mxu1 }
 0x9f5   : > { %v9313_v46 = vpop.f32.mrb[121].mxu1 }
 0x9f6   : > { %v9314_v12 = vadd.f32 %v9313_v46, %v9312_v28  ;;  %v9315_v56 = vpop.f32.mrb[122].mxu1 }
 0x9f7   : > { %v9316_v31 = vpop.f32.mrb[123].mxu1 }
 0x9f8   : > { %v9340_v25 = vpop.f32.mrb[120].mxu0  ;;  %v9317_v35 = vadd.f32 %v9316_v31, %v9315_v56 }
 0x9f9   : > { %v9341_v2 = vpop.f32.mrb[121].mxu0 }
 0x9fa   : > { %v9342_v10 = vadd.f32 %v9341_v2, %v9340_v25  ;;  %v9343_v3 = vpop.f32.mrb[122].mxu0 }
 0x9fb   : > { %v9344_v60 = vpop.f32.mrb[123].mxu0 }
 0x9fc   : > { %v9345_v11 = vadd.f32 %v9344_v60, %v9343_v3  ;;  %v7248_v7 = vadd.f32 %v9342_v10, %v9308_v61  ;;  %v9318_v48 = vpop.f32.mrb[124].mxu1  ;;  %v7372_v60 = vpop.permute.xlu1 %7371 }
 0x9fd   : > { %v9319_v62 = vpop.f32.mrb[125].mxu1 }
 0x9fe   : > { %v7251_v23 = vadd.f32 %v9345_v11, %v9311_v0  ;;  %v9320_v21 = vadd.f32 %v9319_v62, %v9318_v48  ;;  %v9321_v57 = vpop.f32.mrb[126].mxu1 }
 0x9ff   : > { %v9322_v44 = vpop.f32.mrb[127].mxu1 }
 0xa00   : > { %v9346_v50 = vpop.f32.mrb[124].mxu0 }
 0xa01   : > { %v9347_v37 = vpop.f32.mrb[125].mxu0 }
 0xa02   : > { %v9348_v45 = vadd.f32 %v9347_v37, %v9346_v50  ;;  %v9349_v1 = vpop.f32.mrb[126].mxu0 }
 0xa03   : > { %v9350_v9 = vpop.f32.mrb[127].mxu0 }
 0xa04   : > { %v9351_v17 = vadd.f32 %v9350_v9, %v9349_v1  ;;  %v7256_v6 = vadd.f32 %v9348_v45, %v9314_v12  ;;  %v7303_v30 = vpop.f32.mrb[128].mxu1  ;;  %v7437_v9 = vld [vmem:[#allocation7] sm:$0xc] }
 0xa05   : > { %v7304_v58 = vadd.f32 %v7303_v30, %v7248_v7  ;;  %v9662_v52 = vpop.f32.mrb[129].mxu1 }
 0xa06   : > { %v7259_v55 = vadd.f32 %v9351_v17, %v9317_v35  ;;  %v7306_v20 = vpop.f32.mrb[130].mxu1 }
 0xa07   : > { %v7332_v42 = vmul.f32 %v8985_v40, %v7304_v58  ;;  %v7307_v47 = vadd.f32 %v7306_v20, %v7251_v23  ;;  %v9663_v24 = vpop.f32.mrb[131].mxu1 }
 0xa08   : > { %v9352_v54 = vpop.f32.mrb[128].mxu0 }
 0xa09   : > { %v9353_v22 = vpop.f32.mrb[129].mxu0  ;;  %v7344_v15 = vadd.f32 %v8986_v19, %v7332_v42  ;;  %v7333_v29 = vmul.f32 %v8985_v40, %v7307_v47 }
 0xa0a   : > { %v9354_v27 = vadd.f32 %v9353_v22, %v9352_v54  ;;  %v9355_v59 = vpop.f32.mrb[130].mxu0  ;;  %v9911_v54 = vld [vmem:[%s14061_s17 + $0x80] sm:$0xff]  }
 0xa0b   : > { %v9356_v26 = vpop.f32.mrb[131].mxu0  ;;  %v7349_v41 = vmax.f32 %v7344_v15, 0.0  ;;  %v7345_v13 = vadd.f32 %v8986_v19, %v7333_v29  ;;  %v9912_v15 = vld [vmem:[%s14061_s17 + $0x60] sm:$0xff]   ;;  %v9913_v29 = vld [vmem:[%s14061_s17 + $0xc8] sm:$0xff]  }
 0xa0c   : > { %v7264_v18 = vadd.f32 %v9354_v27, %v9320_v21  ;;  %v7311_v16 = vpop.f32.mrb[132].mxu1  ;;  %v7377_v21 = vpop.permute.xlu0 %7376 }
 0xa0d   : > { %v7384_v32 = vmul.f32 %v7362_v43, %v7349_v41  ;;  %v7350_v36 = vmax.f32 %v7345_v13, 0.0  ;;  %v7312_v53 = vadd.f32 %v7311_v16, %v7256_v6  ;;  %v9666_v38 = vpop.f32.mrb[133].mxu1  ;;  %v7382_v27 = vpop.permute.xlu1 %7381  ;;  %v9914_v41 = vld [vmem:[%s14061_s17 + $0x20] sm:$0xff]   ;;  %v9915_v43 = vld [vmem:[%s14061_s17 + $0x88] sm:$0xff]  }
 0xa0e   : > { %v7314_v61 = vpop.f32.mrb[134].mxu1 }
 0xa0f   : > { %v9093_v14 = vpack.c.bf16 %v7384_v32, %v7384_v32  ;;  %v7385_v5 = vmul.f32 %v7367_v63, %v7350_v36  ;;  %v7334_v0 = vmul.f32 %v8985_v40, %v7312_v53  ;;  %v7315_v28 = vadd.f32 %v7314_v61, %v7259_v55  ;;  %v9667_v46 = vpop.f32.mrb[135].mxu1  ;;  %v9908_v55 = vld [vmem:[%s14061_s17 + $0x58] sm:$0xff]   ;;  %v13709_v61 = vld [vmem:[#allocation7 + $0x18] sm:$0x3] }
 0xa10   : > { %9371 = vmatprep.subr.bf16.mxu0 %v9908_v55  ;;  %v9919_v46 = vld [vmem:[%s14061_s17 + $0xd0] sm:$0xff]  }
 0xa11   : > { %v7407_v12 = vrot.slane %v9093_v14, 7  ;;  %v9094_v56 = vpack.c.bf16 %v7385_v5, %v7385_v5  ;;  %v7346_v31 = vadd.f32 %v8986_v19, %v7334_v0  ;;  %v7335_v25 = vmul.f32 %v8985_v40, %v7315_v28  ;;  %v9918_v28 = vld [vmem:[%s14061_s17 + $0x68] sm:$0xff]  }
 0xa13   : > { %v7408_v35 = vrot.slane %v7407_v12, 4  ;;  %7425 = vst.msk [vmem:[#allocation7 + $0x4] sm:$0xe] %vm6520_vm13, %v7407_v12  ;;  %v7409_v2 = vrot.slane %v9094_v56, 7  ;;  %v7351_v10 = vmax.f32 %v7346_v31, 0.0  ;;  %v7347_v3 = vadd.f32 %v8986_v19, %v7335_v25  ;;  %v9920_v31 = vld [vmem:[%s14061_s17 + $0x28] sm:$0xff]  }
 0xa14   : > { %v7319_v11 = vpop.f32.mrb[136].mxu1  ;;  %v9921_v25 = vld [vmem:[%s14061_s17 + $0x90] sm:$0xff]  }
 0xa15   : > { %v7410_v7 = vsel %vm13363_vm9, %v7408_v35, %v7409_v2  ;;  %v7386_v48 = vmul.f32 %v7372_v60, %v7351_v10  ;;  %v7352_v62 = vmax.f32 %v7347_v3, 0.0  ;;  %v9670_v23 = vpop.f32.mrb[137].mxu1  ;;  %v7320_v57 = vadd.f32 %v7319_v11, %v7264_v18 }
 0xa16   : > { %7426 = vst.msk [vmem:[#allocation7 + $0x8] sm:$0xf] %vm6481_vm8, %v7410_v7  ;;  %v7322_v44 = vpop.f32.mrb[138].mxu1  ;;  %v7411_v17 = vrot.slane %v7409_v2, 4  ;;  %v13735_v3 = vcombine.low %v13709_v61, %v13709_v61  ;;  %v9922_v23 = vld [vmem:[%s14061_s17 + $0x70] sm:$0xff]  }
 0xa17   : > { %v9095_v50 = vpack.c.bf16 %v7386_v48, %v7386_v48  ;;  %v7387_v37 = vmul.f32 %v7377_v21, %v7352_v62  ;;  %v9671_v45 = vpop.f32.mrb[139].mxu1  ;;  %v7336_v1 = vmul.f32 %v8985_v40, %v7320_v57  ;;  %v9909_v40 = vld [vmem:[%s14061_s17 + $0xc0] sm:$0xff]   ;;  %v9923_v21 = vld [vmem:[%s14061_s17 + $0xd8] sm:$0xff]   ;;  %v9924_v57 = vld [vmem:[%s14061_s17 + $0x30] sm:$0xff]  }
 0xa18   : > { %9399 = vmatprep.subr.bf16.mxu1 %v9909_v40 }
 0xa19   : > { %v7412_v6 = vrot.slane %v9095_v50, 7  ;;  %v9096_v30 = vpack.c.bf16 %v7387_v37, %v7387_v37  ;;  %v7348_v58 = vadd.f32 %v8986_v19, %v7336_v1  ;;  %v9910_v19 = vld [vmem:[%s14061_s17 + $0x18] sm:$0xff]   ;;  %9400 = vmatpush3.bf16.msra.mxu1 %v9911_v54 }
 0xa1a   : > { %v13671_v52 = vld [vmem:[#allocation7 + $0x4] sm:$0xf]  ;;  %9372 = vmatpush3.bf16.msra.mxu0 %v9910_v19  ;;  %9401 = vmatprep.subr.bf16.mxu1 %v9913_v29 }
 0xa1b   : > { %v7413_v20 = vsel %vm13363_vm9, %v7411_v17, %v7412_v6  ;;  %v7414_v42 = vrot.slane %v7412_v6, 4  ;;  %v7415_v47 = vrot.slane %v9096_v30, 7  ;;  %v13679_v24 = vcombine.low %v7437_v9, %v13671_v52  ;;  %9373 = vmatprep.subr.bf16.mxu0 %v9912_v15  ;;  %v7440_v63 = vld [vmem:[#allocation7 + $0x4] sm:$0xe]  ;;  %v9925_v9 = vld [vmem:[%s14061_s17 + $0x98] sm:$0xff]  }
 0xa1c   : > { %7427 = vst.msk [vmem:[#allocation7 + $0xc] sm:$0xf] %vm6481_vm8, %v7413_v20  ;;  %v7353_v22 = vmax.f32 %v7348_v58, 0.0  ;;  %v7442_v35 = vld [vmem:[#allocation7 + $0x4] sm:$0x8]  ;;  %v7575_v17 = vshrl.u32 %v13735_v3, 16 }
 0xa1d   : > { %v7416_v59 = vsel %vm13363_vm9, %v7414_v42, %v7415_v47  ;;  %v7434_v26 = vld [vmem:[#allocation7 + $0x8] sm:$0xf]  ;;  %v7464_v16 = vshll.u32 %v13679_v24, 16  ;;  %v7417_v53 = vrot.slane %v7415_v47, 4  ;;  %9402 = vmatpush3.bf16.msra.mxu1 %v9915_v43  ;;  %v7462_v10 = vshrl.u32 %v13679_v24, 16  ;;  %v9926_v15 = vld [vmem:[%s14061_s17 + $0x78] sm:$0xff]  }
 0xa1e   : > { %7428 = vst.msk [vmem:[#allocation7 + $0x10] sm:$0xf] %vm6481_vm8, %v7416_v59  ;;  %v7388_v13 = vmul.f32 %v7382_v27, %v7353_v22  ;;  %v8997_v18 = vcombine.low %v13671_v52, %v7434_v26  ;;  %9374 = vmatpush3.bf16.msra.mxu0 %v9914_v41  ;;  %v13711_v0 = vcombine.low %v7440_v63, %v7434_v26  ;;  %vm14140_vm8 = vmmov %vm14132_vm5  ;;  %v7578_v47 = vshll.u32 %v13735_v3, 16  ;;  %v9927_v59 = vld [vmem:[%s14061_s17 + $0xe0] sm:$0xff]   ;;  %v9932_v63 = vld [vmem:[%s14061_s17 + $0xe8] sm:$0xff]  }
 0xa1f   : > { %v7466_v5 = vrot.slane %v7464_v16, 1  ;;  %9375 = vmatprep.subr.bf16.mxu0 %v9918_v28  ;;  %9403 = vmatprep.subr.bf16.mxu1 %v9919_v46  ;;  %v9002_v60 = vcombine.low %v7442_v35, %v7434_v26 }
 0xa20   : > { %v9097_v32 = vpack.c.bf16 %v7388_v13, %v7388_v13  ;;  %v7503_v36 = vrot.slane %v8997_v18, 7  ;;  %v7518_v44 = vshrl.u32 %v13711_v0, 16 }
 0xa21   : > { %9404 = vmatpush3.bf16.msra.mxu1 %v9921_v25  ;;  %v7467_v62 = vor.u32 %v7466_v5, %v7462_v10  ;;  %v7555_v6 = vrot.slane %v9002_v60, 2  ;;  %v9933_v25 = vld [vmem:[%s14061_s17 + $0xa8] sm:$0xff]  }
 0xa22   : > { %v7418_v38 = vrot.slane %v9097_v32, 7  ;;  %7508 = vrot.lane.b32.xlu0 %v7503_v36, %s14119_s1  ;;  %9376 = vmatpush3.bf16.msra.mxu0 %v9920_v31  ;;  %v13771_v19 = vrot.slane %v7518_v44, 7  ;;  %v9928_v32 = vld [vmem:[%s14061_s17 + $0x38] sm:$0xff]  }
 0xa23   : > { %v7435_v14 = vld [vmem:[#allocation7 + $0xc] sm:$0xf]  ;;  %9377 = vmatprep.subr.bf16.mxu0 %v9922_v23  ;;  %9405 = vmatprep.subr.bf16.mxu1 %v9923_v21  ;;  %v9934_v21 = vld [vmem:[%s14061_s17 + $0xf0] sm:$0xff]  }
 0xa24   : > { %v7419_v12 = vsel %vm13363_vm9, %v7417_v53, %v7418_v38  ;;  %v13721_v56 = vcombine.low %v7434_v26, %v7435_v14 }
 0xa25   : > { %7429 = vst.msk [vmem:[#allocation7 + $0x14] sm:$0x7] %vm6525_vm4, %v7419_v12  ;;  %v13730_v2 = vld [vmem:[#allocation7 + $0x10] sm:$0xf]  ;;  %9406 = vmatpush3.bf16.msra.mxu1 %v9925_v9 }
 0xa26   : > { %v13738_v11 = vcombine.low %v7435_v14, %v13730_v2  ;;  %v7469_v7 = vshll.u32 %v13721_v56, 16  ;;  %v13743_v48 = vcombine.low %v13730_v2, %v13730_v2  ;;  %v7473_v45 = vshrl.u32 %v13721_v56, 16  ;;  %9378 = vmatpush3.bf16.msra.mxu0 %v9924_v57  ;;  %9407 = vmatprep.subr.bf16.mxu1 %v9927_v59 }
 0xa27   : > { %9379 = vmatprep.subr.bf16.mxu0 %v9926_v15  ;;  %v7432_v15 = vld [vmem:[#allocation7] sm:$0xe] }
 0xa28   : > { %v7504_v50 = vrot.slane %v13738_v11, 7  ;;  %v7471_v37 = vrot.slane %v7469_v7, 1  ;;  %v7477_v1 = vshll.u32 %v13743_v48, 16  ;;  %v7556_v30 = vrot.slane %v13738_v11, 2 }
 0xa29   : > { %v7525_v54 = vshrl.u32 %v13738_v11, 16  ;;  %v7481_v29 = vshrl.u32 %v13743_v48, 16  ;;  %v7528_v41 = vshll.u32 %v13738_v11, 16  ;;  %v7562_v43 = vrot.slane %v7473_v45, 6 }
 0xa2a   : > { %v7505_v58 = vsel %vm14140_vm8, %v7503_v36, %v7504_v50  ;;  %v7472_v55 = vsel %vm951_vm2, %v7467_v62, %v7471_v37  ;;  %v7475_v20 = vor.u32 %v7473_v45, %v7471_v37  ;;  %v7479_v42 = vrot.slane %v7477_v1, 1  ;;  %v9929_v36 = vld [vmem:[%s14061_s17 + $0xa0] sm:$0xff]   ;;  %9380 = vmatpush3.bf16.msra.mxu0 %v9928_v32  ;;  %v9935_v45 = vld [vmem:[%s14061_s17 + $0xb0] sm:$0xff]  }
 0xa2b   : > { %7510 = vrot.lane.b32.xlu1 %v7505_v58, %s14119_s1  ;;  %7484 = vrot.lane.b32.xlu0 %v7472_v55, %s14119_s1  ;;  %v13769_v40 = vsel %vm1454_vm1, %v7555_v6, %v7556_v30  ;;  %v7527_v26 = vrot.slane %v7525_v54, 7  ;;  %v7563_v53 = vrot.slane %v7469_v7, 7  ;;  %v7580_v37 = vrot.slane %v7578_v47, 7 }
 0xa2c   : > { %v9897_v22 = vld [vmem:[#allocation7 + $0x14] ss:$0 sps:$4 sm:$0x77]   ;;  %v7480_v13 = vsel %vm951_vm2, %v7475_v20, %v7479_v42  ;;  %vm14141_vm2 = vmmov %vm14132_vm5  ;;  %v7483_v46 = vor.u32 %v7481_v29, %v7479_v42  ;;  %9408 = vmatpush3.bf16.msra.mxu1 %v9929_v36  ;;  %9672 = vmatprep.subr.bf16.mxu0 %v10002_v4  ;;  %v7494_v42 = vrot.slane %v13721_v56, 1  ;;  %v7493_v54 = vrot.slane %v13679_v24, 1 }
 0xa2d   : > { %v7441_v27 = vld [vmem:[#allocation7 + $0x14] sm:$0xf]  ;;  %v7506_v18 = vrot.slane %v9897_v22, 7  ;;  %v7530_v14 = vor.u32 %v7528_v41, %v7527_v26  ;;  %v7533_v5 = vshrl.u32 %v9897_v22, 16  ;;  %9409 = vmatprep.subr.bf16.mxu1 %v9932_v63  ;;  %v7536_v3 = vshll.u32 %v9897_v22, 16 }
 0xa2e   : > { %v13784_v16 = vcombine.low %v13730_v2, %v7441_v27  ;;  %v9003_v38 = vcombine.low %v7441_v27, %v13709_v61  ;;  %v7564_v62 = vor.u32 %v7563_v53, %v7562_v43  ;;  %v9001_v55 = vcombine.low %v7441_v27, %v7441_v27  ;;  %v8259_v20 = vld [vmem:[%s14064_s20 + $0x20] sm:$0xf] }
 0xa2f   : > { %7486 = vrot.lane.b32.xlu1 %v7480_v13, %s14119_s1  ;;  %v7507_v28 = vsel %vm14141_vm2, %v7504_v50, %v7506_v18  ;;  %v13808_v35 = vsel %vm6615_vm10, %v13771_v19, %v7530_v14  ;;  %v7535_v10 = vrot.slane %v7533_v5, 7  ;;  %v7577_v50 = vrot.slane %v7575_v17, 6  ;;  %v9936_v17 = vld [vmem:[%s14061_s17 + $0xf8] sm:$0xff]  }
 0xa30   : > { %v7566_v12 = vshrl.u32 %v13784_v16, 16  ;;  %v7569_v31 = vshll.u32 %v13784_v16, 16  ;;  %7512 = vrot.lane.b32.xlu0 %v7507_v28, %s14119_s1  ;;  %v13804_v61 = vrot.slane %v9003_v38, 2  ;;  %9410 = vmatpush3.bf16.msra.mxu1 %v9933_v25  ;;  %v8992_v59 = vcombine.low %v7432_v15, %v13671_v52 }
 0xa31   : > { %v7538_v57 = vor.u32 %v7536_v3, %v7535_v10  ;;  %9411 = vmatprep.subr.bf16.mxu1 %v9934_v21  ;;  %v7581_v6 = vor.u32 %v7580_v37, %v7577_v50  ;;  %v7521_v37 = vshll.u32 %v13711_v0, 16  ;;  %v7593_v15 = vrot.slane %v13784_v16, 7 }
 0xa32   : > { %v7568_v60 = vrot.slane %v7566_v12, 6  ;;  %v7571_v7 = vrot.slane %v7569_v31, 7  ;;  %v13814_v23 = vsel %vm1454_vm1, %v7556_v30, %v13804_v61  ;;  %vm14142_vm1 = vmmov %vm14138_vm7  ;;  %v9937_v30 = vld [vmem:[%s14061_s17 + $0xb8] sm:$0xff]  }
 0xa33   : > { %7488 = vrot.lane.b32.xlu1 %v7483_v46, %s14119_s1  ;;  %v13824_v1 = vsel %vm6615_vm10, %v7527_v26, %v7538_v57  ;;  %vm14143_vm13 = vmmov %vm14142_vm1 }
 0xa34   : > { %v7572_v44 = vor.u32 %v7571_v7, %v7568_v60  ;;  %7583 = vrot.lane.b32.xlu0 %v7564_v62, %s14119_s1  ;;  %9412 = vmatpush3.bf16.msra.mxu1 %v9935_v45 }
 0xa35   : > { %9413 = vmatprep.subr.bf16.mxu1 %v9936_v17 }
 0xa36   : > { %v7573_v9 = vsel %vm14142_vm1, %v7564_v62, %v7572_v44  ;;  %v7582_v58 = vsel %vm14143_vm13, %v7572_v44, %v7581_v6 }
 0xa37   : > { %7585 = vrot.lane.b32.xlu1 %v7573_v9, %s14119_s1 }
 0xa38   : > { %7543 = vrot.lane.b32.xlu0 %v13711_v0, %s14119_s1  ;;  %9414 = vmatpush3.bf16.msra.mxu1 %v9937_v30  ;;  %v7523_v0 = vor.u32 %v7521_v37, %v13771_v19  ;;  %v9939_v19 = vld [vmem:[%s14061_s17 + $0x108] sm:$0xff]   ;;  %v9942_v37 = vld [vmem:[#allocation7 + $0x18] ss:$0 sps:$4 sm:$0x77]  }
 0xa3b   : > { %7545 = vrot.lane.b32.xlu1 %v13738_v11, %s14119_s1  ;;  %v7438_v11 = vld [vmem:[#allocation7 + $0x14] sm:$0x1] }
 0xa3c   : > { %7587 = vrot.lane.b32.xlu0 %v7582_v58, %s14119_s1  ;;  %v8996_v47 = vcombine.low %v13730_v2, %v7438_v11  ;;  %v9938_v11 = vld [vmem:[%s14061_s17 + $0x100] sm:$0xff]  }
 0xa3f   : > { %7547 = vrot.lane.b32.xlu1 %v9001_v55, %s14119_s1 }
 0xa40   : > { %8262 = vperm.xlu0 %9731, %v13549_v8   ;;  %v7495_v8 = vsel %vm1164_vm0, %v7493_v54, %v7494_v42 }
 0xa43   : > { %8267 = vperm.xlu1 %9732, %v13556_v49  }
 0xa44   : > { %8272 = vperm.xlu0 %9731, %v13561_v34   ;;  %v7496_v34 = vrot.slane %v8996_v47, 1 }
 0xa46   : > { %v7497_v26 = vsel %vm1164_vm0, %v7494_v42, %v7496_v34  ;;  %vm14144_vm0 = vmmov %vm14141_vm2 }
 0xa47   : > { %8277 = vperm.xlu1 %9732, %v13568_v33   ;;  %vm14145_vm4 = vmmov %vm14144_vm0 }
 0xa48   : > { %8282 = vperm.xlu0 %9731, %v8259_v20  }
 0xa94   : > { %v7509_v22 = vpop.permute.xlu0 %7508 }
 0xa95   : > { %v7606_v49 = vsel %vm2238_vm15, %v7495_v8, %v7509_v22 }
 0xa96   : > { %v7718_v29 = vshrl.u32 %v7606_v49, 16  ;;  %v7721_v27 = vshll.u32 %v7606_v49, 16 }
 0xa98   : > { %v7720_v43 = vrot.slane %v7718_v29, 1  ;;  %v7723_v32 = vrot.slane %v7721_v27, 2 }
 0xa9a   : > { %v7724_v31 = vor.u32 %v7723_v32, %v7720_v43 }
 0xa9d   : > { %v7511_v33 = vpop.permute.xlu1 %7510  ;;  %v7485_v41 = vpop.permute.xlu0 %7484 }
 0xa9e   : > { %v7609_v13 = vsel %vm2238_vm15, %v7497_v26, %v7511_v33  ;;  %v7599_v2 = vsel %vm2238_vm15, %v8992_v59, %v7485_v41 }
 0xa9f   : > { %v7725_v24 = vshrl.u32 %v7609_v13, 16  ;;  %v7728_v18 = vshll.u32 %v7609_v13, 16  ;;  %v7703_v36 = vshrl.u32 %v7599_v2, 16  ;;  %v7706_v53 = vshll.u32 %v7599_v2, 16 }
 0xaa1   : > { %v7727_v38 = vrot.slane %v7725_v24, 1  ;;  %v7730_v63 = vrot.slane %v7728_v18, 2  ;;  %v7487_v14 = vpop.permute.xlu1 %7486  ;;  %v7705_v25 = vrot.slane %v7703_v36, 1  ;;  %v7708_v10 = vrot.slane %v7706_v53, 2 }
 0xaa2   : > { %v7601_v52 = vsel %vm2238_vm15, %v13721_v56, %v7487_v14  ;;  %v7513_v12 = vpop.permute.xlu0 %7512  ;;  %v7592_v36 = vrot.slane %v13721_v56, 7 }
 0xaa3   : > { %v7731_v5 = vor.u32 %v7730_v63, %v7727_v38  ;;  %v7710_v28 = vshrl.u32 %v7601_v52, 16  ;;  %v7713_v46 = vshll.u32 %v7601_v52, 16  ;;  %v7612_v3 = vsel %vm2238_vm15, %v7496_v34, %v7513_v12  ;;  %v9940_v12 = vld [vmem:[%s14061_s17 + $0x110] sm:$0xff]  }
 0xaa4   : > { %v7788_v62 = vshrl.u32 %v7612_v3, 16  ;;  %v7791_v21 = vshll.u32 %v7612_v3, 16  ;;  %v7709_v58 = vor.u32 %v7708_v10, %v7705_v25 }
 0xaa5   : > { %v7712_v60 = vrot.slane %v7710_v28, 1  ;;  %v7715_v7 = vrot.slane %v7713_v46, 2  ;;  %v7489_v57 = vpop.permute.xlu1 %7488  ;;  %v7732_v50 = vsel %vm1310_vm3, %v7724_v31, %v7731_v5 }
 0xaa6   : > { %v7603_v44 = vsel %vm2238_vm15, %v13743_v48, %v7489_v57  ;;  %v7790_v9 = vrot.slane %v7788_v62, 1  ;;  %v7793_v6 = vrot.slane %v7791_v21, 2  ;;  %8090 = vmatprep.mubr.bf16.mxu0 %v7732_v50  ;;  %v7584_v30 = vpop.permute.xlu0 %7583 }
 0xaa7   : > { %v7716_v45 = vor.u32 %v7715_v7, %v7712_v60  ;;  %v7780_v17 = vshrl.u32 %v7603_v44, 16  ;;  %v7783_v55 = vshll.u32 %v7603_v44, 16  ;;  %v7624_v20 = vsel %vm2238_vm15, %v13769_v40, %v7584_v30 }
 0xaa8   : > { %v7794_v48 = vor.u32 %v7793_v6, %v7790_v9  ;;  %v7748_v42 = vshrl.u32 %v7624_v20, 16  ;;  %v7751_v47 = vshll.u32 %v7624_v20, 16  ;;  %v9941_v6 = vld [vmem:[%s14061_s17 + $0x118] sm:$0xff]  }
 0xaa9   : > { %v7586_v54 = vpop.permute.xlu1 %7585  ;;  %v7782_v22 = vrot.slane %v7780_v17, 1  ;;  %v7785_v8 = vrot.slane %v7783_v55, 2  ;;  %v7717_v34 = vsel %vm1310_vm3, %v7709_v58, %v7716_v45 }
 0xaaa   : > { %v7627_v49 = vsel %vm2238_vm15, %v13814_v23, %v7586_v54  ;;  %8091 = vmatmul.mubr.bf16.vlgmr.msra.gmra.mrb[132].mxu0 %v7717_v34  ;;  %v7544_v27 = vpop.permute.xlu0 %7543  ;;  %v7750_v59 = vrot.slane %v7748_v42, 1  ;;  %v7753_v33 = vrot.slane %v7751_v47, 2  ;;  %v7795_v41 = vsel %vm1310_vm3, %v7731_v5, %v7794_v48 }
 0xaab   : > { %v7755_v40 = vshrl.u32 %v7627_v49, 16  ;;  %v7758_v29 = vshll.u32 %v7627_v49, 16  ;;  %v7615_v26 = vsel %vm2238_vm15, %v7523_v0, %v7544_v27  ;;  %9673 = vmatpush3.bf16.msra.mxu0 %v9938_v11  ;;  %8098 = vmatprep.mubr.bf16.mxu0 %v7795_v41  ;;  %v7786_v18 = vor.u32 %v7785_v8, %v7782_v22 }
 0xaac   : > { %v7733_v2 = vshrl.u32 %v7615_v26, 16  ;;  %9674 = vmatprep.subr.bf16.mxu0 %v10002_v4  ;;  %v7736_v43 = vshll.u32 %v7615_v26, 16  ;;  %v7754_v5 = vor.u32 %v7753_v33, %v7750_v59  ;;  %v7595_v11 = vrot.slane %v9942_v37, 7 }
 0xaad   : > { %v7757_v23 = vrot.slane %v7755_v40, 1  ;;  %v7760_v13 = vrot.slane %v7758_v29, 2  ;;  %v7546_v24 = vpop.permute.xlu1 %7545  ;;  %v7787_v7 = vsel %vm1310_vm3, %v7716_v45, %v7786_v18  ;;  %v7767_v47 = vshll.u32 %v7592_v36, 16 }
 0xaae   : > { %v7618_v32 = vsel %vm2238_vm15, %v13808_v35, %v7546_v24  ;;  %v7735_v38 = vrot.slane %v7733_v2, 1  ;;  %v7588_v52 = vpop.permute.xlu0 %7587  ;;  %v7738_v28 = vrot.slane %v7736_v43, 2  ;;  %v7594_v35 = vsel %vm14144_vm0, %v7592_v36, %v7593_v15  ;;  %v9949_v2 = vld [vmem:[%s14065_s21 + $0x20] ss:$8 sps:$4 sm:$0xff]   ;;  %v9954_v24 = vld [vmem:[%s14065_s21 + $0x34] ss:$8 sps:$4 sm:$0xff]  }
 0xaaf   : > { %v7761_v53 = vor.u32 %v7760_v13, %v7757_v23  ;;  %v7740_v63 = vshrl.u32 %v7618_v32, 16  ;;  %v7743_v14 = vshll.u32 %v7618_v32, 16  ;;  %v7630_v46 = vsel %vm2238_vm15, %v13804_v61, %v7588_v52  ;;  %9675 = vmatpush3.bf16.msra.mxu0 %v9939_v19  ;;  %v9943_v19 = vld [vmem:[%s14065_s21] ss:$8 sps:$4 sm:$0xff]   ;;  %v9945_v23 = vld [vmem:[%s14065_s21 + $0x4] ss:$8 sps:$4 sm:$0xff]  }
 0xab0   : > { %v7804_v25 = vshrl.u32 %v7630_v46, 16  ;;  %v7807_v10 = vshll.u32 %v7630_v46, 16  ;;  %9676 = vmatprep.subr.bf16.mxu0 %v10002_v4  ;;  %v7739_v60 = vor.u32 %v7738_v28, %v7735_v38  ;;  %v7772_v58 = vshrl.u32 %v7594_v35, 16  ;;  %8457 = vmatprep.subr.bf16.mxu1 %v9945_v23  ;;  %v9951_v13 = vld [vmem:[%s14065_s21 + $0x24] ss:$8 sps:$4 sm:$0xff]  }
 0xab1   : > { %v7742_v56 = vrot.slane %v7740_v63, 1  ;;  %v7745_v31 = vrot.slane %v7743_v14, 2  ;;  %v7548_v3 = vpop.permute.xlu1 %7547  ;;  %v7762_v62 = vsel %vm1310_vm3, %v7754_v5, %v7761_v53  ;;  %v7775_v55 = vshll.u32 %v7594_v35, 16  ;;  %v9957_v43 = vld [vmem:[%s14065_s21 + $0x44] ss:$8 sps:$4 sm:$0xff]   ;;  %v9971_v35 = vld [vmem:[%s14068_s24 + $0x50] sm:$0xff]  }
 0xab2   : > { %v7621_v61 = vsel %vm2238_vm15, %v13824_v1, %v7548_v3  ;;  %v7806_v57 = vrot.slane %v7804_v25, 1  ;;  %v7809_v44 = vrot.slane %v7807_v10, 2  ;;  %8099 = vmatmul.mubr.bf16.gmra.mrb[136].mxu0 %v7787_v7  ;;  %8146 = vmatprep.mubr.bf16.mxu1 %v7762_v62  ;;  %v7774_v0 = vrot.slane %v7772_v58, 1  ;;  %v9955_v32 = vld [vmem:[%s14065_s21 + $0x40] ss:$8 sps:$4 sm:$0xff]   ;;  %v9974_v25 = vld [vmem:[%s14068_s24 + $0x18] sm:$0xff]  }
 0xab3   : > { %v7746_v21 = vor.u32 %v7745_v31, %v7742_v56  ;;  %v7796_v50 = vshrl.u32 %v7621_v61, 16  ;;  %v7799_v9 = vshll.u32 %v7621_v61, 16  ;;  %8106 = vmatprep.mubr.bf16.mxu0 %v7794_v48  ;;  %9677 = vmatpush3.bf16.msra.mxu0 %v9940_v12  ;;  %v7764_v48 = vshrl.u32 %v7592_v36, 16  ;;  %v9960_v36 = vld [vmem:[%s14065_s21 + $0x54] ss:$8 sps:$4 sm:$0xff]   ;;  %v9967_v5 = vld [vmem:[%s14068_s24 + $0x40] sm:$0xff]  }
 0xab4   : > { %v7810_v17 = vor.u32 %v7809_v44, %v7806_v57  ;;  %9678 = vmatprep.subr.bf16.mxu0 %v10002_v4  ;;  %v7777_v22 = vrot.slane %v7775_v55, 2  ;;  %v7596_v8 = vsel %vm14145_vm4, %v7593_v15, %v7595_v11  ;;  %v7769_v34 = vrot.slane %v7767_v47, 2  ;;  %v9963_v38 = vld [vmem:[%s14065_s21 + $0x64] ss:$8 sps:$4 sm:$0xff]   ;;  %v9961_v63 = vld [vmem:[%s14065_s21 + $0x60] ss:$8 sps:$4 sm:$0xff]  }
 0xab5   : > { %v7798_v1 = vrot.slane %v7796_v50, 1  ;;  %v7747_v45 = vsel %vm1310_vm3, %v7739_v60, %v7746_v21  ;;  %v7801_v30 = vrot.slane %v7799_v9, 2  ;;  %v7766_v49 = vrot.slane %v7764_v48, 1  ;;  %v9966_v14 = vld [vmem:[%s14065_s21 + $0x74] ss:$8 sps:$4 sm:$0xff]   ;;  %v9968_v28 = vld [vmem:[%s14068_s24] sm:$0xff]  }
 0xab6   : > { %8147 = vmatmul.mubr.bf16.vlgmr.msra.gmra.mrb[140].mxu1 %v7747_v45  ;;  %v7811_v20 = vsel %vm1310_vm3, %v7761_v53, %v7810_v17  ;;  %v7778_v40 = vor.u32 %v7777_v22, %v7774_v0  ;;  %v7813_v29 = vshrl.u32 %v7596_v8, 16  ;;  %v7816_v27 = vshll.u32 %v7596_v8, 16  ;;  %v9958_v53 = vld [vmem:[%s14065_s21 + $0x50] ss:$8 sps:$4 sm:$0xff]   ;;  %v9969_v46 = vld [vmem:[%s14068_s24 + $0x48] sm:$0xff]   ;;  %v9975_v10 = vld [vmem:[%s14068_s24 + $0x60] sm:$0xff]  }
 0xab7   : > { %v7802_v42 = vor.u32 %v7801_v30, %v7798_v1  ;;  %8154 = vmatprep.mubr.bf16.mxu1 %v7811_v20  ;;  %9679 = vmatpush3.bf16.msra.mxu0 %v9941_v6  ;;  %v7770_v59 = vor.u32 %v7769_v34, %v7766_v49  ;;  %v9964_v52 = vld [vmem:[%s14065_s21 + $0x70] ss:$8 sps:$4 sm:$0xff]   ;;  %v9970_v12 = vld [vmem:[%s14068_s24 + $0x8] sm:$0xff]   ;;  %v9976_v3 = vld [vmem:[%s14068_s24 + $0x20] sm:$0xff]  }
 0xab8   : > { %v7815_v26 = vrot.slane %v7813_v29, 1  ;;  %v7818_v41 = vrot.slane %v7816_v27, 2  ;;  %8458 = vmatpush1.bf16.msra.mxu1 %v9943_v19  ;;  %9440 = vmatprep.subr.bf16.mxu0 %v9967_v5  ;;  %v9972_v56 = vld [vmem:[%s14068_s24 + $0x10] sm:$0xff]   ;;  %v9973_v31 = vld [vmem:[%s14068_s24 + $0x58] sm:$0xff]   ;;  %v9977_v60 = vld [vmem:[%s14068_s24 + $0x68] sm:$0xff]  }
 0xab9   : > { %v7803_v54 = vsel %vm1310_vm3, %v7746_v21, %v7802_v42  ;;  %v7779_v33 = vsel %vm1310_vm3, %v7770_v59, %v7778_v40  ;;  %v9047_v23 = vld [vmem:[%s14063_s19] ss:$0 sm:$0xff] }
 0xaba   : > { %8107 = vmatmul.mubr.bf16.gmra.mrb[140].mxu0 %v7786_v18  ;;  %v7819_v16 = vor.u32 %v7818_v41, %v7815_v26  ;;  %v9952_v18 = vld [vmem:[%s14065_s21 + $0x30] ss:$8 sps:$4 sm:$0xff]   ;;  %v9046_v41 = vld [vmem:[%s14062_s18] ss:$0 sm:$0xff] }
 0xabb   : > { %9680 = vmatprep.mubr.msk.bf16.mxu0 %vm14124_vm14, %v10002_v4 }
 0xabc   : > { %v7820_v15 = vsel %vm1310_vm3, %v7778_v40, %v7819_v16 }
 0xabe   : > { %8155 = vmatmul.mubr.bf16.gmra.mrb[144].mxu1 %v7803_v54 }
 0xabf   : > { %8162 = vmatprep.mubr.bf16.mxu1 %v7810_v17  ;;  %v8263_v5 = vpop.permute.xlu0 %8262 }
 0xac2   : > { %9681 = vmatmul.mubr.msk.bf16.vlgmr.msra.gmra.mrb[144].mxu0 %vm2238_vm15, %v7779_v33 }
 0xac3   : > { %9684 = vmatprep.mubr.msk.bf16.mxu0 %vm14124_vm14, %v10002_v4  ;;  %9441 = vmatpush3.bf16.msra.mxu0 %v9968_v28 }
 0xac4   : > { %9442 = vmatprep.subr.bf16.mxu0 %v9969_v46 }
 0xac6   : > { %8163 = vmatmul.mubr.bf16.gmra.mrb[148].mxu1 %v7802_v42 }
 0xac7   : > { %8489 = vmatprep.mubr.bf16.mxu1 %v10004_v39  ;;  %v9948_v39 = vld [vmem:[%s14065_s21 + $0x14] ss:$8 sps:$4 sm:$0xff]   ;;  %9443 = vmatpush3.bf16.msra.mxu0 %v9970_v12 }
 0xac8   : > { %8459 = vmatprep.subr.bf16.mxu1 %v9948_v39  ;;  %9444 = vmatprep.subr.bf16.mxu0 %v9971_v35 }
 0xaca   : > { %9685 = vmatmul.mubr.msk.bf16.gmra.mrb[148].mxu0 %vm2238_vm15, %v7820_v15 }
 0xacb   : > { %9688 = vmatprep.mubr.msk.bf16.mxu0 %vm14124_vm14, %v10002_v4  ;;  %v9946_v4 = vld [vmem:[%s14065_s21 + $0x10] ss:$8 sps:$4 sm:$0xff]   ;;  %9445 = vmatpush3.bf16.msra.mxu0 %v9972_v56 }
 0xacc   : > { %8460 = vmatpush1.bf16.msra.mxu1 %v9946_v4  ;;  %9446 = vmatprep.subr.bf16.mxu0 %v9973_v31  ;;  %v8268_v31 = vpop.permute.xlu1 %8267 }
 0xacd   : > { %8461 = vmatprep.subr.bf16.mxu1 %v9951_v13 }
 0xacf   : > { %9447 = vmatpush3.bf16.msra.mxu0 %v9974_v25 }
 0xad0   : > { %8462 = vmatpush1.bf16.msra.mxu1 %v9949_v2  ;;  %9448 = vmatprep.subr.bf16.mxu0 %v9975_v10 }
 0xad1   : > { %8463 = vmatprep.subr.bf16.mxu1 %v9954_v24 }
 0xad2   : > { %9689 = vmatmul.mubr.msk.bf16.gmra.mrb[152].mxu0 %vm2238_vm15, %v7819_v16 }
 0xad3   : > { %9449 = vmatpush3.bf16.msra.mxu0 %v9976_v3 }
 0xad4   : > { %8464 = vmatpush1.bf16.msra.mxu1 %v9952_v18  ;;  %9450 = vmatprep.subr.bf16.mxu0 %v9977_v60 }
 0xad5   : > { %8465 = vmatprep.subr.bf16.mxu1 %v9957_v43 }
 0xad8   : > { %8466 = vmatpush1.bf16.msra.mxu1 %v9955_v32 }
 0xad9   : > { %8467 = vmatprep.subr.bf16.mxu1 %v9960_v36 }
 0xadc   : > { %8468 = vmatpush1.bf16.msra.mxu1 %v9958_v53 }
 0xadd   : > { %8469 = vmatprep.subr.bf16.mxu1 %v9963_v38 }
 0xae0   : > { %8470 = vmatpush1.bf16.msra.mxu1 %v9961_v63 }
 0xae1   : > { %8471 = vmatprep.subr.bf16.mxu1 %v9966_v14 }
 0xae4   : > { %8472 = vmatpush1.bf16.msra.mxu1 %v9964_v52 }
 0xb7d   : > { %v9381_v61 = vpop.f32.mrb[132].mxu0 }
 0xb7e   : > { %v9382_v7 = vpop.f32.mrb[133].mxu0 }
 0xb7f   : > { %v9383_v62 = vadd.f32 %v9382_v7, %v9381_v61  ;;  %v9384_v21 = vpop.f32.mrb[134].mxu0 }
 0xb80   : > { %v9385_v57 = vpop.f32.mrb[135].mxu0 }
 0xb81   : > { %v9386_v44 = vadd.f32 %v9385_v57, %v9384_v21 }
 0xb85   : > { %v9387_v50 = vpop.f32.mrb[136].mxu0 }
 0xb86   : > { %v9388_v37 = vpop.f32.mrb[137].mxu0 }
 0xb87   : > { %v9389_v9 = vadd.f32 %v9388_v37, %v9387_v50  ;;  %v9390_v6 = vpop.f32.mrb[138].mxu0 }
 0xb88   : > { %v9391_v17 = vpop.f32.mrb[139].mxu0 }
 0xb89   : > { %v9415_v1 = vpop.f32.mrb[140].mxu1  ;;  %v9392_v45 = vadd.f32 %v9391_v17, %v9390_v6  ;;  %v8273_v17 = vpop.permute.xlu0 %8272 }
 0xb8a   : > { %v9416_v30 = vpop.f32.mrb[141].mxu1 }
 0xb8b   : > { %v9417_v58 = vadd.f32 %v9416_v30, %v9415_v1  ;;  %v9418_v55 = vpop.f32.mrb[142].mxu1 }
 0xb8c   : > { %v9419_v20 = vpop.f32.mrb[143].mxu1 }
 0xb8d   : > { %v9420_v11 = vadd.f32 %v9419_v20, %v9418_v55  ;;  %v8149_v42 = vadd.f32 %v9417_v58, %v9383_v62  ;;  %v9393_v48 = vpop.f32.mrb[140].mxu0  ;;  %v8278_v20 = vpop.permute.xlu1 %8277 }
 0xb8e   : > { %v9394_v47 = vpop.f32.mrb[141].mxu0 }
 0xb8f   : > { %v8152_v54 = vadd.f32 %v9420_v11, %v9386_v44  ;;  %v9395_v0 = vadd.f32 %v9394_v47, %v9393_v48  ;;  %v9396_v22 = vpop.f32.mrb[142].mxu0 }
 0xb90   : > { %v9397_v8 = vpop.f32.mrb[143].mxu0 }
 0xb91   : > { %v9421_v49 = vpop.f32.mrb[144].mxu1 }
 0xb92   : > { %v9422_v34 = vpop.f32.mrb[145].mxu1 }
 0xb93   : > { %v9423_v40 = vadd.f32 %v9422_v34, %v9421_v49  ;;  %v9424_v29 = vpop.f32.mrb[146].mxu1 }
 0xb94   : > { %v9425_v27 = vpop.f32.mrb[147].mxu1 }
 0xb95   : > { %v9426_v59 = vadd.f32 %v9425_v27, %v9424_v29  ;;  %v8157_v33 = vadd.f32 %v9423_v40, %v9389_v9  ;;  %v8204_v26 = vpop.f32.mrb[144].mxu0 }
 0xb96   : > { %v8205_v16 = vadd.f32 %v8204_v26, %v8149_v42  ;;  %v9682_v15 = vpop.f32.mrb[145].mxu0 }
 0xb97   : > { %v8160_v19 = vadd.f32 %v9426_v59, %v9392_v45  ;;  %v8207_v39 = vpop.f32.mrb[146].mxu0 }
 0xb98   : > { %v8233_v4 = vmul.f32 %v9046_v41, %v8205_v16  ;;  %v8208_v13 = vadd.f32 %v8207_v39, %v8152_v54  ;;  %v9683_v2 = vpop.f32.mrb[147].mxu0 }
 0xb99   : > { %v9427_v24 = vpop.f32.mrb[148].mxu1 }
 0xb9a   : > { %v9428_v18 = vpop.f32.mrb[149].mxu1  ;;  %v8245_v43 = vadd.f32 %v9047_v23, %v8233_v4  ;;  %v8234_v32 = vmul.f32 %v9046_v41, %v8208_v13 }
 0xb9b   : > { %v9429_v36 = vadd.f32 %v9428_v18, %v9427_v24  ;;  %v9430_v53 = vpop.f32.mrb[150].mxu1 }
 0xb9c   : > { %v9431_v38 = vpop.f32.mrb[151].mxu1  ;;  %v8250_v63 = vmax.f32 %v8245_v43, 0.0  ;;  %v8246_v14 = vadd.f32 %v9047_v23, %v8234_v32  ;;  %v8339_v53 = vld [vmem:[#allocation8 + $0x18] sm:$0xf] }
 0xb9d   : > { %v8165_v52 = vadd.f32 %v9429_v36, %v9395_v0  ;;  %v8212_v28 = vpop.f32.mrb[148].mxu0 }
 0xb9e   : > { %v8285_v46 = vmul.f32 %v8263_v5, %v8250_v63  ;;  %v8251_v12 = vmax.f32 %v8246_v14, 0.0  ;;  %v8213_v35 = vadd.f32 %v8212_v28, %v8157_v33  ;;  %v9686_v56 = vpop.f32.mrb[149].mxu0  ;;  %v8283_v33 = vpop.permute.xlu0 %8282 }
 0xb9f   : > { %v8215_v25 = vpop.f32.mrb[150].mxu0 }
 0xba0   : > { %v9098_v10 = vpack.c.bf16 %v8285_v46, %v8285_v46  ;;  %v8286_v3 = vmul.f32 %v8268_v31, %v8251_v12  ;;  %v8235_v60 = vmul.f32 %v9046_v41, %v8213_v35  ;;  %v8216_v61 = vadd.f32 %v8215_v25, %v8160_v19  ;;  %v9687_v7 = vpop.f32.mrb[151].mxu0 }
 0xba1   : > { %v9980_v7 = vld [vmem:[%s14068_s24 + $0x30] sm:$0xff]  }
 0xba2   : > { %v8308_v62 = vrot.slane %v9098_v10, 7  ;;  %v9099_v21 = vpack.c.bf16 %v8286_v3, %v8286_v3  ;;  %v8247_v57 = vadd.f32 %v9047_v23, %v8235_v60  ;;  %v8236_v44 = vmul.f32 %v9046_v41, %v8216_v61  ;;  %v9978_v60 = vld [vmem:[%s14068_s24 + $0x28] sm:$0xff]   ;;  %v9979_v61 = vld [vmem:[%s14068_s24 + $0x70] sm:$0xff]  }
 0xba3   : > { %9451 = vmatpush3.bf16.msra.mxu0 %v9978_v60 }
 0xba4   : > { %v8309_v50 = vrot.slane %v8308_v62, 4  ;;  %8326 = vst [vmem:[#allocation8 + $0x4] sm:$0xe] %v8308_v62  ;;  %v8310_v37 = vrot.slane %v9099_v21, 7  ;;  %v8252_v9 = vmax.f32 %v8247_v57, 0.0  ;;  %v8248_v6 = vadd.f32 %v9047_v23, %v8236_v44  ;;  %9452 = vmatprep.subr.bf16.mxu0 %v9979_v61  ;;  %v9981_v62 = vld [vmem:[%s14068_s24 + $0x78] sm:$0xff]  }
 0xba5   : > { %v8220_v1 = vpop.f32.mrb[152].mxu0  ;;  %v9982_v21 = vld [vmem:[%s14068_s24 + $0x38] sm:$0xff]   ;;  %v8500_v57 = vlaneseq }
 0xba6   : > { %v8311_v45 = vsel %vm13363_vm9, %v8309_v50, %v8310_v37  ;;  %v8287_v30 = vmul.f32 %v8273_v17, %v8252_v9  ;;  %v8253_v58 = vmax.f32 %v8248_v6, 0.0  ;;  %v9690_v55 = vpop.f32.mrb[153].mxu0  ;;  %v8221_v11 = vadd.f32 %v8220_v1, %v8165_v52  ;;  %v8512_v6 = vld [vmem:[%s14067_s23] sm:$0x3] }
 0xba7   : > { %8327 = vst [vmem:[#allocation8 + $0x8] sm:$0xf] %v8311_v45  ;;  %v8223_v42 = vpop.f32.mrb[154].mxu0  ;;  %v8312_v22 = vrot.slane %v8310_v37, 4  ;;  %v8346_v52 = vunpack.c.l.bf16 %v8339_v53  ;;  %9453 = vmatpush3.bf16.msra.mxu0 %v9980_v7  ;;  %v8501_v44 = vshrl.u32 %v8500_v57, 7 }
 0xba8   : > { %v9100_v48 = vpack.c.bf16 %v8287_v30, %v8287_v30  ;;  %v8288_v47 = vmul.f32 %v8278_v20, %v8253_v58  ;;  %v9691_v54 = vpop.f32.mrb[155].mxu0  ;;  %v8237_v0 = vmul.f32 %v9046_v41, %v8221_v11  ;;  %9454 = vmatprep.subr.bf16.mxu0 %v9981_v62  ;;  %v8498_v37 = vld [vmem:[%s14066_s22] sm:$0x3] }
 0xba9   : > { %v8502_v50 = vsub.s32 0, %v8501_v44  ;;  %v8506_v9 = vsub.s32 1, %v8501_v44 }
 0xbaa   : > { %v8313_v8 = vrot.slane %v9100_v48, 7  ;;  %v9101_v49 = vpack.c.bf16 %v8288_v47, %v8288_v47  ;;  %v8249_v34 = vadd.f32 %v9047_v23, %v8237_v0 }
 0xbab   : > { %v9104_v19 = vld [vmem:[#allocation8] sm:$0xff]   ;;  %9455 = vmatpush3.bf16.msra.mxu0 %v9982_v21  ;;  %v8503_v17 = vrot.slane %v8498_v37, %v8502_v50  ;;  %v8507_v1 = vrot.slane %v8498_v37, %v8506_v9  ;;  %v8517_v45 = vrot.slane %v8512_v6, %v8502_v50  ;;  %v8521_v58 = vrot.slane %v8512_v6, %v8506_v9 }
 0xbac   : > { %v8314_v40 = vsel %vm13363_vm9, %v8312_v22, %v8313_v8  ;;  %v8315_v29 = vrot.slane %v8313_v8, 4  ;;  %v8316_v27 = vrot.slane %v9101_v49, 7  ;;  %v8254_v59 = vmax.f32 %v8249_v34, 0.0 }
 0xbad   : > { %8328 = vst [vmem:[#allocation8 + $0xc] sm:$0xf] %v8314_v40  ;;  %v9105_v4 = vunpack.c.l.bf16 %v9104_v19  ;;  %v9106_v13 = vunpack.c.h.bf16 %v9104_v19  ;;  %v9069_v40 = vld [vmem:[%s14069_s25] ss:$0 sm:$0xff] }
 0xbae   : > { %v8317_v26 = vsel %vm13363_vm9, %v8315_v29, %v8316_v27  ;;  %v8289_v16 = vmul.f32 %v8283_v33, %v8254_v59  ;;  %v8318_v41 = vrot.slane %v8316_v27, 4 }
 0xbaf   : > { %8329 = vst [vmem:[#allocation8 + $0x10] sm:$0xf] %v8317_v26  ;;  %v8347_v18 = vadd.f32 %v9106_v13, %v9105_v4 }
 0xbb0   : > { %v9102_v15 = vpack.c.bf16 %v8289_v16, %v8289_v16 }
 0xbb2   : > { %v8319_v39 = vrot.slane %v9102_v15, 7 }
 0xbb4   : > { %v9115_v23 = vld [vmem:[#allocation8 + $0x8] sm:$0xff]   ;;  %v8320_v2 = vsel %vm13363_vm9, %v8318_v41, %v8319_v39 }
 0xbb5   : > { %8330 = vst [vmem:[#allocation8 + $0x14] sm:$0x7] %v8320_v2  ;;  %v9109_v24 = vunpack.c.l.bf16 %v9115_v23  ;;  %v9110_v32 = vunpack.c.h.bf16 %v9115_v23 }
 0xbb7   : > { %v8348_v43 = vadd.f32 %v9109_v24, %v8347_v18 }
 0xbb9   : > { %v8349_v63 = vadd.f32 %v9110_v32, %v8348_v43 }
 0xbbc   : > { %v9116_v36 = vld [vmem:[#allocation8 + $0x10] sm:$0xff]  }
 0xbbd   : > { %v9113_v38 = vunpack.c.l.bf16 %v9116_v36  ;;  %v9114_v14 = vunpack.c.h.bf16 %v9116_v36 }
 0xbbf   : > { %v8350_v5 = vadd.f32 %v9113_v38, %v8349_v63 }
 0xbc1   : > { %v8351_v28 = vadd.f32 %v9114_v14, %v8350_v5 }
 0xbc3   : > { %v8352_v46 = vadd.f32 %v8351_v28, %v8346_v52 }
 0xbc5   : > { %v8353_v12 = vrot.slane %v8352_v46, 4 }
 0xbc7   : > { %v8354_v35 = vadd.f32 %v8353_v12, %v8352_v46 }
 0xbc9   : > { %v8355_v56 = vrot.slane %v8354_v35, 2 }
 0xbcb   : > { %v8356_v31 = vadd.f32 %v8355_v56, %v8354_v35 }
 0xbcd   : > { %v8357_v51 = vrot.slane %v8356_v31, 1 }
 0xbcf   : > { %v8358_v25 = vadd.f32 %v8357_v51, %v8356_v31 }
 0xbd1   : > { %v8359_v10 = vmul.f32 0.0625, %v8358_v25 }
 0xbd3   : > { %v8360_v3 = vpack.c.bf16 %v8359_v10, %v8359_v10 }
 0xbd5   : > { %8490 = vmatmul.mubr.bf16.vlgmr.msra.gmra.mrb[152].mxu1 %v8360_v3 }
 0xca8   : > { %v8491_v30 = vpop.f32.mrb[152].mxu1 }
 0xca9   : > { %v8510_v55 = vmul.f32 %v8503_v17, %v8491_v30  ;;  %v8493_v20 = vpop.f32.mrb[153].mxu1 }
 0xcaa   : > { %v8511_v11 = vmul.f32 %v8507_v1, %v8493_v20  ;;  %v8495_v42 = vpop.f32.mrb[154].mxu1 }
 0xcab   : > { %v8524_v48 = vadd.f32 %v8517_v45, %v8510_v55  ;;  %v8496_v47 = vpop.f32.mrb[155].mxu1 }
 0xcac   : > { %v8525_v54 = vadd.f32 %v8521_v58, %v8511_v11 }
 0xcad   : > { %v8526_v0 = vmax.f32 %v8524_v48, 0.0 }
 0xcae   : > { %v8527_v22 = vmax.f32 %v8525_v54, 0.0 }
 0xcaf   : > { %v8528_v49 = vpack.c.bf16 %v8526_v0, %v8526_v0 }
 0xcb0   : > { %v8529_v8 = vpack.c.bf16 %v8527_v22, %v8527_v22 }
 0xcb2   : > { %8697 = vmatprep.mubr.bf16.mxu0 %v8529_v8 }
 0xcb3   : > { %8698 = vmatmul.mubr.bf16.vlgmr.msra.gmra.mrb[156].mxu0 %v8528_v49 }
 0xd86   : > { %v9456_v34 = vpop.f32.mrb[156].mxu0 }
 0xd87   : > { %v9457_v29 = vpop.f32.mrb[157].mxu0 }
 0xd88   : > { %v9458_v27 = vadd.f32 %v9457_v29, %v9456_v34  ;;  %v9459_v59 = vpop.f32.mrb[158].mxu0 }
 0xd89   : > { %v9460_v33 = vpop.f32.mrb[159].mxu0 }
 0xd8a   : > { %v8700_v26 = vadd.f32 %v9458_v27, %v9069_v40 }
 0xd8c   : > { %8705 = vst [vmem:[%s789_s29] sm:$0xff] %v8700_v26 }
 0xd8d PF: > { %s36_s27 = sadd.s32 1, %s9992_s27  }
 0xd8e   : > { %p33_p4 = scmp.ge.s32.totalorder %s36_s27, 4  }
 0xd90   :  { %35 = sbr.rel (!%p33_p4) target bundleno = 12 (0xc), region = 154 }

</bundles_post_ra>
